<compile_context>
chip_gen: v7x
topology: tpu7x:2x2x1
jax: 0.10.0
libtpu: 0.0.40
codegen_flags: <defaults>
</compile_context>

<pallas_src>
import functools

import jax
import jax.numpy as jnp
from jax import lax
from jax.experimental import pallas as pl
from jax.experimental.pallas import tpu as pltpu

# High-precision matmuls/convs everywhere (reference path included) so the
# pure-JAX reference matches the f32-accumulating Pallas kernels.
jax.config.update("jax_default_matmul_precision", "highest")


# ---------------------------------------------------------------------------
# Kernel 1: fused grouped 3x3x3 convolutions (to_q, to_k, to_v)
# ---------------------------------------------------------------------------
def _qkv_conv_kernel(xe_ref, xo_ref, le_ref, lo_ref,
                     wqe_ref, wqo_ref, wke_ref, wko_ref, wve_ref, wvo_ref,
                     q_ref, k_ref, v_ref, *, Bf, Bp):
    """One batch element per grid step.

    xe/xo/le/lo : (1, 9*Bp, H, W*C2) -- even/odd input channels of x / last,
                  pre-shifted over the 9 (dy,dx) stencil offsets, depth padded.
    w*e / w*o   : (27, W*C2)        -- per-tap per-channel weights (tiled over W).
    q/k/v       : (1, Bf, H, W*C2)  -- conv outputs, channels-last, lane-dense.
    """
    def run(se_ref, so_ref, we_ref, wo_ref, out_ref):
        acc = jnp.zeros(out_ref.shape[1:], jnp.float32)        # (Bf, H, W*C2)
        for dz in range(3):
            for dy in range(3):
                for dx in range(3):
                    t = dz * 9 + dy * 3 + dx
                    base = (dy * 3 + dx) * Bp + dz
                    se = se_ref[0, base:base + Bf, :, :]
                    so = so_ref[0, base:base + Bf, :, :]
                    acc = acc + se * we_ref[t] + so * wo_ref[t]
        out_ref[0] = acc

    run(xe_ref, xo_ref, wqe_ref, wqo_ref, q_ref)   # q = to_q(x)
    run(le_ref, lo_ref, wke_ref, wko_ref, k_ref)   # k = to_k(last)
    run(le_ref, lo_ref, wve_ref, wvo_ref, v_ref)   # v = to_v(last)


# ---------------------------------------------------------------------------
# Kernel 2: fused windowed attention (Attention + attn @ v + folded to_out)
# ---------------------------------------------------------------------------
def _sca_attention_kernel(q_ref, k_ref, v_ref, pqk_ref, w1_ref, w2aT_ref,
                          w2b_ref, o_ref):
    """A block of `gb` independent (window, head, frame) groups per grid step.

    q_ref, k_ref : (gb, n, d)     head-split query / key tokens
    v_ref        : (gb, n, 2d)    value tokens, channels duplicated & pre-scaled
                                  by the to_out 1x1 grouped-conv weights
    pqk_ref      : (4, d)         rows: pc_proj_q.w, pc_proj_k.w, bias_q, bias_k
    w1_ref       : (1, n)         mlp1 weight
    w2aT_ref     : (n, n)         mlp2[0].weight, transposed (in, out)
    w2b_ref      : (1, n)         mlp2[2].weight
    o_ref        : (gb, n, 2d)    post-to_out output tokens
    """
    f32 = jnp.float32
    q = q_ref[...].astype(f32)
    k = k_ref[...].astype(f32)
    v = v_ref[...].astype(f32)
    gb, n, _ = q.shape

    wq = pqk_ref[0:1, :][None]                 # (1, 1, d)
    wk = pqk_ref[1:2, :][None]
    bq = pqk_ref[2:3, 0:1][None]               # (1, 1, 1)
    bk = pqk_ref[3:4, 0:1][None]

    sigma_q = jnp.sum(q * wq, axis=-1, keepdims=True) + bq      # (gb, n, 1)
    sigma_k = jnp.sum(k * wk, axis=-1, keepdims=True) + bk      # (gb, n, 1)

    # raw similarity -> threshold path
    sim = jnp.einsum('gid,gjd->gij', q, k, preferred_element_type=f32)
    row = lax.broadcasted_iota(jnp.int32, (gb, n, n), 1)
    col = lax.broadcasted_iota(jnp.int32, (gb, n, n), 2)
    sim_nodiag = jnp.where(row == col, 0.0, sim)

    t1 = jnp.sum(sim_nodiag * w1_ref[...][None], axis=-1)       # (gb, n)   mlp1
    h1 = jnp.dot(t1, w2aT_ref[...], preferred_element_type=f32)  # (gb, n)   mlp2[0]
    h1 = jnp.where(h1 >= 0, h1, 0.1 * h1)                        # LeakyReLU(0.1)
    theta = jnp.sum(h1 * w2b_ref[...], axis=-1, keepdims=True)   # (gb, 1)   mlp2[2]
    theta = theta[:, :, None]                                    # (gb, 1, 1)

    # sim * (Sigma_q Sigma_k^T), computed without any in-kernel transposes
    simS = jnp.einsum('gid,gjd->gij', q * sigma_q, k * sigma_k,
                      preferred_element_type=f32)

    m = jnp.max(simS, axis=-1, keepdims=True)
    e = jnp.exp(simS - m)
    att = e / jnp.sum(e, axis=-1, keepdims=True)
    att = att * (simS > theta).astype(f32)

    out = jnp.einsum('gij,gjd->gid', att, v, preferred_element_type=f32)
    o_ref[...] = out.astype(o_ref.dtype)


# ---------------------------------------------------------------------------
# Wrapper
# ---------------------------------------------------------------------------
def sca_forward(x, last, params, *, dim, dim_head, window=(8, 8), gb=4):
    """x, last: (b, dim, Bf, H, W) float32. Returns (b, dim, Bf, H, W)."""
    f32 = jnp.float32
    b, c, Bf, H, W = x.shape
    b0, b1 = window
    assert c == dim and dim % 2 == 0 and dim % dim_head == 0 and dim_head % 2 == 0
    assert H % b0 == 0 and W % b1 == 0
    C2 = dim // 2
    heads = dim // dim_head            # heads_qk == heads_v (sq_dim == dim)
    d_att = dim_head // 2
    n_tok = b0 * b1
    hh, ww = H // b0, W // b1
    Bp = Bf + 2

    # ---- stage 1: grouped 3x3x3 convs (to_q / to_k / to_v) ------------------
    def split_shift(t):
        tcl = jnp.transpose(t, (0, 2, 3, 4, 1)).astype(f32)      # (b, Bf, H, W, dim)
        te, to = tcl[..., 0::2], tcl[..., 1::2]                  # even / odd channels

        def stack(u):
            up = jnp.pad(u, ((0, 0), (1, 1), (1, 1), (1, 1), (0, 0)))
            sh = [up[:, :, dy:dy + H, dx:dx + W, :]
                  for dy in range(3) for dx in range(3)]
            s = jnp.stack(sh, axis=1)                            # (b, 9, Bp, H, W, C2)
            return s.reshape(b, 9 * Bp, H, W * C2)
        return stack(te), stack(to)

    xe, xo = split_shift(x)
    le, lo = split_shift(last)

    def pack_w(wc):                                              # (C2, 2, 3, 3, 3)
        we = jnp.transpose(wc[:, 0].reshape(C2, 27), (1, 0))     # (27, C2)
        wo = jnp.transpose(wc[:, 1].reshape(C2, 27), (1, 0))
        return (jnp.tile(we, (1, W)).astype(f32),
                jnp.tile(wo, (1, W)).astype(f32))                # (27, W*C2)

    wqe, wqo = pack_w(params['wq'])
    wke, wko = pack_w(params['wk'])
    wve, wvo = pack_w(params['wv'])

    stack_spec = pl.BlockSpec((1, 9 * Bp, H, W * C2), lambda i: (i, 0, 0, 0))
    wspec = pl.BlockSpec((27, W * C2), lambda i: (0, 0))
    cout_spec = pl.BlockSpec((1, Bf, H, W * C2), lambda i: (i, 0, 0, 0))
    cout_shape = jax.ShapeDtypeStruct((b, Bf, H, W * C2), f32)

    q_cl, k_cl, v_cl = pl.pallas_call(
        functools.partial(_qkv_conv_kernel, Bf=Bf, Bp=Bp),
        out_shape=(cout_shape, cout_shape, cout_shape),
        grid_spec=pltpu.PrefetchScalarGridSpec(
            num_scalar_prefetch=0,
            grid=(b,),
            in_specs=[stack_spec] * 4 + [wspec] * 6,
            out_specs=(cout_spec, cout_spec, cout_spec),
        ),
        compiler_params=pltpu.CompilerParams(dimension_semantics=("parallel",)),
    )(xe, xo, le, lo, wqe, wqo, wke, wko, wve, wvo)

    q5 = q_cl.reshape(b, Bf, H, W, C2)
    k5 = k_cl.reshape(b, Bf, H, W, C2)
    v5 = v_cl.reshape(b, Bf, H, W, C2)

    # ---- stage 2: window partition + heads (layout glue) --------------------
    def windows_heads(t):                        # -> (bw, heads, Bf, n, d_att)
        u = t.reshape(b, Bf, hh, b0, ww, b1, C2)
        u = jnp.transpose(u, (0, 2, 4, 3, 5, 1, 6))
        u = u.reshape(b * hh * ww, n_tok, Bf, heads, d_att)
        return jnp.transpose(u, (0, 3, 2, 1, 4))

    G = b * hh * ww * heads * Bf
    qg = windows_heads(q5).reshape(G, n_tok, d_att)
    kg = windows_heads(k5).reshape(G, n_tok, d_att)

    # fold to_out (1x1x1 grouped conv) into v: duplicate + pre-scale channels
    vh = windows_heads(v5)
    wout_hd = params['w_out'].reshape(heads, d_att, 2).astype(f32)
    v2 = (vh[..., None] * wout_hd[None, :, None, None, :, :]
          ).reshape(G, n_tok, 2 * d_att)

    # pad the group axis to a multiple of the block size (no divisibility assert)
    gb = max(1, gb)
    Gp = ((G + gb - 1) // gb) * gb
    if Gp != G:
        padg = Gp - G
        qg = jnp.pad(qg, ((0, padg), (0, 0), (0, 0)))
        kg = jnp.pad(kg, ((0, padg), (0, 0), (0, 0)))
        v2 = jnp.pad(v2, ((0, padg), (0, 0), (0, 0)))

    pqk = jnp.concatenate([
        params['pc_q_w'].reshape(1, d_att).astype(f32),
        params['pc_k_w'].reshape(1, d_att).astype(f32),
        jnp.full((1, d_att), params['bias_q'], dtype=f32),
        jnp.full((1, d_att), params['bias_k'], dtype=f32),
    ], axis=0)
    w1 = params['mlp1_w'].reshape(1, n_tok).astype(f32)
    w2aT = jnp.transpose(params['mlp2a_w']).astype(f32)          # (in, out)
    w2b = params['mlp2b_w'].reshape(1, n_tok).astype(f32)

    d2 = 2 * d_att
    att_out = pl.pallas_call(
        _sca_attention_kernel,
        out_shape=jax.ShapeDtypeStruct((Gp, n_tok, d2), f32),
        grid_spec=pltpu.PrefetchScalarGridSpec(
            num_scalar_prefetch=0,
            grid=(Gp // gb,),
            in_specs=[
                pl.BlockSpec((gb, n_tok, d_att), lambda i: (i, 0, 0)),
                pl.BlockSpec((gb, n_tok, d_att), lambda i: (i, 0, 0)),
                pl.BlockSpec((gb, n_tok, d2), lambda i: (i, 0, 0)),
                pl.BlockSpec((4, d_att), lambda i: (0, 0)),
                pl.BlockSpec((1, n_tok), lambda i: (0, 0)),
                pl.BlockSpec((n_tok, n_tok), lambda i: (0, 0)),
                pl.BlockSpec((1, n_tok), lambda i: (0, 0)),
            ],
            out_specs=pl.BlockSpec((gb, n_tok, d2), lambda i: (i, 0, 0)),
        ),
        compiler_params=pltpu.CompilerParams(dimension_semantics=("parallel",)),
    )(qg, kg, v2, pqk, w1, w2aT, w2b)

    att_out = att_out[:G]

    # ---- stage 3: un-window back to (b, dim, Bf, H, W) -----------------------
    o = att_out.reshape(b, hh, ww, heads, Bf, b0, b1, d2)
    o = jnp.transpose(o, (0, 3, 7, 4, 1, 5, 2, 6))
    return o.reshape(b, dim, Bf, H, W)


# ---------------------------------------------------------------------------
# Pure-JAX reference (mirrors the PyTorch module exactly)
# ---------------------------------------------------------------------------
def sca_reference(x, last, params, *, dim, dim_head, window=(8, 8)):
    f32 = jnp.float32
    b, c, Bf, H, W = x.shape
    C2 = dim // 2
    heads = dim // dim_head
    d_att = dim_head // 2
    b0, b1 = window
    n_tok = b0 * b1
    hh, ww = H // b0, W // b1

    def gconv(inp, w):
        return lax.conv_general_dilated(
            inp.astype(f32), w.astype(f32),
            window_strides=(1, 1, 1),
            padding=((1, 1), (1, 1), (1, 1)),
            dimension_numbers=('NCDHW', 'OIDHW', 'NCDHW'),
            feature_group_count=C2)

    q = gconv(x, params['wq'])
    k = gconv(last, params['wk'])
    v = gconv(last, params['wv'])

    def part(t):                                  # -> (bw, heads, Bf, n, d)
        u = t.reshape(b, C2, Bf, hh, b0, ww, b1)
        u = jnp.transpose(u, (0, 3, 5, 4, 6, 2, 1))
        u = u.reshape(b * hh * ww, n_tok, Bf, heads, d_att)
        return jnp.transpose(u, (0, 3, 2, 1, 4))

    qh, kh, vh = part(q), part(k), part(v)

    sig_q = jnp.einsum('whbnd,d->whbn', qh,
                       params['pc_q_w'].reshape(d_att)) + params['bias_q']
    sig_k = jnp.einsum('whbnd,d->whbn', kh,
                       params['pc_k_w'].reshape(d_att)) + params['bias_k']
    sim = jnp.einsum('whbid,whbjd->whbij', qh, kh)
    Sigma = sig_q[..., :, None] * sig_k[..., None, :]
    eye = jnp.eye(n_tok, dtype=bool)
    sim_nodiag = jnp.where(eye, 0.0, sim)
    t1 = jnp.einsum('whbij,j->whbi', sim_nodiag, params['mlp1_w'].reshape(n_tok))
    h1 = jnp.einsum('whbi,pi->whbp', t1, params['mlp2a_w'])
    h1 = jnp.where(h1 >= 0, h1, 0.1 * h1)
    theta = jnp.einsum('whbp,p->whb', h1,
                       params['mlp2b_w'].reshape(n_tok))[..., None, None]
    simS = sim * Sigma
    att = jax.nn.softmax(simS, axis=-1) * (simS > theta)
    out = jnp.einsum('whbij,whbjd->whbid', att, vh)

    out = jnp.transpose(out, (0, 3, 2, 1, 4)).reshape(b * hh * ww, n_tok, Bf, C2)
    out = out.reshape(b, hh, ww, b0, b1, Bf, C2)
    out = jnp.transpose(out, (0, 6, 5, 1, 3, 2, 4)).reshape(b, C2, Bf, H, W)
    out = jnp.repeat(out, 2, axis=1) * params['w_out'].reshape(1, dim, 1, 1, 1)
    return out


if __name__ == "__main__":
    # Small demo config consistent with the module (sq_dim == dim so that
    # heads_qk == heads_v, as required by the einsum in SCA.cal_attention).
    dim, dim_head = 32, 16
    window = (8, 8)
    b, Bf, H, W = 2, 2, 16, 16
    C2 = dim // 2
    heads = dim // dim_head
    d_att = dim_head // 2
    n_tok = window[0] * window[1]

    key = jax.random.PRNGKey(0)
    ks = jax.random.split(key, 11)
    x = jax.random.normal(ks[0], (b, dim, Bf, H, W), jnp.float32)
    last = jax.random.normal(ks[1], (b, dim, Bf, H, W), jnp.float32)

    params = {
        'wq': jax.random.normal(ks[2], (C2, 2, 3, 3, 3), jnp.float32) * (54.0 ** -0.5),
        'wk': jax.random.normal(ks[3], (C2, 2, 3, 3, 3), jnp.float32) * (54.0 ** -0.5),
        'wv': jax.random.normal(ks[4], (C2, 2, 3, 3, 3), jnp.float32) * (54.0 ** -0.5),
        'w_out': jax.random.normal(ks[5], (dim,), jnp.float32) * (2.0 ** -0.5),
        'pc_q_w': jax.random.normal(ks[6], (1, d_att), jnp.float32) * (d_att ** -0.5),
        'pc_k_w': jax.random.normal(ks[7], (1, d_att), jnp.float32) * (d_att ** -0.5),
        'bias_q': jnp.float32(1.0),
        'bias_k': jnp.float32(1.0),
        'mlp1_w': jax.random.normal(ks[8], (1, n_tok), jnp.float32) * (n_tok ** -0.5),
        'mlp2a_w': jax.random.normal(ks[9], (n_tok, n_tok), jnp.float32) * (n_tok ** -0.5),
        'mlp2b_w': jax.random.normal(ks[10], (1, n_tok), jnp.float32) * (n_tok ** -0.5),
    }

    out = sca_forward(x, last, params, dim=dim, dim_head=dim_head, window=window)
    out = jax.block_until_ready(out)
    assert out.shape == (b, dim, Bf, H, W)
    assert not bool(jnp.any(jnp.isnan(out)))

    ref = sca_reference(x, last, params, dim=dim, dim_head=dim_head, window=window)
    # Robust comparison: the hard threshold (simS > theta) can flip for entries
    # within float rounding of theta, changing a handful of outputs; require the
    # overwhelming majority of elements to match tightly.
    scale = jnp.maximum(jnp.max(jnp.abs(ref)), 1.0)
    err = jnp.abs(out - ref)
    frac_bad = float(jnp.mean((err > 1e-3 * scale).astype(jnp.float32)))
    assert frac_bad < 5e-3, f"mismatch fraction too high: {frac_bad}"

    print("KERNEL_OK")
</pallas_src>

<mosaic_0001>
module attributes {stable_mosaic.version = 11 : i64} {
  func.func @_qkv_conv_kernel(%arg0: i32, %arg1: memref<1x36x16x256xf32, #tpu.memory_space<vmem>>, %arg2: memref<1x36x16x256xf32, #tpu.memory_space<vmem>>, %arg3: memref<1x36x16x256xf32, #tpu.memory_space<vmem>>, %arg4: memref<1x36x16x256xf32, #tpu.memory_space<vmem>>, %arg5: memref<27x256xf32, #tpu.memory_space<vmem>>, %arg6: memref<27x256xf32, #tpu.memory_space<vmem>>, %arg7: memref<27x256xf32, #tpu.memory_space<vmem>>, %arg8: memref<27x256xf32, #tpu.memory_space<vmem>>, %arg9: memref<27x256xf32, #tpu.memory_space<vmem>>, %arg10: memref<27x256xf32, #tpu.memory_space<vmem>>, %arg11: memref<1x2x16x256xf32, #tpu.memory_space<vmem>>, %arg12: memref<1x2x16x256xf32, #tpu.memory_space<vmem>>, %arg13: memref<1x2x16x256xf32, #tpu.memory_space<vmem>>) attributes {dimension_semantics = [#tpu.dimension_semantics<parallel>], iteration_bounds = array<i64: 2>, scalar_prefetch = 0 : i64, scratch_operands = 0 : i64, tpu.core_type = #tpu.core_type<tc>, window_params = [{transform_indices = @transform_0, window_bounds = array<i64: 1, 36, 16, 256>}, {transform_indices = @transform_1, window_bounds = array<i64: 1, 36, 16, 256>}, {transform_indices = @transform_2, window_bounds = array<i64: 1, 36, 16, 256>}, {transform_indices = @transform_3, window_bounds = array<i64: 1, 36, 16, 256>}, {pipeline_mode = #tpu.pipeline_mode<synchronous>, transform_indices = @transform_4, window_bounds = array<i64: 27, 256>}, {pipeline_mode = #tpu.pipeline_mode<synchronous>, transform_indices = @transform_5, window_bounds = array<i64: 27, 256>}, {pipeline_mode = #tpu.pipeline_mode<synchronous>, transform_indices = @transform_6, window_bounds = array<i64: 27, 256>}, {pipeline_mode = #tpu.pipeline_mode<synchronous>, transform_indices = @transform_7, window_bounds = array<i64: 27, 256>}, {pipeline_mode = #tpu.pipeline_mode<synchronous>, transform_indices = @transform_8, window_bounds = array<i64: 27, 256>}, {pipeline_mode = #tpu.pipeline_mode<synchronous>, transform_indices = @transform_9, window_bounds = array<i64: 27, 256>}, {transform_indices = @transform_10, window_bounds = array<i64: 1, 2, 16, 256>}, {transform_indices = @transform_11, window_bounds = array<i64: 1, 2, 16, 256>}, {transform_indices = @transform_12, window_bounds = array<i64: 1, 2, 16, 256>}]} {
    %cst = arith.constant 0.000000e+00 : f32
    %0 = vector.broadcast %cst : f32 to vector<2x16x256xf32>
    %c0 = arith.constant 0 : index
    %c0_0 = arith.constant 0 : index
    %c0_1 = arith.constant 0 : index
    %c0_2 = arith.constant 0 : index
    %1 = vector.load %arg1[%c0, %c0_0, %c0_1, %c0_2] : memref<1x36x16x256xf32, #tpu.memory_space<vmem>>, vector<1x2x16x256xf32>
    %2 = vector.shape_cast %1 : vector<1x2x16x256xf32> to vector<2x16x256xf32>
    %c0_3 = arith.constant 0 : index
    %c0_4 = arith.constant 0 : index
    %c0_5 = arith.constant 0 : index
    %c0_6 = arith.constant 0 : index
    %3 = vector.load %arg2[%c0_3, %c0_4, %c0_5, %c0_6] : memref<1x36x16x256xf32, #tpu.memory_space<vmem>>, vector<1x2x16x256xf32>
    %4 = vector.shape_cast %3 : vector<1x2x16x256xf32> to vector<2x16x256xf32>
    %c0_7 = arith.constant 0 : index
    %c0_8 = arith.constant 0 : index
    %5 = vector.load %arg5[%c0_7, %c0_8] : memref<27x256xf32, #tpu.memory_space<vmem>>, vector<1x256xf32>
    %6 = vector.shape_cast %5 : vector<1x256xf32> to vector<256xf32>
    %7 = vector.shape_cast %6 : vector<256xf32> to vector<1x1x256xf32>
    %8 = vector.broadcast %7 : vector<1x1x256xf32> to vector<2x16x256xf32>
    %9 = arith.mulf %2, %8 : vector<2x16x256xf32>
    %10 = arith.addf %0, %9 : vector<2x16x256xf32>
    %c0_9 = arith.constant 0 : index
    %c0_10 = arith.constant 0 : index
    %11 = vector.load %arg6[%c0_9, %c0_10] : memref<27x256xf32, #tpu.memory_space<vmem>>, vector<1x256xf32>
    %12 = vector.shape_cast %11 : vector<1x256xf32> to vector<256xf32>
    %13 = vector.shape_cast %12 : vector<256xf32> to vector<1x1x256xf32>
    %14 = vector.broadcast %13 : vector<1x1x256xf32> to vector<2x16x256xf32>
    %15 = arith.mulf %4, %14 : vector<2x16x256xf32>
    %16 = arith.addf %10, %15 : vector<2x16x256xf32>
    %c0_11 = arith.constant 0 : index
    %c4 = arith.constant 4 : index
    %c0_12 = arith.constant 0 : index
    %c0_13 = arith.constant 0 : index
    %17 = vector.load %arg1[%c0_11, %c4, %c0_12, %c0_13] : memref<1x36x16x256xf32, #tpu.memory_space<vmem>>, vector<1x2x16x256xf32>
    %18 = vector.shape_cast %17 : vector<1x2x16x256xf32> to vector<2x16x256xf32>
    %c0_14 = arith.constant 0 : index
    %c4_15 = arith.constant 4 : index
    %c0_16 = arith.constant 0 : index
    %c0_17 = arith.constant 0 : index
    %19 = vector.load %arg2[%c0_14, %c4_15, %c0_16, %c0_17] : memref<1x36x16x256xf32, #tpu.memory_space<vmem>>, vector<1x2x16x256xf32>
    %20 = vector.shape_cast %19 : vector<1x2x16x256xf32> to vector<2x16x256xf32>
    %c1 = arith.constant 1 : index
    %c0_18 = arith.constant 0 : index
    %21 = vector.load %arg5[%c1, %c0_18] : memref<27x256xf32, #tpu.memory_space<vmem>>, vector<1x256xf32>
    %22 = vector.shape_cast %21 : vector<1x256xf32> to vector<256xf32>
    %23 = vector.shape_cast %22 : vector<256xf32> to vector<1x1x256xf32>
    %24 = vector.broadcast %23 : vector<1x1x256xf32> to vector<2x16x256xf32>
    %25 = arith.mulf %18, %24 : vector<2x16x256xf32>
    %26 = arith.addf %16, %25 : vector<2x16x256xf32>
    %c1_19 = arith.constant 1 : index
    %c0_20 = arith.constant 0 : index
    %27 = vector.load %arg6[%c1_19, %c0_20] : memref<27x256xf32, #tpu.memory_space<vmem>>, vector<1x256xf32>
    %28 = vector.shape_cast %27 : vector<1x256xf32> to vector<256xf32>
    %29 = vector.shape_cast %28 : vector<256xf32> to vector<1x1x256xf32>
    %30 = vector.broadcast %29 : vector<1x1x256xf32> to vector<2x16x256xf32>
    %31 = arith.mulf %20, %30 : vector<2x16x256xf32>
    %32 = arith.addf %26, %31 : vector<2x16x256xf32>
    %c0_21 = arith.constant 0 : index
    %c8 = arith.constant 8 : index
    %c0_22 = arith.constant 0 : index
    %c0_23 = arith.constant 0 : index
    %33 = vector.load %arg1[%c0_21, %c8, %c0_22, %c0_23] : memref<1x36x16x256xf32, #tpu.memory_space<vmem>>, vector<1x2x16x256xf32>
    %34 = vector.shape_cast %33 : vector<1x2x16x256xf32> to vector<2x16x256xf32>
    %c0_24 = arith.constant 0 : index
    %c8_25 = arith.constant 8 : index
    %c0_26 = arith.constant 0 : index
    %c0_27 = arith.constant 0 : index
    %35 = vector.load %arg2[%c0_24, %c8_25, %c0_26, %c0_27] : memref<1x36x16x256xf32, #tpu.memory_space<vmem>>, vector<1x2x16x256xf32>
    %36 = vector.shape_cast %35 : vector<1x2x16x256xf32> to vector<2x16x256xf32>
    %c2 = arith.constant 2 : index
    %c0_28 = arith.constant 0 : index
    %37 = vector.load %arg5[%c2, %c0_28] : memref<27x256xf32, #tpu.memory_space<vmem>>, vector<1x256xf32>
    %38 = vector.shape_cast %37 : vector<1x256xf32> to vector<256xf32>
    %39 = vector.shape_cast %38 : vector<256xf32> to vector<1x1x256xf32>
    %40 = vector.broadcast %39 : vector<1x1x256xf32> to vector<2x16x256xf32>
    %41 = arith.mulf %34, %40 : vector<2x16x256xf32>
    %42 = arith.addf %32, %41 : vector<2x16x256xf32>
    %c2_29 = arith.constant 2 : index
    %c0_30 = arith.constant 0 : index
    %43 = vector.load %arg6[%c2_29, %c0_30] : memref<27x256xf32, #tpu.memory_space<vmem>>, vector<1x256xf32>
    %44 = vector.shape_cast %43 : vector<1x256xf32> to vector<256xf32>
    %45 = vector.shape_cast %44 : vector<256xf32> to vector<1x1x256xf32>
    %46 = vector.broadcast %45 : vector<1x1x256xf32> to vector<2x16x256xf32>
    %47 = arith.mulf %36, %46 : vector<2x16x256xf32>
    %48 = arith.addf %42, %47 : vector<2x16x256xf32>
    %c0_31 = arith.constant 0 : index
    %c12 = arith.constant 12 : index
    %c0_32 = arith.constant 0 : index
    %c0_33 = arith.constant 0 : index
    %49 = vector.load %arg1[%c0_31, %c12, %c0_32, %c0_33] : memref<1x36x16x256xf32, #tpu.memory_space<vmem>>, vector<1x2x16x256xf32>
    %50 = vector.shape_cast %49 : vector<1x2x16x256xf32> to vector<2x16x256xf32>
    %c0_34 = arith.constant 0 : index
    %c12_35 = arith.constant 12 : index
    %c0_36 = arith.constant 0 : index
    %c0_37 = arith.constant 0 : index
    %51 = vector.load %arg2[%c0_34, %c12_35, %c0_36, %c0_37] : memref<1x36x16x256xf32, #tpu.memory_space<vmem>>, vector<1x2x16x256xf32>
    %52 = vector.shape_cast %51 : vector<1x2x16x256xf32> to vector<2x16x256xf32>
    %c3 = arith.constant 3 : index
    %c0_38 = arith.constant 0 : index
    %53 = vector.load %arg5[%c3, %c0_38] : memref<27x256xf32, #tpu.memory_space<vmem>>, vector<1x256xf32>
    %54 = vector.shape_cast %53 : vector<1x256xf32> to vector<256xf32>
    %55 = vector.shape_cast %54 : vector<256xf32> to vector<1x1x256xf32>
    %56 = vector.broadcast %55 : vector<1x1x256xf32> to vector<2x16x256xf32>
    %57 = arith.mulf %50, %56 : vector<2x16x256xf32>
    %58 = arith.addf %48, %57 : vector<2x16x256xf32>
    %c3_39 = arith.constant 3 : index
    %c0_40 = arith.constant 0 : index
    %59 = vector.load %arg6[%c3_39, %c0_40] : memref<27x256xf32, #tpu.memory_space<vmem>>, vector<1x256xf32>
    %60 = vector.shape_cast %59 : vector<1x256xf32> to vector<256xf32>
    %61 = vector.shape_cast %60 : vector<256xf32> to vector<1x1x256xf32>
    %62 = vector.broadcast %61 : vector<1x1x256xf32> to vector<2x16x256xf32>
    %63 = arith.mulf %52, %62 : vector<2x16x256xf32>
    %64 = arith.addf %58, %63 : vector<2x16x256xf32>
    %c0_41 = arith.constant 0 : index
    %c16 = arith.constant 16 : index
    %c0_42 = arith.constant 0 : index
    %c0_43 = arith.constant 0 : index
    %65 = vector.load %arg1[%c0_41, %c16, %c0_42, %c0_43] : memref<1x36x16x256xf32, #tpu.memory_space<vmem>>, vector<1x2x16x256xf32>
    %66 = vector.shape_cast %65 : vector<1x2x16x256xf32> to vector<2x16x256xf32>
    %c0_44 = arith.constant 0 : index
    %c16_45 = arith.constant 16 : index
    %c0_46 = arith.constant 0 : index
    %c0_47 = arith.constant 0 : index
    %67 = vector.load %arg2[%c0_44, %c16_45, %c0_46, %c0_47] : memref<1x36x16x256xf32, #tpu.memory_space<vmem>>, vector<1x2x16x256xf32>
    %68 = vector.shape_cast %67 : vector<1x2x16x256xf32> to vector<2x16x256xf32>
    %c4_48 = arith.constant 4 : index
    %c0_49 = arith.constant 0 : index
    %69 = vector.load %arg5[%c4_48, %c0_49] : memref<27x256xf32, #tpu.memory_space<vmem>>, vector<1x256xf32>
    %70 = vector.shape_cast %69 : vector<1x256xf32> to vector<256xf32>
    %71 = vector.shape_cast %70 : vector<256xf32> to vector<1x1x256xf32>
    %72 = vector.broadcast %71 : vector<1x1x256xf32> to vector<2x16x256xf32>
    %73 = arith.mulf %66, %72 : vector<2x16x256xf32>
    %74 = arith.addf %64, %73 : vector<2x16x256xf32>
    %c4_50 = arith.constant 4 : index
    %c0_51 = arith.constant 0 : index
    %75 = vector.load %arg6[%c4_50, %c0_51] : memref<27x256xf32, #tpu.memory_space<vmem>>, vector<1x256xf32>
    %76 = vector.shape_cast %75 : vector<1x256xf32> to vector<256xf32>
    %77 = vector.shape_cast %76 : vector<256xf32> to vector<1x1x256xf32>
    %78 = vector.broadcast %77 : vector<1x1x256xf32> to vector<2x16x256xf32>
    %79 = arith.mulf %68, %78 : vector<2x16x256xf32>
    %80 = arith.addf %74, %79 : vector<2x16x256xf32>
    %c0_52 = arith.constant 0 : index
    %c20 = arith.constant 20 : index
    %c0_53 = arith.constant 0 : index
    %c0_54 = arith.constant 0 : index
    %81 = vector.load %arg1[%c0_52, %c20, %c0_53, %c0_54] : memref<1x36x16x256xf32, #tpu.memory_space<vmem>>, vector<1x2x16x256xf32>
    %82 = vector.shape_cast %81 : vector<1x2x16x256xf32> to vector<2x16x256xf32>
    %c0_55 = arith.constant 0 : index
    %c20_56 = arith.constant 20 : index
    %c0_57 = arith.constant 0 : index
    %c0_58 = arith.constant 0 : index
    %83 = vector.load %arg2[%c0_55, %c20_56, %c0_57, %c0_58] : memref<1x36x16x256xf32, #tpu.memory_space<vmem>>, vector<1x2x16x256xf32>
    %84 = vector.shape_cast %83 : vector<1x2x16x256xf32> to vector<2x16x256xf32>
    %c5 = arith.constant 5 : index
    %c0_59 = arith.constant 0 : index
    %85 = vector.load %arg5[%c5, %c0_59] : memref<27x256xf32, #tpu.memory_space<vmem>>, vector<1x256xf32>
    %86 = vector.shape_cast %85 : vector<1x256xf32> to vector<256xf32>
    %87 = vector.shape_cast %86 : vector<256xf32> to vector<1x1x256xf32>
    %88 = vector.broadcast %87 : vector<1x1x256xf32> to vector<2x16x256xf32>
    %89 = arith.mulf %82, %88 : vector<2x16x256xf32>
    %90 = arith.addf %80, %89 : vector<2x16x256xf32>
    %c5_60 = arith.constant 5 : index
    %c0_61 = arith.constant 0 : index
    %91 = vector.load %arg6[%c5_60, %c0_61] : memref<27x256xf32, #tpu.memory_space<vmem>>, vector<1x256xf32>
    %92 = vector.shape_cast %91 : vector<1x256xf32> to vector<256xf32>
    %93 = vector.shape_cast %92 : vector<256xf32> to vector<1x1x256xf32>
    %94 = vector.broadcast %93 : vector<1x1x256xf32> to vector<2x16x256xf32>
    %95 = arith.mulf %84, %94 : vector<2x16x256xf32>
    %96 = arith.addf %90, %95 : vector<2x16x256xf32>
    %c0_62 = arith.constant 0 : index
    %c24 = arith.constant 24 : index
    %c0_63 = arith.constant 0 : index
    %c0_64 = arith.constant 0 : index
    %97 = vector.load %arg1[%c0_62, %c24, %c0_63, %c0_64] : memref<1x36x16x256xf32, #tpu.memory_space<vmem>>, vector<1x2x16x256xf32>
    %98 = vector.shape_cast %97 : vector<1x2x16x256xf32> to vector<2x16x256xf32>
    %c0_65 = arith.constant 0 : index
    %c24_66 = arith.constant 24 : index
    %c0_67 = arith.constant 0 : index
    %c0_68 = arith.constant 0 : index
    %99 = vector.load %arg2[%c0_65, %c24_66, %c0_67, %c0_68] : memref<1x36x16x256xf32, #tpu.memory_space<vmem>>, vector<1x2x16x256xf32>
    %100 = vector.shape_cast %99 : vector<1x2x16x256xf32> to vector<2x16x256xf32>
    %c6 = arith.constant 6 : index
    %c0_69 = arith.constant 0 : index
    %101 = vector.load %arg5[%c6, %c0_69] : memref<27x256xf32, #tpu.memory_space<vmem>>, vector<1x256xf32>
    %102 = vector.shape_cast %101 : vector<1x256xf32> to vector<256xf32>
    %103 = vector.shape_cast %102 : vector<256xf32> to vector<1x1x256xf32>
    %104 = vector.broadcast %103 : vector<1x1x256xf32> to vector<2x16x256xf32>
    %105 = arith.mulf %98, %104 : vector<2x16x256xf32>
    %106 = arith.addf %96, %105 : vector<2x16x256xf32>
    %c6_70 = arith.constant 6 : index
    %c0_71 = arith.constant 0 : index
    %107 = vector.load %arg6[%c6_70, %c0_71] : memref<27x256xf32, #tpu.memory_space<vmem>>, vector<1x256xf32>
    %108 = vector.shape_cast %107 : vector<1x256xf32> to vector<256xf32>
    %109 = vector.shape_cast %108 : vector<256xf32> to vector<1x1x256xf32>
    %110 = vector.broadcast %109 : vector<1x1x256xf32> to vector<2x16x256xf32>
    %111 = arith.mulf %100, %110 : vector<2x16x256xf32>
    %112 = arith.addf %106, %111 : vector<2x16x256xf32>
    %c0_72 = arith.constant 0 : index
    %c28 = arith.constant 28 : index
    %c0_73 = arith.constant 0 : index
    %c0_74 = arith.constant 0 : index
    %113 = vector.load %arg1[%c0_72, %c28, %c0_73, %c0_74] : memref<1x36x16x256xf32, #tpu.memory_space<vmem>>, vector<1x2x16x256xf32>
    %114 = vector.shape_cast %113 : vector<1x2x16x256xf32> to vector<2x16x256xf32>
    %c0_75 = arith.constant 0 : index
    %c28_76 = arith.constant 28 : index
    %c0_77 = arith.constant 0 : index
    %c0_78 = arith.constant 0 : index
    %115 = vector.load %arg2[%c0_75, %c28_76, %c0_77, %c0_78] : memref<1x36x16x256xf32, #tpu.memory_space<vmem>>, vector<1x2x16x256xf32>
    %116 = vector.shape_cast %115 : vector<1x2x16x256xf32> to vector<2x16x256xf32>
    %c7 = arith.constant 7 : index
    %c0_79 = arith.constant 0 : index
    %117 = vector.load %arg5[%c7, %c0_79] : memref<27x256xf32, #tpu.memory_space<vmem>>, vector<1x256xf32>
    %118 = vector.shape_cast %117 : vector<1x256xf32> to vector<256xf32>
    %119 = vector.shape_cast %118 : vector<256xf32> to vector<1x1x256xf32>
    %120 = vector.broadcast %119 : vector<1x1x256xf32> to vector<2x16x256xf32>
    %121 = arith.mulf %114, %120 : vector<2x16x256xf32>
    %122 = arith.addf %112, %121 : vector<2x16x256xf32>
    %c7_80 = arith.constant 7 : index
    %c0_81 = arith.constant 0 : index
    %123 = vector.load %arg6[%c7_80, %c0_81] : memref<27x256xf32, #tpu.memory_space<vmem>>, vector<1x256xf32>
    %124 = vector.shape_cast %123 : vector<1x256xf32> to vector<256xf32>
    %125 = vector.shape_cast %124 : vector<256xf32> to vector<1x1x256xf32>
    %126 = vector.broadcast %125 : vector<1x1x256xf32> to vector<2x16x256xf32>
    %127 = arith.mulf %116, %126 : vector<2x16x256xf32>
    %128 = arith.addf %122, %127 : vector<2x16x256xf32>
    %c0_82 = arith.constant 0 : index
    %c32 = arith.constant 32 : index
    %c0_83 = arith.constant 0 : index
    %c0_84 = arith.constant 0 : index
    %129 = vector.load %arg1[%c0_82, %c32, %c0_83, %c0_84] : memref<1x36x16x256xf32, #tpu.memory_space<vmem>>, vector<1x2x16x256xf32>
    %130 = vector.shape_cast %129 : vector<1x2x16x256xf32> to vector<2x16x256xf32>
    %c0_85 = arith.constant 0 : index
    %c32_86 = arith.constant 32 : index
    %c0_87 = arith.constant 0 : index
    %c0_88 = arith.constant 0 : index
    %131 = vector.load %arg2[%c0_85, %c32_86, %c0_87, %c0_88] : memref<1x36x16x256xf32, #tpu.memory_space<vmem>>, vector<1x2x16x256xf32>
    %132 = vector.shape_cast %131 : vector<1x2x16x256xf32> to vector<2x16x256xf32>
    %c8_89 = arith.constant 8 : index
    %c0_90 = arith.constant 0 : index
    %133 = vector.load %arg5[%c8_89, %c0_90] : memref<27x256xf32, #tpu.memory_space<vmem>>, vector<1x256xf32>
    %134 = vector.shape_cast %133 : vector<1x256xf32> to vector<256xf32>
    %135 = vector.shape_cast %134 : vector<256xf32> to vector<1x1x256xf32>
    %136 = vector.broadcast %135 : vector<1x1x256xf32> to vector<2x16x256xf32>
    %137 = arith.mulf %130, %136 : vector<2x16x256xf32>
    %138 = arith.addf %128, %137 : vector<2x16x256xf32>
    %c8_91 = arith.constant 8 : index
    %c0_92 = arith.constant 0 : index
    %139 = vector.load %arg6[%c8_91, %c0_92] : memref<27x256xf32, #tpu.memory_space<vmem>>, vector<1x256xf32>
    %140 = vector.shape_cast %139 : vector<1x256xf32> to vector<256xf32>
    %141 = vector.shape_cast %140 : vector<256xf32> to vector<1x1x256xf32>
    %142 = vector.broadcast %141 : vector<1x1x256xf32> to vector<2x16x256xf32>
    %143 = arith.mulf %132, %142 : vector<2x16x256xf32>
    %144 = arith.addf %138, %143 : vector<2x16x256xf32>
    %c0_93 = arith.constant 0 : index
    %c1_94 = arith.constant 1 : index
    %c0_95 = arith.constant 0 : index
    %c0_96 = arith.constant 0 : index
    %145 = vector.load %arg1[%c0_93, %c1_94, %c0_95, %c0_96] : memref<1x36x16x256xf32, #tpu.memory_space<vmem>>, vector<1x2x16x256xf32>
    %146 = vector.shape_cast %145 : vector<1x2x16x256xf32> to vector<2x16x256xf32>
    %c0_97 = arith.constant 0 : index
    %c1_98 = arith.constant 1 : index
    %c0_99 = arith.constant 0 : index
    %c0_100 = arith.constant 0 : index
    %147 = vector.load %arg2[%c0_97, %c1_98, %c0_99, %c0_100] : memref<1x36x16x256xf32, #tpu.memory_space<vmem>>, vector<1x2x16x256xf32>
    %148 = vector.shape_cast %147 : vector<1x2x16x256xf32> to vector<2x16x256xf32>
    %c9 = arith.constant 9 : index
    %c0_101 = arith.constant 0 : index
    %149 = vector.load %arg5[%c9, %c0_101] : memref<27x256xf32, #tpu.memory_space<vmem>>, vector<1x256xf32>
    %150 = vector.shape_cast %149 : vector<1x256xf32> to vector<256xf32>
    %151 = vector.shape_cast %150 : vector<256xf32> to vector<1x1x256xf32>
    %152 = vector.broadcast %151 : vector<1x1x256xf32> to vector<2x16x256xf32>
    %153 = arith.mulf %146, %152 : vector<2x16x256xf32>
    %154 = arith.addf %144, %153 : vector<2x16x256xf32>
    %c9_102 = arith.constant 9 : index
    %c0_103 = arith.constant 0 : index
    %155 = vector.load %arg6[%c9_102, %c0_103] : memref<27x256xf32, #tpu.memory_space<vmem>>, vector<1x256xf32>
    %156 = vector.shape_cast %155 : vector<1x256xf32> to vector<256xf32>
    %157 = vector.shape_cast %156 : vector<256xf32> to vector<1x1x256xf32>
    %158 = vector.broadcast %157 : vector<1x1x256xf32> to vector<2x16x256xf32>
    %159 = arith.mulf %148, %158 : vector<2x16x256xf32>
    %160 = arith.addf %154, %159 : vector<2x16x256xf32>
    %c0_104 = arith.constant 0 : index
    %c5_105 = arith.constant 5 : index
    %c0_106 = arith.constant 0 : index
    %c0_107 = arith.constant 0 : index
    %161 = vector.load %arg1[%c0_104, %c5_105, %c0_106, %c0_107] : memref<1x36x16x256xf32, #tpu.memory_space<vmem>>, vector<1x2x16x256xf32>
    %162 = vector.shape_cast %161 : vector<1x2x16x256xf32> to vector<2x16x256xf32>
    %c0_108 = arith.constant 0 : index
    %c5_109 = arith.constant 5 : index
    %c0_110 = arith.constant 0 : index
    %c0_111 = arith.constant 0 : index
    %163 = vector.load %arg2[%c0_108, %c5_109, %c0_110, %c0_111] : memref<1x36x16x256xf32, #tpu.memory_space<vmem>>, vector<1x2x16x256xf32>
    %164 = vector.shape_cast %163 : vector<1x2x16x256xf32> to vector<2x16x256xf32>
    %c10 = arith.constant 10 : index
    %c0_112 = arith.constant 0 : index
    %165 = vector.load %arg5[%c10, %c0_112] : memref<27x256xf32, #tpu.memory_space<vmem>>, vector<1x256xf32>
    %166 = vector.shape_cast %165 : vector<1x256xf32> to vector<256xf32>
    %167 = vector.shape_cast %166 : vector<256xf32> to vector<1x1x256xf32>
    %168 = vector.broadcast %167 : vector<1x1x256xf32> to vector<2x16x256xf32>
    %169 = arith.mulf %162, %168 : vector<2x16x256xf32>
    %170 = arith.addf %160, %169 : vector<2x16x256xf32>
    %c10_113 = arith.constant 10 : index
    %c0_114 = arith.constant 0 : index
    %171 = vector.load %arg6[%c10_113, %c0_114] : memref<27x256xf32, #tpu.memory_space<vmem>>, vector<1x256xf32>
    %172 = vector.shape_cast %171 : vector<1x256xf32> to vector<256xf32>
    %173 = vector.shape_cast %172 : vector<256xf32> to vector<1x1x256xf32>
    %174 = vector.broadcast %173 : vector<1x1x256xf32> to vector<2x16x256xf32>
    %175 = arith.mulf %164, %174 : vector<2x16x256xf32>
    %176 = arith.addf %170, %175 : vector<2x16x256xf32>
    %c0_115 = arith.constant 0 : index
    %c9_116 = arith.constant 9 : index
    %c0_117 = arith.constant 0 : index
    %c0_118 = arith.constant 0 : index
    %177 = vector.load %arg1[%c0_115, %c9_116, %c0_117, %c0_118] : memref<1x36x16x256xf32, #tpu.memory_space<vmem>>, vector<1x2x16x256xf32>
    %178 = vector.shape_cast %177 : vector<1x2x16x256xf32> to vector<2x16x256xf32>
    %c0_119 = arith.constant 0 : index
    %c9_120 = arith.constant 9 : index
    %c0_121 = arith.constant 0 : index
    %c0_122 = arith.constant 0 : index
    %179 = vector.load %arg2[%c0_119, %c9_120, %c0_121, %c0_122] : memref<1x36x16x256xf32, #tpu.memory_space<vmem>>, vector<1x2x16x256xf32>
    %180 = vector.shape_cast %179 : vector<1x2x16x256xf32> to vector<2x16x256xf32>
    %c11 = arith.constant 11 : index
    %c0_123 = arith.constant 0 : index
    %181 = vector.load %arg5[%c11, %c0_123] : memref<27x256xf32, #tpu.memory_space<vmem>>, vector<1x256xf32>
    %182 = vector.shape_cast %181 : vector<1x256xf32> to vector<256xf32>
    %183 = vector.shape_cast %182 : vector<256xf32> to vector<1x1x256xf32>
    %184 = vector.broadcast %183 : vector<1x1x256xf32> to vector<2x16x256xf32>
    %185 = arith.mulf %178, %184 : vector<2x16x256xf32>
    %186 = arith.addf %176, %185 : vector<2x16x256xf32>
    %c11_124 = arith.constant 11 : index
    %c0_125 = arith.constant 0 : index
    %187 = vector.load %arg6[%c11_124, %c0_125] : memref<27x256xf32, #tpu.memory_space<vmem>>, vector<1x256xf32>
    %188 = vector.shape_cast %187 : vector<1x256xf32> to vector<256xf32>
    %189 = vector.shape_cast %188 : vector<256xf32> to vector<1x1x256xf32>
    %190 = vector.broadcast %189 : vector<1x1x256xf32> to vector<2x16x256xf32>
    %191 = arith.mulf %180, %190 : vector<2x16x256xf32>
    %192 = arith.addf %186, %191 : vector<2x16x256xf32>
    %c0_126 = arith.constant 0 : index
    %c13 = arith.constant 13 : index
    %c0_127 = arith.constant 0 : index
    %c0_128 = arith.constant 0 : index
    %193 = vector.load %arg1[%c0_126, %c13, %c0_127, %c0_128] : memref<1x36x16x256xf32, #tpu.memory_space<vmem>>, vector<1x2x16x256xf32>
    %194 = vector.shape_cast %193 : vector<1x2x16x256xf32> to vector<2x16x256xf32>
    %c0_129 = arith.constant 0 : index
    %c13_130 = arith.constant 13 : index
    %c0_131 = arith.constant 0 : index
    %c0_132 = arith.constant 0 : index
    %195 = vector.load %arg2[%c0_129, %c13_130, %c0_131, %c0_132] : memref<1x36x16x256xf32, #tpu.memory_space<vmem>>, vector<1x2x16x256xf32>
    %196 = vector.shape_cast %195 : vector<1x2x16x256xf32> to vector<2x16x256xf32>
    %c12_133 = arith.constant 12 : index
    %c0_134 = arith.constant 0 : index
    %197 = vector.load %arg5[%c12_133, %c0_134] : memref<27x256xf32, #tpu.memory_space<vmem>>, vector<1x256xf32>
    %198 = vector.shape_cast %197 : vector<1x256xf32> to vector<256xf32>
    %199 = vector.shape_cast %198 : vector<256xf32> to vector<1x1x256xf32>
    %200 = vector.broadcast %199 : vector<1x1x256xf32> to vector<2x16x256xf32>
    %201 = arith.mulf %194, %200 : vector<2x16x256xf32>
    %202 = arith.addf %192, %201 : vector<2x16x256xf32>
    %c12_135 = arith.constant 12 : index
    %c0_136 = arith.constant 0 : index
    %203 = vector.load %arg6[%c12_135, %c0_136] : memref<27x256xf32, #tpu.memory_space<vmem>>, vector<1x256xf32>
    %204 = vector.shape_cast %203 : vector<1x256xf32> to vector<256xf32>
    %205 = vector.shape_cast %204 : vector<256xf32> to vector<1x1x256xf32>
    %206 = vector.broadcast %205 : vector<1x1x256xf32> to vector<2x16x256xf32>
    %207 = arith.mulf %196, %206 : vector<2x16x256xf32>
    %208 = arith.addf %202, %207 : vector<2x16x256xf32>
    %c0_137 = arith.constant 0 : index
    %c17 = arith.constant 17 : index
    %c0_138 = arith.constant 0 : index
    %c0_139 = arith.constant 0 : index
    %209 = vector.load %arg1[%c0_137, %c17, %c0_138, %c0_139] : memref<1x36x16x256xf32, #tpu.memory_space<vmem>>, vector<1x2x16x256xf32>
    %210 = vector.shape_cast %209 : vector<1x2x16x256xf32> to vector<2x16x256xf32>
    %c0_140 = arith.constant 0 : index
    %c17_141 = arith.constant 17 : index
    %c0_142 = arith.constant 0 : index
    %c0_143 = arith.constant 0 : index
    %211 = vector.load %arg2[%c0_140, %c17_141, %c0_142, %c0_143] : memref<1x36x16x256xf32, #tpu.memory_space<vmem>>, vector<1x2x16x256xf32>
    %212 = vector.shape_cast %211 : vector<1x2x16x256xf32> to vector<2x16x256xf32>
    %c13_144 = arith.constant 13 : index
    %c0_145 = arith.constant 0 : index
    %213 = vector.load %arg5[%c13_144, %c0_145] : memref<27x256xf32, #tpu.memory_space<vmem>>, vector<1x256xf32>
    %214 = vector.shape_cast %213 : vector<1x256xf32> to vector<256xf32>
    %215 = vector.shape_cast %214 : vector<256xf32> to vector<1x1x256xf32>
    %216 = vector.broadcast %215 : vector<1x1x256xf32> to vector<2x16x256xf32>
    %217 = arith.mulf %210, %216 : vector<2x16x256xf32>
    %218 = arith.addf %208, %217 : vector<2x16x256xf32>
    %c13_146 = arith.constant 13 : index
    %c0_147 = arith.constant 0 : index
    %219 = vector.load %arg6[%c13_146, %c0_147] : memref<27x256xf32, #tpu.memory_space<vmem>>, vector<1x256xf32>
    %220 = vector.shape_cast %219 : vector<1x256xf32> to vector<256xf32>
    %221 = vector.shape_cast %220 : vector<256xf32> to vector<1x1x256xf32>
    %222 = vector.broadcast %221 : vector<1x1x256xf32> to vector<2x16x256xf32>
    %223 = arith.mulf %212, %222 : vector<2x16x256xf32>
    %224 = arith.addf %218, %223 : vector<2x16x256xf32>
    %c0_148 = arith.constant 0 : index
    %c21 = arith.constant 21 : index
    %c0_149 = arith.constant 0 : index
    %c0_150 = arith.constant 0 : index
    %225 = vector.load %arg1[%c0_148, %c21, %c0_149, %c0_150] : memref<1x36x16x256xf32, #tpu.memory_space<vmem>>, vector<1x2x16x256xf32>
    %226 = vector.shape_cast %225 : vector<1x2x16x256xf32> to vector<2x16x256xf32>
    %c0_151 = arith.constant 0 : index
    %c21_152 = arith.constant 21 : index
    %c0_153 = arith.constant 0 : index
    %c0_154 = arith.constant 0 : index
    %227 = vector.load %arg2[%c0_151, %c21_152, %c0_153, %c0_154] : memref<1x36x16x256xf32, #tpu.memory_space<vmem>>, vector<1x2x16x256xf32>
    %228 = vector.shape_cast %227 : vector<1x2x16x256xf32> to vector<2x16x256xf32>
    %c14 = arith.constant 14 : index
    %c0_155 = arith.constant 0 : index
    %229 = vector.load %arg5[%c14, %c0_155] : memref<27x256xf32, #tpu.memory_space<vmem>>, vector<1x256xf32>
    %230 = vector.shape_cast %229 : vector<1x256xf32> to vector<256xf32>
    %231 = vector.shape_cast %230 : vector<256xf32> to vector<1x1x256xf32>
    %232 = vector.broadcast %231 : vector<1x1x256xf32> to vector<2x16x256xf32>
    %233 = arith.mulf %226, %232 : vector<2x16x256xf32>
    %234 = arith.addf %224, %233 : vector<2x16x256xf32>
    %c14_156 = arith.constant 14 : index
    %c0_157 = arith.constant 0 : index
    %235 = vector.load %arg6[%c14_156, %c0_157] : memref<27x256xf32, #tpu.memory_space<vmem>>, vector<1x256xf32>
    %236 = vector.shape_cast %235 : vector<1x256xf32> to vector<256xf32>
    %237 = vector.shape_cast %236 : vector<256xf32> to vector<1x1x256xf32>
    %238 = vector.broadcast %237 : vector<1x1x256xf32> to vector<2x16x256xf32>
    %239 = arith.mulf %228, %238 : vector<2x16x256xf32>
    %240 = arith.addf %234, %239 : vector<2x16x256xf32>
    %c0_158 = arith.constant 0 : index
    %c25 = arith.constant 25 : index
    %c0_159 = arith.constant 0 : index
    %c0_160 = arith.constant 0 : index
    %241 = vector.load %arg1[%c0_158, %c25, %c0_159, %c0_160] : memref<1x36x16x256xf32, #tpu.memory_space<vmem>>, vector<1x2x16x256xf32>
    %242 = vector.shape_cast %241 : vector<1x2x16x256xf32> to vector<2x16x256xf32>
    %c0_161 = arith.constant 0 : index
    %c25_162 = arith.constant 25 : index
    %c0_163 = arith.constant 0 : index
    %c0_164 = arith.constant 0 : index
    %243 = vector.load %arg2[%c0_161, %c25_162, %c0_163, %c0_164] : memref<1x36x16x256xf32, #tpu.memory_space<vmem>>, vector<1x2x16x256xf32>
    %244 = vector.shape_cast %243 : vector<1x2x16x256xf32> to vector<2x16x256xf32>
    %c15 = arith.constant 15 : index
    %c0_165 = arith.constant 0 : index
    %245 = vector.load %arg5[%c15, %c0_165] : memref<27x256xf32, #tpu.memory_space<vmem>>, vector<1x256xf32>
    %246 = vector.shape_cast %245 : vector<1x256xf32> to vector<256xf32>
    %247 = vector.shape_cast %246 : vector<256xf32> to vector<1x1x256xf32>
    %248 = vector.broadcast %247 : vector<1x1x256xf32> to vector<2x16x256xf32>
    %249 = arith.mulf %242, %248 : vector<2x16x256xf32>
    %250 = arith.addf %240, %249 : vector<2x16x256xf32>
    %c15_166 = arith.constant 15 : index
    %c0_167 = arith.constant 0 : index
    %251 = vector.load %arg6[%c15_166, %c0_167] : memref<27x256xf32, #tpu.memory_space<vmem>>, vector<1x256xf32>
    %252 = vector.shape_cast %251 : vector<1x256xf32> to vector<256xf32>
    %253 = vector.shape_cast %252 : vector<256xf32> to vector<1x1x256xf32>
    %254 = vector.broadcast %253 : vector<1x1x256xf32> to vector<2x16x256xf32>
    %255 = arith.mulf %244, %254 : vector<2x16x256xf32>
    %256 = arith.addf %250, %255 : vector<2x16x256xf32>
    %c0_168 = arith.constant 0 : index
    %c29 = arith.constant 29 : index
    %c0_169 = arith.constant 0 : index
    %c0_170 = arith.constant 0 : index
    %257 = vector.load %arg1[%c0_168, %c29, %c0_169, %c0_170] : memref<1x36x16x256xf32, #tpu.memory_space<vmem>>, vector<1x2x16x256xf32>
    %258 = vector.shape_cast %257 : vector<1x2x16x256xf32> to vector<2x16x256xf32>
    %c0_171 = arith.constant 0 : index
    %c29_172 = arith.constant 29 : index
    %c0_173 = arith.constant 0 : index
    %c0_174 = arith.constant 0 : index
    %259 = vector.load %arg2[%c0_171, %c29_172, %c0_173, %c0_174] : memref<1x36x16x256xf32, #tpu.memory_space<vmem>>, vector<1x2x16x256xf32>
    %260 = vector.shape_cast %259 : vector<1x2x16x256xf32> to vector<2x16x256xf32>
    %c16_175 = arith.constant 16 : index
    %c0_176 = arith.constant 0 : index
    %261 = vector.load %arg5[%c16_175, %c0_176] : memref<27x256xf32, #tpu.memory_space<vmem>>, vector<1x256xf32>
    %262 = vector.shape_cast %261 : vector<1x256xf32> to vector<256xf32>
    %263 = vector.shape_cast %262 : vector<256xf32> to vector<1x1x256xf32>
    %264 = vector.broadcast %263 : vector<1x1x256xf32> to vector<2x16x256xf32>
    %265 = arith.mulf %258, %264 : vector<2x16x256xf32>
    %266 = arith.addf %256, %265 : vector<2x16x256xf32>
    %c16_177 = arith.constant 16 : index
    %c0_178 = arith.constant 0 : index
    %267 = vector.load %arg6[%c16_177, %c0_178] : memref<27x256xf32, #tpu.memory_space<vmem>>, vector<1x256xf32>
    %268 = vector.shape_cast %267 : vector<1x256xf32> to vector<256xf32>
    %269 = vector.shape_cast %268 : vector<256xf32> to vector<1x1x256xf32>
    %270 = vector.broadcast %269 : vector<1x1x256xf32> to vector<2x16x256xf32>
    %271 = arith.mulf %260, %270 : vector<2x16x256xf32>
    %272 = arith.addf %266, %271 : vector<2x16x256xf32>
    %c0_179 = arith.constant 0 : index
    %c33 = arith.constant 33 : index
    %c0_180 = arith.constant 0 : index
    %c0_181 = arith.constant 0 : index
    %273 = vector.load %arg1[%c0_179, %c33, %c0_180, %c0_181] : memref<1x36x16x256xf32, #tpu.memory_space<vmem>>, vector<1x2x16x256xf32>
    %274 = vector.shape_cast %273 : vector<1x2x16x256xf32> to vector<2x16x256xf32>
    %c0_182 = arith.constant 0 : index
    %c33_183 = arith.constant 33 : index
    %c0_184 = arith.constant 0 : index
    %c0_185 = arith.constant 0 : index
    %275 = vector.load %arg2[%c0_182, %c33_183, %c0_184, %c0_185] : memref<1x36x16x256xf32, #tpu.memory_space<vmem>>, vector<1x2x16x256xf32>
    %276 = vector.shape_cast %275 : vector<1x2x16x256xf32> to vector<2x16x256xf32>
    %c17_186 = arith.constant 17 : index
    %c0_187 = arith.constant 0 : index
    %277 = vector.load %arg5[%c17_186, %c0_187] : memref<27x256xf32, #tpu.memory_space<vmem>>, vector<1x256xf32>
    %278 = vector.shape_cast %277 : vector<1x256xf32> to vector<256xf32>
    %279 = vector.shape_cast %278 : vector<256xf32> to vector<1x1x256xf32>
    %280 = vector.broadcast %279 : vector<1x1x256xf32> to vector<2x16x256xf32>
    %281 = arith.mulf %274, %280 : vector<2x16x256xf32>
    %282 = arith.addf %272, %281 : vector<2x16x256xf32>
    %c17_188 = arith.constant 17 : index
    %c0_189 = arith.constant 0 : index
    %283 = vector.load %arg6[%c17_188, %c0_189] : memref<27x256xf32, #tpu.memory_space<vmem>>, vector<1x256xf32>
    %284 = vector.shape_cast %283 : vector<1x256xf32> to vector<256xf32>
    %285 = vector.shape_cast %284 : vector<256xf32> to vector<1x1x256xf32>
    %286 = vector.broadcast %285 : vector<1x1x256xf32> to vector<2x16x256xf32>
    %287 = arith.mulf %276, %286 : vector<2x16x256xf32>
    %288 = arith.addf %282, %287 : vector<2x16x256xf32>
    %c0_190 = arith.constant 0 : index
    %c2_191 = arith.constant 2 : index
    %c0_192 = arith.constant 0 : index
    %c0_193 = arith.constant 0 : index
    %289 = vector.load %arg1[%c0_190, %c2_191, %c0_192, %c0_193] : memref<1x36x16x256xf32, #tpu.memory_space<vmem>>, vector<1x2x16x256xf32>
    %290 = vector.shape_cast %289 : vector<1x2x16x256xf32> to vector<2x16x256xf32>
    %c0_194 = arith.constant 0 : index
    %c2_195 = arith.constant 2 : index
    %c0_196 = arith.constant 0 : index
    %c0_197 = arith.constant 0 : index
    %291 = vector.load %arg2[%c0_194, %c2_195, %c0_196, %c0_197] : memref<1x36x16x256xf32, #tpu.memory_space<vmem>>, vector<1x2x16x256xf32>
    %292 = vector.shape_cast %291 : vector<1x2x16x256xf32> to vector<2x16x256xf32>
    %c18 = arith.constant 18 : index
    %c0_198 = arith.constant 0 : index
    %293 = vector.load %arg5[%c18, %c0_198] : memref<27x256xf32, #tpu.memory_space<vmem>>, vector<1x256xf32>
    %294 = vector.shape_cast %293 : vector<1x256xf32> to vector<256xf32>
    %295 = vector.shape_cast %294 : vector<256xf32> to vector<1x1x256xf32>
    %296 = vector.broadcast %295 : vector<1x1x256xf32> to vector<2x16x256xf32>
    %297 = arith.mulf %290, %296 : vector<2x16x256xf32>
    %298 = arith.addf %288, %297 : vector<2x16x256xf32>
    %c18_199 = arith.constant 18 : index
    %c0_200 = arith.constant 0 : index
    %299 = vector.load %arg6[%c18_199, %c0_200] : memref<27x256xf32, #tpu.memory_space<vmem>>, vector<1x256xf32>
    %300 = vector.shape_cast %299 : vector<1x256xf32> to vector<256xf32>
    %301 = vector.shape_cast %300 : vector<256xf32> to vector<1x1x256xf32>
    %302 = vector.broadcast %301 : vector<1x1x256xf32> to vector<2x16x256xf32>
    %303 = arith.mulf %292, %302 : vector<2x16x256xf32>
    %304 = arith.addf %298, %303 : vector<2x16x256xf32>
    %c0_201 = arith.constant 0 : index
    %c6_202 = arith.constant 6 : index
    %c0_203 = arith.constant 0 : index
    %c0_204 = arith.constant 0 : index
    %305 = vector.load %arg1[%c0_201, %c6_202, %c0_203, %c0_204] : memref<1x36x16x256xf32, #tpu.memory_space<vmem>>, vector<1x2x16x256xf32>
    %306 = vector.shape_cast %305 : vector<1x2x16x256xf32> to vector<2x16x256xf32>
    %c0_205 = arith.constant 0 : index
    %c6_206 = arith.constant 6 : index
    %c0_207 = arith.constant 0 : index
    %c0_208 = arith.constant 0 : index
    %307 = vector.load %arg2[%c0_205, %c6_206, %c0_207, %c0_208] : memref<1x36x16x256xf32, #tpu.memory_space<vmem>>, vector<1x2x16x256xf32>
    %308 = vector.shape_cast %307 : vector<1x2x16x256xf32> to vector<2x16x256xf32>
    %c19 = arith.constant 19 : index
    %c0_209 = arith.constant 0 : index
    %309 = vector.load %arg5[%c19, %c0_209] : memref<27x256xf32, #tpu.memory_space<vmem>>, vector<1x256xf32>
    %310 = vector.shape_cast %309 : vector<1x256xf32> to vector<256xf32>
    %311 = vector.shape_cast %310 : vector<256xf32> to vector<1x1x256xf32>
    %312 = vector.broadcast %311 : vector<1x1x256xf32> to vector<2x16x256xf32>
    %313 = arith.mulf %306, %312 : vector<2x16x256xf32>
    %314 = arith.addf %304, %313 : vector<2x16x256xf32>
    %c19_210 = arith.constant 19 : index
    %c0_211 = arith.constant 0 : index
    %315 = vector.load %arg6[%c19_210, %c0_211] : memref<27x256xf32, #tpu.memory_space<vmem>>, vector<1x256xf32>
    %316 = vector.shape_cast %315 : vector<1x256xf32> to vector<256xf32>
    %317 = vector.shape_cast %316 : vector<256xf32> to vector<1x1x256xf32>
    %318 = vector.broadcast %317 : vector<1x1x256xf32> to vector<2x16x256xf32>
    %319 = arith.mulf %308, %318 : vector<2x16x256xf32>
    %320 = arith.addf %314, %319 : vector<2x16x256xf32>
    %c0_212 = arith.constant 0 : index
    %c10_213 = arith.constant 10 : index
    %c0_214 = arith.constant 0 : index
    %c0_215 = arith.constant 0 : index
    %321 = vector.load %arg1[%c0_212, %c10_213, %c0_214, %c0_215] : memref<1x36x16x256xf32, #tpu.memory_space<vmem>>, vector<1x2x16x256xf32>
    %322 = vector.shape_cast %321 : vector<1x2x16x256xf32> to vector<2x16x256xf32>
    %c0_216 = arith.constant 0 : index
    %c10_217 = arith.constant 10 : index
    %c0_218 = arith.constant 0 : index
    %c0_219 = arith.constant 0 : index
    %323 = vector.load %arg2[%c0_216, %c10_217, %c0_218, %c0_219] : memref<1x36x16x256xf32, #tpu.memory_space<vmem>>, vector<1x2x16x256xf32>
    %324 = vector.shape_cast %323 : vector<1x2x16x256xf32> to vector<2x16x256xf32>
    %c20_220 = arith.constant 20 : index
    %c0_221 = arith.constant 0 : index
    %325 = vector.load %arg5[%c20_220, %c0_221] : memref<27x256xf32, #tpu.memory_space<vmem>>, vector<1x256xf32>
    %326 = vector.shape_cast %325 : vector<1x256xf32> to vector<256xf32>
    %327 = vector.shape_cast %326 : vector<256xf32> to vector<1x1x256xf32>
    %328 = vector.broadcast %327 : vector<1x1x256xf32> to vector<2x16x256xf32>
    %329 = arith.mulf %322, %328 : vector<2x16x256xf32>
    %330 = arith.addf %320, %329 : vector<2x16x256xf32>
    %c20_222 = arith.constant 20 : index
    %c0_223 = arith.constant 0 : index
    %331 = vector.load %arg6[%c20_222, %c0_223] : memref<27x256xf32, #tpu.memory_space<vmem>>, vector<1x256xf32>
    %332 = vector.shape_cast %331 : vector<1x256xf32> to vector<256xf32>
    %333 = vector.shape_cast %332 : vector<256xf32> to vector<1x1x256xf32>
    %334 = vector.broadcast %333 : vector<1x1x256xf32> to vector<2x16x256xf32>
    %335 = arith.mulf %324, %334 : vector<2x16x256xf32>
    %336 = arith.addf %330, %335 : vector<2x16x256xf32>
    %c0_224 = arith.constant 0 : index
    %c14_225 = arith.constant 14 : index
    %c0_226 = arith.constant 0 : index
    %c0_227 = arith.constant 0 : index
    %337 = vector.load %arg1[%c0_224, %c14_225, %c0_226, %c0_227] : memref<1x36x16x256xf32, #tpu.memory_space<vmem>>, vector<1x2x16x256xf32>
    %338 = vector.shape_cast %337 : vector<1x2x16x256xf32> to vector<2x16x256xf32>
    %c0_228 = arith.constant 0 : index
    %c14_229 = arith.constant 14 : index
    %c0_230 = arith.constant 0 : index
    %c0_231 = arith.constant 0 : index
    %339 = vector.load %arg2[%c0_228, %c14_229, %c0_230, %c0_231] : memref<1x36x16x256xf32, #tpu.memory_space<vmem>>, vector<1x2x16x256xf32>
    %340 = vector.shape_cast %339 : vector<1x2x16x256xf32> to vector<2x16x256xf32>
    %c21_232 = arith.constant 21 : index
    %c0_233 = arith.constant 0 : index
    %341 = vector.load %arg5[%c21_232, %c0_233] : memref<27x256xf32, #tpu.memory_space<vmem>>, vector<1x256xf32>
    %342 = vector.shape_cast %341 : vector<1x256xf32> to vector<256xf32>
    %343 = vector.shape_cast %342 : vector<256xf32> to vector<1x1x256xf32>
    %344 = vector.broadcast %343 : vector<1x1x256xf32> to vector<2x16x256xf32>
    %345 = arith.mulf %338, %344 : vector<2x16x256xf32>
    %346 = arith.addf %336, %345 : vector<2x16x256xf32>
    %c21_234 = arith.constant 21 : index
    %c0_235 = arith.constant 0 : index
    %347 = vector.load %arg6[%c21_234, %c0_235] : memref<27x256xf32, #tpu.memory_space<vmem>>, vector<1x256xf32>
    %348 = vector.shape_cast %347 : vector<1x256xf32> to vector<256xf32>
    %349 = vector.shape_cast %348 : vector<256xf32> to vector<1x1x256xf32>
    %350 = vector.broadcast %349 : vector<1x1x256xf32> to vector<2x16x256xf32>
    %351 = arith.mulf %340, %350 : vector<2x16x256xf32>
    %352 = arith.addf %346, %351 : vector<2x16x256xf32>
    %c0_236 = arith.constant 0 : index
    %c18_237 = arith.constant 18 : index
    %c0_238 = arith.constant 0 : index
    %c0_239 = arith.constant 0 : index
    %353 = vector.load %arg1[%c0_236, %c18_237, %c0_238, %c0_239] : memref<1x36x16x256xf32, #tpu.memory_space<vmem>>, vector<1x2x16x256xf32>
    %354 = vector.shape_cast %353 : vector<1x2x16x256xf32> to vector<2x16x256xf32>
    %c0_240 = arith.constant 0 : index
    %c18_241 = arith.constant 18 : index
    %c0_242 = arith.constant 0 : index
    %c0_243 = arith.constant 0 : index
    %355 = vector.load %arg2[%c0_240, %c18_241, %c0_242, %c0_243] : memref<1x36x16x256xf32, #tpu.memory_space<vmem>>, vector<1x2x16x256xf32>
    %356 = vector.shape_cast %355 : vector<1x2x16x256xf32> to vector<2x16x256xf32>
    %c22 = arith.constant 22 : index
    %c0_244 = arith.constant 0 : index
    %357 = vector.load %arg5[%c22, %c0_244] : memref<27x256xf32, #tpu.memory_space<vmem>>, vector<1x256xf32>
    %358 = vector.shape_cast %357 : vector<1x256xf32> to vector<256xf32>
    %359 = vector.shape_cast %358 : vector<256xf32> to vector<1x1x256xf32>
    %360 = vector.broadcast %359 : vector<1x1x256xf32> to vector<2x16x256xf32>
    %361 = arith.mulf %354, %360 : vector<2x16x256xf32>
    %362 = arith.addf %352, %361 : vector<2x16x256xf32>
    %c22_245 = arith.constant 22 : index
    %c0_246 = arith.constant 0 : index
    %363 = vector.load %arg6[%c22_245, %c0_246] : memref<27x256xf32, #tpu.memory_space<vmem>>, vector<1x256xf32>
    %364 = vector.shape_cast %363 : vector<1x256xf32> to vector<256xf32>
    %365 = vector.shape_cast %364 : vector<256xf32> to vector<1x1x256xf32>
    %366 = vector.broadcast %365 : vector<1x1x256xf32> to vector<2x16x256xf32>
    %367 = arith.mulf %356, %366 : vector<2x16x256xf32>
    %368 = arith.addf %362, %367 : vector<2x16x256xf32>
    %c0_247 = arith.constant 0 : index
    %c22_248 = arith.constant 22 : index
    %c0_249 = arith.constant 0 : index
    %c0_250 = arith.constant 0 : index
    %369 = vector.load %arg1[%c0_247, %c22_248, %c0_249, %c0_250] : memref<1x36x16x256xf32, #tpu.memory_space<vmem>>, vector<1x2x16x256xf32>
    %370 = vector.shape_cast %369 : vector<1x2x16x256xf32> to vector<2x16x256xf32>
    %c0_251 = arith.constant 0 : index
    %c22_252 = arith.constant 22 : index
    %c0_253 = arith.constant 0 : index
    %c0_254 = arith.constant 0 : index
    %371 = vector.load %arg2[%c0_251, %c22_252, %c0_253, %c0_254] : memref<1x36x16x256xf32, #tpu.memory_space<vmem>>, vector<1x2x16x256xf32>
    %372 = vector.shape_cast %371 : vector<1x2x16x256xf32> to vector<2x16x256xf32>
    %c23 = arith.constant 23 : index
    %c0_255 = arith.constant 0 : index
    %373 = vector.load %arg5[%c23, %c0_255] : memref<27x256xf32, #tpu.memory_space<vmem>>, vector<1x256xf32>
    %374 = vector.shape_cast %373 : vector<1x256xf32> to vector<256xf32>
    %375 = vector.shape_cast %374 : vector<256xf32> to vector<1x1x256xf32>
    %376 = vector.broadcast %375 : vector<1x1x256xf32> to vector<2x16x256xf32>
    %377 = arith.mulf %370, %376 : vector<2x16x256xf32>
    %378 = arith.addf %368, %377 : vector<2x16x256xf32>
    %c23_256 = arith.constant 23 : index
    %c0_257 = arith.constant 0 : index
    %379 = vector.load %arg6[%c23_256, %c0_257] : memref<27x256xf32, #tpu.memory_space<vmem>>, vector<1x256xf32>
    %380 = vector.shape_cast %379 : vector<1x256xf32> to vector<256xf32>
    %381 = vector.shape_cast %380 : vector<256xf32> to vector<1x1x256xf32>
    %382 = vector.broadcast %381 : vector<1x1x256xf32> to vector<2x16x256xf32>
    %383 = arith.mulf %372, %382 : vector<2x16x256xf32>
    %384 = arith.addf %378, %383 : vector<2x16x256xf32>
    %c0_258 = arith.constant 0 : index
    %c26 = arith.constant 26 : index
    %c0_259 = arith.constant 0 : index
    %c0_260 = arith.constant 0 : index
    %385 = vector.load %arg1[%c0_258, %c26, %c0_259, %c0_260] : memref<1x36x16x256xf32, #tpu.memory_space<vmem>>, vector<1x2x16x256xf32>
    %386 = vector.shape_cast %385 : vector<1x2x16x256xf32> to vector<2x16x256xf32>
    %c0_261 = arith.constant 0 : index
    %c26_262 = arith.constant 26 : index
    %c0_263 = arith.constant 0 : index
    %c0_264 = arith.constant 0 : index
    %387 = vector.load %arg2[%c0_261, %c26_262, %c0_263, %c0_264] : memref<1x36x16x256xf32, #tpu.memory_space<vmem>>, vector<1x2x16x256xf32>
    %388 = vector.shape_cast %387 : vector<1x2x16x256xf32> to vector<2x16x256xf32>
    %c24_265 = arith.constant 24 : index
    %c0_266 = arith.constant 0 : index
    %389 = vector.load %arg5[%c24_265, %c0_266] : memref<27x256xf32, #tpu.memory_space<vmem>>, vector<1x256xf32>
    %390 = vector.shape_cast %389 : vector<1x256xf32> to vector<256xf32>
    %391 = vector.shape_cast %390 : vector<256xf32> to vector<1x1x256xf32>
    %392 = vector.broadcast %391 : vector<1x1x256xf32> to vector<2x16x256xf32>
    %393 = arith.mulf %386, %392 : vector<2x16x256xf32>
    %394 = arith.addf %384, %393 : vector<2x16x256xf32>
    %c24_267 = arith.constant 24 : index
    %c0_268 = arith.constant 0 : index
    %395 = vector.load %arg6[%c24_267, %c0_268] : memref<27x256xf32, #tpu.memory_space<vmem>>, vector<1x256xf32>
    %396 = vector.shape_cast %395 : vector<1x256xf32> to vector<256xf32>
    %397 = vector.shape_cast %396 : vector<256xf32> to vector<1x1x256xf32>
    %398 = vector.broadcast %397 : vector<1x1x256xf32> to vector<2x16x256xf32>
    %399 = arith.mulf %388, %398 : vector<2x16x256xf32>
    %400 = arith.addf %394, %399 : vector<2x16x256xf32>
    %c0_269 = arith.constant 0 : index
    %c30 = arith.constant 30 : index
    %c0_270 = arith.constant 0 : index
    %c0_271 = arith.constant 0 : index
    %401 = vector.load %arg1[%c0_269, %c30, %c0_270, %c0_271] : memref<1x36x16x256xf32, #tpu.memory_space<vmem>>, vector<1x2x16x256xf32>
    %402 = vector.shape_cast %401 : vector<1x2x16x256xf32> to vector<2x16x256xf32>
    %c0_272 = arith.constant 0 : index
    %c30_273 = arith.constant 30 : index
    %c0_274 = arith.constant 0 : index
    %c0_275 = arith.constant 0 : index
    %403 = vector.load %arg2[%c0_272, %c30_273, %c0_274, %c0_275] : memref<1x36x16x256xf32, #tpu.memory_space<vmem>>, vector<1x2x16x256xf32>
    %404 = vector.shape_cast %403 : vector<1x2x16x256xf32> to vector<2x16x256xf32>
    %c25_276 = arith.constant 25 : index
    %c0_277 = arith.constant 0 : index
    %405 = vector.load %arg5[%c25_276, %c0_277] : memref<27x256xf32, #tpu.memory_space<vmem>>, vector<1x256xf32>
    %406 = vector.shape_cast %405 : vector<1x256xf32> to vector<256xf32>
    %407 = vector.shape_cast %406 : vector<256xf32> to vector<1x1x256xf32>
    %408 = vector.broadcast %407 : vector<1x1x256xf32> to vector<2x16x256xf32>
    %409 = arith.mulf %402, %408 : vector<2x16x256xf32>
    %410 = arith.addf %400, %409 : vector<2x16x256xf32>
    %c25_278 = arith.constant 25 : index
    %c0_279 = arith.constant 0 : index
    %411 = vector.load %arg6[%c25_278, %c0_279] : memref<27x256xf32, #tpu.memory_space<vmem>>, vector<1x256xf32>
    %412 = vector.shape_cast %411 : vector<1x256xf32> to vector<256xf32>
    %413 = vector.shape_cast %412 : vector<256xf32> to vector<1x1x256xf32>
    %414 = vector.broadcast %413 : vector<1x1x256xf32> to vector<2x16x256xf32>
    %415 = arith.mulf %404, %414 : vector<2x16x256xf32>
    %416 = arith.addf %410, %415 : vector<2x16x256xf32>
    %c0_280 = arith.constant 0 : index
    %c34 = arith.constant 34 : index
    %c0_281 = arith.constant 0 : index
    %c0_282 = arith.constant 0 : index
    %417 = vector.load %arg1[%c0_280, %c34, %c0_281, %c0_282] : memref<1x36x16x256xf32, #tpu.memory_space<vmem>>, vector<1x2x16x256xf32>
    %418 = vector.shape_cast %417 : vector<1x2x16x256xf32> to vector<2x16x256xf32>
    %c0_283 = arith.constant 0 : index
    %c34_284 = arith.constant 34 : index
    %c0_285 = arith.constant 0 : index
    %c0_286 = arith.constant 0 : index
    %419 = vector.load %arg2[%c0_283, %c34_284, %c0_285, %c0_286] : memref<1x36x16x256xf32, #tpu.memory_space<vmem>>, vector<1x2x16x256xf32>
    %420 = vector.shape_cast %419 : vector<1x2x16x256xf32> to vector<2x16x256xf32>
    %c26_287 = arith.constant 26 : index
    %c0_288 = arith.constant 0 : index
    %421 = vector.load %arg5[%c26_287, %c0_288] : memref<27x256xf32, #tpu.memory_space<vmem>>, vector<1x256xf32>
    %422 = vector.shape_cast %421 : vector<1x256xf32> to vector<256xf32>
    %423 = vector.shape_cast %422 : vector<256xf32> to vector<1x1x256xf32>
    %424 = vector.broadcast %423 : vector<1x1x256xf32> to vector<2x16x256xf32>
    %425 = arith.mulf %418, %424 : vector<2x16x256xf32>
    %426 = arith.addf %416, %425 : vector<2x16x256xf32>
    %c26_289 = arith.constant 26 : index
    %c0_290 = arith.constant 0 : index
    %427 = vector.load %arg6[%c26_289, %c0_290] : memref<27x256xf32, #tpu.memory_space<vmem>>, vector<1x256xf32>
    %428 = vector.shape_cast %427 : vector<1x256xf32> to vector<256xf32>
    %429 = vector.shape_cast %428 : vector<256xf32> to vector<1x1x256xf32>
    %430 = vector.broadcast %429 : vector<1x1x256xf32> to vector<2x16x256xf32>
    %431 = arith.mulf %420, %430 : vector<2x16x256xf32>
    %432 = arith.addf %426, %431 : vector<2x16x256xf32>
    %c0_291 = arith.constant 0 : index
    %c0_292 = arith.constant 0 : index
    %c0_293 = arith.constant 0 : index
    %c0_294 = arith.constant 0 : index
    %433 = vector.load %arg11[%c0_291, %c0_292, %c0_293, %c0_294] : memref<1x2x16x256xf32, #tpu.memory_space<vmem>>, vector<1x2x16x256xf32>
    %434 = vector.shape_cast %433 : vector<1x2x16x256xf32> to vector<2x16x256xf32>
    %435 = vector.shape_cast %432 : vector<2x16x256xf32> to vector<1x2x16x256xf32>
    tpu.vector_store %arg11[%c0_291, %c0_292, %c0_293, %c0_294], %435 {strides = array<i32>} : memref<1x2x16x256xf32, #tpu.memory_space<vmem>>, vector<1x2x16x256xf32>,
    %cst_295 = arith.constant 0.000000e+00 : f32
    %436 = vector.broadcast %cst_295 : f32 to vector<2x16x256xf32>
    %c0_296 = arith.constant 0 : index
    %c0_297 = arith.constant 0 : index
    %c0_298 = arith.constant 0 : index
    %c0_299 = arith.constant 0 : index
    %437 = vector.load %arg3[%c0_296, %c0_297, %c0_298, %c0_299] : memref<1x36x16x256xf32, #tpu.memory_space<vmem>>, vector<1x2x16x256xf32>
    %438 = vector.shape_cast %437 : vector<1x2x16x256xf32> to vector<2x16x256xf32>
    %c0_300 = arith.constant 0 : index
    %c0_301 = arith.constant 0 : index
    %c0_302 = arith.constant 0 : index
    %c0_303 = arith.constant 0 : index
    %439 = vector.load %arg4[%c0_300, %c0_301, %c0_302, %c0_303] : memref<1x36x16x256xf32, #tpu.memory_space<vmem>>, vector<1x2x16x256xf32>
    %440 = vector.shape_cast %439 : vector<1x2x16x256xf32> to vector<2x16x256xf32>
    %c0_304 = arith.constant 0 : index
    %c0_305 = arith.constant 0 : index
    %441 = vector.load %arg7[%c0_304, %c0_305] : memref<27x256xf32, #tpu.memory_space<vmem>>, vector<1x256xf32>
    %442 = vector.shape_cast %441 : vector<1x256xf32> to vector<256xf32>
    %443 = vector.shape_cast %442 : vector<256xf32> to vector<1x1x256xf32>
    %444 = vector.broadcast %443 : vector<1x1x256xf32> to vector<2x16x256xf32>
    %445 = arith.mulf %438, %444 : vector<2x16x256xf32>
    %446 = arith.addf %436, %445 : vector<2x16x256xf32>
    %c0_306 = arith.constant 0 : index
    %c0_307 = arith.constant 0 : index
    %447 = vector.load %arg8[%c0_306, %c0_307] : memref<27x256xf32, #tpu.memory_space<vmem>>, vector<1x256xf32>
    %448 = vector.shape_cast %447 : vector<1x256xf32> to vector<256xf32>
    %449 = vector.shape_cast %448 : vector<256xf32> to vector<1x1x256xf32>
    %450 = vector.broadcast %449 : vector<1x1x256xf32> to vector<2x16x256xf32>
    %451 = arith.mulf %440, %450 : vector<2x16x256xf32>
    %452 = arith.addf %446, %451 : vector<2x16x256xf32>
    %c0_308 = arith.constant 0 : index
    %c4_309 = arith.constant 4 : index
    %c0_310 = arith.constant 0 : index
    %c0_311 = arith.constant 0 : index
    %453 = vector.load %arg3[%c0_308, %c4_309, %c0_310, %c0_311] : memref<1x36x16x256xf32, #tpu.memory_space<vmem>>, vector<1x2x16x256xf32>
    %454 = vector.shape_cast %453 : vector<1x2x16x256xf32> to vector<2x16x256xf32>
    %c0_312 = arith.constant 0 : index
    %c4_313 = arith.constant 4 : index
    %c0_314 = arith.constant 0 : index
    %c0_315 = arith.constant 0 : index
    %455 = vector.load %arg4[%c0_312, %c4_313, %c0_314, %c0_315] : memref<1x36x16x256xf32, #tpu.memory_space<vmem>>, vector<1x2x16x256xf32>
    %456 = vector.shape_cast %455 : vector<1x2x16x256xf32> to vector<2x16x256xf32>
    %c1_316 = arith.constant 1 : index
    %c0_317 = arith.constant 0 : index
    %457 = vector.load %arg7[%c1_316, %c0_317] : memref<27x256xf32, #tpu.memory_space<vmem>>, vector<1x256xf32>
    %458 = vector.shape_cast %457 : vector<1x256xf32> to vector<256xf32>
    %459 = vector.shape_cast %458 : vector<256xf32> to vector<1x1x256xf32>
    %460 = vector.broadcast %459 : vector<1x1x256xf32> to vector<2x16x256xf32>
    %461 = arith.mulf %454, %460 : vector<2x16x256xf32>
    %462 = arith.addf %452, %461 : vector<2x16x256xf32>
    %c1_318 = arith.constant 1 : index
    %c0_319 = arith.constant 0 : index
    %463 = vector.load %arg8[%c1_318, %c0_319] : memref<27x256xf32, #tpu.memory_space<vmem>>, vector<1x256xf32>
    %464 = vector.shape_cast %463 : vector<1x256xf32> to vector<256xf32>
    %465 = vector.shape_cast %464 : vector<256xf32> to vector<1x1x256xf32>
    %466 = vector.broadcast %465 : vector<1x1x256xf32> to vector<2x16x256xf32>
    %467 = arith.mulf %456, %466 : vector<2x16x256xf32>
    %468 = arith.addf %462, %467 : vector<2x16x256xf32>
    %c0_320 = arith.constant 0 : index
    %c8_321 = arith.constant 8 : index
    %c0_322 = arith.constant 0 : index
    %c0_323 = arith.constant 0 : index
    %469 = vector.load %arg3[%c0_320, %c8_321, %c0_322, %c0_323] : memref<1x36x16x256xf32, #tpu.memory_space<vmem>>, vector<1x2x16x256xf32>
    %470 = vector.shape_cast %469 : vector<1x2x16x256xf32> to vector<2x16x256xf32>
    %c0_324 = arith.constant 0 : index
    %c8_325 = arith.constant 8 : index
    %c0_326 = arith.constant 0 : index
    %c0_327 = arith.constant 0 : index
    %471 = vector.load %arg4[%c0_324, %c8_325, %c0_326, %c0_327] : memref<1x36x16x256xf32, #tpu.memory_space<vmem>>, vector<1x2x16x256xf32>
    %472 = vector.shape_cast %471 : vector<1x2x16x256xf32> to vector<2x16x256xf32>
    %c2_328 = arith.constant 2 : index
    %c0_329 = arith.constant 0 : index
    %473 = vector.load %arg7[%c2_328, %c0_329] : memref<27x256xf32, #tpu.memory_space<vmem>>, vector<1x256xf32>
    %474 = vector.shape_cast %473 : vector<1x256xf32> to vector<256xf32>
    %475 = vector.shape_cast %474 : vector<256xf32> to vector<1x1x256xf32>
    %476 = vector.broadcast %475 : vector<1x1x256xf32> to vector<2x16x256xf32>
    %477 = arith.mulf %470, %476 : vector<2x16x256xf32>
    %478 = arith.addf %468, %477 : vector<2x16x256xf32>
    %c2_330 = arith.constant 2 : index
    %c0_331 = arith.constant 0 : index
    %479 = vector.load %arg8[%c2_330, %c0_331] : memref<27x256xf32, #tpu.memory_space<vmem>>, vector<1x256xf32>
    %480 = vector.shape_cast %479 : vector<1x256xf32> to vector<256xf32>
    %481 = vector.shape_cast %480 : vector<256xf32> to vector<1x1x256xf32>
    %482 = vector.broadcast %481 : vector<1x1x256xf32> to vector<2x16x256xf32>
    %483 = arith.mulf %472, %482 : vector<2x16x256xf32>
    %484 = arith.addf %478, %483 : vector<2x16x256xf32>
    %c0_332 = arith.constant 0 : index
    %c12_333 = arith.constant 12 : index
    %c0_334 = arith.constant 0 : index
    %c0_335 = arith.constant 0 : index
    %485 = vector.load %arg3[%c0_332, %c12_333, %c0_334, %c0_335] : memref<1x36x16x256xf32, #tpu.memory_space<vmem>>, vector<1x2x16x256xf32>
    %486 = vector.shape_cast %485 : vector<1x2x16x256xf32> to vector<2x16x256xf32>
    %c0_336 = arith.constant 0 : index
    %c12_337 = arith.constant 12 : index
    %c0_338 = arith.constant 0 : index
    %c0_339 = arith.constant 0 : index
    %487 = vector.load %arg4[%c0_336, %c12_337, %c0_338, %c0_339] : memref<1x36x16x256xf32, #tpu.memory_space<vmem>>, vector<1x2x16x256xf32>
    %488 = vector.shape_cast %487 : vector<1x2x16x256xf32> to vector<2x16x256xf32>
    %c3_340 = arith.constant 3 : index
    %c0_341 = arith.constant 0 : index
    %489 = vector.load %arg7[%c3_340, %c0_341] : memref<27x256xf32, #tpu.memory_space<vmem>>, vector<1x256xf32>
    %490 = vector.shape_cast %489 : vector<1x256xf32> to vector<256xf32>
    %491 = vector.shape_cast %490 : vector<256xf32> to vector<1x1x256xf32>
    %492 = vector.broadcast %491 : vector<1x1x256xf32> to vector<2x16x256xf32>
    %493 = arith.mulf %486, %492 : vector<2x16x256xf32>
    %494 = arith.addf %484, %493 : vector<2x16x256xf32>
    %c3_342 = arith.constant 3 : index
    %c0_343 = arith.constant 0 : index
    %495 = vector.load %arg8[%c3_342, %c0_343] : memref<27x256xf32, #tpu.memory_space<vmem>>, vector<1x256xf32>
    %496 = vector.shape_cast %495 : vector<1x256xf32> to vector<256xf32>
    %497 = vector.shape_cast %496 : vector<256xf32> to vector<1x1x256xf32>
    %498 = vector.broadcast %497 : vector<1x1x256xf32> to vector<2x16x256xf32>
    %499 = arith.mulf %488, %498 : vector<2x16x256xf32>
    %500 = arith.addf %494, %499 : vector<2x16x256xf32>
    %c0_344 = arith.constant 0 : index
    %c16_345 = arith.constant 16 : index
    %c0_346 = arith.constant 0 : index
    %c0_347 = arith.constant 0 : index
    %501 = vector.load %arg3[%c0_344, %c16_345, %c0_346, %c0_347] : memref<1x36x16x256xf32, #tpu.memory_space<vmem>>, vector<1x2x16x256xf32>
    %502 = vector.shape_cast %501 : vector<1x2x16x256xf32> to vector<2x16x256xf32>
    %c0_348 = arith.constant 0 : index
    %c16_349 = arith.constant 16 : index
    %c0_350 = arith.constant 0 : index
    %c0_351 = arith.constant 0 : index
    %503 = vector.load %arg4[%c0_348, %c16_349, %c0_350, %c0_351] : memref<1x36x16x256xf32, #tpu.memory_space<vmem>>, vector<1x2x16x256xf32>
    %504 = vector.shape_cast %503 : vector<1x2x16x256xf32> to vector<2x16x256xf32>
    %c4_352 = arith.constant 4 : index
    %c0_353 = arith.constant 0 : index
    %505 = vector.load %arg7[%c4_352, %c0_353] : memref<27x256xf32, #tpu.memory_space<vmem>>, vector<1x256xf32>
    %506 = vector.shape_cast %505 : vector<1x256xf32> to vector<256xf32>
    %507 = vector.shape_cast %506 : vector<256xf32> to vector<1x1x256xf32>
    %508 = vector.broadcast %507 : vector<1x1x256xf32> to vector<2x16x256xf32>
    %509 = arith.mulf %502, %508 : vector<2x16x256xf32>
    %510 = arith.addf %500, %509 : vector<2x16x256xf32>
    %c4_354 = arith.constant 4 : index
    %c0_355 = arith.constant 0 : index
    %511 = vector.load %arg8[%c4_354, %c0_355] : memref<27x256xf32, #tpu.memory_space<vmem>>, vector<1x256xf32>
    %512 = vector.shape_cast %511 : vector<1x256xf32> to vector<256xf32>
    %513 = vector.shape_cast %512 : vector<256xf32> to vector<1x1x256xf32>
    %514 = vector.broadcast %513 : vector<1x1x256xf32> to vector<2x16x256xf32>
    %515 = arith.mulf %504, %514 : vector<2x16x256xf32>
    %516 = arith.addf %510, %515 : vector<2x16x256xf32>
    %c0_356 = arith.constant 0 : index
    %c20_357 = arith.constant 20 : index
    %c0_358 = arith.constant 0 : index
    %c0_359 = arith.constant 0 : index
    %517 = vector.load %arg3[%c0_356, %c20_357, %c0_358, %c0_359] : memref<1x36x16x256xf32, #tpu.memory_space<vmem>>, vector<1x2x16x256xf32>
    %518 = vector.shape_cast %517 : vector<1x2x16x256xf32> to vector<2x16x256xf32>
    %c0_360 = arith.constant 0 : index
    %c20_361 = arith.constant 20 : index
    %c0_362 = arith.constant 0 : index
    %c0_363 = arith.constant 0 : index
    %519 = vector.load %arg4[%c0_360, %c20_361, %c0_362, %c0_363] : memref<1x36x16x256xf32, #tpu.memory_space<vmem>>, vector<1x2x16x256xf32>
    %520 = vector.shape_cast %519 : vector<1x2x16x256xf32> to vector<2x16x256xf32>
    %c5_364 = arith.constant 5 : index
    %c0_365 = arith.constant 0 : index
    %521 = vector.load %arg7[%c5_364, %c0_365] : memref<27x256xf32, #tpu.memory_space<vmem>>, vector<1x256xf32>
    %522 = vector.shape_cast %521 : vector<1x256xf32> to vector<256xf32>
    %523 = vector.shape_cast %522 : vector<256xf32> to vector<1x1x256xf32>
    %524 = vector.broadcast %523 : vector<1x1x256xf32> to vector<2x16x256xf32>
    %525 = arith.mulf %518, %524 : vector<2x16x256xf32>
    %526 = arith.addf %516, %525 : vector<2x16x256xf32>
    %c5_366 = arith.constant 5 : index
    %c0_367 = arith.constant 0 : index
    %527 = vector.load %arg8[%c5_366, %c0_367] : memref<27x256xf32, #tpu.memory_space<vmem>>, vector<1x256xf32>
    %528 = vector.shape_cast %527 : vector<1x256xf32> to vector<256xf32>
    %529 = vector.shape_cast %528 : vector<256xf32> to vector<1x1x256xf32>
    %530 = vector.broadcast %529 : vector<1x1x256xf32> to vector<2x16x256xf32>
    %531 = arith.mulf %520, %530 : vector<2x16x256xf32>
    %532 = arith.addf %526, %531 : vector<2x16x256xf32>
    %c0_368 = arith.constant 0 : index
    %c24_369 = arith.constant 24 : index
    %c0_370 = arith.constant 0 : index
    %c0_371 = arith.constant 0 : index
    %533 = vector.load %arg3[%c0_368, %c24_369, %c0_370, %c0_371] : memref<1x36x16x256xf32, #tpu.memory_space<vmem>>, vector<1x2x16x256xf32>
    %534 = vector.shape_cast %533 : vector<1x2x16x256xf32> to vector<2x16x256xf32>
    %c0_372 = arith.constant 0 : index
    %c24_373 = arith.constant 24 : index
    %c0_374 = arith.constant 0 : index
    %c0_375 = arith.constant 0 : index
    %535 = vector.load %arg4[%c0_372, %c24_373, %c0_374, %c0_375] : memref<1x36x16x256xf32, #tpu.memory_space<vmem>>, vector<1x2x16x256xf32>
    %536 = vector.shape_cast %535 : vector<1x2x16x256xf32> to vector<2x16x256xf32>
    %c6_376 = arith.constant 6 : index
    %c0_377 = arith.constant 0 : index
    %537 = vector.load %arg7[%c6_376, %c0_377] : memref<27x256xf32, #tpu.memory_space<vmem>>, vector<1x256xf32>
    %538 = vector.shape_cast %537 : vector<1x256xf32> to vector<256xf32>
    %539 = vector.shape_cast %538 : vector<256xf32> to vector<1x1x256xf32>
    %540 = vector.broadcast %539 : vector<1x1x256xf32> to vector<2x16x256xf32>
    %541 = arith.mulf %534, %540 : vector<2x16x256xf32>
    %542 = arith.addf %532, %541 : vector<2x16x256xf32>
    %c6_378 = arith.constant 6 : index
    %c0_379 = arith.constant 0 : index
    %543 = vector.load %arg8[%c6_378, %c0_379] : memref<27x256xf32, #tpu.memory_space<vmem>>, vector<1x256xf32>
    %544 = vector.shape_cast %543 : vector<1x256xf32> to vector<256xf32>
    %545 = vector.shape_cast %544 : vector<256xf32> to vector<1x1x256xf32>
    %546 = vector.broadcast %545 : vector<1x1x256xf32> to vector<2x16x256xf32>
    %547 = arith.mulf %536, %546 : vector<2x16x256xf32>
    %548 = arith.addf %542, %547 : vector<2x16x256xf32>
    %c0_380 = arith.constant 0 : index
    %c28_381 = arith.constant 28 : index
    %c0_382 = arith.constant 0 : index
    %c0_383 = arith.constant 0 : index
    %549 = vector.load %arg3[%c0_380, %c28_381, %c0_382, %c0_383] : memref<1x36x16x256xf32, #tpu.memory_space<vmem>>, vector<1x2x16x256xf32>
    %550 = vector.shape_cast %549 : vector<1x2x16x256xf32> to vector<2x16x256xf32>
    %c0_384 = arith.constant 0 : index
    %c28_385 = arith.constant 28 : index
    %c0_386 = arith.constant 0 : index
    %c0_387 = arith.constant 0 : index
    %551 = vector.load %arg4[%c0_384, %c28_385, %c0_386, %c0_387] : memref<1x36x16x256xf32, #tpu.memory_space<vmem>>, vector<1x2x16x256xf32>
    %552 = vector.shape_cast %551 : vector<1x2x16x256xf32> to vector<2x16x256xf32>
    %c7_388 = arith.constant 7 : index
    %c0_389 = arith.constant 0 : index
    %553 = vector.load %arg7[%c7_388, %c0_389] : memref<27x256xf32, #tpu.memory_space<vmem>>, vector<1x256xf32>
    %554 = vector.shape_cast %553 : vector<1x256xf32> to vector<256xf32>
    %555 = vector.shape_cast %554 : vector<256xf32> to vector<1x1x256xf32>
    %556 = vector.broadcast %555 : vector<1x1x256xf32> to vector<2x16x256xf32>
    %557 = arith.mulf %550, %556 : vector<2x16x256xf32>
    %558 = arith.addf %548, %557 : vector<2x16x256xf32>
    %c7_390 = arith.constant 7 : index
    %c0_391 = arith.constant 0 : index
    %559 = vector.load %arg8[%c7_390, %c0_391] : memref<27x256xf32, #tpu.memory_space<vmem>>, vector<1x256xf32>
    %560 = vector.shape_cast %559 : vector<1x256xf32> to vector<256xf32>
    %561 = vector.shape_cast %560 : vector<256xf32> to vector<1x1x256xf32>
    %562 = vector.broadcast %561 : vector<1x1x256xf32> to vector<2x16x256xf32>
    %563 = arith.mulf %552, %562 : vector<2x16x256xf32>
    %564 = arith.addf %558, %563 : vector<2x16x256xf32>
    %c0_392 = arith.constant 0 : index
    %c32_393 = arith.constant 32 : index
    %c0_394 = arith.constant 0 : index
    %c0_395 = arith.constant 0 : index
    %565 = vector.load %arg3[%c0_392, %c32_393, %c0_394, %c0_395] : memref<1x36x16x256xf32, #tpu.memory_space<vmem>>, vector<1x2x16x256xf32>
    %566 = vector.shape_cast %565 : vector<1x2x16x256xf32> to vector<2x16x256xf32>
    %c0_396 = arith.constant 0 : index
    %c32_397 = arith.constant 32 : index
    %c0_398 = arith.constant 0 : index
    %c0_399 = arith.constant 0 : index
    %567 = vector.load %arg4[%c0_396, %c32_397, %c0_398, %c0_399] : memref<1x36x16x256xf32, #tpu.memory_space<vmem>>, vector<1x2x16x256xf32>
    %568 = vector.shape_cast %567 : vector<1x2x16x256xf32> to vector<2x16x256xf32>
    %c8_400 = arith.constant 8 : index
    %c0_401 = arith.constant 0 : index
    %569 = vector.load %arg7[%c8_400, %c0_401] : memref<27x256xf32, #tpu.memory_space<vmem>>, vector<1x256xf32>
    %570 = vector.shape_cast %569 : vector<1x256xf32> to vector<256xf32>
    %571 = vector.shape_cast %570 : vector<256xf32> to vector<1x1x256xf32>
    %572 = vector.broadcast %571 : vector<1x1x256xf32> to vector<2x16x256xf32>
    %573 = arith.mulf %566, %572 : vector<2x16x256xf32>
    %574 = arith.addf %564, %573 : vector<2x16x256xf32>
    %c8_402 = arith.constant 8 : index
    %c0_403 = arith.constant 0 : index
    %575 = vector.load %arg8[%c8_402, %c0_403] : memref<27x256xf32, #tpu.memory_space<vmem>>, vector<1x256xf32>
    %576 = vector.shape_cast %575 : vector<1x256xf32> to vector<256xf32>
    %577 = vector.shape_cast %576 : vector<256xf32> to vector<1x1x256xf32>
    %578 = vector.broadcast %577 : vector<1x1x256xf32> to vector<2x16x256xf32>
    %579 = arith.mulf %568, %578 : vector<2x16x256xf32>
    %580 = arith.addf %574, %579 : vector<2x16x256xf32>
    %c0_404 = arith.constant 0 : index
    %c1_405 = arith.constant 1 : index
    %c0_406 = arith.constant 0 : index
    %c0_407 = arith.constant 0 : index
    %581 = vector.load %arg3[%c0_404, %c1_405, %c0_406, %c0_407] : memref<1x36x16x256xf32, #tpu.memory_space<vmem>>, vector<1x2x16x256xf32>
    %582 = vector.shape_cast %581 : vector<1x2x16x256xf32> to vector<2x16x256xf32>
    %c0_408 = arith.constant 0 : index
    %c1_409 = arith.constant 1 : index
    %c0_410 = arith.constant 0 : index
    %c0_411 = arith.constant 0 : index
    %583 = vector.load %arg4[%c0_408, %c1_409, %c0_410, %c0_411] : memref<1x36x16x256xf32, #tpu.memory_space<vmem>>, vector<1x2x16x256xf32>
    %584 = vector.shape_cast %583 : vector<1x2x16x256xf32> to vector<2x16x256xf32>
    %c9_412 = arith.constant 9 : index
    %c0_413 = arith.constant 0 : index
    %585 = vector.load %arg7[%c9_412, %c0_413] : memref<27x256xf32, #tpu.memory_space<vmem>>, vector<1x256xf32>
    %586 = vector.shape_cast %585 : vector<1x256xf32> to vector<256xf32>
    %587 = vector.shape_cast %586 : vector<256xf32> to vector<1x1x256xf32>
    %588 = vector.broadcast %587 : vector<1x1x256xf32> to vector<2x16x256xf32>
    %589 = arith.mulf %582, %588 : vector<2x16x256xf32>
    %590 = arith.addf %580, %589 : vector<2x16x256xf32>
    %c9_414 = arith.constant 9 : index
    %c0_415 = arith.constant 0 : index
    %591 = vector.load %arg8[%c9_414, %c0_415] : memref<27x256xf32, #tpu.memory_space<vmem>>, vector<1x256xf32>
    %592 = vector.shape_cast %591 : vector<1x256xf32> to vector<256xf32>
    %593 = vector.shape_cast %592 : vector<256xf32> to vector<1x1x256xf32>
    %594 = vector.broadcast %593 : vector<1x1x256xf32> to vector<2x16x256xf32>
    %595 = arith.mulf %584, %594 : vector<2x16x256xf32>
    %596 = arith.addf %590, %595 : vector<2x16x256xf32>
    %c0_416 = arith.constant 0 : index
    %c5_417 = arith.constant 5 : index
    %c0_418 = arith.constant 0 : index
    %c0_419 = arith.constant 0 : index
    %597 = vector.load %arg3[%c0_416, %c5_417, %c0_418, %c0_419] : memref<1x36x16x256xf32, #tpu.memory_space<vmem>>, vector<1x2x16x256xf32>
    %598 = vector.shape_cast %597 : vector<1x2x16x256xf32> to vector<2x16x256xf32>
    %c0_420 = arith.constant 0 : index
    %c5_421 = arith.constant 5 : index
    %c0_422 = arith.constant 0 : index
    %c0_423 = arith.constant 0 : index
    %599 = vector.load %arg4[%c0_420, %c5_421, %c0_422, %c0_423] : memref<1x36x16x256xf32, #tpu.memory_space<vmem>>, vector<1x2x16x256xf32>
    %600 = vector.shape_cast %599 : vector<1x2x16x256xf32> to vector<2x16x256xf32>
    %c10_424 = arith.constant 10 : index
    %c0_425 = arith.constant 0 : index
    %601 = vector.load %arg7[%c10_424, %c0_425] : memref<27x256xf32, #tpu.memory_space<vmem>>, vector<1x256xf32>
    %602 = vector.shape_cast %601 : vector<1x256xf32> to vector<256xf32>
    %603 = vector.shape_cast %602 : vector<256xf32> to vector<1x1x256xf32>
    %604 = vector.broadcast %603 : vector<1x1x256xf32> to vector<2x16x256xf32>
    %605 = arith.mulf %598, %604 : vector<2x16x256xf32>
    %606 = arith.addf %596, %605 : vector<2x16x256xf32>
    %c10_426 = arith.constant 10 : index
    %c0_427 = arith.constant 0 : index
    %607 = vector.load %arg8[%c10_426, %c0_427] : memref<27x256xf32, #tpu.memory_space<vmem>>, vector<1x256xf32>
    %608 = vector.shape_cast %607 : vector<1x256xf32> to vector<256xf32>
    %609 = vector.shape_cast %608 : vector<256xf32> to vector<1x1x256xf32>
    %610 = vector.broadcast %609 : vector<1x1x256xf32> to vector<2x16x256xf32>
    %611 = arith.mulf %600, %610 : vector<2x16x256xf32>
    %612 = arith.addf %606, %611 : vector<2x16x256xf32>
    %c0_428 = arith.constant 0 : index
    %c9_429 = arith.constant 9 : index
    %c0_430 = arith.constant 0 : index
    %c0_431 = arith.constant 0 : index
    %613 = vector.load %arg3[%c0_428, %c9_429, %c0_430, %c0_431] : memref<1x36x16x256xf32, #tpu.memory_space<vmem>>, vector<1x2x16x256xf32>
    %614 = vector.shape_cast %613 : vector<1x2x16x256xf32> to vector<2x16x256xf32>
    %c0_432 = arith.constant 0 : index
    %c9_433 = arith.constant 9 : index
    %c0_434 = arith.constant 0 : index
    %c0_435 = arith.constant 0 : index
    %615 = vector.load %arg4[%c0_432, %c9_433, %c0_434, %c0_435] : memref<1x36x16x256xf32, #tpu.memory_space<vmem>>, vector<1x2x16x256xf32>
    %616 = vector.shape_cast %615 : vector<1x2x16x256xf32> to vector<2x16x256xf32>
    %c11_436 = arith.constant 11 : index
    %c0_437 = arith.constant 0 : index
    %617 = vector.load %arg7[%c11_436, %c0_437] : memref<27x256xf32, #tpu.memory_space<vmem>>, vector<1x256xf32>
    %618 = vector.shape_cast %617 : vector<1x256xf32> to vector<256xf32>
    %619 = vector.shape_cast %618 : vector<256xf32> to vector<1x1x256xf32>
    %620 = vector.broadcast %619 : vector<1x1x256xf32> to vector<2x16x256xf32>
    %621 = arith.mulf %614, %620 : vector<2x16x256xf32>
    %622 = arith.addf %612, %621 : vector<2x16x256xf32>
    %c11_438 = arith.constant 11 : index
    %c0_439 = arith.constant 0 : index
    %623 = vector.load %arg8[%c11_438, %c0_439] : memref<27x256xf32, #tpu.memory_space<vmem>>, vector<1x256xf32>
    %624 = vector.shape_cast %623 : vector<1x256xf32> to vector<256xf32>
    %625 = vector.shape_cast %624 : vector<256xf32> to vector<1x1x256xf32>
    %626 = vector.broadcast %625 : vector<1x1x256xf32> to vector<2x16x256xf32>
    %627 = arith.mulf %616, %626 : vector<2x16x256xf32>
    %628 = arith.addf %622, %627 : vector<2x16x256xf32>
    %c0_440 = arith.constant 0 : index
    %c13_441 = arith.constant 13 : index
    %c0_442 = arith.constant 0 : index
    %c0_443 = arith.constant 0 : index
    %629 = vector.load %arg3[%c0_440, %c13_441, %c0_442, %c0_443] : memref<1x36x16x256xf32, #tpu.memory_space<vmem>>, vector<1x2x16x256xf32>
    %630 = vector.shape_cast %629 : vector<1x2x16x256xf32> to vector<2x16x256xf32>
    %c0_444 = arith.constant 0 : index
    %c13_445 = arith.constant 13 : index
    %c0_446 = arith.constant 0 : index
    %c0_447 = arith.constant 0 : index
    %631 = vector.load %arg4[%c0_444, %c13_445, %c0_446, %c0_447] : memref<1x36x16x256xf32, #tpu.memory_space<vmem>>, vector<1x2x16x256xf32>
    %632 = vector.shape_cast %631 : vector<1x2x16x256xf32> to vector<2x16x256xf32>
    %c12_448 = arith.constant 12 : index
    %c0_449 = arith.constant 0 : index
    %633 = vector.load %arg7[%c12_448, %c0_449] : memref<27x256xf32, #tpu.memory_space<vmem>>, vector<1x256xf32>
    %634 = vector.shape_cast %633 : vector<1x256xf32> to vector<256xf32>
    %635 = vector.shape_cast %634 : vector<256xf32> to vector<1x1x256xf32>
    %636 = vector.broadcast %635 : vector<1x1x256xf32> to vector<2x16x256xf32>
    %637 = arith.mulf %630, %636 : vector<2x16x256xf32>
    %638 = arith.addf %628, %637 : vector<2x16x256xf32>
    %c12_450 = arith.constant 12 : index
    %c0_451 = arith.constant 0 : index
    %639 = vector.load %arg8[%c12_450, %c0_451] : memref<27x256xf32, #tpu.memory_space<vmem>>, vector<1x256xf32>
    %640 = vector.shape_cast %639 : vector<1x256xf32> to vector<256xf32>
    %641 = vector.shape_cast %640 : vector<256xf32> to vector<1x1x256xf32>
    %642 = vector.broadcast %641 : vector<1x1x256xf32> to vector<2x16x256xf32>
    %643 = arith.mulf %632, %642 : vector<2x16x256xf32>
    %644 = arith.addf %638, %643 : vector<2x16x256xf32>
    %c0_452 = arith.constant 0 : index
    %c17_453 = arith.constant 17 : index
    %c0_454 = arith.constant 0 : index
    %c0_455 = arith.constant 0 : index
    %645 = vector.load %arg3[%c0_452, %c17_453, %c0_454, %c0_455] : memref<1x36x16x256xf32, #tpu.memory_space<vmem>>, vector<1x2x16x256xf32>
    %646 = vector.shape_cast %645 : vector<1x2x16x256xf32> to vector<2x16x256xf32>
    %c0_456 = arith.constant 0 : index
    %c17_457 = arith.constant 17 : index
    %c0_458 = arith.constant 0 : index
    %c0_459 = arith.constant 0 : index
    %647 = vector.load %arg4[%c0_456, %c17_457, %c0_458, %c0_459] : memref<1x36x16x256xf32, #tpu.memory_space<vmem>>, vector<1x2x16x256xf32>
    %648 = vector.shape_cast %647 : vector<1x2x16x256xf32> to vector<2x16x256xf32>
    %c13_460 = arith.constant 13 : index
    %c0_461 = arith.constant 0 : index
    %649 = vector.load %arg7[%c13_460, %c0_461] : memref<27x256xf32, #tpu.memory_space<vmem>>, vector<1x256xf32>
    %650 = vector.shape_cast %649 : vector<1x256xf32> to vector<256xf32>
    %651 = vector.shape_cast %650 : vector<256xf32> to vector<1x1x256xf32>
    %652 = vector.broadcast %651 : vector<1x1x256xf32> to vector<2x16x256xf32>
    %653 = arith.mulf %646, %652 : vector<2x16x256xf32>
    %654 = arith.addf %644, %653 : vector<2x16x256xf32>
    %c13_462 = arith.constant 13 : index
    %c0_463 = arith.constant 0 : index
    %655 = vector.load %arg8[%c13_462, %c0_463] : memref<27x256xf32, #tpu.memory_space<vmem>>, vector<1x256xf32>
    %656 = vector.shape_cast %655 : vector<1x256xf32> to vector<256xf32>
    %657 = vector.shape_cast %656 : vector<256xf32> to vector<1x1x256xf32>
    %658 = vector.broadcast %657 : vector<1x1x256xf32> to vector<2x16x256xf32>
    %659 = arith.mulf %648, %658 : vector<2x16x256xf32>
    %660 = arith.addf %654, %659 : vector<2x16x256xf32>
    %c0_464 = arith.constant 0 : index
    %c21_465 = arith.constant 21 : index
    %c0_466 = arith.constant 0 : index
    %c0_467 = arith.constant 0 : index
    %661 = vector.load %arg3[%c0_464, %c21_465, %c0_466, %c0_467] : memref<1x36x16x256xf32, #tpu.memory_space<vmem>>, vector<1x2x16x256xf32>
    %662 = vector.shape_cast %661 : vector<1x2x16x256xf32> to vector<2x16x256xf32>
    %c0_468 = arith.constant 0 : index
    %c21_469 = arith.constant 21 : index
    %c0_470 = arith.constant 0 : index
    %c0_471 = arith.constant 0 : index
    %663 = vector.load %arg4[%c0_468, %c21_469, %c0_470, %c0_471] : memref<1x36x16x256xf32, #tpu.memory_space<vmem>>, vector<1x2x16x256xf32>
    %664 = vector.shape_cast %663 : vector<1x2x16x256xf32> to vector<2x16x256xf32>
    %c14_472 = arith.constant 14 : index
    %c0_473 = arith.constant 0 : index
    %665 = vector.load %arg7[%c14_472, %c0_473] : memref<27x256xf32, #tpu.memory_space<vmem>>, vector<1x256xf32>
    %666 = vector.shape_cast %665 : vector<1x256xf32> to vector<256xf32>
    %667 = vector.shape_cast %666 : vector<256xf32> to vector<1x1x256xf32>
    %668 = vector.broadcast %667 : vector<1x1x256xf32> to vector<2x16x256xf32>
    %669 = arith.mulf %662, %668 : vector<2x16x256xf32>
    %670 = arith.addf %660, %669 : vector<2x16x256xf32>
    %c14_474 = arith.constant 14 : index
    %c0_475 = arith.constant 0 : index
    %671 = vector.load %arg8[%c14_474, %c0_475] : memref<27x256xf32, #tpu.memory_space<vmem>>, vector<1x256xf32>
    %672 = vector.shape_cast %671 : vector<1x256xf32> to vector<256xf32>
    %673 = vector.shape_cast %672 : vector<256xf32> to vector<1x1x256xf32>
    %674 = vector.broadcast %673 : vector<1x1x256xf32> to vector<2x16x256xf32>
    %675 = arith.mulf %664, %674 : vector<2x16x256xf32>
    %676 = arith.addf %670, %675 : vector<2x16x256xf32>
    %c0_476 = arith.constant 0 : index
    %c25_477 = arith.constant 25 : index
    %c0_478 = arith.constant 0 : index
    %c0_479 = arith.constant 0 : index
    %677 = vector.load %arg3[%c0_476, %c25_477, %c0_478, %c0_479] : memref<1x36x16x256xf32, #tpu.memory_space<vmem>>, vector<1x2x16x256xf32>
    %678 = vector.shape_cast %677 : vector<1x2x16x256xf32> to vector<2x16x256xf32>
    %c0_480 = arith.constant 0 : index
    %c25_481 = arith.constant 25 : index
    %c0_482 = arith.constant 0 : index
    %c0_483 = arith.constant 0 : index
    %679 = vector.load %arg4[%c0_480, %c25_481, %c0_482, %c0_483] : memref<1x36x16x256xf32, #tpu.memory_space<vmem>>, vector<1x2x16x256xf32>
    %680 = vector.shape_cast %679 : vector<1x2x16x256xf32> to vector<2x16x256xf32>
    %c15_484 = arith.constant 15 : index
    %c0_485 = arith.constant 0 : index
    %681 = vector.load %arg7[%c15_484, %c0_485] : memref<27x256xf32, #tpu.memory_space<vmem>>, vector<1x256xf32>
    %682 = vector.shape_cast %681 : vector<1x256xf32> to vector<256xf32>
    %683 = vector.shape_cast %682 : vector<256xf32> to vector<1x1x256xf32>
    %684 = vector.broadcast %683 : vector<1x1x256xf32> to vector<2x16x256xf32>
    %685 = arith.mulf %678, %684 : vector<2x16x256xf32>
    %686 = arith.addf %676, %685 : vector<2x16x256xf32>
    %c15_486 = arith.constant 15 : index
    %c0_487 = arith.constant 0 : index
    %687 = vector.load %arg8[%c15_486, %c0_487] : memref<27x256xf32, #tpu.memory_space<vmem>>, vector<1x256xf32>
    %688 = vector.shape_cast %687 : vector<1x256xf32> to vector<256xf32>
    %689 = vector.shape_cast %688 : vector<256xf32> to vector<1x1x256xf32>
    %690 = vector.broadcast %689 : vector<1x1x256xf32> to vector<2x16x256xf32>
    %691 = arith.mulf %680, %690 : vector<2x16x256xf32>
    %692 = arith.addf %686, %691 : vector<2x16x256xf32>
    %c0_488 = arith.constant 0 : index
    %c29_489 = arith.constant 29 : index
    %c0_490 = arith.constant 0 : index
    %c0_491 = arith.constant 0 : index
    %693 = vector.load %arg3[%c0_488, %c29_489, %c0_490, %c0_491] : memref<1x36x16x256xf32, #tpu.memory_space<vmem>>, vector<1x2x16x256xf32>
    %694 = vector.shape_cast %693 : vector<1x2x16x256xf32> to vector<2x16x256xf32>
    %c0_492 = arith.constant 0 : index
    %c29_493 = arith.constant 29 : index
    %c0_494 = arith.constant 0 : index
    %c0_495 = arith.constant 0 : index
    %695 = vector.load %arg4[%c0_492, %c29_493, %c0_494, %c0_495] : memref<1x36x16x256xf32, #tpu.memory_space<vmem>>, vector<1x2x16x256xf32>
    %696 = vector.shape_cast %695 : vector<1x2x16x256xf32> to vector<2x16x256xf32>
    %c16_496 = arith.constant 16 : index
    %c0_497 = arith.constant 0 : index
    %697 = vector.load %arg7[%c16_496, %c0_497] : memref<27x256xf32, #tpu.memory_space<vmem>>, vector<1x256xf32>
    %698 = vector.shape_cast %697 : vector<1x256xf32> to vector<256xf32>
    %699 = vector.shape_cast %698 : vector<256xf32> to vector<1x1x256xf32>
    %700 = vector.broadcast %699 : vector<1x1x256xf32> to vector<2x16x256xf32>
    %701 = arith.mulf %694, %700 : vector<2x16x256xf32>
    %702 = arith.addf %692, %701 : vector<2x16x256xf32>
    %c16_498 = arith.constant 16 : index
    %c0_499 = arith.constant 0 : index
    %703 = vector.load %arg8[%c16_498, %c0_499] : memref<27x256xf32, #tpu.memory_space<vmem>>, vector<1x256xf32>
    %704 = vector.shape_cast %703 : vector<1x256xf32> to vector<256xf32>
    %705 = vector.shape_cast %704 : vector<256xf32> to vector<1x1x256xf32>
    %706 = vector.broadcast %705 : vector<1x1x256xf32> to vector<2x16x256xf32>
    %707 = arith.mulf %696, %706 : vector<2x16x256xf32>
    %708 = arith.addf %702, %707 : vector<2x16x256xf32>
    %c0_500 = arith.constant 0 : index
    %c33_501 = arith.constant 33 : index
    %c0_502 = arith.constant 0 : index
    %c0_503 = arith.constant 0 : index
    %709 = vector.load %arg3[%c0_500, %c33_501, %c0_502, %c0_503] : memref<1x36x16x256xf32, #tpu.memory_space<vmem>>, vector<1x2x16x256xf32>
    %710 = vector.shape_cast %709 : vector<1x2x16x256xf32> to vector<2x16x256xf32>
    %c0_504 = arith.constant 0 : index
    %c33_505 = arith.constant 33 : index
    %c0_506 = arith.constant 0 : index
    %c0_507 = arith.constant 0 : index
    %711 = vector.load %arg4[%c0_504, %c33_505, %c0_506, %c0_507] : memref<1x36x16x256xf32, #tpu.memory_space<vmem>>, vector<1x2x16x256xf32>
    %712 = vector.shape_cast %711 : vector<1x2x16x256xf32> to vector<2x16x256xf32>
    %c17_508 = arith.constant 17 : index
    %c0_509 = arith.constant 0 : index
    %713 = vector.load %arg7[%c17_508, %c0_509] : memref<27x256xf32, #tpu.memory_space<vmem>>, vector<1x256xf32>
    %714 = vector.shape_cast %713 : vector<1x256xf32> to vector<256xf32>
    %715 = vector.shape_cast %714 : vector<256xf32> to vector<1x1x256xf32>
    %716 = vector.broadcast %715 : vector<1x1x256xf32> to vector<2x16x256xf32>
    %717 = arith.mulf %710, %716 : vector<2x16x256xf32>
    %718 = arith.addf %708, %717 : vector<2x16x256xf32>
    %c17_510 = arith.constant 17 : index
    %c0_511 = arith.constant 0 : index
    %719 = vector.load %arg8[%c17_510, %c0_511] : memref<27x256xf32, #tpu.memory_space<vmem>>, vector<1x256xf32>
    %720 = vector.shape_cast %719 : vector<1x256xf32> to vector<256xf32>
    %721 = vector.shape_cast %720 : vector<256xf32> to vector<1x1x256xf32>
    %722 = vector.broadcast %721 : vector<1x1x256xf32> to vector<2x16x256xf32>
    %723 = arith.mulf %712, %722 : vector<2x16x256xf32>
    %724 = arith.addf %718, %723 : vector<2x16x256xf32>
    %c0_512 = arith.constant 0 : index
    %c2_513 = arith.constant 2 : index
    %c0_514 = arith.constant 0 : index
    %c0_515 = arith.constant 0 : index
    %725 = vector.load %arg3[%c0_512, %c2_513, %c0_514, %c0_515] : memref<1x36x16x256xf32, #tpu.memory_space<vmem>>, vector<1x2x16x256xf32>
    %726 = vector.shape_cast %725 : vector<1x2x16x256xf32> to vector<2x16x256xf32>
    %c0_516 = arith.constant 0 : index
    %c2_517 = arith.constant 2 : index
    %c0_518 = arith.constant 0 : index
    %c0_519 = arith.constant 0 : index
    %727 = vector.load %arg4[%c0_516, %c2_517, %c0_518, %c0_519] : memref<1x36x16x256xf32, #tpu.memory_space<vmem>>, vector<1x2x16x256xf32>
    %728 = vector.shape_cast %727 : vector<1x2x16x256xf32> to vector<2x16x256xf32>
    %c18_520 = arith.constant 18 : index
    %c0_521 = arith.constant 0 : index
    %729 = vector.load %arg7[%c18_520, %c0_521] : memref<27x256xf32, #tpu.memory_space<vmem>>, vector<1x256xf32>
    %730 = vector.shape_cast %729 : vector<1x256xf32> to vector<256xf32>
    %731 = vector.shape_cast %730 : vector<256xf32> to vector<1x1x256xf32>
    %732 = vector.broadcast %731 : vector<1x1x256xf32> to vector<2x16x256xf32>
    %733 = arith.mulf %726, %732 : vector<2x16x256xf32>
    %734 = arith.addf %724, %733 : vector<2x16x256xf32>
    %c18_522 = arith.constant 18 : index
    %c0_523 = arith.constant 0 : index
    %735 = vector.load %arg8[%c18_522, %c0_523] : memref<27x256xf32, #tpu.memory_space<vmem>>, vector<1x256xf32>
    %736 = vector.shape_cast %735 : vector<1x256xf32> to vector<256xf32>
    %737 = vector.shape_cast %736 : vector<256xf32> to vector<1x1x256xf32>
    %738 = vector.broadcast %737 : vector<1x1x256xf32> to vector<2x16x256xf32>
    %739 = arith.mulf %728, %738 : vector<2x16x256xf32>
    %740 = arith.addf %734, %739 : vector<2x16x256xf32>
    %c0_524 = arith.constant 0 : index
    %c6_525 = arith.constant 6 : index
    %c0_526 = arith.constant 0 : index
    %c0_527 = arith.constant 0 : index
    %741 = vector.load %arg3[%c0_524, %c6_525, %c0_526, %c0_527] : memref<1x36x16x256xf32, #tpu.memory_space<vmem>>, vector<1x2x16x256xf32>
    %742 = vector.shape_cast %741 : vector<1x2x16x256xf32> to vector<2x16x256xf32>
    %c0_528 = arith.constant 0 : index
    %c6_529 = arith.constant 6 : index
    %c0_530 = arith.constant 0 : index
    %c0_531 = arith.constant 0 : index
    %743 = vector.load %arg4[%c0_528, %c6_529, %c0_530, %c0_531] : memref<1x36x16x256xf32, #tpu.memory_space<vmem>>, vector<1x2x16x256xf32>
    %744 = vector.shape_cast %743 : vector<1x2x16x256xf32> to vector<2x16x256xf32>
    %c19_532 = arith.constant 19 : index
    %c0_533 = arith.constant 0 : index
    %745 = vector.load %arg7[%c19_532, %c0_533] : memref<27x256xf32, #tpu.memory_space<vmem>>, vector<1x256xf32>
    %746 = vector.shape_cast %745 : vector<1x256xf32> to vector<256xf32>
    %747 = vector.shape_cast %746 : vector<256xf32> to vector<1x1x256xf32>
    %748 = vector.broadcast %747 : vector<1x1x256xf32> to vector<2x16x256xf32>
    %749 = arith.mulf %742, %748 : vector<2x16x256xf32>
    %750 = arith.addf %740, %749 : vector<2x16x256xf32>
    %c19_534 = arith.constant 19 : index
    %c0_535 = arith.constant 0 : index
    %751 = vector.load %arg8[%c19_534, %c0_535] : memref<27x256xf32, #tpu.memory_space<vmem>>, vector<1x256xf32>
    %752 = vector.shape_cast %751 : vector<1x256xf32> to vector<256xf32>
    %753 = vector.shape_cast %752 : vector<256xf32> to vector<1x1x256xf32>
    %754 = vector.broadcast %753 : vector<1x1x256xf32> to vector<2x16x256xf32>
    %755 = arith.mulf %744, %754 : vector<2x16x256xf32>
    %756 = arith.addf %750, %755 : vector<2x16x256xf32>
    %c0_536 = arith.constant 0 : index
    %c10_537 = arith.constant 10 : index
    %c0_538 = arith.constant 0 : index
    %c0_539 = arith.constant 0 : index
    %757 = vector.load %arg3[%c0_536, %c10_537, %c0_538, %c0_539] : memref<1x36x16x256xf32, #tpu.memory_space<vmem>>, vector<1x2x16x256xf32>
    %758 = vector.shape_cast %757 : vector<1x2x16x256xf32> to vector<2x16x256xf32>
    %c0_540 = arith.constant 0 : index
    %c10_541 = arith.constant 10 : index
    %c0_542 = arith.constant 0 : index
    %c0_543 = arith.constant 0 : index
    %759 = vector.load %arg4[%c0_540, %c10_541, %c0_542, %c0_543] : memref<1x36x16x256xf32, #tpu.memory_space<vmem>>, vector<1x2x16x256xf32>
    %760 = vector.shape_cast %759 : vector<1x2x16x256xf32> to vector<2x16x256xf32>
    %c20_544 = arith.constant 20 : index
    %c0_545 = arith.constant 0 : index
    %761 = vector.load %arg7[%c20_544, %c0_545] : memref<27x256xf32, #tpu.memory_space<vmem>>, vector<1x256xf32>
    %762 = vector.shape_cast %761 : vector<1x256xf32> to vector<256xf32>
    %763 = vector.shape_cast %762 : vector<256xf32> to vector<1x1x256xf32>
    %764 = vector.broadcast %763 : vector<1x1x256xf32> to vector<2x16x256xf32>
    %765 = arith.mulf %758, %764 : vector<2x16x256xf32>
    %766 = arith.addf %756, %765 : vector<2x16x256xf32>
    %c20_546 = arith.constant 20 : index
    %c0_547 = arith.constant 0 : index
    %767 = vector.load %arg8[%c20_546, %c0_547] : memref<27x256xf32, #tpu.memory_space<vmem>>, vector<1x256xf32>
    %768 = vector.shape_cast %767 : vector<1x256xf32> to vector<256xf32>
    %769 = vector.shape_cast %768 : vector<256xf32> to vector<1x1x256xf32>
    %770 = vector.broadcast %769 : vector<1x1x256xf32> to vector<2x16x256xf32>
    %771 = arith.mulf %760, %770 : vector<2x16x256xf32>
    %772 = arith.addf %766, %771 : vector<2x16x256xf32>
    %c0_548 = arith.constant 0 : index
    %c14_549 = arith.constant 14 : index
    %c0_550 = arith.constant 0 : index
    %c0_551 = arith.constant 0 : index
    %773 = vector.load %arg3[%c0_548, %c14_549, %c0_550, %c0_551] : memref<1x36x16x256xf32, #tpu.memory_space<vmem>>, vector<1x2x16x256xf32>
    %774 = vector.shape_cast %773 : vector<1x2x16x256xf32> to vector<2x16x256xf32>
    %c0_552 = arith.constant 0 : index
    %c14_553 = arith.constant 14 : index
    %c0_554 = arith.constant 0 : index
    %c0_555 = arith.constant 0 : index
    %775 = vector.load %arg4[%c0_552, %c14_553, %c0_554, %c0_555] : memref<1x36x16x256xf32, #tpu.memory_space<vmem>>, vector<1x2x16x256xf32>
    %776 = vector.shape_cast %775 : vector<1x2x16x256xf32> to vector<2x16x256xf32>
    %c21_556 = arith.constant 21 : index
    %c0_557 = arith.constant 0 : index
    %777 = vector.load %arg7[%c21_556, %c0_557] : memref<27x256xf32, #tpu.memory_space<vmem>>, vector<1x256xf32>
    %778 = vector.shape_cast %777 : vector<1x256xf32> to vector<256xf32>
    %779 = vector.shape_cast %778 : vector<256xf32> to vector<1x1x256xf32>
    %780 = vector.broadcast %779 : vector<1x1x256xf32> to vector<2x16x256xf32>
    %781 = arith.mulf %774, %780 : vector<2x16x256xf32>
    %782 = arith.addf %772, %781 : vector<2x16x256xf32>
    %c21_558 = arith.constant 21 : index
    %c0_559 = arith.constant 0 : index
    %783 = vector.load %arg8[%c21_558, %c0_559] : memref<27x256xf32, #tpu.memory_space<vmem>>, vector<1x256xf32>
    %784 = vector.shape_cast %783 : vector<1x256xf32> to vector<256xf32>
    %785 = vector.shape_cast %784 : vector<256xf32> to vector<1x1x256xf32>
    %786 = vector.broadcast %785 : vector<1x1x256xf32> to vector<2x16x256xf32>
    %787 = arith.mulf %776, %786 : vector<2x16x256xf32>
    %788 = arith.addf %782, %787 : vector<2x16x256xf32>
    %c0_560 = arith.constant 0 : index
    %c18_561 = arith.constant 18 : index
    %c0_562 = arith.constant 0 : index
    %c0_563 = arith.constant 0 : index
    %789 = vector.load %arg3[%c0_560, %c18_561, %c0_562, %c0_563] : memref<1x36x16x256xf32, #tpu.memory_space<vmem>>, vector<1x2x16x256xf32>
    %790 = vector.shape_cast %789 : vector<1x2x16x256xf32> to vector<2x16x256xf32>
    %c0_564 = arith.constant 0 : index
    %c18_565 = arith.constant 18 : index
    %c0_566 = arith.constant 0 : index
    %c0_567 = arith.constant 0 : index
    %791 = vector.load %arg4[%c0_564, %c18_565, %c0_566, %c0_567] : memref<1x36x16x256xf32, #tpu.memory_space<vmem>>, vector<1x2x16x256xf32>
    %792 = vector.shape_cast %791 : vector<1x2x16x256xf32> to vector<2x16x256xf32>
    %c22_568 = arith.constant 22 : index
    %c0_569 = arith.constant 0 : index
    %793 = vector.load %arg7[%c22_568, %c0_569] : memref<27x256xf32, #tpu.memory_space<vmem>>, vector<1x256xf32>
    %794 = vector.shape_cast %793 : vector<1x256xf32> to vector<256xf32>
    %795 = vector.shape_cast %794 : vector<256xf32> to vector<1x1x256xf32>
    %796 = vector.broadcast %795 : vector<1x1x256xf32> to vector<2x16x256xf32>
    %797 = arith.mulf %790, %796 : vector<2x16x256xf32>
    %798 = arith.addf %788, %797 : vector<2x16x256xf32>
    %c22_570 = arith.constant 22 : index
    %c0_571 = arith.constant 0 : index
    %799 = vector.load %arg8[%c22_570, %c0_571] : memref<27x256xf32, #tpu.memory_space<vmem>>, vector<1x256xf32>
    %800 = vector.shape_cast %799 : vector<1x256xf32> to vector<256xf32>
    %801 = vector.shape_cast %800 : vector<256xf32> to vector<1x1x256xf32>
    %802 = vector.broadcast %801 : vector<1x1x256xf32> to vector<2x16x256xf32>
    %803 = arith.mulf %792, %802 : vector<2x16x256xf32>
    %804 = arith.addf %798, %803 : vector<2x16x256xf32>
    %c0_572 = arith.constant 0 : index
    %c22_573 = arith.constant 22 : index
    %c0_574 = arith.constant 0 : index
    %c0_575 = arith.constant 0 : index
    %805 = vector.load %arg3[%c0_572, %c22_573, %c0_574, %c0_575] : memref<1x36x16x256xf32, #tpu.memory_space<vmem>>, vector<1x2x16x256xf32>
    %806 = vector.shape_cast %805 : vector<1x2x16x256xf32> to vector<2x16x256xf32>
    %c0_576 = arith.constant 0 : index
    %c22_577 = arith.constant 22 : index
    %c0_578 = arith.constant 0 : index
    %c0_579 = arith.constant 0 : index
    %807 = vector.load %arg4[%c0_576, %c22_577, %c0_578, %c0_579] : memref<1x36x16x256xf32, #tpu.memory_space<vmem>>, vector<1x2x16x256xf32>
    %808 = vector.shape_cast %807 : vector<1x2x16x256xf32> to vector<2x16x256xf32>
    %c23_580 = arith.constant 23 : index
    %c0_581 = arith.constant 0 : index
    %809 = vector.load %arg7[%c23_580, %c0_581] : memref<27x256xf32, #tpu.memory_space<vmem>>, vector<1x256xf32>
    %810 = vector.shape_cast %809 : vector<1x256xf32> to vector<256xf32>
    %811 = vector.shape_cast %810 : vector<256xf32> to vector<1x1x256xf32>
    %812 = vector.broadcast %811 : vector<1x1x256xf32> to vector<2x16x256xf32>
    %813 = arith.mulf %806, %812 : vector<2x16x256xf32>
    %814 = arith.addf %804, %813 : vector<2x16x256xf32>
    %c23_582 = arith.constant 23 : index
    %c0_583 = arith.constant 0 : index
    %815 = vector.load %arg8[%c23_582, %c0_583] : memref<27x256xf32, #tpu.memory_space<vmem>>, vector<1x256xf32>
    %816 = vector.shape_cast %815 : vector<1x256xf32> to vector<256xf32>
    %817 = vector.shape_cast %816 : vector<256xf32> to vector<1x1x256xf32>
    %818 = vector.broadcast %817 : vector<1x1x256xf32> to vector<2x16x256xf32>
    %819 = arith.mulf %808, %818 : vector<2x16x256xf32>
    %820 = arith.addf %814, %819 : vector<2x16x256xf32>
    %c0_584 = arith.constant 0 : index
    %c26_585 = arith.constant 26 : index
    %c0_586 = arith.constant 0 : index
    %c0_587 = arith.constant 0 : index
    %821 = vector.load %arg3[%c0_584, %c26_585, %c0_586, %c0_587] : memref<1x36x16x256xf32, #tpu.memory_space<vmem>>, vector<1x2x16x256xf32>
    %822 = vector.shape_cast %821 : vector<1x2x16x256xf32> to vector<2x16x256xf32>
    %c0_588 = arith.constant 0 : index
    %c26_589 = arith.constant 26 : index
    %c0_590 = arith.constant 0 : index
    %c0_591 = arith.constant 0 : index
    %823 = vector.load %arg4[%c0_588, %c26_589, %c0_590, %c0_591] : memref<1x36x16x256xf32, #tpu.memory_space<vmem>>, vector<1x2x16x256xf32>
    %824 = vector.shape_cast %823 : vector<1x2x16x256xf32> to vector<2x16x256xf32>
    %c24_592 = arith.constant 24 : index
    %c0_593 = arith.constant 0 : index
    %825 = vector.load %arg7[%c24_592, %c0_593] : memref<27x256xf32, #tpu.memory_space<vmem>>, vector<1x256xf32>
    %826 = vector.shape_cast %825 : vector<1x256xf32> to vector<256xf32>
    %827 = vector.shape_cast %826 : vector<256xf32> to vector<1x1x256xf32>
    %828 = vector.broadcast %827 : vector<1x1x256xf32> to vector<2x16x256xf32>
    %829 = arith.mulf %822, %828 : vector<2x16x256xf32>
    %830 = arith.addf %820, %829 : vector<2x16x256xf32>
    %c24_594 = arith.constant 24 : index
    %c0_595 = arith.constant 0 : index
    %831 = vector.load %arg8[%c24_594, %c0_595] : memref<27x256xf32, #tpu.memory_space<vmem>>, vector<1x256xf32>
    %832 = vector.shape_cast %831 : vector<1x256xf32> to vector<256xf32>
    %833 = vector.shape_cast %832 : vector<256xf32> to vector<1x1x256xf32>
    %834 = vector.broadcast %833 : vector<1x1x256xf32> to vector<2x16x256xf32>
    %835 = arith.mulf %824, %834 : vector<2x16x256xf32>
    %836 = arith.addf %830, %835 : vector<2x16x256xf32>
    %c0_596 = arith.constant 0 : index
    %c30_597 = arith.constant 30 : index
    %c0_598 = arith.constant 0 : index
    %c0_599 = arith.constant 0 : index
    %837 = vector.load %arg3[%c0_596, %c30_597, %c0_598, %c0_599] : memref<1x36x16x256xf32, #tpu.memory_space<vmem>>, vector<1x2x16x256xf32>
    %838 = vector.shape_cast %837 : vector<1x2x16x256xf32> to vector<2x16x256xf32>
    %c0_600 = arith.constant 0 : index
    %c30_601 = arith.constant 30 : index
    %c0_602 = arith.constant 0 : index
    %c0_603 = arith.constant 0 : index
    %839 = vector.load %arg4[%c0_600, %c30_601, %c0_602, %c0_603] : memref<1x36x16x256xf32, #tpu.memory_space<vmem>>, vector<1x2x16x256xf32>
    %840 = vector.shape_cast %839 : vector<1x2x16x256xf32> to vector<2x16x256xf32>
    %c25_604 = arith.constant 25 : index
    %c0_605 = arith.constant 0 : index
    %841 = vector.load %arg7[%c25_604, %c0_605] : memref<27x256xf32, #tpu.memory_space<vmem>>, vector<1x256xf32>
    %842 = vector.shape_cast %841 : vector<1x256xf32> to vector<256xf32>
    %843 = vector.shape_cast %842 : vector<256xf32> to vector<1x1x256xf32>
    %844 = vector.broadcast %843 : vector<1x1x256xf32> to vector<2x16x256xf32>
    %845 = arith.mulf %838, %844 : vector<2x16x256xf32>
    %846 = arith.addf %836, %845 : vector<2x16x256xf32>
    %c25_606 = arith.constant 25 : index
    %c0_607 = arith.constant 0 : index
    %847 = vector.load %arg8[%c25_606, %c0_607] : memref<27x256xf32, #tpu.memory_space<vmem>>, vector<1x256xf32>
    %848 = vector.shape_cast %847 : vector<1x256xf32> to vector<256xf32>
    %849 = vector.shape_cast %848 : vector<256xf32> to vector<1x1x256xf32>
    %850 = vector.broadcast %849 : vector<1x1x256xf32> to vector<2x16x256xf32>
    %851 = arith.mulf %840, %850 : vector<2x16x256xf32>
    %852 = arith.addf %846, %851 : vector<2x16x256xf32>
    %c0_608 = arith.constant 0 : index
    %c34_609 = arith.constant 34 : index
    %c0_610 = arith.constant 0 : index
    %c0_611 = arith.constant 0 : index
    %853 = vector.load %arg3[%c0_608, %c34_609, %c0_610, %c0_611] : memref<1x36x16x256xf32, #tpu.memory_space<vmem>>, vector<1x2x16x256xf32>
    %854 = vector.shape_cast %853 : vector<1x2x16x256xf32> to vector<2x16x256xf32>
    %c0_612 = arith.constant 0 : index
    %c34_613 = arith.constant 34 : index
    %c0_614 = arith.constant 0 : index
    %c0_615 = arith.constant 0 : index
    %855 = vector.load %arg4[%c0_612, %c34_613, %c0_614, %c0_615] : memref<1x36x16x256xf32, #tpu.memory_space<vmem>>, vector<1x2x16x256xf32>
    %856 = vector.shape_cast %855 : vector<1x2x16x256xf32> to vector<2x16x256xf32>
    %c26_616 = arith.constant 26 : index
    %c0_617 = arith.constant 0 : index
    %857 = vector.load %arg7[%c26_616, %c0_617] : memref<27x256xf32, #tpu.memory_space<vmem>>, vector<1x256xf32>
    %858 = vector.shape_cast %857 : vector<1x256xf32> to vector<256xf32>
    %859 = vector.shape_cast %858 : vector<256xf32> to vector<1x1x256xf32>
    %860 = vector.broadcast %859 : vector<1x1x256xf32> to vector<2x16x256xf32>
    %861 = arith.mulf %854, %860 : vector<2x16x256xf32>
    %862 = arith.addf %852, %861 : vector<2x16x256xf32>
    %c26_618 = arith.constant 26 : index
    %c0_619 = arith.constant 0 : index
    %863 = vector.load %arg8[%c26_618, %c0_619] : memref<27x256xf32, #tpu.memory_space<vmem>>, vector<1x256xf32>
    %864 = vector.shape_cast %863 : vector<1x256xf32> to vector<256xf32>
    %865 = vector.shape_cast %864 : vector<256xf32> to vector<1x1x256xf32>
    %866 = vector.broadcast %865 : vector<1x1x256xf32> to vector<2x16x256xf32>
    %867 = arith.mulf %856, %866 : vector<2x16x256xf32>
    %868 = arith.addf %862, %867 : vector<2x16x256xf32>
    %c0_620 = arith.constant 0 : index
    %c0_621 = arith.constant 0 : index
    %c0_622 = arith.constant 0 : index
    %c0_623 = arith.constant 0 : index
    %869 = vector.load %arg12[%c0_620, %c0_621, %c0_622, %c0_623] : memref<1x2x16x256xf32, #tpu.memory_space<vmem>>, vector<1x2x16x256xf32>
    %870 = vector.shape_cast %869 : vector<1x2x16x256xf32> to vector<2x16x256xf32>
    %871 = vector.shape_cast %868 : vector<2x16x256xf32> to vector<1x2x16x256xf32>
    tpu.vector_store %arg12[%c0_620, %c0_621, %c0_622, %c0_623], %871 {strides = array<i32>} : memref<1x2x16x256xf32, #tpu.memory_space<vmem>>, vector<1x2x16x256xf32>,
    %cst_624 = arith.constant 0.000000e+00 : f32
    %872 = vector.broadcast %cst_624 : f32 to vector<2x16x256xf32>
    %c0_625 = arith.constant 0 : index
    %c0_626 = arith.constant 0 : index
    %c0_627 = arith.constant 0 : index
    %c0_628 = arith.constant 0 : index
    %873 = vector.load %arg3[%c0_625, %c0_626, %c0_627, %c0_628] : memref<1x36x16x256xf32, #tpu.memory_space<vmem>>, vector<1x2x16x256xf32>
    %874 = vector.shape_cast %873 : vector<1x2x16x256xf32> to vector<2x16x256xf32>
    %c0_629 = arith.constant 0 : index
    %c0_630 = arith.constant 0 : index
    %c0_631 = arith.constant 0 : index
    %c0_632 = arith.constant 0 : index
    %875 = vector.load %arg4[%c0_629, %c0_630, %c0_631, %c0_632] : memref<1x36x16x256xf32, #tpu.memory_space<vmem>>, vector<1x2x16x256xf32>
    %876 = vector.shape_cast %875 : vector<1x2x16x256xf32> to vector<2x16x256xf32>
    %c0_633 = arith.constant 0 : index
    %c0_634 = arith.constant 0 : index
    %877 = vector.load %arg9[%c0_633, %c0_634] : memref<27x256xf32, #tpu.memory_space<vmem>>, vector<1x256xf32>
    %878 = vector.shape_cast %877 : vector<1x256xf32> to vector<256xf32>
    %879 = vector.shape_cast %878 : vector<256xf32> to vector<1x1x256xf32>
    %880 = vector.broadcast %879 : vector<1x1x256xf32> to vector<2x16x256xf32>
    %881 = arith.mulf %874, %880 : vector<2x16x256xf32>
    %882 = arith.addf %872, %881 : vector<2x16x256xf32>
    %c0_635 = arith.constant 0 : index
    %c0_636 = arith.constant 0 : index
    %883 = vector.load %arg10[%c0_635, %c0_636] : memref<27x256xf32, #tpu.memory_space<vmem>>, vector<1x256xf32>
    %884 = vector.shape_cast %883 : vector<1x256xf32> to vector<256xf32>
    %885 = vector.shape_cast %884 : vector<256xf32> to vector<1x1x256xf32>
    %886 = vector.broadcast %885 : vector<1x1x256xf32> to vector<2x16x256xf32>
    %887 = arith.mulf %876, %886 : vector<2x16x256xf32>
    %888 = arith.addf %882, %887 : vector<2x16x256xf32>
    %c0_637 = arith.constant 0 : index
    %c4_638 = arith.constant 4 : index
    %c0_639 = arith.constant 0 : index
    %c0_640 = arith.constant 0 : index
    %889 = vector.load %arg3[%c0_637, %c4_638, %c0_639, %c0_640] : memref<1x36x16x256xf32, #tpu.memory_space<vmem>>, vector<1x2x16x256xf32>
    %890 = vector.shape_cast %889 : vector<1x2x16x256xf32> to vector<2x16x256xf32>
    %c0_641 = arith.constant 0 : index
    %c4_642 = arith.constant 4 : index
    %c0_643 = arith.constant 0 : index
    %c0_644 = arith.constant 0 : index
    %891 = vector.load %arg4[%c0_641, %c4_642, %c0_643, %c0_644] : memref<1x36x16x256xf32, #tpu.memory_space<vmem>>, vector<1x2x16x256xf32>
    %892 = vector.shape_cast %891 : vector<1x2x16x256xf32> to vector<2x16x256xf32>
    %c1_645 = arith.constant 1 : index
    %c0_646 = arith.constant 0 : index
    %893 = vector.load %arg9[%c1_645, %c0_646] : memref<27x256xf32, #tpu.memory_space<vmem>>, vector<1x256xf32>
    %894 = vector.shape_cast %893 : vector<1x256xf32> to vector<256xf32>
    %895 = vector.shape_cast %894 : vector<256xf32> to vector<1x1x256xf32>
    %896 = vector.broadcast %895 : vector<1x1x256xf32> to vector<2x16x256xf32>
    %897 = arith.mulf %890, %896 : vector<2x16x256xf32>
    %898 = arith.addf %888, %897 : vector<2x16x256xf32>
    %c1_647 = arith.constant 1 : index
    %c0_648 = arith.constant 0 : index
    %899 = vector.load %arg10[%c1_647, %c0_648] : memref<27x256xf32, #tpu.memory_space<vmem>>, vector<1x256xf32>
    %900 = vector.shape_cast %899 : vector<1x256xf32> to vector<256xf32>
    %901 = vector.shape_cast %900 : vector<256xf32> to vector<1x1x256xf32>
    %902 = vector.broadcast %901 : vector<1x1x256xf32> to vector<2x16x256xf32>
    %903 = arith.mulf %892, %902 : vector<2x16x256xf32>
    %904 = arith.addf %898, %903 : vector<2x16x256xf32>
    %c0_649 = arith.constant 0 : index
    %c8_650 = arith.constant 8 : index
    %c0_651 = arith.constant 0 : index
    %c0_652 = arith.constant 0 : index
    %905 = vector.load %arg3[%c0_649, %c8_650, %c0_651, %c0_652] : memref<1x36x16x256xf32, #tpu.memory_space<vmem>>, vector<1x2x16x256xf32>
    %906 = vector.shape_cast %905 : vector<1x2x16x256xf32> to vector<2x16x256xf32>
    %c0_653 = arith.constant 0 : index
    %c8_654 = arith.constant 8 : index
    %c0_655 = arith.constant 0 : index
    %c0_656 = arith.constant 0 : index
    %907 = vector.load %arg4[%c0_653, %c8_654, %c0_655, %c0_656] : memref<1x36x16x256xf32, #tpu.memory_space<vmem>>, vector<1x2x16x256xf32>
    %908 = vector.shape_cast %907 : vector<1x2x16x256xf32> to vector<2x16x256xf32>
    %c2_657 = arith.constant 2 : index
    %c0_658 = arith.constant 0 : index
    %909 = vector.load %arg9[%c2_657, %c0_658] : memref<27x256xf32, #tpu.memory_space<vmem>>, vector<1x256xf32>
    %910 = vector.shape_cast %909 : vector<1x256xf32> to vector<256xf32>
    %911 = vector.shape_cast %910 : vector<256xf32> to vector<1x1x256xf32>
    %912 = vector.broadcast %911 : vector<1x1x256xf32> to vector<2x16x256xf32>
    %913 = arith.mulf %906, %912 : vector<2x16x256xf32>
    %914 = arith.addf %904, %913 : vector<2x16x256xf32>
    %c2_659 = arith.constant 2 : index
    %c0_660 = arith.constant 0 : index
    %915 = vector.load %arg10[%c2_659, %c0_660] : memref<27x256xf32, #tpu.memory_space<vmem>>, vector<1x256xf32>
    %916 = vector.shape_cast %915 : vector<1x256xf32> to vector<256xf32>
    %917 = vector.shape_cast %916 : vector<256xf32> to vector<1x1x256xf32>
    %918 = vector.broadcast %917 : vector<1x1x256xf32> to vector<2x16x256xf32>
    %919 = arith.mulf %908, %918 : vector<2x16x256xf32>
    %920 = arith.addf %914, %919 : vector<2x16x256xf32>
    %c0_661 = arith.constant 0 : index
    %c12_662 = arith.constant 12 : index
    %c0_663 = arith.constant 0 : index
    %c0_664 = arith.constant 0 : index
    %921 = vector.load %arg3[%c0_661, %c12_662, %c0_663, %c0_664] : memref<1x36x16x256xf32, #tpu.memory_space<vmem>>, vector<1x2x16x256xf32>
    %922 = vector.shape_cast %921 : vector<1x2x16x256xf32> to vector<2x16x256xf32>
    %c0_665 = arith.constant 0 : index
    %c12_666 = arith.constant 12 : index
    %c0_667 = arith.constant 0 : index
    %c0_668 = arith.constant 0 : index
    %923 = vector.load %arg4[%c0_665, %c12_666, %c0_667, %c0_668] : memref<1x36x16x256xf32, #tpu.memory_space<vmem>>, vector<1x2x16x256xf32>
    %924 = vector.shape_cast %923 : vector<1x2x16x256xf32> to vector<2x16x256xf32>
    %c3_669 = arith.constant 3 : index
    %c0_670 = arith.constant 0 : index
    %925 = vector.load %arg9[%c3_669, %c0_670] : memref<27x256xf32, #tpu.memory_space<vmem>>, vector<1x256xf32>
    %926 = vector.shape_cast %925 : vector<1x256xf32> to vector<256xf32>
    %927 = vector.shape_cast %926 : vector<256xf32> to vector<1x1x256xf32>
    %928 = vector.broadcast %927 : vector<1x1x256xf32> to vector<2x16x256xf32>
    %929 = arith.mulf %922, %928 : vector<2x16x256xf32>
    %930 = arith.addf %920, %929 : vector<2x16x256xf32>
    %c3_671 = arith.constant 3 : index
    %c0_672 = arith.constant 0 : index
    %931 = vector.load %arg10[%c3_671, %c0_672] : memref<27x256xf32, #tpu.memory_space<vmem>>, vector<1x256xf32>
    %932 = vector.shape_cast %931 : vector<1x256xf32> to vector<256xf32>
    %933 = vector.shape_cast %932 : vector<256xf32> to vector<1x1x256xf32>
    %934 = vector.broadcast %933 : vector<1x1x256xf32> to vector<2x16x256xf32>
    %935 = arith.mulf %924, %934 : vector<2x16x256xf32>
    %936 = arith.addf %930, %935 : vector<2x16x256xf32>
    %c0_673 = arith.constant 0 : index
    %c16_674 = arith.constant 16 : index
    %c0_675 = arith.constant 0 : index
    %c0_676 = arith.constant 0 : index
    %937 = vector.load %arg3[%c0_673, %c16_674, %c0_675, %c0_676] : memref<1x36x16x256xf32, #tpu.memory_space<vmem>>, vector<1x2x16x256xf32>
    %938 = vector.shape_cast %937 : vector<1x2x16x256xf32> to vector<2x16x256xf32>
    %c0_677 = arith.constant 0 : index
    %c16_678 = arith.constant 16 : index
    %c0_679 = arith.constant 0 : index
    %c0_680 = arith.constant 0 : index
    %939 = vector.load %arg4[%c0_677, %c16_678, %c0_679, %c0_680] : memref<1x36x16x256xf32, #tpu.memory_space<vmem>>, vector<1x2x16x256xf32>
    %940 = vector.shape_cast %939 : vector<1x2x16x256xf32> to vector<2x16x256xf32>
    %c4_681 = arith.constant 4 : index
    %c0_682 = arith.constant 0 : index
    %941 = vector.load %arg9[%c4_681, %c0_682] : memref<27x256xf32, #tpu.memory_space<vmem>>, vector<1x256xf32>
    %942 = vector.shape_cast %941 : vector<1x256xf32> to vector<256xf32>
    %943 = vector.shape_cast %942 : vector<256xf32> to vector<1x1x256xf32>
    %944 = vector.broadcast %943 : vector<1x1x256xf32> to vector<2x16x256xf32>
    %945 = arith.mulf %938, %944 : vector<2x16x256xf32>
    %946 = arith.addf %936, %945 : vector<2x16x256xf32>
    %c4_683 = arith.constant 4 : index
    %c0_684 = arith.constant 0 : index
    %947 = vector.load %arg10[%c4_683, %c0_684] : memref<27x256xf32, #tpu.memory_space<vmem>>, vector<1x256xf32>
    %948 = vector.shape_cast %947 : vector<1x256xf32> to vector<256xf32>
    %949 = vector.shape_cast %948 : vector<256xf32> to vector<1x1x256xf32>
    %950 = vector.broadcast %949 : vector<1x1x256xf32> to vector<2x16x256xf32>
    %951 = arith.mulf %940, %950 : vector<2x16x256xf32>
    %952 = arith.addf %946, %951 : vector<2x16x256xf32>
    %c0_685 = arith.constant 0 : index
    %c20_686 = arith.constant 20 : index
    %c0_687 = arith.constant 0 : index
    %c0_688 = arith.constant 0 : index
    %953 = vector.load %arg3[%c0_685, %c20_686, %c0_687, %c0_688] : memref<1x36x16x256xf32, #tpu.memory_space<vmem>>, vector<1x2x16x256xf32>
    %954 = vector.shape_cast %953 : vector<1x2x16x256xf32> to vector<2x16x256xf32>
    %c0_689 = arith.constant 0 : index
    %c20_690 = arith.constant 20 : index
    %c0_691 = arith.constant 0 : index
    %c0_692 = arith.constant 0 : index
    %955 = vector.load %arg4[%c0_689, %c20_690, %c0_691, %c0_692] : memref<1x36x16x256xf32, #tpu.memory_space<vmem>>, vector<1x2x16x256xf32>
    %956 = vector.shape_cast %955 : vector<1x2x16x256xf32> to vector<2x16x256xf32>
    %c5_693 = arith.constant 5 : index
    %c0_694 = arith.constant 0 : index
    %957 = vector.load %arg9[%c5_693, %c0_694] : memref<27x256xf32, #tpu.memory_space<vmem>>, vector<1x256xf32>
    %958 = vector.shape_cast %957 : vector<1x256xf32> to vector<256xf32>
    %959 = vector.shape_cast %958 : vector<256xf32> to vector<1x1x256xf32>
    %960 = vector.broadcast %959 : vector<1x1x256xf32> to vector<2x16x256xf32>
    %961 = arith.mulf %954, %960 : vector<2x16x256xf32>
    %962 = arith.addf %952, %961 : vector<2x16x256xf32>
    %c5_695 = arith.constant 5 : index
    %c0_696 = arith.constant 0 : index
    %963 = vector.load %arg10[%c5_695, %c0_696] : memref<27x256xf32, #tpu.memory_space<vmem>>, vector<1x256xf32>
    %964 = vector.shape_cast %963 : vector<1x256xf32> to vector<256xf32>
    %965 = vector.shape_cast %964 : vector<256xf32> to vector<1x1x256xf32>
    %966 = vector.broadcast %965 : vector<1x1x256xf32> to vector<2x16x256xf32>
    %967 = arith.mulf %956, %966 : vector<2x16x256xf32>
    %968 = arith.addf %962, %967 : vector<2x16x256xf32>
    %c0_697 = arith.constant 0 : index
    %c24_698 = arith.constant 24 : index
    %c0_699 = arith.constant 0 : index
    %c0_700 = arith.constant 0 : index
    %969 = vector.load %arg3[%c0_697, %c24_698, %c0_699, %c0_700] : memref<1x36x16x256xf32, #tpu.memory_space<vmem>>, vector<1x2x16x256xf32>
    %970 = vector.shape_cast %969 : vector<1x2x16x256xf32> to vector<2x16x256xf32>
    %c0_701 = arith.constant 0 : index
    %c24_702 = arith.constant 24 : index
    %c0_703 = arith.constant 0 : index
    %c0_704 = arith.constant 0 : index
    %971 = vector.load %arg4[%c0_701, %c24_702, %c0_703, %c0_704] : memref<1x36x16x256xf32, #tpu.memory_space<vmem>>, vector<1x2x16x256xf32>
    %972 = vector.shape_cast %971 : vector<1x2x16x256xf32> to vector<2x16x256xf32>
    %c6_705 = arith.constant 6 : index
    %c0_706 = arith.constant 0 : index
    %973 = vector.load %arg9[%c6_705, %c0_706] : memref<27x256xf32, #tpu.memory_space<vmem>>, vector<1x256xf32>
    %974 = vector.shape_cast %973 : vector<1x256xf32> to vector<256xf32>
    %975 = vector.shape_cast %974 : vector<256xf32> to vector<1x1x256xf32>
    %976 = vector.broadcast %975 : vector<1x1x256xf32> to vector<2x16x256xf32>
    %977 = arith.mulf %970, %976 : vector<2x16x256xf32>
    %978 = arith.addf %968, %977 : vector<2x16x256xf32>
    %c6_707 = arith.constant 6 : index
    %c0_708 = arith.constant 0 : index
    %979 = vector.load %arg10[%c6_707, %c0_708] : memref<27x256xf32, #tpu.memory_space<vmem>>, vector<1x256xf32>
    %980 = vector.shape_cast %979 : vector<1x256xf32> to vector<256xf32>
    %981 = vector.shape_cast %980 : vector<256xf32> to vector<1x1x256xf32>
    %982 = vector.broadcast %981 : vector<1x1x256xf32> to vector<2x16x256xf32>
    %983 = arith.mulf %972, %982 : vector<2x16x256xf32>
    %984 = arith.addf %978, %983 : vector<2x16x256xf32>
    %c0_709 = arith.constant 0 : index
    %c28_710 = arith.constant 28 : index
    %c0_711 = arith.constant 0 : index
    %c0_712 = arith.constant 0 : index
    %985 = vector.load %arg3[%c0_709, %c28_710, %c0_711, %c0_712] : memref<1x36x16x256xf32, #tpu.memory_space<vmem>>, vector<1x2x16x256xf32>
    %986 = vector.shape_cast %985 : vector<1x2x16x256xf32> to vector<2x16x256xf32>
    %c0_713 = arith.constant 0 : index
    %c28_714 = arith.constant 28 : index
    %c0_715 = arith.constant 0 : index
    %c0_716 = arith.constant 0 : index
    %987 = vector.load %arg4[%c0_713, %c28_714, %c0_715, %c0_716] : memref<1x36x16x256xf32, #tpu.memory_space<vmem>>, vector<1x2x16x256xf32>
    %988 = vector.shape_cast %987 : vector<1x2x16x256xf32> to vector<2x16x256xf32>
    %c7_717 = arith.constant 7 : index
    %c0_718 = arith.constant 0 : index
    %989 = vector.load %arg9[%c7_717, %c0_718] : memref<27x256xf32, #tpu.memory_space<vmem>>, vector<1x256xf32>
    %990 = vector.shape_cast %989 : vector<1x256xf32> to vector<256xf32>
    %991 = vector.shape_cast %990 : vector<256xf32> to vector<1x1x256xf32>
    %992 = vector.broadcast %991 : vector<1x1x256xf32> to vector<2x16x256xf32>
    %993 = arith.mulf %986, %992 : vector<2x16x256xf32>
    %994 = arith.addf %984, %993 : vector<2x16x256xf32>
    %c7_719 = arith.constant 7 : index
    %c0_720 = arith.constant 0 : index
    %995 = vector.load %arg10[%c7_719, %c0_720] : memref<27x256xf32, #tpu.memory_space<vmem>>, vector<1x256xf32>
    %996 = vector.shape_cast %995 : vector<1x256xf32> to vector<256xf32>
    %997 = vector.shape_cast %996 : vector<256xf32> to vector<1x1x256xf32>
    %998 = vector.broadcast %997 : vector<1x1x256xf32> to vector<2x16x256xf32>
    %999 = arith.mulf %988, %998 : vector<2x16x256xf32>
    %1000 = arith.addf %994, %999 : vector<2x16x256xf32>
    %c0_721 = arith.constant 0 : index
    %c32_722 = arith.constant 32 : index
    %c0_723 = arith.constant 0 : index
    %c0_724 = arith.constant 0 : index
    %1001 = vector.load %arg3[%c0_721, %c32_722, %c0_723, %c0_724] : memref<1x36x16x256xf32, #tpu.memory_space<vmem>>, vector<1x2x16x256xf32>
    %1002 = vector.shape_cast %1001 : vector<1x2x16x256xf32> to vector<2x16x256xf32>
    %c0_725 = arith.constant 0 : index
    %c32_726 = arith.constant 32 : index
    %c0_727 = arith.constant 0 : index
    %c0_728 = arith.constant 0 : index
    %1003 = vector.load %arg4[%c0_725, %c32_726, %c0_727, %c0_728] : memref<1x36x16x256xf32, #tpu.memory_space<vmem>>, vector<1x2x16x256xf32>
    %1004 = vector.shape_cast %1003 : vector<1x2x16x256xf32> to vector<2x16x256xf32>
    %c8_729 = arith.constant 8 : index
    %c0_730 = arith.constant 0 : index
    %1005 = vector.load %arg9[%c8_729, %c0_730] : memref<27x256xf32, #tpu.memory_space<vmem>>, vector<1x256xf32>
    %1006 = vector.shape_cast %1005 : vector<1x256xf32> to vector<256xf32>
    %1007 = vector.shape_cast %1006 : vector<256xf32> to vector<1x1x256xf32>
    %1008 = vector.broadcast %1007 : vector<1x1x256xf32> to vector<2x16x256xf32>
    %1009 = arith.mulf %1002, %1008 : vector<2x16x256xf32>
    %1010 = arith.addf %1000, %1009 : vector<2x16x256xf32>
    %c8_731 = arith.constant 8 : index
    %c0_732 = arith.constant 0 : index
    %1011 = vector.load %arg10[%c8_731, %c0_732] : memref<27x256xf32, #tpu.memory_space<vmem>>, vector<1x256xf32>
    %1012 = vector.shape_cast %1011 : vector<1x256xf32> to vector<256xf32>
    %1013 = vector.shape_cast %1012 : vector<256xf32> to vector<1x1x256xf32>
    %1014 = vector.broadcast %1013 : vector<1x1x256xf32> to vector<2x16x256xf32>
    %1015 = arith.mulf %1004, %1014 : vector<2x16x256xf32>
    %1016 = arith.addf %1010, %1015 : vector<2x16x256xf32>
    %c0_733 = arith.constant 0 : index
    %c1_734 = arith.constant 1 : index
    %c0_735 = arith.constant 0 : index
    %c0_736 = arith.constant 0 : index
    %1017 = vector.load %arg3[%c0_733, %c1_734, %c0_735, %c0_736] : memref<1x36x16x256xf32, #tpu.memory_space<vmem>>, vector<1x2x16x256xf32>
    %1018 = vector.shape_cast %1017 : vector<1x2x16x256xf32> to vector<2x16x256xf32>
    %c0_737 = arith.constant 0 : index
    %c1_738 = arith.constant 1 : index
    %c0_739 = arith.constant 0 : index
    %c0_740 = arith.constant 0 : index
    %1019 = vector.load %arg4[%c0_737, %c1_738, %c0_739, %c0_740] : memref<1x36x16x256xf32, #tpu.memory_space<vmem>>, vector<1x2x16x256xf32>
    %1020 = vector.shape_cast %1019 : vector<1x2x16x256xf32> to vector<2x16x256xf32>
    %c9_741 = arith.constant 9 : index
    %c0_742 = arith.constant 0 : index
    %1021 = vector.load %arg9[%c9_741, %c0_742] : memref<27x256xf32, #tpu.memory_space<vmem>>, vector<1x256xf32>
    %1022 = vector.shape_cast %1021 : vector<1x256xf32> to vector<256xf32>
    %1023 = vector.shape_cast %1022 : vector<256xf32> to vector<1x1x256xf32>
    %1024 = vector.broadcast %1023 : vector<1x1x256xf32> to vector<2x16x256xf32>
    %1025 = arith.mulf %1018, %1024 : vector<2x16x256xf32>
    %1026 = arith.addf %1016, %1025 : vector<2x16x256xf32>
    %c9_743 = arith.constant 9 : index
    %c0_744 = arith.constant 0 : index
    %1027 = vector.load %arg10[%c9_743, %c0_744] : memref<27x256xf32, #tpu.memory_space<vmem>>, vector<1x256xf32>
    %1028 = vector.shape_cast %1027 : vector<1x256xf32> to vector<256xf32>
    %1029 = vector.shape_cast %1028 : vector<256xf32> to vector<1x1x256xf32>
    %1030 = vector.broadcast %1029 : vector<1x1x256xf32> to vector<2x16x256xf32>
    %1031 = arith.mulf %1020, %1030 : vector<2x16x256xf32>
    %1032 = arith.addf %1026, %1031 : vector<2x16x256xf32>
    %c0_745 = arith.constant 0 : index
    %c5_746 = arith.constant 5 : index
    %c0_747 = arith.constant 0 : index
    %c0_748 = arith.constant 0 : index
    %1033 = vector.load %arg3[%c0_745, %c5_746, %c0_747, %c0_748] : memref<1x36x16x256xf32, #tpu.memory_space<vmem>>, vector<1x2x16x256xf32>
    %1034 = vector.shape_cast %1033 : vector<1x2x16x256xf32> to vector<2x16x256xf32>
    %c0_749 = arith.constant 0 : index
    %c5_750 = arith.constant 5 : index
    %c0_751 = arith.constant 0 : index
    %c0_752 = arith.constant 0 : index
    %1035 = vector.load %arg4[%c0_749, %c5_750, %c0_751, %c0_752] : memref<1x36x16x256xf32, #tpu.memory_space<vmem>>, vector<1x2x16x256xf32>
    %1036 = vector.shape_cast %1035 : vector<1x2x16x256xf32> to vector<2x16x256xf32>
    %c10_753 = arith.constant 10 : index
    %c0_754 = arith.constant 0 : index
    %1037 = vector.load %arg9[%c10_753, %c0_754] : memref<27x256xf32, #tpu.memory_space<vmem>>, vector<1x256xf32>
    %1038 = vector.shape_cast %1037 : vector<1x256xf32> to vector<256xf32>
    %1039 = vector.shape_cast %1038 : vector<256xf32> to vector<1x1x256xf32>
    %1040 = vector.broadcast %1039 : vector<1x1x256xf32> to vector<2x16x256xf32>
    %1041 = arith.mulf %1034, %1040 : vector<2x16x256xf32>
    %1042 = arith.addf %1032, %1041 : vector<2x16x256xf32>
    %c10_755 = arith.constant 10 : index
    %c0_756 = arith.constant 0 : index
    %1043 = vector.load %arg10[%c10_755, %c0_756] : memref<27x256xf32, #tpu.memory_space<vmem>>, vector<1x256xf32>
    %1044 = vector.shape_cast %1043 : vector<1x256xf32> to vector<256xf32>
    %1045 = vector.shape_cast %1044 : vector<256xf32> to vector<1x1x256xf32>
    %1046 = vector.broadcast %1045 : vector<1x1x256xf32> to vector<2x16x256xf32>
    %1047 = arith.mulf %1036, %1046 : vector<2x16x256xf32>
    %1048 = arith.addf %1042, %1047 : vector<2x16x256xf32>
    %c0_757 = arith.constant 0 : index
    %c9_758 = arith.constant 9 : index
    %c0_759 = arith.constant 0 : index
    %c0_760 = arith.constant 0 : index
    %1049 = vector.load %arg3[%c0_757, %c9_758, %c0_759, %c0_760] : memref<1x36x16x256xf32, #tpu.memory_space<vmem>>, vector<1x2x16x256xf32>
    %1050 = vector.shape_cast %1049 : vector<1x2x16x256xf32> to vector<2x16x256xf32>
    %c0_761 = arith.constant 0 : index
    %c9_762 = arith.constant 9 : index
    %c0_763 = arith.constant 0 : index
    %c0_764 = arith.constant 0 : index
    %1051 = vector.load %arg4[%c0_761, %c9_762, %c0_763, %c0_764] : memref<1x36x16x256xf32, #tpu.memory_space<vmem>>, vector<1x2x16x256xf32>
    %1052 = vector.shape_cast %1051 : vector<1x2x16x256xf32> to vector<2x16x256xf32>
    %c11_765 = arith.constant 11 : index
    %c0_766 = arith.constant 0 : index
    %1053 = vector.load %arg9[%c11_765, %c0_766] : memref<27x256xf32, #tpu.memory_space<vmem>>, vector<1x256xf32>
    %1054 = vector.shape_cast %1053 : vector<1x256xf32> to vector<256xf32>
    %1055 = vector.shape_cast %1054 : vector<256xf32> to vector<1x1x256xf32>
    %1056 = vector.broadcast %1055 : vector<1x1x256xf32> to vector<2x16x256xf32>
    %1057 = arith.mulf %1050, %1056 : vector<2x16x256xf32>
    %1058 = arith.addf %1048, %1057 : vector<2x16x256xf32>
    %c11_767 = arith.constant 11 : index
    %c0_768 = arith.constant 0 : index
    %1059 = vector.load %arg10[%c11_767, %c0_768] : memref<27x256xf32, #tpu.memory_space<vmem>>, vector<1x256xf32>
    %1060 = vector.shape_cast %1059 : vector<1x256xf32> to vector<256xf32>
    %1061 = vector.shape_cast %1060 : vector<256xf32> to vector<1x1x256xf32>
    %1062 = vector.broadcast %1061 : vector<1x1x256xf32> to vector<2x16x256xf32>
    %1063 = arith.mulf %1052, %1062 : vector<2x16x256xf32>
    %1064 = arith.addf %1058, %1063 : vector<2x16x256xf32>
    %c0_769 = arith.constant 0 : index
    %c13_770 = arith.constant 13 : index
    %c0_771 = arith.constant 0 : index
    %c0_772 = arith.constant 0 : index
    %1065 = vector.load %arg3[%c0_769, %c13_770, %c0_771, %c0_772] : memref<1x36x16x256xf32, #tpu.memory_space<vmem>>, vector<1x2x16x256xf32>
    %1066 = vector.shape_cast %1065 : vector<1x2x16x256xf32> to vector<2x16x256xf32>
    %c0_773 = arith.constant 0 : index
    %c13_774 = arith.constant 13 : index
    %c0_775 = arith.constant 0 : index
    %c0_776 = arith.constant 0 : index
    %1067 = vector.load %arg4[%c0_773, %c13_774, %c0_775, %c0_776] : memref<1x36x16x256xf32, #tpu.memory_space<vmem>>, vector<1x2x16x256xf32>
    %1068 = vector.shape_cast %1067 : vector<1x2x16x256xf32> to vector<2x16x256xf32>
    %c12_777 = arith.constant 12 : index
    %c0_778 = arith.constant 0 : index
    %1069 = vector.load %arg9[%c12_777, %c0_778] : memref<27x256xf32, #tpu.memory_space<vmem>>, vector<1x256xf32>
    %1070 = vector.shape_cast %1069 : vector<1x256xf32> to vector<256xf32>
    %1071 = vector.shape_cast %1070 : vector<256xf32> to vector<1x1x256xf32>
    %1072 = vector.broadcast %1071 : vector<1x1x256xf32> to vector<2x16x256xf32>
    %1073 = arith.mulf %1066, %1072 : vector<2x16x256xf32>
    %1074 = arith.addf %1064, %1073 : vector<2x16x256xf32>
    %c12_779 = arith.constant 12 : index
    %c0_780 = arith.constant 0 : index
    %1075 = vector.load %arg10[%c12_779, %c0_780] : memref<27x256xf32, #tpu.memory_space<vmem>>, vector<1x256xf32>
    %1076 = vector.shape_cast %1075 : vector<1x256xf32> to vector<256xf32>
    %1077 = vector.shape_cast %1076 : vector<256xf32> to vector<1x1x256xf32>
    %1078 = vector.broadcast %1077 : vector<1x1x256xf32> to vector<2x16x256xf32>
    %1079 = arith.mulf %1068, %1078 : vector<2x16x256xf32>
    %1080 = arith.addf %1074, %1079 : vector<2x16x256xf32>
    %c0_781 = arith.constant 0 : index
    %c17_782 = arith.constant 17 : index
    %c0_783 = arith.constant 0 : index
    %c0_784 = arith.constant 0 : index
    %1081 = vector.load %arg3[%c0_781, %c17_782, %c0_783, %c0_784] : memref<1x36x16x256xf32, #tpu.memory_space<vmem>>, vector<1x2x16x256xf32>
    %1082 = vector.shape_cast %1081 : vector<1x2x16x256xf32> to vector<2x16x256xf32>
    %c0_785 = arith.constant 0 : index
    %c17_786 = arith.constant 17 : index
    %c0_787 = arith.constant 0 : index
    %c0_788 = arith.constant 0 : index
    %1083 = vector.load %arg4[%c0_785, %c17_786, %c0_787, %c0_788] : memref<1x36x16x256xf32, #tpu.memory_space<vmem>>, vector<1x2x16x256xf32>
    %1084 = vector.shape_cast %1083 : vector<1x2x16x256xf32> to vector<2x16x256xf32>
    %c13_789 = arith.constant 13 : index
    %c0_790 = arith.constant 0 : index
    %1085 = vector.load %arg9[%c13_789, %c0_790] : memref<27x256xf32, #tpu.memory_space<vmem>>, vector<1x256xf32>
    %1086 = vector.shape_cast %1085 : vector<1x256xf32> to vector<256xf32>
    %1087 = vector.shape_cast %1086 : vector<256xf32> to vector<1x1x256xf32>
    %1088 = vector.broadcast %1087 : vector<1x1x256xf32> to vector<2x16x256xf32>
    %1089 = arith.mulf %1082, %1088 : vector<2x16x256xf32>
    %1090 = arith.addf %1080, %1089 : vector<2x16x256xf32>
    %c13_791 = arith.constant 13 : index
    %c0_792 = arith.constant 0 : index
    %1091 = vector.load %arg10[%c13_791, %c0_792] : memref<27x256xf32, #tpu.memory_space<vmem>>, vector<1x256xf32>
    %1092 = vector.shape_cast %1091 : vector<1x256xf32> to vector<256xf32>
    %1093 = vector.shape_cast %1092 : vector<256xf32> to vector<1x1x256xf32>
    %1094 = vector.broadcast %1093 : vector<1x1x256xf32> to vector<2x16x256xf32>
    %1095 = arith.mulf %1084, %1094 : vector<2x16x256xf32>
    %1096 = arith.addf %1090, %1095 : vector<2x16x256xf32>
    %c0_793 = arith.constant 0 : index
    %c21_794 = arith.constant 21 : index
    %c0_795 = arith.constant 0 : index
    %c0_796 = arith.constant 0 : index
    %1097 = vector.load %arg3[%c0_793, %c21_794, %c0_795, %c0_796] : memref<1x36x16x256xf32, #tpu.memory_space<vmem>>, vector<1x2x16x256xf32>
    %1098 = vector.shape_cast %1097 : vector<1x2x16x256xf32> to vector<2x16x256xf32>
    %c0_797 = arith.constant 0 : index
    %c21_798 = arith.constant 21 : index
    %c0_799 = arith.constant 0 : index
    %c0_800 = arith.constant 0 : index
    %1099 = vector.load %arg4[%c0_797, %c21_798, %c0_799, %c0_800] : memref<1x36x16x256xf32, #tpu.memory_space<vmem>>, vector<1x2x16x256xf32>
    %1100 = vector.shape_cast %1099 : vector<1x2x16x256xf32> to vector<2x16x256xf32>
    %c14_801 = arith.constant 14 : index
    %c0_802 = arith.constant 0 : index
    %1101 = vector.load %arg9[%c14_801, %c0_802] : memref<27x256xf32, #tpu.memory_space<vmem>>, vector<1x256xf32>
    %1102 = vector.shape_cast %1101 : vector<1x256xf32> to vector<256xf32>
    %1103 = vector.shape_cast %1102 : vector<256xf32> to vector<1x1x256xf32>
    %1104 = vector.broadcast %1103 : vector<1x1x256xf32> to vector<2x16x256xf32>
    %1105 = arith.mulf %1098, %1104 : vector<2x16x256xf32>
    %1106 = arith.addf %1096, %1105 : vector<2x16x256xf32>
    %c14_803 = arith.constant 14 : index
    %c0_804 = arith.constant 0 : index
    %1107 = vector.load %arg10[%c14_803, %c0_804] : memref<27x256xf32, #tpu.memory_space<vmem>>, vector<1x256xf32>
    %1108 = vector.shape_cast %1107 : vector<1x256xf32> to vector<256xf32>
    %1109 = vector.shape_cast %1108 : vector<256xf32> to vector<1x1x256xf32>
    %1110 = vector.broadcast %1109 : vector<1x1x256xf32> to vector<2x16x256xf32>
    %1111 = arith.mulf %1100, %1110 : vector<2x16x256xf32>
    %1112 = arith.addf %1106, %1111 : vector<2x16x256xf32>
    %c0_805 = arith.constant 0 : index
    %c25_806 = arith.constant 25 : index
    %c0_807 = arith.constant 0 : index
    %c0_808 = arith.constant 0 : index
    %1113 = vector.load %arg3[%c0_805, %c25_806, %c0_807, %c0_808] : memref<1x36x16x256xf32, #tpu.memory_space<vmem>>, vector<1x2x16x256xf32>
    %1114 = vector.shape_cast %1113 : vector<1x2x16x256xf32> to vector<2x16x256xf32>
    %c0_809 = arith.constant 0 : index
    %c25_810 = arith.constant 25 : index
    %c0_811 = arith.constant 0 : index
    %c0_812 = arith.constant 0 : index
    %1115 = vector.load %arg4[%c0_809, %c25_810, %c0_811, %c0_812] : memref<1x36x16x256xf32, #tpu.memory_space<vmem>>, vector<1x2x16x256xf32>
    %1116 = vector.shape_cast %1115 : vector<1x2x16x256xf32> to vector<2x16x256xf32>
    %c15_813 = arith.constant 15 : index
    %c0_814 = arith.constant 0 : index
    %1117 = vector.load %arg9[%c15_813, %c0_814] : memref<27x256xf32, #tpu.memory_space<vmem>>, vector<1x256xf32>
    %1118 = vector.shape_cast %1117 : vector<1x256xf32> to vector<256xf32>
    %1119 = vector.shape_cast %1118 : vector<256xf32> to vector<1x1x256xf32>
    %1120 = vector.broadcast %1119 : vector<1x1x256xf32> to vector<2x16x256xf32>
    %1121 = arith.mulf %1114, %1120 : vector<2x16x256xf32>
    %1122 = arith.addf %1112, %1121 : vector<2x16x256xf32>
    %c15_815 = arith.constant 15 : index
    %c0_816 = arith.constant 0 : index
    %1123 = vector.load %arg10[%c15_815, %c0_816] : memref<27x256xf32, #tpu.memory_space<vmem>>, vector<1x256xf32>
    %1124 = vector.shape_cast %1123 : vector<1x256xf32> to vector<256xf32>
    %1125 = vector.shape_cast %1124 : vector<256xf32> to vector<1x1x256xf32>
    %1126 = vector.broadcast %1125 : vector<1x1x256xf32> to vector<2x16x256xf32>
    %1127 = arith.mulf %1116, %1126 : vector<2x16x256xf32>
    %1128 = arith.addf %1122, %1127 : vector<2x16x256xf32>
    %c0_817 = arith.constant 0 : index
    %c29_818 = arith.constant 29 : index
    %c0_819 = arith.constant 0 : index
    %c0_820 = arith.constant 0 : index
    %1129 = vector.load %arg3[%c0_817, %c29_818, %c0_819, %c0_820] : memref<1x36x16x256xf32, #tpu.memory_space<vmem>>, vector<1x2x16x256xf32>
    %1130 = vector.shape_cast %1129 : vector<1x2x16x256xf32> to vector<2x16x256xf32>
    %c0_821 = arith.constant 0 : index
    %c29_822 = arith.constant 29 : index
    %c0_823 = arith.constant 0 : index
    %c0_824 = arith.constant 0 : index
    %1131 = vector.load %arg4[%c0_821, %c29_822, %c0_823, %c0_824] : memref<1x36x16x256xf32, #tpu.memory_space<vmem>>, vector<1x2x16x256xf32>
    %1132 = vector.shape_cast %1131 : vector<1x2x16x256xf32> to vector<2x16x256xf32>
    %c16_825 = arith.constant 16 : index
    %c0_826 = arith.constant 0 : index
    %1133 = vector.load %arg9[%c16_825, %c0_826] : memref<27x256xf32, #tpu.memory_space<vmem>>, vector<1x256xf32>
    %1134 = vector.shape_cast %1133 : vector<1x256xf32> to vector<256xf32>
    %1135 = vector.shape_cast %1134 : vector<256xf32> to vector<1x1x256xf32>
    %1136 = vector.broadcast %1135 : vector<1x1x256xf32> to vector<2x16x256xf32>
    %1137 = arith.mulf %1130, %1136 : vector<2x16x256xf32>
    %1138 = arith.addf %1128, %1137 : vector<2x16x256xf32>
    %c16_827 = arith.constant 16 : index
    %c0_828 = arith.constant 0 : index
    %1139 = vector.load %arg10[%c16_827, %c0_828] : memref<27x256xf32, #tpu.memory_space<vmem>>, vector<1x256xf32>
    %1140 = vector.shape_cast %1139 : vector<1x256xf32> to vector<256xf32>
    %1141 = vector.shape_cast %1140 : vector<256xf32> to vector<1x1x256xf32>
    %1142 = vector.broadcast %1141 : vector<1x1x256xf32> to vector<2x16x256xf32>
    %1143 = arith.mulf %1132, %1142 : vector<2x16x256xf32>
    %1144 = arith.addf %1138, %1143 : vector<2x16x256xf32>
    %c0_829 = arith.constant 0 : index
    %c33_830 = arith.constant 33 : index
    %c0_831 = arith.constant 0 : index
    %c0_832 = arith.constant 0 : index
    %1145 = vector.load %arg3[%c0_829, %c33_830, %c0_831, %c0_832] : memref<1x36x16x256xf32, #tpu.memory_space<vmem>>, vector<1x2x16x256xf32>
    %1146 = vector.shape_cast %1145 : vector<1x2x16x256xf32> to vector<2x16x256xf32>
    %c0_833 = arith.constant 0 : index
    %c33_834 = arith.constant 33 : index
    %c0_835 = arith.constant 0 : index
    %c0_836 = arith.constant 0 : index
    %1147 = vector.load %arg4[%c0_833, %c33_834, %c0_835, %c0_836] : memref<1x36x16x256xf32, #tpu.memory_space<vmem>>, vector<1x2x16x256xf32>
    %1148 = vector.shape_cast %1147 : vector<1x2x16x256xf32> to vector<2x16x256xf32>
    %c17_837 = arith.constant 17 : index
    %c0_838 = arith.constant 0 : index
    %1149 = vector.load %arg9[%c17_837, %c0_838] : memref<27x256xf32, #tpu.memory_space<vmem>>, vector<1x256xf32>
    %1150 = vector.shape_cast %1149 : vector<1x256xf32> to vector<256xf32>
    %1151 = vector.shape_cast %1150 : vector<256xf32> to vector<1x1x256xf32>
    %1152 = vector.broadcast %1151 : vector<1x1x256xf32> to vector<2x16x256xf32>
    %1153 = arith.mulf %1146, %1152 : vector<2x16x256xf32>
    %1154 = arith.addf %1144, %1153 : vector<2x16x256xf32>
    %c17_839 = arith.constant 17 : index
    %c0_840 = arith.constant 0 : index
    %1155 = vector.load %arg10[%c17_839, %c0_840] : memref<27x256xf32, #tpu.memory_space<vmem>>, vector<1x256xf32>
    %1156 = vector.shape_cast %1155 : vector<1x256xf32> to vector<256xf32>
    %1157 = vector.shape_cast %1156 : vector<256xf32> to vector<1x1x256xf32>
    %1158 = vector.broadcast %1157 : vector<1x1x256xf32> to vector<2x16x256xf32>
    %1159 = arith.mulf %1148, %1158 : vector<2x16x256xf32>
    %1160 = arith.addf %1154, %1159 : vector<2x16x256xf32>
    %c0_841 = arith.constant 0 : index
    %c2_842 = arith.constant 2 : index
    %c0_843 = arith.constant 0 : index
    %c0_844 = arith.constant 0 : index
    %1161 = vector.load %arg3[%c0_841, %c2_842, %c0_843, %c0_844] : memref<1x36x16x256xf32, #tpu.memory_space<vmem>>, vector<1x2x16x256xf32>
    %1162 = vector.shape_cast %1161 : vector<1x2x16x256xf32> to vector<2x16x256xf32>
    %c0_845 = arith.constant 0 : index
    %c2_846 = arith.constant 2 : index
    %c0_847 = arith.constant 0 : index
    %c0_848 = arith.constant 0 : index
    %1163 = vector.load %arg4[%c0_845, %c2_846, %c0_847, %c0_848] : memref<1x36x16x256xf32, #tpu.memory_space<vmem>>, vector<1x2x16x256xf32>
    %1164 = vector.shape_cast %1163 : vector<1x2x16x256xf32> to vector<2x16x256xf32>
    %c18_849 = arith.constant 18 : index
    %c0_850 = arith.constant 0 : index
    %1165 = vector.load %arg9[%c18_849, %c0_850] : memref<27x256xf32, #tpu.memory_space<vmem>>, vector<1x256xf32>
    %1166 = vector.shape_cast %1165 : vector<1x256xf32> to vector<256xf32>
    %1167 = vector.shape_cast %1166 : vector<256xf32> to vector<1x1x256xf32>
    %1168 = vector.broadcast %1167 : vector<1x1x256xf32> to vector<2x16x256xf32>
    %1169 = arith.mulf %1162, %1168 : vector<2x16x256xf32>
    %1170 = arith.addf %1160, %1169 : vector<2x16x256xf32>
    %c18_851 = arith.constant 18 : index
    %c0_852 = arith.constant 0 : index
    %1171 = vector.load %arg10[%c18_851, %c0_852] : memref<27x256xf32, #tpu.memory_space<vmem>>, vector<1x256xf32>
    %1172 = vector.shape_cast %1171 : vector<1x256xf32> to vector<256xf32>
    %1173 = vector.shape_cast %1172 : vector<256xf32> to vector<1x1x256xf32>
    %1174 = vector.broadcast %1173 : vector<1x1x256xf32> to vector<2x16x256xf32>
    %1175 = arith.mulf %1164, %1174 : vector<2x16x256xf32>
    %1176 = arith.addf %1170, %1175 : vector<2x16x256xf32>
    %c0_853 = arith.constant 0 : index
    %c6_854 = arith.constant 6 : index
    %c0_855 = arith.constant 0 : index
    %c0_856 = arith.constant 0 : index
    %1177 = vector.load %arg3[%c0_853, %c6_854, %c0_855, %c0_856] : memref<1x36x16x256xf32, #tpu.memory_space<vmem>>, vector<1x2x16x256xf32>
    %1178 = vector.shape_cast %1177 : vector<1x2x16x256xf32> to vector<2x16x256xf32>
    %c0_857 = arith.constant 0 : index
    %c6_858 = arith.constant 6 : index
    %c0_859 = arith.constant 0 : index
    %c0_860 = arith.constant 0 : index
    %1179 = vector.load %arg4[%c0_857, %c6_858, %c0_859, %c0_860] : memref<1x36x16x256xf32, #tpu.memory_space<vmem>>, vector<1x2x16x256xf32>
    %1180 = vector.shape_cast %1179 : vector<1x2x16x256xf32> to vector<2x16x256xf32>
    %c19_861 = arith.constant 19 : index
    %c0_862 = arith.constant 0 : index
    %1181 = vector.load %arg9[%c19_861, %c0_862] : memref<27x256xf32, #tpu.memory_space<vmem>>, vector<1x256xf32>
    %1182 = vector.shape_cast %1181 : vector<1x256xf32> to vector<256xf32>
    %1183 = vector.shape_cast %1182 : vector<256xf32> to vector<1x1x256xf32>
    %1184 = vector.broadcast %1183 : vector<1x1x256xf32> to vector<2x16x256xf32>
    %1185 = arith.mulf %1178, %1184 : vector<2x16x256xf32>
    %1186 = arith.addf %1176, %1185 : vector<2x16x256xf32>
    %c19_863 = arith.constant 19 : index
    %c0_864 = arith.constant 0 : index
    %1187 = vector.load %arg10[%c19_863, %c0_864] : memref<27x256xf32, #tpu.memory_space<vmem>>, vector<1x256xf32>
    %1188 = vector.shape_cast %1187 : vector<1x256xf32> to vector<256xf32>
    %1189 = vector.shape_cast %1188 : vector<256xf32> to vector<1x1x256xf32>
    %1190 = vector.broadcast %1189 : vector<1x1x256xf32> to vector<2x16x256xf32>
    %1191 = arith.mulf %1180, %1190 : vector<2x16x256xf32>
    %1192 = arith.addf %1186, %1191 : vector<2x16x256xf32>
    %c0_865 = arith.constant 0 : index
    %c10_866 = arith.constant 10 : index
    %c0_867 = arith.constant 0 : index
    %c0_868 = arith.constant 0 : index
    %1193 = vector.load %arg3[%c0_865, %c10_866, %c0_867, %c0_868] : memref<1x36x16x256xf32, #tpu.memory_space<vmem>>, vector<1x2x16x256xf32>
    %1194 = vector.shape_cast %1193 : vector<1x2x16x256xf32> to vector<2x16x256xf32>
    %c0_869 = arith.constant 0 : index
    %c10_870 = arith.constant 10 : index
    %c0_871 = arith.constant 0 : index
    %c0_872 = arith.constant 0 : index
    %1195 = vector.load %arg4[%c0_869, %c10_870, %c0_871, %c0_872] : memref<1x36x16x256xf32, #tpu.memory_space<vmem>>, vector<1x2x16x256xf32>
    %1196 = vector.shape_cast %1195 : vector<1x2x16x256xf32> to vector<2x16x256xf32>
    %c20_873 = arith.constant 20 : index
    %c0_874 = arith.constant 0 : index
    %1197 = vector.load %arg9[%c20_873, %c0_874] : memref<27x256xf32, #tpu.memory_space<vmem>>, vector<1x256xf32>
    %1198 = vector.shape_cast %1197 : vector<1x256xf32> to vector<256xf32>
    %1199 = vector.shape_cast %1198 : vector<256xf32> to vector<1x1x256xf32>
    %1200 = vector.broadcast %1199 : vector<1x1x256xf32> to vector<2x16x256xf32>
    %1201 = arith.mulf %1194, %1200 : vector<2x16x256xf32>
    %1202 = arith.addf %1192, %1201 : vector<2x16x256xf32>
    %c20_875 = arith.constant 20 : index
    %c0_876 = arith.constant 0 : index
    %1203 = vector.load %arg10[%c20_875, %c0_876] : memref<27x256xf32, #tpu.memory_space<vmem>>, vector<1x256xf32>
    %1204 = vector.shape_cast %1203 : vector<1x256xf32> to vector<256xf32>
    %1205 = vector.shape_cast %1204 : vector<256xf32> to vector<1x1x256xf32>
    %1206 = vector.broadcast %1205 : vector<1x1x256xf32> to vector<2x16x256xf32>
    %1207 = arith.mulf %1196, %1206 : vector<2x16x256xf32>
    %1208 = arith.addf %1202, %1207 : vector<2x16x256xf32>
    %c0_877 = arith.constant 0 : index
    %c14_878 = arith.constant 14 : index
    %c0_879 = arith.constant 0 : index
    %c0_880 = arith.constant 0 : index
    %1209 = vector.load %arg3[%c0_877, %c14_878, %c0_879, %c0_880] : memref<1x36x16x256xf32, #tpu.memory_space<vmem>>, vector<1x2x16x256xf32>
    %1210 = vector.shape_cast %1209 : vector<1x2x16x256xf32> to vector<2x16x256xf32>
    %c0_881 = arith.constant 0 : index
    %c14_882 = arith.constant 14 : index
    %c0_883 = arith.constant 0 : index
    %c0_884 = arith.constant 0 : index
    %1211 = vector.load %arg4[%c0_881, %c14_882, %c0_883, %c0_884] : memref<1x36x16x256xf32, #tpu.memory_space<vmem>>, vector<1x2x16x256xf32>
    %1212 = vector.shape_cast %1211 : vector<1x2x16x256xf32> to vector<2x16x256xf32>
    %c21_885 = arith.constant 21 : index
    %c0_886 = arith.constant 0 : index
    %1213 = vector.load %arg9[%c21_885, %c0_886] : memref<27x256xf32, #tpu.memory_space<vmem>>, vector<1x256xf32>
    %1214 = vector.shape_cast %1213 : vector<1x256xf32> to vector<256xf32>
    %1215 = vector.shape_cast %1214 : vector<256xf32> to vector<1x1x256xf32>
    %1216 = vector.broadcast %1215 : vector<1x1x256xf32> to vector<2x16x256xf32>
    %1217 = arith.mulf %1210, %1216 : vector<2x16x256xf32>
    %1218 = arith.addf %1208, %1217 : vector<2x16x256xf32>
    %c21_887 = arith.constant 21 : index
    %c0_888 = arith.constant 0 : index
    %1219 = vector.load %arg10[%c21_887, %c0_888] : memref<27x256xf32, #tpu.memory_space<vmem>>, vector<1x256xf32>
    %1220 = vector.shape_cast %1219 : vector<1x256xf32> to vector<256xf32>
    %1221 = vector.shape_cast %1220 : vector<256xf32> to vector<1x1x256xf32>
    %1222 = vector.broadcast %1221 : vector<1x1x256xf32> to vector<2x16x256xf32>
    %1223 = arith.mulf %1212, %1222 : vector<2x16x256xf32>
    %1224 = arith.addf %1218, %1223 : vector<2x16x256xf32>
    %c0_889 = arith.constant 0 : index
    %c18_890 = arith.constant 18 : index
    %c0_891 = arith.constant 0 : index
    %c0_892 = arith.constant 0 : index
    %1225 = vector.load %arg3[%c0_889, %c18_890, %c0_891, %c0_892] : memref<1x36x16x256xf32, #tpu.memory_space<vmem>>, vector<1x2x16x256xf32>
    %1226 = vector.shape_cast %1225 : vector<1x2x16x256xf32> to vector<2x16x256xf32>
    %c0_893 = arith.constant 0 : index
    %c18_894 = arith.constant 18 : index
    %c0_895 = arith.constant 0 : index
    %c0_896 = arith.constant 0 : index
    %1227 = vector.load %arg4[%c0_893, %c18_894, %c0_895, %c0_896] : memref<1x36x16x256xf32, #tpu.memory_space<vmem>>, vector<1x2x16x256xf32>
    %1228 = vector.shape_cast %1227 : vector<1x2x16x256xf32> to vector<2x16x256xf32>
    %c22_897 = arith.constant 22 : index
    %c0_898 = arith.constant 0 : index
    %1229 = vector.load %arg9[%c22_897, %c0_898] : memref<27x256xf32, #tpu.memory_space<vmem>>, vector<1x256xf32>
    %1230 = vector.shape_cast %1229 : vector<1x256xf32> to vector<256xf32>
    %1231 = vector.shape_cast %1230 : vector<256xf32> to vector<1x1x256xf32>
    %1232 = vector.broadcast %1231 : vector<1x1x256xf32> to vector<2x16x256xf32>
    %1233 = arith.mulf %1226, %1232 : vector<2x16x256xf32>
    %1234 = arith.addf %1224, %1233 : vector<2x16x256xf32>
    %c22_899 = arith.constant 22 : index
    %c0_900 = arith.constant 0 : index
    %1235 = vector.load %arg10[%c22_899, %c0_900] : memref<27x256xf32, #tpu.memory_space<vmem>>, vector<1x256xf32>
    %1236 = vector.shape_cast %1235 : vector<1x256xf32> to vector<256xf32>
    %1237 = vector.shape_cast %1236 : vector<256xf32> to vector<1x1x256xf32>
    %1238 = vector.broadcast %1237 : vector<1x1x256xf32> to vector<2x16x256xf32>
    %1239 = arith.mulf %1228, %1238 : vector<2x16x256xf32>
    %1240 = arith.addf %1234, %1239 : vector<2x16x256xf32>
    %c0_901 = arith.constant 0 : index
    %c22_902 = arith.constant 22 : index
    %c0_903 = arith.constant 0 : index
    %c0_904 = arith.constant 0 : index
    %1241 = vector.load %arg3[%c0_901, %c22_902, %c0_903, %c0_904] : memref<1x36x16x256xf32, #tpu.memory_space<vmem>>, vector<1x2x16x256xf32>
    %1242 = vector.shape_cast %1241 : vector<1x2x16x256xf32> to vector<2x16x256xf32>
    %c0_905 = arith.constant 0 : index
    %c22_906 = arith.constant 22 : index
    %c0_907 = arith.constant 0 : index
    %c0_908 = arith.constant 0 : index
    %1243 = vector.load %arg4[%c0_905, %c22_906, %c0_907, %c0_908] : memref<1x36x16x256xf32, #tpu.memory_space<vmem>>, vector<1x2x16x256xf32>
    %1244 = vector.shape_cast %1243 : vector<1x2x16x256xf32> to vector<2x16x256xf32>
    %c23_909 = arith.constant 23 : index
    %c0_910 = arith.constant 0 : index
    %1245 = vector.load %arg9[%c23_909, %c0_910] : memref<27x256xf32, #tpu.memory_space<vmem>>, vector<1x256xf32>
    %1246 = vector.shape_cast %1245 : vector<1x256xf32> to vector<256xf32>
    %1247 = vector.shape_cast %1246 : vector<256xf32> to vector<1x1x256xf32>
    %1248 = vector.broadcast %1247 : vector<1x1x256xf32> to vector<2x16x256xf32>
    %1249 = arith.mulf %1242, %1248 : vector<2x16x256xf32>
    %1250 = arith.addf %1240, %1249 : vector<2x16x256xf32>
    %c23_911 = arith.constant 23 : index
    %c0_912 = arith.constant 0 : index
    %1251 = vector.load %arg10[%c23_911, %c0_912] : memref<27x256xf32, #tpu.memory_space<vmem>>, vector<1x256xf32>
    %1252 = vector.shape_cast %1251 : vector<1x256xf32> to vector<256xf32>
    %1253 = vector.shape_cast %1252 : vector<256xf32> to vector<1x1x256xf32>
    %1254 = vector.broadcast %1253 : vector<1x1x256xf32> to vector<2x16x256xf32>
    %1255 = arith.mulf %1244, %1254 : vector<2x16x256xf32>
    %1256 = arith.addf %1250, %1255 : vector<2x16x256xf32>
    %c0_913 = arith.constant 0 : index
    %c26_914 = arith.constant 26 : index
    %c0_915 = arith.constant 0 : index
    %c0_916 = arith.constant 0 : index
    %1257 = vector.load %arg3[%c0_913, %c26_914, %c0_915, %c0_916] : memref<1x36x16x256xf32, #tpu.memory_space<vmem>>, vector<1x2x16x256xf32>
    %1258 = vector.shape_cast %1257 : vector<1x2x16x256xf32> to vector<2x16x256xf32>
    %c0_917 = arith.constant 0 : index
    %c26_918 = arith.constant 26 : index
    %c0_919 = arith.constant 0 : index
    %c0_920 = arith.constant 0 : index
    %1259 = vector.load %arg4[%c0_917, %c26_918, %c0_919, %c0_920] : memref<1x36x16x256xf32, #tpu.memory_space<vmem>>, vector<1x2x16x256xf32>
    %1260 = vector.shape_cast %1259 : vector<1x2x16x256xf32> to vector<2x16x256xf32>
    %c24_921 = arith.constant 24 : index
    %c0_922 = arith.constant 0 : index
    %1261 = vector.load %arg9[%c24_921, %c0_922] : memref<27x256xf32, #tpu.memory_space<vmem>>, vector<1x256xf32>
    %1262 = vector.shape_cast %1261 : vector<1x256xf32> to vector<256xf32>
    %1263 = vector.shape_cast %1262 : vector<256xf32> to vector<1x1x256xf32>
    %1264 = vector.broadcast %1263 : vector<1x1x256xf32> to vector<2x16x256xf32>
    %1265 = arith.mulf %1258, %1264 : vector<2x16x256xf32>
    %1266 = arith.addf %1256, %1265 : vector<2x16x256xf32>
    %c24_923 = arith.constant 24 : index
    %c0_924 = arith.constant 0 : index
    %1267 = vector.load %arg10[%c24_923, %c0_924] : memref<27x256xf32, #tpu.memory_space<vmem>>, vector<1x256xf32>
    %1268 = vector.shape_cast %1267 : vector<1x256xf32> to vector<256xf32>
    %1269 = vector.shape_cast %1268 : vector<256xf32> to vector<1x1x256xf32>
    %1270 = vector.broadcast %1269 : vector<1x1x256xf32> to vector<2x16x256xf32>
    %1271 = arith.mulf %1260, %1270 : vector<2x16x256xf32>
    %1272 = arith.addf %1266, %1271 : vector<2x16x256xf32>
    %c0_925 = arith.constant 0 : index
    %c30_926 = arith.constant 30 : index
    %c0_927 = arith.constant 0 : index
    %c0_928 = arith.constant 0 : index
    %1273 = vector.load %arg3[%c0_925, %c30_926, %c0_927, %c0_928] : memref<1x36x16x256xf32, #tpu.memory_space<vmem>>, vector<1x2x16x256xf32>
    %1274 = vector.shape_cast %1273 : vector<1x2x16x256xf32> to vector<2x16x256xf32>
    %c0_929 = arith.constant 0 : index
    %c30_930 = arith.constant 30 : index
    %c0_931 = arith.constant 0 : index
    %c0_932 = arith.constant 0 : index
    %1275 = vector.load %arg4[%c0_929, %c30_930, %c0_931, %c0_932] : memref<1x36x16x256xf32, #tpu.memory_space<vmem>>, vector<1x2x16x256xf32>
    %1276 = vector.shape_cast %1275 : vector<1x2x16x256xf32> to vector<2x16x256xf32>
    %c25_933 = arith.constant 25 : index
    %c0_934 = arith.constant 0 : index
    %1277 = vector.load %arg9[%c25_933, %c0_934] : memref<27x256xf32, #tpu.memory_space<vmem>>, vector<1x256xf32>
    %1278 = vector.shape_cast %1277 : vector<1x256xf32> to vector<256xf32>
    %1279 = vector.shape_cast %1278 : vector<256xf32> to vector<1x1x256xf32>
    %1280 = vector.broadcast %1279 : vector<1x1x256xf32> to vector<2x16x256xf32>
    %1281 = arith.mulf %1274, %1280 : vector<2x16x256xf32>
    %1282 = arith.addf %1272, %1281 : vector<2x16x256xf32>
    %c25_935 = arith.constant 25 : index
    %c0_936 = arith.constant 0 : index
    %1283 = vector.load %arg10[%c25_935, %c0_936] : memref<27x256xf32, #tpu.memory_space<vmem>>, vector<1x256xf32>
    %1284 = vector.shape_cast %1283 : vector<1x256xf32> to vector<256xf32>
    %1285 = vector.shape_cast %1284 : vector<256xf32> to vector<1x1x256xf32>
    %1286 = vector.broadcast %1285 : vector<1x1x256xf32> to vector<2x16x256xf32>
    %1287 = arith.mulf %1276, %1286 : vector<2x16x256xf32>
    %1288 = arith.addf %1282, %1287 : vector<2x16x256xf32>
    %c0_937 = arith.constant 0 : index
    %c34_938 = arith.constant 34 : index
    %c0_939 = arith.constant 0 : index
    %c0_940 = arith.constant 0 : index
    %1289 = vector.load %arg3[%c0_937, %c34_938, %c0_939, %c0_940] : memref<1x36x16x256xf32, #tpu.memory_space<vmem>>, vector<1x2x16x256xf32>
    %1290 = vector.shape_cast %1289 : vector<1x2x16x256xf32> to vector<2x16x256xf32>
    %c0_941 = arith.constant 0 : index
    %c34_942 = arith.constant 34 : index
    %c0_943 = arith.constant 0 : index
    %c0_944 = arith.constant 0 : index
    %1291 = vector.load %arg4[%c0_941, %c34_942, %c0_943, %c0_944] : memref<1x36x16x256xf32, #tpu.memory_space<vmem>>, vector<1x2x16x256xf32>
    %1292 = vector.shape_cast %1291 : vector<1x2x16x256xf32> to vector<2x16x256xf32>
    %c26_945 = arith.constant 26 : index
    %c0_946 = arith.constant 0 : index
    %1293 = vector.load %arg9[%c26_945, %c0_946] : memref<27x256xf32, #tpu.memory_space<vmem>>, vector<1x256xf32>
    %1294 = vector.shape_cast %1293 : vector<1x256xf32> to vector<256xf32>
    %1295 = vector.shape_cast %1294 : vector<256xf32> to vector<1x1x256xf32>
    %1296 = vector.broadcast %1295 : vector<1x1x256xf32> to vector<2x16x256xf32>
    %1297 = arith.mulf %1290, %1296 : vector<2x16x256xf32>
    %1298 = arith.addf %1288, %1297 : vector<2x16x256xf32>
    %c26_947 = arith.constant 26 : index
    %c0_948 = arith.constant 0 : index
    %1299 = vector.load %arg10[%c26_947, %c0_948] : memref<27x256xf32, #tpu.memory_space<vmem>>, vector<1x256xf32>
    %1300 = vector.shape_cast %1299 : vector<1x256xf32> to vector<256xf32>
    %1301 = vector.shape_cast %1300 : vector<256xf32> to vector<1x1x256xf32>
    %1302 = vector.broadcast %1301 : vector<1x1x256xf32> to vector<2x16x256xf32>
    %1303 = arith.mulf %1292, %1302 : vector<2x16x256xf32>
    %1304 = arith.addf %1298, %1303 : vector<2x16x256xf32>
    %c0_949 = arith.constant 0 : index
    %c0_950 = arith.constant 0 : index
    %c0_951 = arith.constant 0 : index
    %c0_952 = arith.constant 0 : index
    %1305 = vector.load %arg13[%c0_949, %c0_950, %c0_951, %c0_952] : memref<1x2x16x256xf32, #tpu.memory_space<vmem>>, vector<1x2x16x256xf32>
    %1306 = vector.shape_cast %1305 : vector<1x2x16x256xf32> to vector<2x16x256xf32>
    %1307 = vector.shape_cast %1304 : vector<2x16x256xf32> to vector<1x2x16x256xf32>
    tpu.vector_store %arg13[%c0_949, %c0_950, %c0_951, %c0_952], %1307 {strides = array<i32>} : memref<1x2x16x256xf32, #tpu.memory_space<vmem>>, vector<1x2x16x256xf32>,
    return
  }
  func.func @transform_0(%arg0: i32) -> (i32, i32, i32, i32) {
    %c0_i32 = arith.constant 0 : i32
    %c0_i32_0 = arith.constant 0 : i32
    %c0_i32_1 = arith.constant 0 : i32
    %c0_i32_2 = arith.constant 0 : i32
    return %arg0, %c0_i32, %c0_i32_0, %c0_i32_1 : i32, i32, i32, i32
  }
  func.func @transform_1(%arg0: i32) -> (i32, i32, i32, i32) {
    %c0_i32 = arith.constant 0 : i32
    %c0_i32_0 = arith.constant 0 : i32
    %c0_i32_1 = arith.constant 0 : i32
    %c0_i32_2 = arith.constant 0 : i32
    return %arg0, %c0_i32, %c0_i32_0, %c0_i32_1 : i32, i32, i32, i32
  }
  func.func @transform_2(%arg0: i32) -> (i32, i32, i32, i32) {
    %c0_i32 = arith.constant 0 : i32
    %c0_i32_0 = arith.constant 0 : i32
    %c0_i32_1 = arith.constant 0 : i32
    %c0_i32_2 = arith.constant 0 : i32
    return %arg0, %c0_i32, %c0_i32_0, %c0_i32_1 : i32, i32, i32, i32
  }
  func.func @transform_3(%arg0: i32) -> (i32, i32, i32, i32) {
    %c0_i32 = arith.constant 0 : i32
    %c0_i32_0 = arith.constant 0 : i32
    %c0_i32_1 = arith.constant 0 : i32
    %c0_i32_2 = arith.constant 0 : i32
    return %arg0, %c0_i32, %c0_i32_0, %c0_i32_1 : i32, i32, i32, i32
  }
  func.func @transform_4(%arg0: i32) -> (i32, i32) {
    %c0_i32 = arith.constant 0 : i32
    %c0_i32_0 = arith.constant 0 : i32
    %c0_i32_1 = arith.constant 0 : i32
    return %c0_i32, %c0_i32_0 : i32, i32
  }
  func.func @transform_5(%arg0: i32) -> (i32, i32) {
    %c0_i32 = arith.constant 0 : i32
    %c0_i32_0 = arith.constant 0 : i32
    %c0_i32_1 = arith.constant 0 : i32
    return %c0_i32, %c0_i32_0 : i32, i32
  }
  func.func @transform_6(%arg0: i32) -> (i32, i32) {
    %c0_i32 = arith.constant 0 : i32
    %c0_i32_0 = arith.constant 0 : i32
    %c0_i32_1 = arith.constant 0 : i32
    return %c0_i32, %c0_i32_0 : i32, i32
  }
  func.func @transform_7(%arg0: i32) -> (i32, i32) {
    %c0_i32 = arith.constant 0 : i32
    %c0_i32_0 = arith.constant 0 : i32
    %c0_i32_1 = arith.constant 0 : i32
    return %c0_i32, %c0_i32_0 : i32, i32
  }
  func.func @transform_8(%arg0: i32) -> (i32, i32) {
    %c0_i32 = arith.constant 0 : i32
    %c0_i32_0 = arith.constant 0 : i32
    %c0_i32_1 = arith.constant 0 : i32
    return %c0_i32, %c0_i32_0 : i32, i32
  }
  func.func @transform_9(%arg0: i32) -> (i32, i32) {
    %c0_i32 = arith.constant 0 : i32
    %c0_i32_0 = arith.constant 0 : i32
    %c0_i32_1 = arith.constant 0 : i32
    return %c0_i32, %c0_i32_0 : i32, i32
  }
  func.func @transform_10(%arg0: i32) -> (i32, i32, i32, i32) {
    %c0_i32 = arith.constant 0 : i32
    %c0_i32_0 = arith.constant 0 : i32
    %c0_i32_1 = arith.constant 0 : i32
    %c0_i32_2 = arith.constant 0 : i32
    return %arg0, %c0_i32, %c0_i32_0, %c0_i32_1 : i32, i32, i32, i32
  }
  func.func @transform_11(%arg0: i32) -> (i32, i32, i32, i32) {
    %c0_i32 = arith.constant 0 : i32
    %c0_i32_0 = arith.constant 0 : i32
    %c0_i32_1 = arith.constant 0 : i32
    %c0_i32_2 = arith.constant 0 : i32
    return %arg0, %c0_i32, %c0_i32_0, %c0_i32_1 : i32, i32, i32, i32
  }
  func.func @transform_12(%arg0: i32) -> (i32, i32, i32, i32) {
    %c0_i32 = arith.constant 0 : i32
    %c0_i32_0 = arith.constant 0 : i32
    %c0_i32_1 = arith.constant 0 : i32
    %c0_i32_2 = arith.constant 0 : i32
    return %arg0, %c0_i32, %c0_i32_0, %c0_i32_1 : i32, i32, i32, i32
  }
}

</mosaic_0001>

<bundles_post_ra>
// kernel: tpu_custom_call.1
= control target key start
LH: loop header
LB: loop body
LE: loop exit
PB: predicated region body
PF: predicated region fallthrough
CT: control target
= control target key end

     0   :  { %s13089_s0 = inlined_call_operand.hbm [shape: f32[2,36,16,256], index: 0, kind: input, shape index: {}]   ;;  %s13090_s1 = inlined_call_operand.hbm [shape: f32[2,36,16,256], index: 1, kind: input, shape index: {}]   ;;  %s13091_s2 = inlined_call_operand.hbm [shape: f32[2,36,16,256], index: 2, kind: input, shape index: {}]   ;;  %s13092_s3 = inlined_call_operand.hbm [shape: f32[2,36,16,256], index: 3, kind: input, shape index: {}]   ;;  %s13093_s4 = inlined_call_operand.hbm [shape: f32[27,256], index: 4, kind: input, shape index: {}]   ;;  %s13094_s5 = inlined_call_operand.hbm [shape: f32[27,256], index: 5, kind: input, shape index: {}]   ;;  %s13095_s6 = inlined_call_operand.hbm [shape: f32[27,256], index: 6, kind: input, shape index: {}]   ;;  %s13096_s7 = inlined_call_operand.hbm [shape: f32[27,256], index: 7, kind: input, shape index: {}]   ;;  %s13097_s8 = inlined_call_operand.hbm [shape: f32[27,256], index: 8, kind: input, shape index: {}]   ;;  %s13098_s9 = inlined_call_operand.hbm [shape: f32[27,256], index: 9, kind: input, shape index: {}]   ;;  %s13099_s10 = inlined_call_operand.hbm [shape: f32[2,2,16,256], index: 10, kind: output, shape index: {0}]   ;;  %s13100_s11 = inlined_call_operand.hbm [shape: f32[2,2,16,256], index: 11, kind: output, shape index: {1}]   ;;  %s13101_s12 = inlined_call_operand.hbm [shape: f32[2,2,16,256], index: 12, kind: output, shape index: {2}]  }
   0x1   :  { %13342 = sst [smem:[#allocation95_spill]] %s13090_s1 }
   0x2   :  { %13343 = sst [smem:[#allocation96_spill]] %s13093_s4 }
   0x3   :  { %13344 = sst [smem:[#allocation97_spill]] %s13094_s5 }
   0x4   :  { %13345 = sst [smem:[#allocation98_spill]] %s13095_s6 }
   0x5   :  { %13346 = sst [smem:[#allocation99_spill]] %s13096_s7 }
   0x6   :  { %13347 = sst [smem:[#allocation100_spill]] %s13099_s10 }
   0x7   :  { %13348 = sst [smem:[#allocation101_spill]] %s13100_s11 }
   0x8   :  { %13349 = sst [smem:[#allocation102_spill]] %s13101_s12 }
   0x9   :  { %18 = vsyncpa [#allocation3], 0 }
   0xa   :  { %20 = vsyncpa [#allocation3 + $0x1], 0 }
   0xb   :  { %21 = vsyncpa [#allocation6], 0 }
   0xc   :  { %23 = vsyncpa [#allocation6 + $0x1], 0 }
   0xd   :  { %24 = vsyncpa [#allocation9], 0 }
   0xe   :  { %26 = vsyncpa [#allocation9 + $0x1], 0 }
   0xf   :  { %27 = vsyncpa [#allocation12], 0 }
  0x10   :  { %28 = vsyncpa [#allocation15], 0 }
  0x11   :  { %29 = vsyncpa [#allocation18], 0 }
  0x12   :  { %30 = vsyncpa [#allocation4], 0 }
  0x13   :  { %32 = vsyncpa [#allocation4 + $0x1], 0 }
  0x14   :  { %33 = vsyncpa [#allocation21], 0 }
  0x15   :  { %35 = vsyncpa [#allocation21 + $0x1], 0  ;;  %s9095_s21 = smov 0   ;;  %s9097_s22 = smov 0  }
  0x16   :  { %s9099_s23 = smov 0   ;;  %s9101_s24 = smov 0  }
  0x17 LB: > { %13350 = sst [smem:[#allocation32_spill]] %s8999_s21  ;;  %s9013_s25 = smov [#allocation10]   ;;  %s9011_s24 = sphi %s9101_s24, %s13826_s24   ;;  %s9007_s23 = sphi %s9099_s23, %s13830_s23   ;;  %s9003_s22 = sphi %s9097_s22, %s13829_s22   ;;  %s8999_s21 = sphi %s9095_s21, %s13828_s21  }
  0x18   : > { %s366_s26 = sshll.u32 %s9013_s25, 4  ;;  %s9116_s27 = sadd.s32 4294967295, %s9011_s24   ;;  %s9121_s26 = int_to_ptr.vmem [resolvable:$true] %s366_s26 }
  0x19   : > { %13351 = sst [smem:[#allocation33_spill]] %s9116_s27  ;;  %p7084_p0 = scmp.ge.s32.totalorder %s9011_s24, 1 }
  0x1a   : > { %p13115_p1 = scmp.eq.s32.totalorder %s9116_s27, 0  ;;  %p354_p2 = scmp.lt.s32.totalorder %s9011_s24, 3 }
  0x1b   : > { %s9014_s29 = smov [#allocation11]   ;;  %s9015_s14 = smov [#allocation14]  }
  0x1c   : > { %p9123_p3 = pnand %p7084_p0, %p354_p2  ;;  %s379_s30 = sshll.u32 %s9014_s29, 4  ;;  %s9136_s30 = int_to_ptr.vmem [resolvable:$true] %s379_s30 }
  0x1d   : > { %s405_s15 = sshll.u32 %s9015_s14, 4  ;;  %s13355_s4 = sld [smem:[#allocation96_spill]]  ;;  %s9138_s15 = int_to_ptr.vmem [resolvable:$true] %s405_s15 }
  0x1e   : > { %s13352_s28 = scalar_select %p9123_p3, 1, 0 }
  0x1f   : > { %p8415_p5 = pneg %p9123_p3 }
  0x20   : > { %13353 = sst [smem:[#allocation34_spill]] %s13352_s28 }
  0x21   : > { %p9132_p6 = pnand %p8415_p5, %p13115_p1 }
  0x23   : > { %s13354_s13 = scalar_select %p9132_p6, 1, 0 }
  0x24   : > { %s8573_s18 = scalar_lea.hbm %s13355_s4, 1024  ;;  %p9148_p8 = pneg %p9132_p6 }
  0x25   : > { %p8574_p7 = scmp.ne.s32.totalorder %s13355_s4, %s8573_s18  ;;  %p8580_p11 = scmp.lt.u32.totalorder %s8573_s18, %s13355_s4 }
  0x26   : > { %s13356_s25 = scalar_select %p9148_p8, 1, 0 }
  0x27   : > { %p8576_p9 = pnand %p9148_p8, %p8574_p7 }
  0x29   : > { %p8577_p10 = pneg %p8576_p9 }
  0x2b   : > { %p8582_p12 = pnand %p8580_p11, %p8577_p10 }
  0x2d   : > { %8585 = shalt.err (!%p8582_p12)
}
  0x2e   : > { %s8586_s16 = scalar_lea.vmem %s9121_s26, 1024  ;;  %p8594_p5 = scmp.lt.s32.totalorder %s9121_s26, %s9121_s26 }
  0x2f   : > { %p8587_p13 = scmp.ne.s32.totalorder %s9121_s26, %s8586_s16  ;;  %p8595_p4 = scmp.lt.s32.totalorder %s8586_s16, %s8586_s16 }
  0x31   : > { %p8589_p0 = pnand %p8587_p13, %p9148_p8  ;;  %p8596_p7 = por %p8595_p4, %p8594_p5 }
  0x33   : > { %p8590_p2 = pneg %p8589_p0 }
  0x35   : > { %p8597_p9 = pnand %p8596_p7, %p8590_p2 }
  0x37   : > { %8600 = shalt.err (!%p8597_p9)
}
  0x38   : > { %s13108_s17 = smov 256   ;;  %s13111_s18 = smov 16  }
  0x39   : > { %8418 = dma.hbm_to_vmem [thread:$0]  (!%p9132_p6), %s13355_s4, 1024, %s9121_s26, [#allocation9], %s13108_s17, %s13108_s17, %s13111_s18  }
  0x3a   : > { %s13357_s5 = sld [smem:[#allocation97_spill]] }
  0x40   : > { %s8601_s16 = scalar_lea.hbm %s13357_s5, 1024 }
  0x41   : > { %p8602_p4 = scmp.ne.s32.totalorder %s13357_s5, %s8601_s16  ;;  %p8608_p12 = scmp.lt.u32.totalorder %s8601_s16, %s13357_s5 }
  0x43   : > { %p8604_p10 = pnand %p8602_p4, %p9148_p8 }
  0x45   : > { %p8605_p11 = pneg %p8604_p10 }
  0x47   : > { %p8610_p13 = pnand %p8608_p12, %p8605_p11 }
  0x49   : > { %8613 = shalt.err (!%p8610_p13)
}
  0x4a   : > { %s8614_s26 = scalar_lea.vmem %s9136_s30, 1024  ;;  %p8622_p7 = scmp.lt.s32.totalorder %s9136_s30, %s9136_s30 }
  0x4b   : > { %p8615_p0 = scmp.ne.s32.totalorder %s9136_s30, %s8614_s26  ;;  %p8623_p9 = scmp.lt.s32.totalorder %s8614_s26, %s8614_s26 }
  0x4d   : > { %p8617_p2 = pnand %p8615_p0, %p9148_p8  ;;  %p8624_p4 = por %p8623_p9, %p8622_p7 }
  0x4f   : > { %p8618_p5 = pneg %p8617_p2 }
  0x51   : > { %p8625_p10 = pnand %p8624_p4, %p8618_p5 }
  0x53   : > { %8628 = shalt.err (!%p8625_p10)
}
  0x54   : > { %8421 = dma.hbm_to_vmem [thread:$0]  (!%p9132_p6), %s13357_s5, 1024, %s9136_s30, [#allocation12], %s13108_s17, %s13108_s17, %s13111_s18  }
  0x55   : > { %s13358_s7 = sld [smem:[#allocation99_spill]] }
  0x5b   : > { %s8629_s19 = scalar_lea.hbm %s13358_s7, 1024 }
  0x5c   : > { %p8630_p11 = scmp.ne.s32.totalorder %s13358_s7, %s8629_s19  ;;  %p8636_p0 = scmp.lt.u32.totalorder %s8629_s19, %s13358_s7 }
  0x5e   : > { %p8632_p12 = pnand %p8630_p11, %p9148_p8 }
  0x60   : > { %p8633_p13 = pneg %p8632_p12 }
  0x62   : > { %p8638_p2 = pnand %p8636_p0, %p8633_p13 }
  0x64   : > { %8641 = shalt.err (!%p8638_p2)
}
  0x65   : > { %s8642_s30 = scalar_lea.vmem %s9138_s15, 1024  ;;  %p8650_p4 = scmp.lt.s32.totalorder %s9138_s15, %s9138_s15 }
  0x66   : > { %p8643_p5 = scmp.ne.s32.totalorder %s9138_s15, %s8642_s30  ;;  %p8651_p10 = scmp.lt.s32.totalorder %s8642_s30, %s8642_s30 }
  0x68   : > { %p8645_p7 = pnand %p8643_p5, %p9148_p8  ;;  %p8652_p11 = por %p8651_p10, %p8650_p4 }
  0x6a   : > { %p8646_p9 = pneg %p8645_p7 }
  0x6c   : > { %p8653_p12 = pnand %p8652_p11, %p8646_p9 }
  0x6e   : > { %8656 = shalt.err (!%p8653_p12)
}
  0x6f   : > { %8427 = dma.hbm_to_vmem [thread:$0]  (!%p9132_p6), %s13358_s7, 1024, %s9138_s15, [#allocation15], %s13108_s17, %s13108_s17, %s13111_s18  }
  0x70   : > { %s13107_s11 = sadd.s32 4294967294, %s9011_s24   ;;  %s9226_s12 = sadd.s32 1, %s9011_s24  }
  0x71   : > { %13359 = sst [smem:[#allocation35_spill]] %s9226_s12  ;;  %s48_s28 = sadd.s32 1, %s9007_s23 }
  0x72   : > { %s45_s19 = ssub.s32 %s9011_s24, %s9226_s12  ;;  %p55_p13 = scmp.ne.s32.totalorder %s9007_s23, %s9003_s22 }
  0x73   : > { %p46_p0 = scmp.eq.s32.totalorder %s45_s19, 0  ;;  %p56_p2 = scmp.eq.s32.totalorder %s9011_s24, 0 }
  0x74   : > { %p61_p5 = scmp.ne.s32.totalorder %s9003_s22, %s8999_s21  ;;  %p289_p7 = scmp.eq.s32.totalorder %s9116_s27, 1 }
  0x75   : > { %s9238_s20 = scalar_select %p46_p0, %s9007_s23, %s48_s28  }
  0x76   : > { %p57_p9 = por %p56_p2, %p55_p13  ;;  %p9242_p4 = por %p13115_p1, %p61_p5 }
  0x77   : > { %13360 = sst [smem:[#allocation36_spill]] %s9238_s20  ;;  %p9246_p10 = por %p289_p7, %p55_p13 }
  0x78   : > { %s13361_s15 = scalar_select %p9242_p4, 1, 0 }
  0x79   : > { %s13362_s29 = scalar_select %p9246_p10, 1, 0 }
  0x7a   : > { %p295_p11 = scmp.eq.s32.totalorder %s13107_s11, 1  ;;  %p8463_p12 = scmp.lt.s32.totalorder %s9011_s24, 2 }
  0x7b   : > { %13363 = sst [smem:[#allocation37_spill]] %s13362_s29  ;;  %s13110_s14 = sand.u32 1, %s9007_s23  }
  0x7c   : > { %p9254_p3 = por %p295_p11, %p61_p5  ;;  %s9260_s30 = smul.u32 1152, %s13110_s14 }
  0x7d   : > { %s9263_s26 = smul.u32 18432, %s9011_s24  ;;  %p9265_p0 = pnand %p8463_p12, %p57_p9 }
  0x7e   : > { %s13364_s16 = scalar_select %p9254_p3, 1, 0 }
  0x7f   : > { %s13366_s10 = scalar_select %p9265_p0, 1, 0 }
  0x80   : > { %13365 = sst [smem:[#allocation38_spill]] %s13364_s16  ;;  %s13117_s28 = sand.u32 1, %s9011_s24  }
  0x81   : > { %s13367_s1 = sld [smem:[#allocation95_spill]]  ;;  %s470_s14 = scalar_lea.vmem [#allocation5], %s9260_s30 }
  0x82   : > { %s477_s18 = sshll.u32 %s470_s14, 4  ;;  %s9281_s4 = scalar_lea.sflag [#allocation6], %s13117_s28  ;;  %s9277_s18 = int_to_ptr.vmem [resolvable:$true] %s477_s18 }
  0x83   : > { %p9287_p2 = pneg %p9265_p0 }
  0x85   : > { %s13368_s7 = scalar_select %p9287_p2, 1, 0 }
  0x87   : > { %s9274_s17 = scalar_lea.hbm %s13367_s1, %s9263_s26  ;;  %s8662_s14 = scalar_lea.hbm %s13367_s1, 36864 }
  0x88   : > { %s8657_s5 = scalar_lea.hbm %s9274_s17, 18432  ;;  %p8663_p9 = scmp.lt.u32.totalorder %s9274_s17, %s13367_s1 }
  0x89   : > { %p8658_p13 = scmp.ne.s32.totalorder %s9274_s17, %s8657_s5  ;;  %p8664_p11 = scmp.lt.u32.totalorder %s8662_s14, %s8657_s5 }
  0x8a   : > { %p8666_p1 = scmp.lt.u32.totalorder %s8657_s5, %s9274_s17 }
  0x8b   : > { %p8660_p5 = pnand %p9287_p2, %p8658_p13  ;;  %p8665_p12 = por %p8664_p11, %p8663_p9 }
  0x8d   : > { %p8661_p7 = pneg %p8660_p5  ;;  %p8667_p3 = por %p8666_p1, %p8665_p12 }
  0x8f   : > { %p8668_p10 = pnand %p8667_p3, %p8661_p7 }
  0x91   : > { %8671 = shalt.err (!%p8668_p10)
}
  0x92   : > { %s8672_s28 = scalar_lea.vmem %s9277_s18, 18432  ;;  %s9018_s11 = smov [#allocation5]  }
  0x93   : > { %p8673_p13 = scmp.ne.s32.totalorder %s9277_s18, %s8672_s28  ;;  %s8677_s19 = sshll.u32 %s9018_s11, 4  ;;  %s8678_s19 = int_to_ptr.vmem [resolvable:$false] %s8677_s19 }
  0x94   : > { %s8679_s12 = scalar_lea.vmem %s8678_s19, 36864  ;;  %p8680_p6 = scmp.lt.s32.totalorder %s9277_s18, %s8678_s19 }
  0x95   : > { %p8675_p5 = pnand %p8673_p13, %p9287_p2  ;;  %p8681_p8 = scmp.lt.s32.totalorder %s8679_s12, %s8672_s28 }
  0x97   : > { %p8676_p4 = pneg %p8675_p5  ;;  %p8682_p9 = por %p8681_p8, %p8680_p6 }
  0x99   : > { %p8683_p11 = pnand %p8682_p9, %p8676_p4 }
  0x9b   : > { %8686 = shalt.err (!%p8683_p11)
}
  0x9c   : > { %s13369_s5 = smov 16   ;;  %s13370_s20 = smov 256  }
  0x9d   : > { %8440 = dma.hbm_to_vmem [thread:$0]  (!%p9265_p0), %s9274_s17, 18432, %s9277_s18, %s9281_s4, %s13370_s20, %s13370_s20, %s13369_s5  }
  0x9e   : > { %s9019_s14 = smov [#allocation13]   ;;  %s9020_s11 = smov [#allocation16]  }
  0x9f   : > { %s392_s1 = sshll.u32 %s9019_s14, 4  ;;  %s418_s16 = sshll.u32 %s9020_s11, 4  ;;  %s393_s1 = int_to_ptr.vmem [resolvable:$true] %s392_s1  ;;  %s9314_s16 = int_to_ptr.vmem [resolvable:$true] %s418_s16 }
  0xa0   : > { %s13371_s6 = sld [smem:[#allocation98_spill]]  ;;  %p13372_p3 = scmp.ne.s32.totalorder %s13356_s25, 0 }
  0xa6   : > { %s8687_s12 = scalar_lea.hbm %s13371_s6, 1024 }
  0xa7   : > { %p8688_p1 = scmp.ne.s32.totalorder %s13371_s6, %s8687_s12  ;;  %p8694_p4 = scmp.lt.u32.totalorder %s8687_s12, %s13371_s6 }
  0xa9   : > { %p8690_p6 = pnand %p8688_p1, %p13372_p3 }
  0xab   : > { %p8691_p8 = pneg %p8690_p6 }
  0xad   : > { %p8696_p10 = pnand %p8694_p4, %p8691_p8 }
  0xaf   : > { %8699 = shalt.err (!%p8696_p10)
}
  0xb0   : > { %s8700_s18 = scalar_lea.vmem %s393_s1, 1024  ;;  %p8708_p5 = scmp.lt.s32.totalorder %s393_s1, %s393_s1 }
  0xb1   : > { %p8701_p7 = scmp.ne.s32.totalorder %s393_s1, %s8700_s18  ;;  %p8709_p9 = scmp.lt.s32.totalorder %s8700_s18, %s8700_s18 }
  0xb3   : > { %p8703_p12 = pnand %p8701_p7, %p13372_p3  ;;  %p8710_p11 = por %p8709_p9, %p8708_p5 }
  0xb5   : > { %p8704_p13 = pneg %p8703_p12 }
  0xb7   : > { %p8711_p0 = pnand %p8710_p11, %p8704_p13 }
  0xb9   : > { %8714 = shalt.err (!%p8711_p0)
}
  0xba   : > { %p13373_p1 = scmp.ne.s32.totalorder %s13354_s13, 0  ;;  %s8715_s11 = scalar_lea.hbm %s13097_s8, 1024 }
  0xbb   : > { %p8716_p6 = scmp.ne.s32.totalorder %s13097_s8, %s8715_s11  ;;  %p8722_p4 = scmp.lt.u32.totalorder %s8715_s11, %s13097_s8 }
  0xbc   : > { %8424 = dma.hbm_to_vmem [thread:$0]  (!%p13373_p1), %s13371_s6, 1024, %s393_s1, [#allocation12], %s13370_s20, %s13370_s20, %s13369_s5  }
  0xbd   : > { %p8718_p0 = pnand %p8716_p6, %p13372_p3 }
  0xbf   : > { %p8719_p8 = pneg %p8718_p0 }
  0xc1   : > { %p8724_p10 = pnand %p8722_p4, %p8719_p8 }
  0xc3   : > { %8727 = shalt.err (!%p8724_p10)
}
  0xc4   : > { %s8728_s1 = scalar_lea.vmem %s9314_s16, 1024  ;;  %p8736_p5 = scmp.lt.s32.totalorder %s9314_s16, %s9314_s16 }
  0xc5   : > { %p8729_p7 = scmp.ne.s32.totalorder %s9314_s16, %s8728_s1  ;;  %p8737_p9 = scmp.lt.s32.totalorder %s8728_s1, %s8728_s1 }
  0xc7   : > { %p8731_p12 = pnand %p8729_p7, %p13372_p3  ;;  %p8738_p11 = por %p8737_p9, %p8736_p5 }
  0xc9   : > { %p8732_p13 = pneg %p8731_p12 }
  0xcb   : > { %p8739_p6 = pnand %p8738_p11, %p8732_p13 }
  0xcd   : > { %8742 = shalt.err (!%p8739_p6)
}
  0xce   : > { %8430 = dma.hbm_to_vmem [thread:$0]  (!%p13373_p1), %s13097_s8, 1024, %s9314_s16, [#allocation15], %s13370_s20, %s13370_s20, %s13369_s5  }
  0xcf   : > { %s9021_s27 = smov [#allocation17]   ;;  %s9367_s28 = scalar_lea.hbm %s13089_s0, %s9263_s26 }
  0xd0   : > { %s431_s29 = sshll.u32 %s9021_s27, 4  ;;  %s8743_s17 = scalar_lea.hbm %s13098_s9, 1024  ;;  %s432_s29 = int_to_ptr.vmem [resolvable:$true] %s431_s29 }
  0xd1   : > { %p8744_p0 = scmp.ne.s32.totalorder %s13098_s9, %s8743_s17  ;;  %p8750_p10 = scmp.lt.u32.totalorder %s8743_s17, %s13098_s9 }
  0xd3   : > { %p8746_p8 = pnand %p8744_p0, %p13372_p3 }
  0xd5   : > { %p8747_p4 = pneg %p8746_p8 }
  0xd7   : > { %p8752_p7 = pnand %p8750_p10, %p8747_p4 }
  0xd9   : > { %8755 = shalt.err (!%p8752_p7)
}
  0xda   : > { %s8756_s21 = scalar_lea.vmem %s432_s29, 1024  ;;  %p8764_p9 = scmp.lt.s32.totalorder %s432_s29, %s432_s29 }
  0xdb   : > { %p8757_p12 = scmp.ne.s32.totalorder %s432_s29, %s8756_s21  ;;  %p8765_p11 = scmp.lt.s32.totalorder %s8756_s21, %s8756_s21 }
  0xdd   : > { %p8759_p13 = pnand %p8757_p12, %p13372_p3  ;;  %p8766_p6 = por %p8765_p11, %p8764_p9 }
  0xdf   : > { %p8760_p5 = pneg %p8759_p13 }
  0xe1   : > { %p8767_p2 = pnand %p8766_p6, %p8760_p5 }
  0xe3   : > { %8770 = shalt.err (!%p8767_p2)
}
  0xe4   : > { %8433 = dma.hbm_to_vmem [thread:$0]  (!%p13373_p1), %s13098_s9, 1024, %s432_s29, [#allocation18], %s13370_s20, %s13370_s20, %s13369_s5  }
  0xe5   : > { %s449_s25 = scalar_lea.vmem [#allocation2], %s9260_s30  ;;  %s9397_s19 = scalar_lea.hbm %s13091_s2, %s9263_s26 }
  0xe6   : > { %s456_s14 = sshll.u32 %s449_s25, 4  ;;  %s13374_s12 = sand.u32 1, %s9007_s23   ;;  %s9391_s14 = int_to_ptr.vmem [resolvable:$true] %s456_s14 }
  0xe7   : > { %s9401_s17 = scalar_lea.sflag [#allocation3], %s13374_s12  ;;  %s8771_s1 = scalar_lea.hbm %s9367_s28, 18432 }
  0xe8   : > { %p8772_p2 = scmp.ne.s32.totalorder %s9367_s28, %s8771_s1  ;;  %p13375_p3 = scmp.ne.s32.totalorder %s13368_s7, 0 }
  0xe9   : > { %s8776_s29 = scalar_lea.hbm %s13089_s0, 36864  ;;  %p8777_p1 = scmp.lt.u32.totalorder %s9367_s28, %s13089_s0 }
  0xea   : > { %p8774_p0 = pnand %p8772_p2, %p13375_p3  ;;  %p8778_p4 = scmp.lt.u32.totalorder %s8776_s29, %s8771_s1 }
  0xeb   : > { %p8780_p7 = scmp.lt.u32.totalorder %s8771_s1, %s9367_s28 }
  0xec   : > { %p8775_p8 = pneg %p8774_p0  ;;  %p8779_p10 = por %p8778_p4, %p8777_p1 }
  0xee   : > { %p8781_p12 = por %p8780_p7, %p8779_p10 }
  0xf0   : > { %p8782_p13 = pnand %p8781_p12, %p8775_p8 }
  0xf2   : > { %8785 = shalt.err (!%p8782_p13)
}
  0xf3   : > { %s8786_s27 = scalar_lea.vmem %s9391_s14, 18432  ;;  %s9022_s25 = smov [#allocation2]  }
  0xf4   : > { %p8787_p5 = scmp.ne.s32.totalorder %s9391_s14, %s8786_s27  ;;  %s8791_s13 = sshll.u32 %s9022_s25, 4  ;;  %s8792_s13 = int_to_ptr.vmem [resolvable:$false] %s8791_s13 }
  0xf5   : > { %s8793_s11 = scalar_lea.vmem %s8792_s13, 36864  ;;  %p8794_p6 = scmp.lt.s32.totalorder %s9391_s14, %s8792_s13 }
  0xf6   : > { %p8789_p9 = pnand %p8787_p5, %p13375_p3  ;;  %p8795_p2 = scmp.lt.s32.totalorder %s8793_s11, %s8786_s27 }
  0xf8   : > { %p8790_p11 = pneg %p8789_p9  ;;  %p8796_p0 = por %p8795_p2, %p8794_p6 }
  0xfa   : > { %p8797_p1 = pnand %p8796_p0, %p8790_p11 }
  0xfc   : > { %8800 = shalt.err (!%p8797_p1)
}
  0xfd   : > { %p13376_p8 = scmp.ne.s32.totalorder %s13366_s10, 0  ;;  %s491_s12 = scalar_lea.vmem [#allocation7], %s9260_s30 }
  0xfe   : > { %s498_s1 = sshll.u32 %s491_s12, 4  ;;  %s9435_s29 = scalar_lea.hbm %s13092_s3, %s9263_s26  ;;  %s9429_s1 = int_to_ptr.vmem [resolvable:$true] %s498_s1 }
  0xff   : > { %8437 = dma.hbm_to_vmem [thread:$0]  (!%p13376_p8), %s9367_s28, 18432, %s9391_s14, %s9401_s17, %s13370_s20, %s13370_s20, %s13369_s5  }
 0x100   : > { %s8801_s21 = scalar_lea.hbm %s9397_s19, 18432  ;;  %s8806_s25 = scalar_lea.hbm %s13091_s2, 36864 }
 0x101   : > { %p8802_p4 = scmp.ne.s32.totalorder %s9397_s19, %s8801_s21  ;;  %p8807_p12 = scmp.lt.u32.totalorder %s9397_s19, %s13091_s2 }
 0x102   : > { %p8808_p13 = scmp.lt.u32.totalorder %s8806_s25, %s8801_s21  ;;  %p8810_p9 = scmp.lt.u32.totalorder %s8801_s21, %s9397_s19 }
 0x103   : > { %p8804_p10 = pnand %p8802_p4, %p13375_p3 }
 0x104   : > { %p8809_p5 = por %p8808_p13, %p8807_p12 }
 0x105   : > { %p8805_p7 = pneg %p8804_p10 }
 0x106   : > { %p8811_p11 = por %p8810_p9, %p8809_p5 }
 0x108   : > { %p8812_p6 = pnand %p8811_p11, %p8805_p7 }
 0x10a   : > { %8815 = shalt.err (!%p8812_p6)
}
 0x10b   : > { %s8816_s26 = scalar_lea.vmem %s9429_s1, 18432  ;;  %s9023_s14 = smov [#allocation7]  }
 0x10c   : > { %p8817_p2 = scmp.ne.s32.totalorder %s9429_s1, %s8816_s26  ;;  %s8821_s17 = sshll.u32 %s9023_s14, 4  ;;  %s8822_s17 = int_to_ptr.vmem [resolvable:$false] %s8821_s17 }
 0x10d   : > { %s8823_s11 = scalar_lea.vmem %s8822_s17, 36864  ;;  %p8824_p4 = scmp.lt.s32.totalorder %s9429_s1, %s8822_s17 }
 0x10e   : > { %p8819_p0 = pnand %p8817_p2, %p13375_p3  ;;  %p8825_p10 = scmp.lt.s32.totalorder %s8823_s11, %s8816_s26 }
 0x110   : > { %p8820_p1 = pneg %p8819_p0  ;;  %p8826_p12 = por %p8825_p10, %p8824_p4 }
 0x112   : > { %p8827_p13 = pnand %p8826_p12, %p8820_p1 }
 0x114   : > { %8830 = shalt.err (!%p8827_p13)
}
 0x115   : > { %8443 = dma.hbm_to_vmem [thread:$0]  (!%p13376_p8), %s9397_s19, 18432, %s9429_s1, %s9281_s4, %s13370_s20, %s13370_s20, %s13369_s5  }
 0x116   : > { %s512_s12 = scalar_lea.vmem [#allocation8], %s9260_s30  ;;  %s13377_s18 = sand.u32 1, %s9011_s24  }
 0x117   : > { %s519_s16 = sshll.u32 %s512_s12, 4  ;;  %s9467_s21 = scalar_lea.sflag [#allocation9], %s13377_s18  ;;  %s9463_s16 = int_to_ptr.vmem [resolvable:$true] %s519_s16 }
 0x118   : > { %s8831_s6 = scalar_lea.hbm %s9435_s29, 18432  ;;  %s8836_s13 = scalar_lea.hbm %s13092_s3, 36864 }
 0x119   : > { %p8832_p7 = scmp.ne.s32.totalorder %s9435_s29, %s8831_s6  ;;  %p8837_p11 = scmp.lt.u32.totalorder %s9435_s29, %s13092_s3 }
 0x11a   : > { %p8838_p6 = scmp.lt.u32.totalorder %s8836_s13, %s8831_s6  ;;  %p8840_p0 = scmp.lt.u32.totalorder %s8831_s6, %s9435_s29 }
 0x11b   : > { %p8834_p5 = pnand %p8832_p7, %p13375_p3 }
 0x11c   : > { %p8839_p2 = por %p8838_p6, %p8837_p11 }
 0x11d   : > { %p8835_p9 = pneg %p8834_p5 }
 0x11e   : > { %p8841_p1 = por %p8840_p0, %p8839_p2 }
 0x120   : > { %p8842_p4 = pnand %p8841_p1, %p8835_p9 }
 0x122   : > { %8845 = shalt.err (!%p8842_p4)
}
 0x123   : > { %s8846_s4 = scalar_lea.vmem %s9463_s16, 18432  ;;  %s9024_s30 = smov [#allocation8]  }
 0x124   : > { %p8847_p10 = scmp.ne.s32.totalorder %s9463_s16, %s8846_s4  ;;  %s8851_s19 = sshll.u32 %s9024_s30, 4  ;;  %s8852_s19 = int_to_ptr.vmem [resolvable:$false] %s8851_s19 }
 0x125   : > { %s8853_s1 = scalar_lea.vmem %s8852_s19, 36864  ;;  %p8854_p7 = scmp.lt.s32.totalorder %s9463_s16, %s8852_s19 }
 0x126   : > { %p8849_p12 = pnand %p8847_p10, %p13375_p3  ;;  %p8855_p5 = scmp.lt.s32.totalorder %s8853_s1, %s8846_s4 }
 0x128   : > { %p8850_p13 = pneg %p8849_p12  ;;  %p8856_p11 = por %p8855_p5, %p8854_p7 }
 0x12a   : > { %p8857_p6 = pnand %p8856_p11, %p8850_p13 }
 0x12c   : > { %8860 = shalt.err (!%p8857_p6)
}
 0x12d   : > { %8446 = dma.hbm_to_vmem [thread:$0]  (!%p13376_p8), %s9435_s29, 18432, %s9463_s16, %s9467_s21, %s13370_s20, %s13370_s20, %s13369_s5  }
 0x12e   : > { %s13378_s7 = sld [smem:[#allocation34_spill]] }
 0x134   : > { %p13379_p3 = scmp.ne.s32.totalorder %s13378_s7, 0 }
 0x136   : > { %531 = sbr.rel (%p13379_p3) target bundleno = 1127 (0x467), region = 60 }
 0x13d   : > { %s9497_s14 = sand.u32 1, %s9003_s22   ;;  %p13380_p9 = scmp.ne.s32.totalorder %s13361_s15, 0 }
 0x13e   : > { %s8376_s17 = smul.u32 1152, %s9497_s14  ;;  %s534_s11 = scalar_lea.sflag [#allocation3], %s9497_s14 }
 0x140   : > { %s9501_s12 = scalar_lea.vmem [#allocation2], %s8376_s17 }
 0x141   : > { %8962 = dma.done.wait (%p13380_p9), %s534_s11, 18432  }
 0x142   : > { %8964 = vsyncadd (%p13380_p9), %s534_s11, 4294948864  ;;  %s13381_s10 = sld [smem:[#allocation33_spill]]  ;;  %s9511_s29 = scalar_lea.vmem [#allocation5], %s8376_s17 }
 0x148   : > { %s9508_s5 = sand.u32 1, %s13381_s10  }
 0x149   : > { %s543_s20 = scalar_lea.sflag [#allocation6], %s9508_s5 }
 0x14a   : > { %8966 = dma.done.wait (%p13380_p9), %s543_s20, 36864  }
 0x14b   : > { %8968 = vsyncadd (%p13380_p9), %s543_s20, 4294930432  ;;  %s9517_s16 = scalar_lea.vmem [#allocation7], %s8376_s17  ;;  %s561_s18 = scalar_lea.sflag [#allocation9], %s9508_s5 }
 0x14c   : > { %s9520_s21 = scalar_lea.vmem [#allocation8], %s8376_s17 }
 0x14d   : > { %8970 = dma.done.wait (%p13380_p9), %s561_s18, 18432  }
 0x14e   : > { %8972 = vsyncadd (%p13380_p9), %s561_s18, 4294948864  ;;  %p13382_p8 = scmp.eq.s32.totalorder %s13381_s10, 0 }
 0x150   : > { %8974 = dma.done.wait (%p13382_p8), [#allocation9], 1024   ;;  %p13383_p2 = pmov %p13382_p8 }
 0x152   : > { %8976 = vsyncadd (%p13383_p2), [#allocation9], 4294966272  ;;  %p13384_p0 = pmov %p13383_p2 }
 0x154   : > { %8978 = dma.done.wait (%p13384_p0), [#allocation12], 2048   ;;  %p13385_p1 = pmov %p13384_p0 }
 0x155   : > { %p13386_p4 = pmov %p13384_p0 }
 0x156   : > { %8980 = vsyncadd (%p13385_p1), [#allocation12], 4294965248 }
 0x157   : > { %8982 = dma.done.wait (%p13386_p4), [#allocation15], 2048   ;;  %p13387_p10 = pmov %p13384_p0 }
 0x158   : > { %p13388_p12 = pmov %p13384_p0 }
 0x159   : > { %8984 = vsyncadd (%p13387_p10), [#allocation15], 4294965248 }
 0x15a   : > { %8986 = dma.done.wait (%p13388_p12), [#allocation18], 1024   ;;  %p13389_p13 = pmov %p13384_p0 }
 0x15b   : > { %v672_v0 = vlaneseq  ;;  %v2710_v4 = vld [vmem:[%s9517_s16] sm:$0xff]  ;;  %v2712_v5 = vld [vmem:[%s9517_s16 + $0x10] sm:$0xff]  ;;  %v2711_v8 = vld [vmem:[%s9517_s16 + $0x8] sm:$0xff]  ;;  %s10115_s15 = sshll.u32 %s9497_s14, 6  ;;  %s11249_s27 = sshll.u32 %s13381_s10, 10 }
 0x15c   : > { %8988 = vsyncadd (%p13389_p13), [#allocation18], 4294966272  ;;  %v9549_v6 = vld [vmem:[%s9517_s16 + $0x20] sm:$0xff]  ;;  %v9552_v7 = vld [vmem:[%s9517_s16 + $0x30] sm:$0xff]  ;;  %s10156_s6 = scalar_lea.vmem [#allocation20], %s10115_s15  ;;  %s13518_s25 = sld [smem:[#allocation37_spill]] }
 0x15d   : > { %v673_v1 = vshrl.u32 %v672_v0, 7  ;;  %v2718_v9 = vld [vmem:[%s9520_s21] sm:$0xff]  ;;  %v2720_v10 = vld [vmem:[%s9520_s21 + $0x10] sm:$0xff]  ;;  %v2713_v17 = vld [vmem:[%s9517_s16 + $0x18] sm:$0xff]  ;;  %s13519_s26 = sld [smem:[#allocation101_spill]]  ;;  %s6810_s30 = sshll.u32 %s10156_s6, 4  ;;  %s11298_s30 = int_to_ptr.vmem [resolvable:$true] %s6810_s30 }
 0x15e   : > { %v2726_v11 = vld [vmem:[#allocation13] ss:$8 sm:$0x3]  ;;  %v9561_v13 = vld [vmem:[%s9520_s21 + $0x30] sm:$0xff]  ;;  %v2717_v19 = vld [vmem:[%s9517_s16 + $0x38] sm:$0xff]  ;;  %s6776_s19 = scalar_lea.sflag [#allocation21], %s9508_s5 }
 0x15f   : > { %v9542_v2 = vsub.s32 0, %v673_v1  ;;  %v9544_v3 = vsub.s32 1, %v673_v1  ;;  %v9558_v12 = vld [vmem:[%s9520_s21 + $0x20] sm:$0xff]  ;;  %v2715_v18 = vld [vmem:[%s9517_s16 + $0x28] sm:$0xff]  ;;  %v2721_v23 = vld [vmem:[%s9520_s21 + $0x18] sm:$0xff]  ;;  %s8861_s1 = scalar_lea.vmem %s11298_s30, 1024 }
 0x160   : > { %v2754_v15 = vld [vmem:[#allocation14] ss:$8 sm:$0x3]  ;;  %v2725_v29 = vld [vmem:[%s9520_s21 + $0x38] sm:$0xff]  ;;  %v7524_v35 = vld [vmem:[%s9517_s16 + $0x90] sm:$0xff]  ;;  %p8862_p7 = scmp.ne.s32.totalorder %s11298_s30, %s8861_s1  ;;  %s9025_s7 = smov [#allocation20]  }
 0x161   : > { %13390 = vst [vmem:[#allocation39_spill] sm:$0xff] %v9542_v2  ;;  %13391 = vst [vmem:[#allocation40_spill] sm:$0xff] %v9544_v3  ;;  %v2731_v14 = vrot.slane %v2726_v11, %v9542_v2  ;;  %v2735_v16 = vrot.slane %v2726_v11, %v9544_v3  ;;  %v2759_v20 = vrot.slane %v2754_v15, %v9542_v2  ;;  %v2719_v22 = vld [vmem:[%s9520_s21 + $0x8] sm:$0xff]  ;;  %v7522_v34 = vld [vmem:[%s9517_s16 + $0x80] sm:$0xff]  ;;  %s8865_s17 = sshll.u32 %s9025_s7, 4  ;;  %s8866_s17 = int_to_ptr.vmem [resolvable:$false] %s8865_s17 }
 0x162   : > { %v2763_v21 = vrot.slane %v2754_v15, %v9544_v3  ;;  %v2723_v28 = vld [vmem:[%s9520_s21 + $0x28] sm:$0xff]  ;;  %v9581_v36 = vld [vmem:[%s9517_s16 + $0xa0] sm:$0xff]  ;;  %v9584_v37 = vld [vmem:[%s9517_s16 + $0xb0] sm:$0xff]  ;;  %p13524_p5 = scmp.ne.s32.totalorder %s13518_s25, 0  ;;  %s8867_s11 = scalar_lea.vmem %s8866_s17, 2048 }
 0x163   : > { %v2738_v24 = vmul.f32 %v2731_v14, %v2710_v4  ;;  %v2740_v25 = vmul.f32 %v2731_v14, %v2712_v5  ;;  %v2742_v26 = vmul.f32 %v2731_v14, %v9549_v6  ;;  %v2744_v27 = vmul.f32 %v2731_v14, %v9552_v7  ;;  %v7530_v46 = vld [vmem:[%s9520_s21 + $0x80] sm:$0xff]  ;;  %v7532_v47 = vld [vmem:[%s9520_s21 + $0x90] sm:$0xff]  ;;  %v7523_v60 = vld [vmem:[%s9517_s16 + $0x88] sm:$0xff]  ;;  %s11283_s4 = scalar_lea.hbm %s13519_s26, %s11249_s27  ;;  %p8868_p3 = scmp.lt.s32.totalorder %s11298_s30, %s8866_s17 }
 0x164   : > { %v2766_v30 = vmul.f32 %v2759_v20, %v2718_v9  ;;  %v2768_v31 = vmul.f32 %v2759_v20, %v2720_v10  ;;  %v2770_v32 = vmul.f32 %v2759_v20, %v9558_v12  ;;  %v2772_v33 = vmul.f32 %v2759_v20, %v9561_v13  ;;  %v2801_v48 = vld [vmem:[#allocation13 + $0x1] ss:$8 sm:$0x3]  ;;  %v9592_v50 = vld [vmem:[%s9520_s21 + $0xb0] sm:$0xff]  ;;  %v7525_v1 = vld [vmem:[%s9517_s16 + $0x98] sm:$0xff]  ;;  %p8863_p11 = pnand %p8862_p7, %p13524_p5  ;;  %p8869_p9 = scmp.lt.s32.totalorder %s8867_s11, %s8861_s1 }
 0x165   : > { %v2739_v38 = vmul.f32 %v2735_v16, %v2711_v8  ;;  %v2741_v39 = vmul.f32 %v2735_v16, %v2713_v17  ;;  %v2743_v40 = vmul.f32 %v2735_v16, %v2715_v18  ;;  %v2745_v41 = vmul.f32 %v2735_v16, %v2717_v19  ;;  %v9589_v49 = vld [vmem:[%s9520_s21 + $0xa0] sm:$0xff]  ;;  %v7527_v4 = vld [vmem:[%s9517_s16 + $0xa8] sm:$0xff]  ;;  %v7529_v5 = vld [vmem:[%s9517_s16 + $0xb8] sm:$0xff] }
 0x166   : > { %v2774_v42 = vadd.f32 %v2766_v30, %v2738_v24  ;;  %v2776_v43 = vadd.f32 %v2768_v31, %v2740_v25  ;;  %v2778_v44 = vadd.f32 %v2770_v32, %v2742_v26  ;;  %v2780_v45 = vadd.f32 %v2772_v33, %v2744_v27  ;;  %v2830_v52 = vld [vmem:[#allocation14 + $0x1] ss:$8 sm:$0x3]  ;;  %v7533_v15 = vld [vmem:[%s9520_s21 + $0x98] sm:$0xff]  ;;  %v9618_v32 = vld [vmem:[%s9517_s16 + $0x130] sm:$0xff]  ;;  %p8864_p6 = pneg %p8863_p11  ;;  %p8870_p8 = por %p8869_p9, %p8868_p3 }
 0x167   : > { %v2806_v51 = vrot.slane %v2801_v48, %v9542_v2  ;;  %v2767_v53 = vmul.f32 %v2763_v21, %v2719_v22  ;;  %v2769_v54 = vmul.f32 %v2763_v21, %v2721_v23  ;;  %v2771_v55 = vmul.f32 %v2763_v21, %v2723_v28  ;;  %v7531_v14 = vld [vmem:[%s9520_s21 + $0x88] sm:$0xff]  ;;  %v7538_v20 = vld [vmem:[%s9517_s16 + $0x100] sm:$0xff] }
 0x168   : > { %v2835_v56 = vrot.slane %v2830_v52, %v9542_v2  ;;  %v2773_v57 = vmul.f32 %v2763_v21, %v2725_v29  ;;  %v2810_v58 = vrot.slane %v2801_v48, %v9544_v3  ;;  %v9598_v59 = vrot.slane %v2830_v52, %v9544_v3  ;;  %v7540_v21 = vld [vmem:[%s9517_s16 + $0x110] sm:$0xff]  ;;  %v9613_v22 = vld [vmem:[%s9517_s16 + $0x120] sm:$0xff]  ;;  %p8871_p2 = pnand %p8870_p8, %p8864_p6 }
 0x169   : > { %v2813_v61 = vmul.f32 %v7522_v34, %v2806_v51  ;;  %v2815_v62 = vmul.f32 %v7524_v35, %v2806_v51  ;;  %v2817_v63 = vmul.f32 %v9581_v36, %v2806_v51  ;;  %v2819_v0 = vmul.f32 %v9584_v37, %v2806_v51  ;;  %v9615_v23 = vld [vmem:[#allocation13 + $0x2] ss:$8 sm:$0x3]  ;;  %v7548_v35 = vld [vmem:[%s9520_s21 + $0x110] sm:$0xff] }
 0x16a   : > { %v2842_v8 = vmul.f32 %v7530_v46, %v2835_v56  ;;  %v2844_v9 = vmul.f32 %v7532_v47, %v2835_v56  ;;  %v2846_v10 = vmul.f32 %v9589_v49, %v2835_v56  ;;  %v2848_v11 = vmul.f32 %v9592_v50, %v2835_v56  ;;  %v7546_v33 = vld [vmem:[%s9520_s21 + $0x100] sm:$0xff] }
 0x16b   : > { %v2821_v16 = vadd.f32 %v2813_v61, %v2774_v42  ;;  %v2823_v17 = vadd.f32 %v2815_v62, %v2776_v43  ;;  %v2825_v18 = vadd.f32 %v2817_v63, %v2778_v44  ;;  %v2827_v19 = vadd.f32 %v2819_v0, %v2780_v45  ;;  %v9621_v34 = vld [vmem:[#allocation14 + $0x2] ss:$8 sm:$0x3]  ;;  %v9628_v43 = vld [vmem:[%s9520_s21 + $0x130] sm:$0xff] }
 0x16c   : > { %v2775_v24 = vadd.f32 %v2767_v53, %v2739_v38  ;;  %v2777_v25 = vadd.f32 %v2769_v54, %v2741_v39  ;;  %v2779_v26 = vadd.f32 %v2771_v55, %v2743_v40  ;;  %v2781_v27 = vadd.f32 %v2773_v57, %v2745_v41  ;;  %v9625_v42 = vld [vmem:[%s9520_s21 + $0x120] sm:$0xff] }
 0x16d   : > { %v2850_v28 = vadd.f32 %v2842_v8, %v2821_v16  ;;  %v2852_v29 = vadd.f32 %v2844_v9, %v2823_v17  ;;  %v2854_v30 = vadd.f32 %v2846_v10, %v2825_v18  ;;  %v2856_v31 = vadd.f32 %v2848_v11, %v2827_v19  ;;  %v7535_v8 = vld [vmem:[%s9520_s21 + $0xa8] sm:$0xff]  ;;  %v7537_v9 = vld [vmem:[%s9520_s21 + $0xb8] sm:$0xff] }
 0x16e   : > { %v2882_v38 = vrot.slane %v9615_v23, %v9542_v2  ;;  %v2911_v39 = vrot.slane %v9621_v34, %v9542_v2  ;;  %v2814_v40 = vmul.f32 %v7523_v60, %v2810_v58  ;;  %v2816_v41 = vmul.f32 %v7525_v1, %v2810_v58  ;;  %v7556_v60 = vld [vmem:[%s9517_s16 + $0x190] sm:$0xff]  ;;  %v9643_v1 = vld [vmem:[%s9517_s16 + $0x1a0] sm:$0xff] }
 0x16f   : > { %v2818_v44 = vmul.f32 %v7527_v4, %v2810_v58  ;;  %v2820_v45 = vmul.f32 %v7529_v5, %v2810_v58  ;;  %v2843_v46 = vmul.f32 %v7531_v14, %v9598_v59  ;;  %v2845_v47 = vmul.f32 %v7533_v15, %v9598_v59  ;;  %v7554_v58 = vld [vmem:[%s9517_s16 + $0x180] sm:$0xff]  ;;  %v9646_v4 = vld [vmem:[%s9517_s16 + $0x1b0] sm:$0xff] }
 0x170   : > { %v2889_v48 = vmul.f32 %v7538_v20, %v2882_v38  ;;  %v2891_v51 = vmul.f32 %v7540_v21, %v2882_v38  ;;  %v2893_v52 = vmul.f32 %v9613_v22, %v2882_v38  ;;  %v2895_v53 = vmul.f32 %v9618_v32, %v2882_v38  ;;  %v9648_v5 = vld [vmem:[#allocation13 + $0x3] ss:$8 sm:$0x3] }
 0x171   : > { %v2918_v54 = vmul.f32 %v7546_v33, %v2911_v39  ;;  %v2920_v55 = vmul.f32 %v7548_v35, %v2911_v39  ;;  %v2922_v56 = vmul.f32 %v9625_v42, %v2911_v39  ;;  %v2924_v57 = vmul.f32 %v9628_v43, %v2911_v39  ;;  %v9654_v11 = vld [vmem:[#allocation14 + $0x3] ss:$8 sm:$0x3] }
 0x172   : > { %v2897_v61 = vadd.f32 %v2889_v48, %v2850_v28  ;;  %v2899_v62 = vadd.f32 %v2891_v51, %v2852_v29  ;;  %v2901_v63 = vadd.f32 %v2893_v52, %v2854_v30  ;;  %v2903_v0 = vadd.f32 %v2895_v53, %v2856_v31  ;;  %v7562_v21 = vld [vmem:[%s9520_s21 + $0x180] sm:$0xff]  ;;  %v7564_v28 = vld [vmem:[%s9520_s21 + $0x190] sm:$0xff] }
 0x173   : > { %v2958_v10 = vrot.slane %v9648_v5, %v9542_v2  ;;  %v2822_v14 = vadd.f32 %v2814_v40, %v2775_v24  ;;  %v2824_v15 = vadd.f32 %v2816_v41, %v2777_v25  ;;  %v2826_v16 = vadd.f32 %v2818_v44, %v2779_v26  ;;  %v9659_v29 = vld [vmem:[%s9520_s21 + $0x1a0] sm:$0xff]  ;;  %v9662_v30 = vld [vmem:[%s9520_s21 + $0x1b0] sm:$0xff] }
 0x174   : > { %v2926_v17 = vadd.f32 %v2918_v54, %v2897_v61  ;;  %v2928_v18 = vadd.f32 %v2920_v55, %v2899_v62  ;;  %v2930_v19 = vadd.f32 %v2922_v56, %v2901_v63  ;;  %v2932_v20 = vadd.f32 %v2924_v57, %v2903_v0  ;;  %v7570_v51 = vld [vmem:[%s9517_s16 + $0x200] sm:$0xff]  ;;  %v7572_v52 = vld [vmem:[%s9517_s16 + $0x210] sm:$0xff] }
 0x175   : > { %v2965_v31 = vmul.f32 %v7554_v58, %v2958_v10  ;;  %v2967_v33 = vmul.f32 %v7556_v60, %v2958_v10  ;;  %v2969_v35 = vmul.f32 %v9643_v1, %v2958_v10  ;;  %v2971_v24 = vmul.f32 %v9646_v4, %v2958_v10  ;;  %v3058_v58 = vld [vmem:[#allocation14 + $0x4] ss:$8 sm:$0x3] }
 0x176   : > { %v2987_v25 = vrot.slane %v9654_v11, %v9542_v2  ;;  %v2828_v26 = vadd.f32 %v2820_v45, %v2781_v27  ;;  %v2847_v38 = vmul.f32 %v7535_v8, %v9598_v59  ;;  %v2849_v39 = vmul.f32 %v7537_v9, %v9598_v59  ;;  %v9675_v27 = vld [vmem:[%s9517_s16 + $0x220] sm:$0xff]  ;;  %v9678_v45 = vld [vmem:[%s9517_s16 + $0x230] sm:$0xff] }
 0x177   : > { %v2973_v40 = vadd.f32 %v2965_v31, %v2926_v17  ;;  %v2975_v41 = vadd.f32 %v2967_v33, %v2928_v18  ;;  %v2977_v44 = vadd.f32 %v2969_v35, %v2930_v19  ;;  %v2979_v48 = vadd.f32 %v2971_v24, %v2932_v20  ;;  %v3029_v59 = vld [vmem:[#allocation13 + $0x4] ss:$8 sm:$0x3]  ;;  %v7580_v17 = vld [vmem:[%s9520_s21 + $0x210] sm:$0xff] }
 0x178   : > { %v2994_v53 = vmul.f32 %v7562_v21, %v2987_v25  ;;  %v2996_v54 = vmul.f32 %v7564_v28, %v2987_v25  ;;  %v2998_v55 = vmul.f32 %v9659_v29, %v2987_v25  ;;  %v3000_v56 = vmul.f32 %v9662_v30, %v2987_v25  ;;  %v7578_v10 = vld [vmem:[%s9520_s21 + $0x200] sm:$0xff]  ;;  %v9689_v19 = vld [vmem:[%s9520_s21 + $0x230] sm:$0xff] }
 0x179   : > { %v3034_v57 = vrot.slane %v3029_v59, %v9542_v2  ;;  %v2851_v60 = vadd.f32 %v2843_v46, %v2822_v14  ;;  %v2853_v61 = vadd.f32 %v2845_v47, %v2824_v15  ;;  %v9681_v62 = vadd.f32 %v2847_v38, %v2826_v16  ;;  %v9686_v18 = vld [vmem:[%s9520_s21 + $0x220] sm:$0xff]  ;;  %v7539_v14 = vld [vmem:[%s9517_s16 + $0x108] sm:$0xff]  ;;  %v7541_v15 = vld [vmem:[%s9517_s16 + $0x118] sm:$0xff] }
 0x17a   : > { %v3002_v63 = vadd.f32 %v2994_v53, %v2973_v40  ;;  %v3004_v0 = vadd.f32 %v2996_v54, %v2975_v41  ;;  %v3006_v8 = vadd.f32 %v2998_v55, %v2977_v44  ;;  %v3008_v9 = vadd.f32 %v3000_v56, %v2979_v48  ;;  %v7543_v16 = vld [vmem:[%s9517_s16 + $0x128] sm:$0xff]  ;;  %v7586_v41 = vld [vmem:[%s9517_s16 + $0x280] sm:$0xff]  ;;  %v7588_v44 = vld [vmem:[%s9517_s16 + $0x290] sm:$0xff] }
 0x17b   : > { %v3041_v20 = vmul.f32 %v7570_v51, %v3034_v57  ;;  %v3043_v21 = vmul.f32 %v7572_v52, %v3034_v57  ;;  %v3045_v46 = vmul.f32 %v9675_v27, %v3034_v57  ;;  %v3047_v47 = vmul.f32 %v9678_v45, %v3034_v57  ;;  %v7545_v53 = vld [vmem:[%s9517_s16 + $0x138] sm:$0xff]  ;;  %v3134_v55 = vld [vmem:[#allocation14 + $0x5] ss:$8 sm:$0x3] }
 0x17c   : > { %v3063_v28 = vrot.slane %v3058_v58, %v9542_v2  ;;  %v2857_v31 = vadd.f32 %v2849_v39, %v2828_v26  ;;  %v2886_v33 = vrot.slane %v9615_v23, %v9544_v3  ;;  %v9701_v35 = vrot.slane %v9621_v34, %v9544_v3  ;;  %v9708_v23 = vld [vmem:[%s9517_s16 + $0x2a0] sm:$0xff]  ;;  %v9711_v34 = vld [vmem:[%s9517_s16 + $0x2b0] sm:$0xff] }
 0x17d   : > { %v3049_v24 = vadd.f32 %v3041_v20, %v3002_v63  ;;  %v3051_v25 = vadd.f32 %v3043_v21, %v3004_v0  ;;  %v3053_v38 = vadd.f32 %v3045_v46, %v3006_v8  ;;  %v3055_v40 = vadd.f32 %v3047_v47, %v3008_v9  ;;  %13392 = vst [vmem:[#allocation41_spill] sm:$0xff] %v9711_v34  ;;  %v3105_v39 = vld [vmem:[#allocation13 + $0x5] ss:$8 sm:$0x3]  ;;  %v9721_v20 = vld [vmem:[%s9520_s21 + $0x2b0] sm:$0xff] }
 0x17e   : > { %v3070_v48 = vmul.f32 %v7578_v10, %v3063_v28  ;;  %v3072_v51 = vmul.f32 %v7580_v17, %v3063_v28  ;;  %v3074_v52 = vmul.f32 %v9686_v18, %v3063_v28  ;;  %v3076_v26 = vmul.f32 %v9689_v19, %v3063_v28  ;;  %v7594_v9 = vld [vmem:[%s9520_s21 + $0x280] sm:$0xff]  ;;  %v7596_v10 = vld [vmem:[%s9520_s21 + $0x290] sm:$0xff]  ;;  %13394 = vst [vmem:[#allocation43_spill] sm:$0xff] %v9721_v20 }
 0x17f   : > { %v3110_v54 = vrot.slane %v3105_v39, %v9542_v2  ;;  %v2890_v56 = vmul.f32 %v7539_v14, %v2886_v33  ;;  %v2892_v59 = vmul.f32 %v7541_v15, %v2886_v33  ;;  %v2894_v57 = vmul.f32 %v7543_v16, %v2886_v33  ;;  %v9718_v17 = vld [vmem:[%s9520_s21 + $0x2a0] sm:$0xff]  ;;  %v7547_v15 = vld [vmem:[%s9520_s21 + $0x108] sm:$0xff] }
 0x180   : > { %v3078_v58 = vadd.f32 %v3070_v48, %v3049_v24  ;;  %v3080_v63 = vadd.f32 %v3072_v51, %v3051_v25  ;;  %v3082_v0 = vadd.f32 %v3074_v52, %v3053_v38  ;;  %v3084_v8 = vadd.f32 %v3076_v26, %v3055_v40  ;;  %13393 = vst [vmem:[#allocation42_spill] sm:$0xff] %v9718_v17  ;;  %v7549_v38 = vld [vmem:[%s9520_s21 + $0x118] sm:$0xff]  ;;  %v7604_v52 = vld [vmem:[%s9517_s16 + $0x310] sm:$0xff] }
 0x181   : > { %v3117_v21 = vmul.f32 %v7586_v41, %v3110_v54  ;;  %v3119_v46 = vmul.f32 %v7588_v44, %v3110_v54  ;;  %v3121_v47 = vmul.f32 %v9708_v23, %v3110_v54  ;;  %v3123_v14 = vmul.f32 %v9711_v34, %v3110_v54  ;;  %v7602_v44 = vld [vmem:[%s9517_s16 + $0x300] sm:$0xff] }
 0x182   : > { %v3139_v16 = vrot.slane %v3134_v55, %v9542_v2  ;;  %v2896_v28 = vmul.f32 %v7545_v53, %v2886_v33  ;;  %v2898_v24 = vadd.f32 %v2890_v56, %v2851_v60  ;;  %v2900_v25 = vadd.f32 %v2892_v59, %v2853_v61  ;;  %v9733_v33 = vld [vmem:[%s9517_s16 + $0x320] sm:$0xff]  ;;  %v9736_v60 = vld [vmem:[%s9517_s16 + $0x330] sm:$0xff]  ;;  %v7551_v53 = vld [vmem:[%s9520_s21 + $0x128] sm:$0xff] }
 0x183   : > { %v3125_v40 = vadd.f32 %v3117_v21, %v3078_v58  ;;  %v3127_v48 = vadd.f32 %v3119_v46, %v3080_v63  ;;  %v3129_v51 = vadd.f32 %v3121_v47, %v3082_v0  ;;  %v3131_v41 = vadd.f32 %v3123_v14, %v3084_v8  ;;  %v3181_v61 = vld [vmem:[#allocation13 + $0x6] ss:$8 sm:$0x3]  ;;  %v7553_v56 = vld [vmem:[%s9520_s21 + $0x138] sm:$0xff]  ;;  %v7612_v14 = vld [vmem:[%s9520_s21 + $0x310] sm:$0xff] }
 0x184   : > { %v3146_v26 = vmul.f32 %v7594_v9, %v3139_v16  ;;  %v3148_v39 = vmul.f32 %v7596_v10, %v3139_v16  ;;  %v3150_v54 = vmul.f32 %v9718_v17, %v3139_v16  ;;  %v3152_v55 = vmul.f32 %v9721_v20, %v3139_v16  ;;  %v3210_v58 = vld [vmem:[#allocation14 + $0x6] ss:$8 sm:$0x3]  ;;  %v9749_v20 = vld [vmem:[%s9520_s21 + $0x330] sm:$0xff] }
 0x185   : > { %v3186_v59 = vrot.slane %v3181_v61, %v9542_v2  ;;  %v2902_v63 = vadd.f32 %v2894_v57, %v9681_v62  ;;  %v2904_v0 = vadd.f32 %v2896_v28, %v2857_v31  ;;  %v2919_v8 = vmul.f32 %v7547_v15, %v9701_v35  ;;  %v7610_v47 = vld [vmem:[%s9520_s21 + $0x300] sm:$0xff] }
 0x186   : > { %v3154_v9 = vadd.f32 %v3146_v26, %v3125_v40  ;;  %v3156_v10 = vadd.f32 %v3148_v39, %v3127_v48  ;;  %v3158_v21 = vadd.f32 %v3150_v54, %v3129_v51  ;;  %v3160_v46 = vadd.f32 %v3152_v55, %v3131_v41  ;;  %v9746_v16 = vld [vmem:[%s9520_s21 + $0x320] sm:$0xff] }
 0x187   : > { %v3193_v17 = vmul.f32 %v7602_v44, %v3186_v59  ;;  %v3195_v61 = vmul.f32 %v7604_v52, %v3186_v59  ;;  %v3197_v34 = vmul.f32 %v9733_v33, %v3186_v59  ;;  %v3199_v62 = vmul.f32 %v9736_v60, %v3186_v59  ;;  %v7618_v44 = vld [vmem:[%s9517_s16 + $0x380] sm:$0xff]  ;;  %v7620_v52 = vld [vmem:[%s9517_s16 + $0x390] sm:$0xff] }
 0x188   : > { %v3215_v31 = vrot.slane %v3210_v58, %v9542_v2  ;;  %v2921_v57 = vmul.f32 %v7549_v38, %v9701_v35  ;;  %v2923_v15 = vmul.f32 %v7551_v53, %v9701_v35  ;;  %v2925_v28 = vmul.f32 %v7553_v56, %v9701_v35  ;;  %v9762_v38 = vld [vmem:[%s9517_s16 + $0x3a0] sm:$0xff]  ;;  %v9765_v53 = vld [vmem:[%s9517_s16 + $0x3b0] sm:$0xff] }
 0x189   : > { %v3201_v40 = vadd.f32 %v3193_v17, %v3154_v9  ;;  %v3203_v48 = vadd.f32 %v3195_v61, %v3156_v10  ;;  %v3205_v51 = vadd.f32 %v3197_v34, %v3158_v21  ;;  %v3207_v41 = vadd.f32 %v3199_v62, %v3160_v46  ;;  %v3257_v35 = vld [vmem:[#allocation13 + $0x7] ss:$8 sm:$0x3]  ;;  %v9778_v62 = vld [vmem:[%s9520_s21 + $0x3b0] sm:$0xff] }
 0x18a   : > { %v3222_v26 = vmul.f32 %v7610_v47, %v3215_v31  ;;  %v3224_v39 = vmul.f32 %v7612_v14, %v3215_v31  ;;  %v3226_v54 = vmul.f32 %v9746_v16, %v3215_v31  ;;  %v3228_v55 = vmul.f32 %v9749_v20, %v3215_v31  ;;  %v3286_v17 = vld [vmem:[#allocation14 + $0x7] ss:$8 sm:$0x3]  ;;  %v7628_v14 = vld [vmem:[%s9520_s21 + $0x390] sm:$0xff]  ;;  %13396 = vst [vmem:[#allocation45_spill] sm:$0xff] %v9778_v62 }
 0x18b   : > { %v3262_v34 = vrot.slane %v3257_v35, %v9542_v2  ;;  %v2927_v56 = vadd.f32 %v2919_v8, %v2898_v24  ;;  %v9768_v59 = vadd.f32 %v2921_v57, %v2900_v25  ;;  %v9770_v58 = vadd.f32 %v2923_v15, %v2902_v63  ;;  %v7626_v47 = vld [vmem:[%s9520_s21 + $0x380] sm:$0xff]  ;;  %v7555_v63 = vld [vmem:[%s9517_s16 + $0x188] sm:$0xff]  ;;  %v7557_v57 = vld [vmem:[%s9517_s16 + $0x198] sm:$0xff] }
 0x18c   : > { %v3230_v9 = vadd.f32 %v3222_v26, %v3201_v40  ;;  %v3232_v10 = vadd.f32 %v3224_v39, %v3203_v48  ;;  %v3234_v21 = vadd.f32 %v3226_v54, %v3205_v51  ;;  %v3236_v46 = vadd.f32 %v3228_v55, %v3207_v41  ;;  %v9775_v61 = vld [vmem:[%s9520_s21 + $0x3a0] sm:$0xff]  ;;  %v7559_v15 = vld [vmem:[%s9517_s16 + $0x1a8] sm:$0xff]  ;;  %v7636_v55 = vld [vmem:[%s9517_s16 + $0x410] sm:$0xff] }
 0x18d   : > { %13395 = vst [vmem:[#allocation44_spill] sm:$0xff] %v9770_v58  ;;  %v3269_v31 = vmul.f32 %v7618_v44, %v3262_v34  ;;  %v3271_v24 = vmul.f32 %v7620_v52, %v3262_v34  ;;  %v3273_v25 = vmul.f32 %v9762_v38, %v3262_v34  ;;  %v3275_v8 = vmul.f32 %v9765_v53, %v3262_v34  ;;  %v7634_v54 = vld [vmem:[%s9517_s16 + $0x400] sm:$0xff] }
 0x18e   : > { %v3291_v40 = vrot.slane %v3286_v17, %v9542_v2  ;;  %v9786_v48 = vadd.f32 %v2925_v28, %v2904_v0  ;;  %v2962_v51 = vrot.slane %v9648_v5, %v9544_v3  ;;  %v9792_v41 = vrot.slane %v9654_v11, %v9544_v3  ;;  %v9799_v5 = vld [vmem:[%s9517_s16 + $0x420] sm:$0xff]  ;;  %v9802_v11 = vld [vmem:[%s9517_s16 + $0x430] sm:$0xff] }
 0x18f   : > { %v3277_v44 = vadd.f32 %v3269_v31, %v3230_v9  ;;  %v3279_v52 = vadd.f32 %v3271_v24, %v3232_v10  ;;  %v3281_v26 = vadd.f32 %v3273_v25, %v3234_v21  ;;  %v3283_v39 = vadd.f32 %v3275_v8, %v3236_v46  ;;  %13399 = vst [vmem:[#allocation48_spill] sm:$0xff] %v9802_v11  ;;  %v3333_v17 = vld [vmem:[#allocation13 + $0x10] ss:$8 sm:$0x3] }
 0x190   : > { %13397 = vst [vmem:[#allocation46_spill] sm:$0xff] %v9786_v48  ;;  %13398 = vst [vmem:[#allocation47_spill] sm:$0xff] %v9792_v41  ;;  %v3298_v35 = vmul.f32 %v7626_v47, %v3291_v40  ;;  %v3300_v34 = vmul.f32 %v7628_v14, %v3291_v40  ;;  %v3302_v0 = vmul.f32 %v9775_v61, %v3291_v40  ;;  %v7561_v9 = vld [vmem:[%s9517_s16 + $0x1b8] sm:$0xff]  ;;  %v7644_v3 = vld [vmem:[%s9520_s21 + $0x410] sm:$0xff] }
 0x191   : > { %v3304_v28 = vmul.f32 %v9778_v62, %v3291_v40  ;;  %v3338_v10 = vrot.slane %v3333_v17, %v9542_v2  ;;  %v3362_v21 = vld [vmem:[#allocation14 + $0x10] ss:$8 sm:$0x3]  ;;  %v2966_v46 = vmul.f32 %v7555_v63, %v2962_v51  ;;  %v2968_v47 = vmul.f32 %v7557_v57, %v2962_v51  ;;  %v7642_v40 = vld [vmem:[%s9520_s21 + $0x400] sm:$0xff] }
 0x192   : > { %v9806_v14 = vmul.f32 %v7559_v15, %v2962_v51  ;;  %v3306_v31 = vadd.f32 %v3298_v35, %v3277_v44  ;;  %v3308_v24 = vadd.f32 %v3300_v34, %v3279_v52  ;;  %v3310_v25 = vadd.f32 %v3302_v0, %v3281_v26  ;;  %v9811_v41 = vld [vmem:[%s9520_s21 + $0x420] sm:$0xff]  ;;  %v9814_v48 = vld [vmem:[%s9520_s21 + $0x430] sm:$0xff] }
 0x193   : > { %v3312_v8 = vadd.f32 %v3304_v28, %v3283_v39  ;;  %v3345_v58 = vmul.f32 %v7634_v54, %v3338_v10  ;;  %v3347_v62 = vmul.f32 %v7636_v55, %v3338_v10  ;;  %v3349_v17 = vmul.f32 %v9799_v5, %v3338_v10  ;;  %v3409_v57 = vld [vmem:[#allocation13 + $0x11] ss:$8 sm:$0x3] }
 0x194   : > { %13400 = vst [vmem:[#allocation49_spill] sm:$0xff] %v9806_v14  ;;  %v3351_v63 = vmul.f32 %v9802_v11, %v3338_v10  ;;  %v3367_v15 = vrot.slane %v3362_v21, %v9542_v2  ;;  %v9820_v14 = vld [vmem:[%s9517_s16 + $0x40] sm:$0xff]  ;;  %v9823_v44 = vld [vmem:[%s9517_s16 + $0x50] sm:$0xff]  ;;  %v3414_v52 = vrot.slane %v3409_v57, %v9542_v2  ;;  %v9826_v26 = vmul.f32 %v7561_v9, %v2962_v51 }
 0x195   : > { %v9828_v39 = vadd.f32 %v2966_v46, %v2927_v56  ;;  %v3353_v35 = vadd.f32 %v3345_v58, %v3306_v31  ;;  %v3355_v54 = vadd.f32 %v3347_v62, %v3308_v24  ;;  %v3357_v55 = vadd.f32 %v3349_v17, %v3310_v25  ;;  %v3438_v11 = vld [vmem:[#allocation14 + $0x11] ss:$8 sm:$0x3]  ;;  %v3485_v9 = vld [vmem:[#allocation13 + $0x12] ss:$8 sm:$0x3] }
 0x196   : > { %13401 = vst [vmem:[#allocation50_spill] sm:$0xff] %v9826_v26  ;;  %v3359_v34 = vadd.f32 %v3351_v63, %v3312_v8  ;;  %v3374_v0 = vmul.f32 %v7642_v40, %v3367_v15  ;;  %v3376_v28 = vmul.f32 %v7644_v3, %v3367_v15  ;;  %v3378_v10 = vmul.f32 %v9811_v41, %v3367_v15  ;;  %v3514_v46 = vld [vmem:[#allocation14 + $0x12] ss:$8 sm:$0x3]  ;;  %v9837_v8 = vld [vmem:[%s9520_s21 + $0x40] sm:$0xff] }
 0x197   : > { %13402 = vst [vmem:[#allocation51_spill] sm:$0xff] %v9828_v39  ;;  %v3380_v21 = vmul.f32 %v9814_v48, %v3367_v15  ;;  %v3421_v51 = vmul.f32 %v3414_v52, %v9549_v6  ;;  %v3423_v56 = vmul.f32 %v3414_v52, %v9552_v7  ;;  %v3425_v58 = vmul.f32 %v9820_v14, %v3414_v52  ;;  %v9840_v40 = vld [vmem:[%s9520_s21 + $0x50] sm:$0xff]  ;;  %v9844_v17 = vld [vmem:[%s9517_s16 + $0xc0] sm:$0xff] }
 0x198   : > { %v3427_v62 = vmul.f32 %v9823_v44, %v3414_v52  ;;  %v3382_v31 = vadd.f32 %v3374_v0, %v3353_v35  ;;  %v3384_v24 = vadd.f32 %v3376_v28, %v3355_v54  ;;  %v3386_v3 = vadd.f32 %v3378_v10, %v3357_v55  ;;  %v9847_v7 = vld [vmem:[%s9517_s16 + $0xd0] sm:$0xff]  ;;  %v9859_v10 = vld [vmem:[%s9520_s21 + $0xc0] sm:$0xff] }
 0x199   : > { %v3388_v25 = vadd.f32 %v3380_v21, %v3359_v34  ;;  %v3443_v6 = vrot.slane %v3438_v11, %v9542_v2  ;;  %v3490_v63 = vrot.slane %v3485_v9, %v9542_v2  ;;  %v3519_v57 = vrot.slane %v3514_v46, %v9542_v2  ;;  %v9862_v21 = vld [vmem:[%s9520_s21 + $0xd0] sm:$0xff] }
 0x19a   : > { %v9852_v15 = vadd.f32 %v2968_v47, %v9768_v59  ;;  %v3429_v52 = vadd.f32 %v3421_v51, %v3382_v31  ;;  %v3431_v35 = vadd.f32 %v3423_v56, %v3384_v24  ;;  %v3433_v54 = vadd.f32 %v3425_v58, %v3386_v3  ;;  %v3590_v46 = vld [vmem:[#allocation14 + $0x13] ss:$8 sm:$0x3]  ;;  %v3637_v3 = vld [vmem:[#allocation13 + $0x14] ss:$8 sm:$0x3] }
 0x19b   : > { %v3435_v55 = vadd.f32 %v3427_v62, %v3388_v25  ;;  %v3450_v34 = vmul.f32 %v3443_v6, %v9558_v12  ;;  %v3452_v0 = vmul.f32 %v3443_v6, %v9561_v13  ;;  %v3454_v11 = vmul.f32 %v9837_v8, %v3443_v6  ;;  %v3561_v62 = vld [vmem:[#allocation13 + $0x13] ss:$8 sm:$0x3]  ;;  %v3666_v25 = vld [vmem:[#allocation14 + $0x14] ss:$8 sm:$0x3] }
 0x19c   : > { %13403 = vst [vmem:[#allocation52_spill] sm:$0xff] %v9852_v15  ;;  %v3456_v28 = vmul.f32 %v9840_v40, %v3443_v6  ;;  %v3497_v9 = vmul.f32 %v9581_v36, %v3490_v63  ;;  %v3499_v59 = vmul.f32 %v9584_v37, %v3490_v63  ;;  %v3501_v47 = vmul.f32 %v9844_v17, %v3490_v63 }
 0x19d   : > { %v3503_v51 = vmul.f32 %v9847_v7, %v3490_v63  ;;  %v3458_v56 = vadd.f32 %v3450_v34, %v3429_v52  ;;  %v3460_v12 = vadd.f32 %v3452_v0, %v3431_v35  ;;  %v3462_v13 = vadd.f32 %v3454_v11, %v3433_v54  ;;  %v9873_v54 = vld [vmem:[%s9517_s16 + $0x140] sm:$0xff] }
 0x19e   : > { %v3464_v58 = vadd.f32 %v3456_v28, %v3435_v55  ;;  %v3526_v31 = vmul.f32 %v9589_v49, %v3519_v57  ;;  %v3528_v36 = vmul.f32 %v9592_v50, %v3519_v57  ;;  %v3530_v37 = vmul.f32 %v9859_v10, %v3519_v57  ;;  %v9876_v55 = vld [vmem:[%s9517_s16 + $0x150] sm:$0xff]  ;;  %v9879_v34 = vld [vmem:[%s9520_s21 + $0x140] sm:$0xff] }
 0x19f   : > { %v3532_v24 = vmul.f32 %v9862_v21, %v3519_v57  ;;  %v3505_v6 = vadd.f32 %v3497_v9, %v3458_v56  ;;  %v3507_v63 = vadd.f32 %v3499_v59, %v3460_v12  ;;  %v3509_v52 = vadd.f32 %v3501_v47, %v3462_v13  ;;  %v9882_v49 = vld [vmem:[%s9520_s21 + $0x150] sm:$0xff] }
 0x1a0   : > { %v3511_v35 = vadd.f32 %v3503_v51, %v3464_v58  ;;  %v3566_v50 = vrot.slane %v3561_v62, %v9542_v2  ;;  %v3595_v57 = vrot.slane %v3590_v46, %v9542_v2  ;;  %v3642_v0 = vrot.slane %v3637_v3, %v9542_v2  ;;  %v9893_v58 = vld [vmem:[%s9517_s16 + $0x1c0] sm:$0xff]  ;;  %v9896_v62 = vld [vmem:[%s9517_s16 + $0x1d0] sm:$0xff] }
 0x1a1   : > { %v3671_v11 = vrot.slane %v3666_v25, %v9542_v2  ;;  %v3534_v28 = vadd.f32 %v3526_v31, %v3505_v6  ;;  %v3536_v9 = vadd.f32 %v3528_v36, %v3507_v63  ;;  %v3538_v59 = vadd.f32 %v3530_v37, %v3509_v52  ;;  %v9903_v25 = vld [vmem:[%s9520_s21 + $0x1c0] sm:$0xff]  ;;  %v9906_v6 = vld [vmem:[%s9520_s21 + $0x1d0] sm:$0xff] }
 0x1a2   : > { %v3540_v47 = vadd.f32 %v3532_v24, %v3511_v35  ;;  %v3573_v51 = vmul.f32 %v9613_v22, %v3566_v50  ;;  %v3575_v56 = vmul.f32 %v9618_v32, %v3566_v50  ;;  %v3577_v12 = vmul.f32 %v9873_v54, %v3566_v50  ;;  %v3713_v35 = vld [vmem:[#allocation13 + $0x15] ss:$8 sm:$0x3] }
 0x1a3   : > { %v3579_v13 = vmul.f32 %v9876_v55, %v3566_v50  ;;  %v3602_v46 = vmul.f32 %v9625_v42, %v3595_v57  ;;  %v3604_v31 = vmul.f32 %v9628_v43, %v3595_v57  ;;  %v3606_v36 = vmul.f32 %v9879_v34, %v3595_v57  ;;  %v3742_v50 = vld [vmem:[#allocation14 + $0x15] ss:$8 sm:$0x3] }
 0x1a4   : > { %v3608_v37 = vmul.f32 %v9882_v49, %v3595_v57  ;;  %v3581_v24 = vadd.f32 %v3573_v51, %v3534_v28  ;;  %v3583_v22 = vadd.f32 %v3575_v56, %v3536_v9  ;;  %v3585_v3 = vadd.f32 %v3577_v12, %v3538_v59  ;;  %v3818_v51 = vld [vmem:[#allocation14 + $0x16] ss:$8 sm:$0x3] }
 0x1a5   : > { %v3587_v32 = vadd.f32 %v3579_v13, %v3540_v47  ;;  %v3649_v63 = vmul.f32 %v9643_v1, %v3642_v0  ;;  %v3651_v52 = vmul.f32 %v9646_v4, %v3642_v0  ;;  %v3653_v42 = vmul.f32 %v9893_v58, %v3642_v0  ;;  %v3789_v47 = vld [vmem:[#allocation13 + $0x16] ss:$8 sm:$0x3] }
 0x1a6   : > { %v3655_v43 = vmul.f32 %v9896_v62, %v3642_v0  ;;  %v3610_v57 = vadd.f32 %v3602_v46, %v3581_v24  ;;  %v3612_v28 = vadd.f32 %v3604_v31, %v3583_v22  ;;  %v3614_v9 = vadd.f32 %v3606_v36, %v3585_v3  ;;  %v9917_v46 = vld [vmem:[%s9517_s16 + $0x240] sm:$0xff]  ;;  %v9920_v31 = vld [vmem:[%s9517_s16 + $0x250] sm:$0xff] }
 0x1a7   : > { %v3616_v59 = vadd.f32 %v3608_v37, %v3587_v32  ;;  %v3678_v1 = vmul.f32 %v9659_v29, %v3671_v11  ;;  %v3680_v4 = vmul.f32 %v9662_v30, %v3671_v11  ;;  %v3682_v56 = vmul.f32 %v9903_v25, %v3671_v11  ;;  %v9923_v36 = vld [vmem:[%s9520_s21 + $0x240] sm:$0xff]  ;;  %v9926_v37 = vld [vmem:[%s9520_s21 + $0x250] sm:$0xff] }
 0x1a8   : > { %v3684_v0 = vmul.f32 %v9906_v6, %v3671_v11  ;;  %v3657_v12 = vadd.f32 %v3649_v63, %v3610_v57  ;;  %v3659_v13 = vadd.f32 %v3651_v52, %v3612_v28  ;;  %v3661_v15 = vadd.f32 %v3653_v42, %v3614_v9  ;;  %v9937_v57 = vld [vmem:[%s9517_s16 + $0x2c0] sm:$0xff] }
 0x1a9   : > { %v3663_v39 = vadd.f32 %v3655_v43, %v3616_v59  ;;  %v3718_v29 = vrot.slane %v3713_v35, %v9542_v2  ;;  %v3747_v30 = vrot.slane %v3742_v50, %v9542_v2  ;;  %v3794_v11 = vrot.slane %v3789_v47, %v9542_v2  ;;  %13404 = vst [vmem:[#allocation53_spill] sm:$0xff] %v9937_v57  ;;  %v9940_v50 = vld [vmem:[%s9517_s16 + $0x2d0] sm:$0xff] }
 0x1aa   : > { %v3823_v24 = vrot.slane %v3818_v51, %v9542_v2  ;;  %v3686_v22 = vadd.f32 %v3678_v1, %v3657_v12  ;;  %v3688_v3 = vadd.f32 %v3680_v4, %v3659_v13  ;;  %v3690_v32 = vadd.f32 %v3682_v56, %v3661_v15  ;;  %13405 = vst [vmem:[#allocation54_spill] sm:$0xff] %v9940_v50  ;;  %v9947_v51 = vld [vmem:[%s9520_s21 + $0x2c0] sm:$0xff]  ;;  %v9950_v1 = vld [vmem:[%s9520_s21 + $0x2d0] sm:$0xff] }
 0x1ab   : > { %v3692_v63 = vadd.f32 %v3684_v0, %v3663_v39  ;;  %v3725_v52 = vmul.f32 %v9675_v27, %v3718_v29  ;;  %v3727_v42 = vmul.f32 %v9678_v45, %v3718_v29  ;;  %v3729_v43 = vmul.f32 %v9917_v46, %v3718_v29  ;;  %v13406_v56 = vld [vmem:[#allocation41_spill] sm:$0xff] }
 0x1ac   : > { %v3731_v35 = vmul.f32 %v9920_v31, %v3718_v29  ;;  %v3754_v28 = vmul.f32 %v9686_v18, %v3747_v30  ;;  %v3756_v9 = vmul.f32 %v9689_v19, %v3747_v30  ;;  %v3758_v15 = vmul.f32 %v9923_v36, %v3747_v30  ;;  %v3865_v12 = vld [vmem:[#allocation13 + $0x17] ss:$8 sm:$0x3] }
 0x1ad   : > { %v3760_v39 = vmul.f32 %v9926_v37, %v3747_v30  ;;  %v3733_v59 = vadd.f32 %v3725_v52, %v3686_v22  ;;  %v3735_v27 = vadd.f32 %v3727_v42, %v3688_v3  ;;  %v3737_v47 = vadd.f32 %v3729_v43, %v3690_v32  ;;  %v3894_v13 = vld [vmem:[#allocation14 + $0x17] ss:$8 sm:$0x3]  ;;  %v3941_v32 = vld [vmem:[#allocation13 + $0x20] ss:$8 sm:$0x3] }
 0x1ae   : > { %v3739_v45 = vadd.f32 %v3731_v35, %v3692_v63  ;;  %v3801_v4 = vmul.f32 %v9708_v23, %v3794_v11  ;;  %v3803_v0 = vmul.f32 %v13406_v56, %v3794_v11  ;;  %v3805_v18 = vmul.f32 %v9937_v57, %v3794_v11  ;;  %v3970_v63 = vld [vmem:[#allocation14 + $0x20] ss:$8 sm:$0x3]  ;;  %v13407_v52 = vld [vmem:[#allocation42_spill] sm:$0xff] }
 0x1af   : > { %v3807_v19 = vmul.f32 %v9940_v50, %v3794_v11  ;;  %v3762_v29 = vadd.f32 %v3754_v28, %v3733_v59  ;;  %v3764_v30 = vadd.f32 %v3756_v9, %v3735_v27  ;;  %v3766_v22 = vadd.f32 %v3758_v15, %v3737_v47  ;;  %v13408_v42 = vld [vmem:[#allocation43_spill] sm:$0xff]  ;;  %v9964_v9 = vld [vmem:[%s9517_s16 + $0x350] sm:$0xff] }
 0x1b0   : > { %v3768_v3 = vadd.f32 %v3760_v39, %v3739_v45  ;;  %v3830_v23 = vmul.f32 %v13407_v52, %v3823_v24  ;;  %v3832_v43 = vmul.f32 %v13408_v42, %v3823_v24  ;;  %v3834_v35 = vmul.f32 %v9947_v51, %v3823_v24  ;;  %v9961_v28 = vld [vmem:[%s9517_s16 + $0x340] sm:$0xff]  ;;  %v9970_v39 = vld [vmem:[%s9520_s21 + $0x350] sm:$0xff] }
 0x1b1   : > { %v3836_v11 = vmul.f32 %v9950_v1, %v3823_v24  ;;  %v3809_v56 = vadd.f32 %v3801_v4, %v3762_v29  ;;  %v3811_v26 = vadd.f32 %v3803_v0, %v3764_v30  ;;  %v3813_v50 = vadd.f32 %v3805_v18, %v3766_v22  ;;  %v9967_v15 = vld [vmem:[%s9520_s21 + $0x340] sm:$0xff] }
 0x1b2   : > { %v3815_v57 = vadd.f32 %v3807_v19, %v3768_v3  ;;  %v3870_v59 = vrot.slane %v3865_v12, %v9542_v2  ;;  %v3899_v27 = vrot.slane %v3894_v13, %v9542_v2  ;;  %v3946_v24 = vrot.slane %v3941_v32, %v9542_v2  ;;  %v9981_v22 = vld [vmem:[%s9517_s16 + $0x3c0] sm:$0xff]  ;;  %v9984_v13 = vld [vmem:[%s9517_s16 + $0x3d0] sm:$0xff] }
 0x1b3   : > { %v3975_v47 = vrot.slane %v3970_v63, %v9542_v2  ;;  %v3838_v45 = vadd.f32 %v3830_v23, %v3809_v56  ;;  %v3840_v4 = vadd.f32 %v3832_v43, %v3811_v26  ;;  %v3842_v0 = vadd.f32 %v3834_v35, %v3813_v50  ;;  %13409 = vst [vmem:[#allocation41_spill] sm:$0xff] %v9984_v13  ;;  %v9991_v52 = vld [vmem:[%s9520_s21 + $0x3c0] sm:$0xff]  ;;  %v9994_v23 = vld [vmem:[%s9520_s21 + $0x3d0] sm:$0xff] }
 0x1b4   : > { %v3844_v18 = vadd.f32 %v3836_v11, %v3815_v57  ;;  %v3877_v19 = vmul.f32 %v9733_v33, %v3870_v59  ;;  %v3879_v29 = vmul.f32 %v9736_v60, %v3870_v59  ;;  %v3881_v30 = vmul.f32 %v9961_v28, %v3870_v59  ;;  %v4017_v35 = vld [vmem:[#allocation13 + $0x21] ss:$8 sm:$0x3] }
 0x1b5   : > { %v3883_v12 = vmul.f32 %v9964_v9, %v3870_v59  ;;  %v3906_v3 = vmul.f32 %v9746_v16, %v3899_v27  ;;  %v3908_v26 = vmul.f32 %v9749_v20, %v3899_v27  ;;  %v3910_v50 = vmul.f32 %v9967_v15, %v3899_v27  ;;  %v4046_v11 = vld [vmem:[#allocation14 + $0x21] ss:$8 sm:$0x3] }
 0x1b6   : > { %v3912_v57 = vmul.f32 %v9970_v39, %v3899_v27  ;;  %v3885_v32 = vadd.f32 %v3877_v19, %v3838_v45  ;;  %v3887_v33 = vadd.f32 %v3879_v29, %v3840_v4  ;;  %v3889_v63 = vadd.f32 %v3881_v30, %v3842_v0  ;;  %v4093_v4 = vld [vmem:[#allocation13 + $0x22] ss:$8 sm:$0x3] }
 0x1b7   : > { %v3891_v60 = vadd.f32 %v3883_v12, %v3844_v18  ;;  %v3953_v42 = vmul.f32 %v9762_v38, %v3946_v24  ;;  %v3955_v43 = vmul.f32 %v9765_v53, %v3946_v24  ;;  %v3957_v16 = vmul.f32 %v9981_v22, %v3946_v24  ;;  %v4122_v0 = vld [vmem:[#allocation14 + $0x22] ss:$8 sm:$0x3]  ;;  %v13410_v18 = vld [vmem:[#allocation45_spill] sm:$0xff] }
 0x1b8   : > { %v3959_v20 = vmul.f32 %v9984_v13, %v3946_v24  ;;  %v3914_v56 = vadd.f32 %v3906_v3, %v3885_v32  ;;  %v3916_v59 = vadd.f32 %v3908_v26, %v3887_v33  ;;  %v3918_v27 = vadd.f32 %v3910_v50, %v3889_v63  ;;  %v10005_v3 = vld [vmem:[%s9517_s16 + $0x440] sm:$0xff]  ;;  %v10008_v26 = vld [vmem:[%s9517_s16 + $0x450] sm:$0xff] }
 0x1b9   : > { %v3920_v45 = vadd.f32 %v3912_v57, %v3891_v60  ;;  %v3982_v38 = vmul.f32 %v9775_v61, %v3975_v47  ;;  %v3984_v53 = vmul.f32 %v13410_v18, %v3975_v47  ;;  %v3986_v19 = vmul.f32 %v9991_v52, %v3975_v47  ;;  %v10011_v50 = vld [vmem:[%s9520_s21 + $0x440] sm:$0xff]  ;;  %v10014_v57 = vld [vmem:[%s9520_s21 + $0x450] sm:$0xff] }
 0x1ba   : > { %v3988_v24 = vmul.f32 %v9994_v23, %v3975_v47  ;;  %v3961_v29 = vadd.f32 %v3953_v42, %v3914_v56  ;;  %v3963_v30 = vadd.f32 %v3955_v43, %v3916_v59  ;;  %v3965_v12 = vadd.f32 %v3957_v16, %v3918_v27  ;;  %13411 = vst [vmem:[#allocation42_spill] sm:$0xff] %v10011_v50  ;;  %v7798_v27 = vld [vmem:[%s9517_s16 + $0x60] sm:$0xff] }
 0x1bb   : > { %v3967_v13 = vadd.f32 %v3959_v20, %v3920_v45  ;;  %v4022_v61 = vrot.slane %v4017_v35, %v9542_v2  ;;  %v4051_v32 = vrot.slane %v4046_v11, %v9542_v2  ;;  %v4098_v47 = vrot.slane %v4093_v4, %v9542_v2  ;;  %v13412_v20 = vld [vmem:[#allocation48_spill] sm:$0xff]  ;;  %v7800_v11 = vld [vmem:[%s9517_s16 + $0x70] sm:$0xff] }
 0x1bc   : > { %v4127_v33 = vrot.slane %v4122_v0, %v9542_v2  ;;  %v3990_v63 = vadd.f32 %v3982_v38, %v3961_v29  ;;  %v3992_v60 = vadd.f32 %v3984_v53, %v3963_v30  ;;  %v3994_v42 = vadd.f32 %v3986_v19, %v3965_v12  ;;  %v7806_v19 = vld [vmem:[%s9520_s21 + $0x60] sm:$0xff] }
 0x1bd   : > { %v3996_v43 = vadd.f32 %v3988_v24, %v3967_v13  ;;  %v4029_v16 = vmul.f32 %v9799_v5, %v4022_v61  ;;  %v4031_v56 = vmul.f32 %v13412_v20, %v4022_v61  ;;  %v4033_v59 = vmul.f32 %v10005_v3, %v4022_v61  ;;  %v7808_v24 = vld [vmem:[%s9520_s21 + $0x70] sm:$0xff]  ;;  %v4169_v20 = vld [vmem:[#allocation13 + $0x23] ss:$8 sm:$0x3] }
 0x1be   : > { %v4035_v35 = vmul.f32 %v10008_v26, %v4022_v61  ;;  %v4058_v45 = vmul.f32 %v9811_v41, %v4051_v32  ;;  %v4060_v4 = vmul.f32 %v9814_v48, %v4051_v32  ;;  %v4062_v0 = vmul.f32 %v10011_v50, %v4051_v32  ;;  %v4198_v41 = vld [vmem:[#allocation14 + $0x23] ss:$8 sm:$0x3] }
 0x1bf   : > { %v4064_v38 = vmul.f32 %v10014_v57, %v4051_v32  ;;  %v4037_v13 = vadd.f32 %v4029_v16, %v3990_v63  ;;  %v4039_v18 = vadd.f32 %v4031_v56, %v3992_v60  ;;  %v4041_v53 = vadd.f32 %v4033_v59, %v3994_v42  ;;  %v4245_v60 = vld [vmem:[#allocation13 + $0x24] ss:$8 sm:$0x3] }
 0x1c0   : > { %v4043_v5 = vadd.f32 %v4035_v35, %v3996_v43  ;;  %v4105_v29 = vmul.f32 %v9820_v14, %v4098_v47  ;;  %v4107_v30 = vmul.f32 %v9823_v44, %v4098_v47  ;;  %v4109_v12 = vmul.f32 %v7798_v27, %v4098_v47  ;;  %v4274_v42 = vld [vmem:[#allocation14 + $0x24] ss:$8 sm:$0x3] }
 0x1c1   : > { %v4111_v61 = vmul.f32 %v7800_v11, %v4098_v47  ;;  %v4066_v48 = vadd.f32 %v4058_v45, %v4037_v13  ;;  %v4068_v50 = vadd.f32 %v4060_v4, %v4039_v18  ;;  %v4070_v32 = vadd.f32 %v4062_v0, %v4041_v53  ;;  %v7814_v27 = vld [vmem:[%s9517_s16 + $0xe0] sm:$0xff]  ;;  %v7816_v11 = vld [vmem:[%s9517_s16 + $0xf0] sm:$0xff] }
 0x1c2   : > { %v4072_v63 = vadd.f32 %v4064_v38, %v4043_v5  ;;  %v4134_v43 = vmul.f32 %v9837_v8, %v4127_v33  ;;  %v4136_v14 = vmul.f32 %v9840_v40, %v4127_v33  ;;  %v4138_v16 = vmul.f32 %v7806_v19, %v4127_v33  ;;  %v7822_v45 = vld [vmem:[%s9520_s21 + $0xe0] sm:$0xff]  ;;  %v7824_v4 = vld [vmem:[%s9520_s21 + $0xf0] sm:$0xff] }
 0x1c3   : > { %v4140_v44 = vmul.f32 %v7808_v24, %v4127_v33  ;;  %v4113_v56 = vadd.f32 %v4105_v29, %v4066_v48  ;;  %v4115_v47 = vadd.f32 %v4107_v30, %v4068_v50  ;;  %v4117_v59 = vadd.f32 %v4109_v12, %v4070_v32  ;;  %v7830_v29 = vld [vmem:[%s9517_s16 + $0x160] sm:$0xff]  ;;  %v7832_v30 = vld [vmem:[%s9517_s16 + $0x170] sm:$0xff] }
 0x1c4   : > { %v4119_v35 = vadd.f32 %v4111_v61, %v4072_v63  ;;  %v4174_v0 = vrot.slane %v4169_v20, %v9542_v2  ;;  %v4203_v38 = vrot.slane %v4198_v41, %v9542_v2  ;;  %v4250_v8 = vrot.slane %v4245_v60, %v9542_v2 }
 0x1c5   : > { %v4279_v40 = vrot.slane %v4274_v42, %v9542_v2  ;;  %v4142_v13 = vadd.f32 %v4134_v43, %v4113_v56  ;;  %v4144_v33 = vadd.f32 %v4136_v14, %v4115_v47  ;;  %v4146_v18 = vadd.f32 %v4138_v16, %v4117_v59  ;;  %v7838_v42 = vld [vmem:[%s9520_s21 + $0x160] sm:$0xff]  ;;  %v7840_v43 = vld [vmem:[%s9520_s21 + $0x170] sm:$0xff] }
 0x1c6   : > { %v4148_v50 = vadd.f32 %v4140_v44, %v4119_v35  ;;  %v4181_v53 = vmul.f32 %v9844_v17, %v4174_v0  ;;  %v4183_v5 = vmul.f32 %v9847_v7, %v4174_v0  ;;  %v4185_v19 = vmul.f32 %v7814_v27, %v4174_v0  ;;  %v4321_v44 = vld [vmem:[#allocation13 + $0x25] ss:$8 sm:$0x3]  ;;  %v4397_v35 = vld [vmem:[#allocation13 + $0x26] ss:$8 sm:$0x3] }
 0x1c7   : > { %v4187_v24 = vmul.f32 %v7816_v11, %v4174_v0  ;;  %v4210_v12 = vmul.f32 %v9859_v10, %v4203_v38  ;;  %v4212_v61 = vmul.f32 %v9862_v21, %v4203_v38  ;;  %v4214_v20 = vmul.f32 %v7822_v45, %v4203_v38  ;;  %v4350_v56 = vld [vmem:[#allocation14 + $0x25] ss:$8 sm:$0x3]  ;;  %v4426_v27 = vld [vmem:[#allocation14 + $0x26] ss:$8 sm:$0x3] }
 0x1c8   : > { %v4216_v41 = vmul.f32 %v7824_v4, %v4203_v38  ;;  %v4189_v48 = vadd.f32 %v4181_v53, %v4142_v13  ;;  %v4191_v32 = vadd.f32 %v4183_v5, %v4144_v33  ;;  %v4193_v63 = vadd.f32 %v4185_v19, %v4146_v18  ;;  %v7846_v13 = vld [vmem:[%s9517_s16 + $0x1e0] sm:$0xff]  ;;  %v7848_v33 = vld [vmem:[%s9517_s16 + $0x1f0] sm:$0xff] }
 0x1c9   : > { %v4195_v60 = vadd.f32 %v4187_v24, %v4148_v50  ;;  %v4257_v17 = vmul.f32 %v9873_v54, %v4250_v8  ;;  %v4259_v7 = vmul.f32 %v9876_v55, %v4250_v8  ;;  %v4261_v14 = vmul.f32 %v7830_v29, %v4250_v8  ;;  %v7854_v18 = vld [vmem:[%s9520_s21 + $0x1e0] sm:$0xff]  ;;  %v7856_v50 = vld [vmem:[%s9520_s21 + $0x1f0] sm:$0xff] }
 0x1ca   : > { %v4263_v16 = vmul.f32 %v7832_v30, %v4250_v8  ;;  %v4218_v10 = vadd.f32 %v4210_v12, %v4189_v48  ;;  %v4220_v21 = vadd.f32 %v4212_v61, %v4191_v32  ;;  %v4222_v47 = vadd.f32 %v4214_v20, %v4193_v63  ;;  %v7864_v48 = vld [vmem:[%s9517_s16 + $0x270] sm:$0xff] }
 0x1cb   : > { %v4224_v59 = vadd.f32 %v4216_v41, %v4195_v60  ;;  %v4286_v11 = vmul.f32 %v9879_v34, %v4279_v40  ;;  %v4288_v54 = vmul.f32 %v9882_v49, %v4279_v40  ;;  %v4290_v45 = vmul.f32 %v7838_v42, %v4279_v40  ;;  %v7862_v41 = vld [vmem:[%s9517_s16 + $0x260] sm:$0xff] }
 0x1cc   : > { %v4292_v55 = vmul.f32 %v7840_v43, %v4279_v40  ;;  %v4265_v4 = vadd.f32 %v4257_v17, %v4218_v10  ;;  %v4267_v0 = vadd.f32 %v4259_v7, %v4220_v21  ;;  %v4269_v38 = vadd.f32 %v4261_v14, %v4222_v47  ;;  %v4473_v21 = vld [vmem:[#allocation13 + $0x27] ss:$8 sm:$0x3] }
 0x1cd   : > { %v4271_v8 = vadd.f32 %v4263_v16, %v4224_v59  ;;  %v4326_v53 = vrot.slane %v4321_v44, %v9542_v2  ;;  %v4355_v5 = vrot.slane %v4350_v56, %v9542_v2  ;;  %v4402_v34 = vrot.slane %v4397_v35, %v9542_v2  ;;  %v7870_v16 = vld [vmem:[%s9520_s21 + $0x260] sm:$0xff]  ;;  %v7872_v44 = vld [vmem:[%s9520_s21 + $0x270] sm:$0xff] }
 0x1ce   : > { %v4431_v49 = vrot.slane %v4426_v27, %v9542_v2  ;;  %v4294_v19 = vadd.f32 %v4286_v11, %v4265_v4  ;;  %v4296_v40 = vadd.f32 %v4288_v54, %v4267_v0  ;;  %v4298_v24 = vadd.f32 %v4290_v45, %v4269_v38  ;;  %v4502_v47 = vld [vmem:[#allocation14 + $0x27] ss:$8 sm:$0x3]  ;;  %v4549_v27 = vld [vmem:[#allocation13 + $0x30] ss:$8 sm:$0x3] }
 0x1cf   : > { %v4300_v29 = vadd.f32 %v4292_v55, %v4271_v8  ;;  %v4333_v30 = vmul.f32 %v9893_v58, %v4326_v53  ;;  %v4335_v12 = vmul.f32 %v9896_v62, %v4326_v53  ;;  %v4337_v61 = vmul.f32 %v7846_v13, %v4326_v53  ;;  %v4578_v11 = vld [vmem:[#allocation14 + $0x30] ss:$8 sm:$0x3]  ;;  %v7878_v8 = vld [vmem:[%s9517_s16 + $0x2e0] sm:$0xff] }
 0x1d0   : > { %v4339_v20 = vmul.f32 %v7848_v33, %v4326_v53  ;;  %v4362_v32 = vmul.f32 %v9903_v25, %v4355_v5  ;;  %v4364_v63 = vmul.f32 %v9906_v6, %v4355_v5  ;;  %v4366_v60 = vmul.f32 %v7854_v18, %v4355_v5  ;;  %v7880_v13 = vld [vmem:[%s9517_s16 + $0x2f0] sm:$0xff]  ;;  %v7886_v33 = vld [vmem:[%s9520_s21 + $0x2e0] sm:$0xff] }
 0x1d1   : > { %v4368_v42 = vmul.f32 %v7856_v50, %v4355_v5  ;;  %v4341_v43 = vadd.f32 %v4333_v30, %v4294_v19  ;;  %v4343_v17 = vadd.f32 %v4335_v12, %v4296_v40  ;;  %v4345_v7 = vadd.f32 %v4337_v61, %v4298_v24  ;;  %v7888_v18 = vld [vmem:[%s9520_s21 + $0x2f0] sm:$0xff] }
 0x1d2   : > { %v4347_v14 = vadd.f32 %v4339_v20, %v4300_v29  ;;  %v4409_v58 = vmul.f32 %v9917_v46, %v4402_v34  ;;  %v4411_v62 = vmul.f32 %v9920_v31, %v4402_v34  ;;  %v4413_v56 = vmul.f32 %v7862_v41, %v4402_v34  ;;  %v13413_v40 = vld [vmem:[#allocation53_spill] sm:$0xff]  ;;  %v13414_v29 = vld [vmem:[#allocation54_spill] sm:$0xff]  ;;  %v7894_v20 = vld [vmem:[%s9517_s16 + $0x360] sm:$0xff] }
 0x1d3   : > { %v4415_v10 = vmul.f32 %v7864_v48, %v4402_v34  ;;  %v4370_v25 = vadd.f32 %v4362_v32, %v4341_v43  ;;  %v4372_v6 = vadd.f32 %v4364_v63, %v4343_v17  ;;  %v4374_v59 = vadd.f32 %v4366_v60, %v4345_v7  ;;  %v7896_v41 = vld [vmem:[%s9517_s16 + $0x370] sm:$0xff] }
 0x1d4   : > { %v4376_v35 = vadd.f32 %v4368_v42, %v4347_v14  ;;  %v4438_v54 = vmul.f32 %v9923_v36, %v4431_v49  ;;  %v4440_v46 = vmul.f32 %v9926_v37, %v4431_v49  ;;  %v4442_v45 = vmul.f32 %v7870_v16, %v4431_v49  ;;  %v7902_v14 = vld [vmem:[%s9520_s21 + $0x360] sm:$0xff]  ;;  %v7904_v16 = vld [vmem:[%s9520_s21 + $0x370] sm:$0xff] }
 0x1d5   : > { %v4444_v31 = vmul.f32 %v7872_v44, %v4431_v49  ;;  %v4417_v55 = vadd.f32 %v4409_v58, %v4370_v25  ;;  %v4419_v4 = vadd.f32 %v4411_v62, %v4372_v6  ;;  %v4421_v0 = vadd.f32 %v4413_v56, %v4374_v59  ;;  %v4701_v6 = vld [vmem:[#allocation13 + $0x32] ss:$8 sm:$0x3] }
 0x1d6   : > { %v4423_v38 = vadd.f32 %v4415_v10, %v4376_v35  ;;  %v4478_v50 = vrot.slane %v4473_v21, %v9542_v2  ;;  %v4507_v53 = vrot.slane %v4502_v47, %v9542_v2  ;;  %v4554_v36 = vrot.slane %v4549_v27, %v9542_v2  ;;  %v4625_v10 = vld [vmem:[#allocation13 + $0x31] ss:$8 sm:$0x3]  ;;  %v4730_v59 = vld [vmem:[#allocation14 + $0x32] ss:$8 sm:$0x3] }
 0x1d7   : > { %v4583_v37 = vrot.slane %v4578_v11, %v9542_v2  ;;  %v4446_v5 = vadd.f32 %v4438_v54, %v4417_v55  ;;  %v4448_v34 = vadd.f32 %v4440_v46, %v4419_v4  ;;  %v4450_v49 = vadd.f32 %v4442_v45, %v4421_v0  ;;  %v4654_v21 = vld [vmem:[#allocation14 + $0x31] ss:$8 sm:$0x3]  ;;  %v7918_v4 = vld [vmem:[%s9520_s21 + $0x3e0] sm:$0xff] }
 0x1d8   : > { %v4452_v19 = vadd.f32 %v4444_v31, %v4423_v38  ;;  %v4485_v24 = vmul.f32 %v13413_v40, %v4478_v50  ;;  %v4487_v30 = vmul.f32 %v13414_v29, %v4478_v50  ;;  %v4489_v12 = vmul.f32 %v7878_v8, %v4478_v50  ;;  %v7910_v31 = vld [vmem:[%s9517_s16 + $0x3e0] sm:$0xff]  ;;  %v7912_v55 = vld [vmem:[%s9517_s16 + $0x3f0] sm:$0xff] }
 0x1d9   : > { %v4491_v61 = vmul.f32 %v7880_v13, %v4478_v50  ;;  %v4514_v48 = vmul.f32 %v9947_v51, %v4507_v53  ;;  %v4516_v32 = vmul.f32 %v9950_v1, %v4507_v53  ;;  %v4518_v63 = vmul.f32 %v7886_v33, %v4507_v53  ;;  %v7920_v0 = vld [vmem:[%s9520_s21 + $0x3f0] sm:$0xff] }
 0x1da   : > { %v4520_v60 = vmul.f32 %v7888_v18, %v4507_v53  ;;  %v4493_v42 = vadd.f32 %v4485_v24, %v4446_v5  ;;  %v4495_v43 = vadd.f32 %v4487_v30, %v4448_v34  ;;  %v4497_v17 = vadd.f32 %v4489_v12, %v4450_v49  ;;  %v7926_v49 = vld [vmem:[%s9517_s16 + $0x460] sm:$0xff] }
 0x1db   : > { %v4499_v7 = vadd.f32 %v4491_v61, %v4452_v19  ;;  %v4561_v44 = vmul.f32 %v9961_v28, %v4554_v36  ;;  %v4563_v58 = vmul.f32 %v9964_v9, %v4554_v36  ;;  %v4565_v62 = vmul.f32 %v7894_v20, %v4554_v36  ;;  %v7928_v19 = vld [vmem:[%s9517_s16 + $0x470] sm:$0xff] }
 0x1dc   : > { %v4567_v56 = vmul.f32 %v7896_v41, %v4554_v36  ;;  %v4522_v51 = vadd.f32 %v4514_v48, %v4493_v42  ;;  %v4524_v1 = vadd.f32 %v4516_v32, %v4495_v43  ;;  %v4526_v47 = vadd.f32 %v4518_v63, %v4497_v17  ;;  %v13415_v36 = vld [vmem:[#allocation41_spill] sm:$0xff] }
 0x1dd   : > { %v4528_v25 = vadd.f32 %v4520_v60, %v4499_v7  ;;  %v4590_v35 = vmul.f32 %v9967_v15, %v4583_v37  ;;  %v4592_v28 = vmul.f32 %v9970_v39, %v4583_v37  ;;  %v4594_v27 = vmul.f32 %v7902_v14, %v4583_v37  ;;  %v7936_v48 = vld [vmem:[%s9520_s21 + $0x470] sm:$0xff] }
 0x1de   : > { %v4596_v9 = vmul.f32 %v7904_v16, %v4583_v37  ;;  %v4569_v11 = vadd.f32 %v4561_v44, %v4522_v51  ;;  %v4571_v54 = vadd.f32 %v4563_v58, %v4524_v1  ;;  %v4573_v46 = vadd.f32 %v4565_v62, %v4526_v47  ;;  %v13416_v16 = vld [vmem:[#allocation42_spill] sm:$0xff]  ;;  %v13417_v47 = vld [vmem:[#allocation44_spill] sm:$0xff] }
 0x1df   : > { %v4575_v45 = vadd.f32 %v4567_v56, %v4528_v25  ;;  %v4630_v38 = vrot.slane %v4625_v10, %v9542_v2  ;;  %v4659_v8 = vrot.slane %v4654_v21, %v9542_v2  ;;  %v4706_v15 = vrot.slane %v4701_v6, %v9542_v2  ;;  %v10122_v56 = vld [vmem:[%s9520_s21 + $0x1a8] sm:$0xff]  ;;  %v13418_v25 = vld [vmem:[#allocation49_spill] sm:$0xff] }
 0x1e0   : > { %v4735_v39 = vrot.slane %v4730_v59, %v9542_v2  ;;  %v4598_v13 = vadd.f32 %v4590_v35, %v4569_v11  ;;  %v4600_v33 = vadd.f32 %v4592_v28, %v4571_v54  ;;  %v4602_v18 = vadd.f32 %v4594_v27, %v4573_v46  ;;  %v13419_v59 = vld [vmem:[#allocation46_spill] sm:$0xff]  ;;  %v7571_v11 = vld [vmem:[%s9517_s16 + $0x208] sm:$0xff] }
 0x1e1   : > { %v4604_v50 = vadd.f32 %v4596_v9, %v4575_v45  ;;  %v4637_v53 = vmul.f32 %v9981_v22, %v4630_v38  ;;  %v4639_v37 = vmul.f32 %v13415_v36, %v4630_v38  ;;  %v4641_v5 = vmul.f32 %v7910_v31, %v4630_v38  ;;  %v7934_v22 = vld [vmem:[%s9520_s21 + $0x460] sm:$0xff]  ;;  %v13420_v35 = vld [vmem:[#allocation50_spill] sm:$0xff] }
 0x1e2   : > { %v4643_v34 = vmul.f32 %v7912_v55, %v4630_v38  ;;  %v4666_v40 = vmul.f32 %v9991_v52, %v4659_v8  ;;  %v4668_v24 = vmul.f32 %v9994_v23, %v4659_v8  ;;  %v4670_v29 = vmul.f32 %v7918_v4, %v4659_v8  ;;  %v7563_v52 = vld [vmem:[%s9520_s21 + $0x188] sm:$0xff]  ;;  %v7565_v23 = vld [vmem:[%s9520_s21 + $0x198] sm:$0xff] }
 0x1e3   : > { %v4672_v30 = vmul.f32 %v7920_v0, %v4659_v8  ;;  %v4645_v12 = vadd.f32 %v4637_v53, %v4598_v13  ;;  %v4647_v61 = vadd.f32 %v4639_v37, %v4600_v33  ;;  %v4649_v20 = vadd.f32 %v4641_v5, %v4602_v18  ;;  %v7573_v54 = vld [vmem:[%s9517_s16 + $0x218] sm:$0xff]  ;;  %v10136_v4 = vld [vmem:[%s9517_s16 + $0x228] sm:$0xff] }
 0x1e4   : > { %v4651_v41 = vadd.f32 %v4643_v34, %v4604_v50  ;;  %v4713_v32 = vmul.f32 %v10005_v3, %v4706_v15  ;;  %v4715_v63 = vmul.f32 %v10008_v26, %v4706_v15  ;;  %v4717_v60 = vmul.f32 %v7926_v49, %v4706_v15  ;;  %v10125_v26 = vld [vmem:[%s9520_s21 + $0x1b8] sm:$0xff]  ;;  %v7579_v38 = vld [vmem:[%s9520_s21 + $0x208] sm:$0xff] }
 0x1e5   : > { %v4719_v42 = vmul.f32 %v7928_v19, %v4706_v15  ;;  %v4674_v43 = vadd.f32 %v4666_v40, %v4645_v12  ;;  %v4676_v17 = vadd.f32 %v4668_v24, %v4647_v61  ;;  %v4678_v7 = vadd.f32 %v4670_v29, %v4649_v20  ;;  %v10139_v0 = vld [vmem:[%s9517_s16 + $0x238] sm:$0xff]  ;;  %v13423_v33 = vld [vmem:[#allocation52_spill] sm:$0xff] }
 0x1e6   : > { %v4680_v14 = vadd.f32 %v4672_v30, %v4651_v41  ;;  %v4742_v44 = vmul.f32 %v13416_v16, %v4735_v39  ;;  %v4744_v58 = vmul.f32 %v10014_v57, %v4735_v39  ;;  %v4746_v3 = vmul.f32 %v7934_v22, %v4735_v39  ;;  %v13421_v57 = vld [vmem:[#allocation47_spill] sm:$0xff]  ;;  %v7581_v50 = vld [vmem:[%s9520_s21 + $0x218] sm:$0xff]  ;;  %v10150_v53 = vld [vmem:[%s9520_s21 + $0x228] sm:$0xff] }
 0x1e7   : > { %v4748_v62 = vmul.f32 %v7936_v48, %v4735_v39  ;;  %v4721_v10 = vadd.f32 %v4713_v32, %v4674_v43  ;;  %v4723_v21 = vadd.f32 %v4715_v63, %v4676_v17  ;;  %v4725_v51 = vadd.f32 %v4717_v60, %v4678_v7  ;;  %v13422_v39 = vld [vmem:[#allocation51_spill] sm:$0xff]  ;;  %v10153_v36 = vld [vmem:[%s9520_s21 + $0x238] sm:$0xff]  ;;  %v13424_v5 = vld [vmem:[#allocation40_spill] sm:$0xff] }
 0x1e8   : > { %v4727_v1 = vadd.f32 %v4719_v42, %v4680_v14  ;;  %v2978_v6 = vadd.f32 %v13418_v25, %v13417_v47  ;;  %v2980_v28 = vadd.f32 %v13420_v35, %v13419_v59  ;;  %v2995_v27 = vmul.f32 %v7563_v52, %v13421_v57  ;;  %v8513_v37 = vld [vmem:[#allocation13 + $0x4] ss:$8 sm:$0x3]  ;;  %v8515_v40 = vld [vmem:[#allocation13 + $0x5] ss:$8 sm:$0x3] }
 0x1e9   : > { %v2997_v9 = vmul.f32 %v7565_v23, %v13421_v57  ;;  %v4750_v46 = vadd.f32 %v4742_v44, %v4721_v10  ;;  %v4752_v45 = vadd.f32 %v4744_v58, %v4723_v21  ;;  %v4754_v31 = vadd.f32 %v4746_v3, %v4725_v51  ;;  %v8514_v49 = vld [vmem:[#allocation14 + $0x4] ss:$8 sm:$0x3]  ;;  %v8516_v29 = vld [vmem:[#allocation14 + $0x5] ss:$8 sm:$0x3] }
 0x1ea   : > { %v4756_v55 = vadd.f32 %v4748_v62, %v4727_v1  ;;  %v2999_v8 = vmul.f32 %v10122_v56, %v13421_v57  ;;  %v3001_v15 = vmul.f32 %v10125_v26, %v13421_v57  ;;  %v3003_v13 = vadd.f32 %v2995_v27, %v13422_v39  ;;  %v7587_v12 = vld [vmem:[%s9517_s16 + $0x288] sm:$0xff]  ;;  %v7589_v63 = vld [vmem:[%s9517_s16 + $0x298] sm:$0xff] }
 0x1eb   : > { %v3005_v18 = vadd.f32 %v2997_v9, %v13423_v33  ;;  %4758 = vst [vmem:[%s10156_s6] sm:$0xff] %v4750_v46  ;;  %4760 = vst [vmem:[%s10156_s6 + $0x10] sm:$0xff] %v4752_v45  ;;  %v3038_v34 = vrot.slane %v8513_v37, %v13424_v5  ;;  %v3067_v19 = vrot.slane %v8514_v49, %v13424_v5  ;;  %v8517_v41 = vld [vmem:[#allocation13 + $0x6] ss:$8 sm:$0x3]  ;;  %v10174_v42 = vld [vmem:[%s9517_s16 + $0x2b8] sm:$0xff] }
 0x1ec   : > { %4762 = vst [vmem:[%s10156_s6 + $0x20] sm:$0xff] %v4754_v31  ;;  %4764 = vst [vmem:[%s10156_s6 + $0x30] sm:$0xff] %v4756_v55  ;;  %v3114_v24 = vrot.slane %v8515_v40, %v13424_v5  ;;  %v3143_v30 = vrot.slane %v8516_v29, %v13424_v5  ;;  %v3007_v61 = vadd.f32 %v2999_v8, %v2978_v6  ;;  %v8518_v48 = vld [vmem:[#allocation14 + $0x6] ss:$8 sm:$0x3]  ;;  %v7597_v3 = vld [vmem:[%s9520_s21 + $0x298] sm:$0xff] }
 0x1ed   : > { %v3009_v20 = vadd.f32 %v3001_v15, %v2980_v28  ;;  %v3190_v22 = vrot.slane %v8517_v41, %v13424_v5  ;;  %v3219_v32 = vrot.slane %v8518_v48, %v13424_v5  ;;  %v10171_v60 = vld [vmem:[%s9517_s16 + $0x2a8] sm:$0xff]  ;;  %v3042_v52 = vmul.f32 %v7571_v11, %v3038_v34  ;;  %v10186_v10 = vld [vmem:[%s9520_s21 + $0x2b8] sm:$0xff] }
 0x1ee   : > { %v3044_v23 = vmul.f32 %v7573_v54, %v3038_v34  ;;  %v3046_v43 = vmul.f32 %v10136_v4, %v3038_v34  ;;  %v3048_v17 = vmul.f32 %v10139_v0, %v3038_v34  ;;  %v7595_v7 = vld [vmem:[%s9520_s21 + $0x288] sm:$0xff]  ;;  %v3071_v14 = vmul.f32 %v7579_v38, %v3067_v19  ;;  %v7605_v57 = vld [vmem:[%s9517_s16 + $0x318] sm:$0xff] }
 0x1ef   : > { %v3073_v16 = vmul.f32 %v7581_v50, %v3067_v19  ;;  %v3075_v44 = vmul.f32 %v10150_v53, %v3067_v19  ;;  %v3077_v58 = vmul.f32 %v10153_v36, %v3067_v19  ;;  %v10183_v62 = vld [vmem:[%s9520_s21 + $0x2a8] sm:$0xff]  ;;  %v3050_v21 = vadd.f32 %v3042_v52, %v3003_v13  ;;  %v10196_v9 = vld [vmem:[%s9517_s16 + $0x338] sm:$0xff] }
 0x1f0   : > { %v3052_v51 = vadd.f32 %v3044_v23, %v3005_v18  ;;  %v3054_v1 = vadd.f32 %v3046_v43, %v3007_v61  ;;  %v3056_v47 = vadd.f32 %v3048_v17, %v3009_v20  ;;  %v7603_v25 = vld [vmem:[%s9517_s16 + $0x308] sm:$0xff]  ;;  %v3118_v6 = vmul.f32 %v7587_v12, %v3114_v24  ;;  %v7613_v39 = vld [vmem:[%s9520_s21 + $0x318] sm:$0xff] }
 0x1f1   : > { %v3120_v59 = vmul.f32 %v7589_v63, %v3114_v24  ;;  %v3122_v35 = vmul.f32 %v10171_v60, %v3114_v24  ;;  %v3124_v28 = vmul.f32 %v10174_v42, %v3114_v24  ;;  %v10193_v27 = vld [vmem:[%s9517_s16 + $0x328] sm:$0xff]  ;;  %v3079_v11 = vadd.f32 %v3071_v14, %v3050_v21  ;;  %v10206_v33 = vld [vmem:[%s9520_s21 + $0x338] sm:$0xff] }
 0x1f2   : > { %v3081_v54 = vadd.f32 %v3073_v16, %v3052_v51  ;;  %v3083_v46 = vadd.f32 %v3075_v44, %v3054_v1  ;;  %v3085_v45 = vadd.f32 %v3077_v58, %v3056_v47  ;;  %v7611_v31 = vld [vmem:[%s9520_s21 + $0x308] sm:$0xff]  ;;  %v3147_v55 = vmul.f32 %v7595_v7, %v3143_v30  ;;  %v7621_v41 = vld [vmem:[%s9517_s16 + $0x398] sm:$0xff] }
 0x1f3   : > { %v3149_v38 = vmul.f32 %v7597_v3, %v3143_v30  ;;  %v3151_v8 = vmul.f32 %v10183_v62, %v3143_v30  ;;  %v3153_v15 = vmul.f32 %v10186_v10, %v3143_v30  ;;  %v10203_v13 = vld [vmem:[%s9520_s21 + $0x328] sm:$0xff]  ;;  %v3126_v18 = vadd.f32 %v3118_v6, %v3079_v11  ;;  %v10218_v17 = vld [vmem:[%s9517_s16 + $0x3b8] sm:$0xff] }
 0x1f4   : > { %v3128_v50 = vadd.f32 %v3120_v59, %v3081_v54  ;;  %v3130_v37 = vadd.f32 %v3122_v35, %v3083_v46  ;;  %v3132_v34 = vadd.f32 %v3124_v28, %v3085_v45  ;;  %v3194_v49 = vmul.f32 %v7603_v25, %v3190_v22  ;;  %v7619_v20 = vld [vmem:[%s9517_s16 + $0x388] sm:$0xff]  ;;  %v7629_v58 = vld [vmem:[%s9520_s21 + $0x398] sm:$0xff] }
 0x1f5   : > { %v3196_v19 = vmul.f32 %v7605_v57, %v3190_v22  ;;  %v3198_v40 = vmul.f32 %v10193_v27, %v3190_v22  ;;  %v3200_v24 = vmul.f32 %v10196_v9, %v3190_v22  ;;  %v3155_v29 = vadd.f32 %v3147_v55, %v3126_v18  ;;  %v10215_v43 = vld [vmem:[%s9517_s16 + $0x3a8] sm:$0xff]  ;;  %v10226_v21 = vld [vmem:[%s9520_s21 + $0x3b8] sm:$0xff] }
 0x1f6   : > { %v3157_v30 = vadd.f32 %v3149_v38, %v3128_v50  ;;  %v3159_v12 = vadd.f32 %v3151_v8, %v3130_v37  ;;  %v3161_v61 = vadd.f32 %v3153_v15, %v3132_v34  ;;  %v3223_v48 = vmul.f32 %v7611_v31, %v3219_v32  ;;  %v7627_v22 = vld [vmem:[%s9520_s21 + $0x388] sm:$0xff]  ;;  %v8521_v25 = vld [vmem:[#allocation13 + $0x10] ss:$8 sm:$0x3] }
 0x1f7   : > { %v3225_v63 = vmul.f32 %v7613_v39, %v3219_v32  ;;  %v3227_v52 = vmul.f32 %v10203_v13, %v3219_v32  ;;  %v3229_v23 = vmul.f32 %v10206_v33, %v3219_v32  ;;  %v3202_v7 = vadd.f32 %v3194_v49, %v3155_v29  ;;  %v10223_v3 = vld [vmem:[%s9520_s21 + $0x3a8] sm:$0xff]  ;;  %v8522_v59 = vld [vmem:[#allocation14 + $0x10] ss:$8 sm:$0x3] }
 0x1f8   : > { %v3204_v14 = vadd.f32 %v3196_v19, %v3157_v30  ;;  %v3206_v16 = vadd.f32 %v3198_v40, %v3159_v12  ;;  %v3208_v44 = vadd.f32 %v3200_v24, %v3161_v61  ;;  %v8519_v51 = vld [vmem:[#allocation13 + $0x7] ss:$8 sm:$0x3]  ;;  %v3342_v6 = vrot.slane %v8521_v25, %v13424_v5  ;;  %v7637_v45 = vld [vmem:[%s9517_s16 + $0x418] sm:$0xff] }
 0x1f9   : > { %v3266_v32 = vrot.slane %v8519_v51, %v13424_v5  ;;  %v8520_v1 = vld [vmem:[#allocation14 + $0x7] ss:$8 sm:$0x3]  ;;  %v3371_v35 = vrot.slane %v8522_v59, %v13424_v5  ;;  %v3231_v57 = vadd.f32 %v3223_v48, %v3202_v7  ;;  %v10238_v55 = vld [vmem:[%s9517_s16 + $0x438] sm:$0xff] }
 0x1fa   : > { %v3295_v47 = vrot.slane %v8520_v1, %v13424_v5  ;;  %v7635_v28 = vld [vmem:[%s9517_s16 + $0x408] sm:$0xff]  ;;  %v3233_v11 = vadd.f32 %v3225_v63, %v3204_v14  ;;  %v3235_v54 = vadd.f32 %v3227_v52, %v3206_v16  ;;  %v3237_v46 = vadd.f32 %v3229_v23, %v3208_v44  ;;  %v7645_v19 = vld [vmem:[%s9520_s21 + $0x418] sm:$0xff] }
 0x1fb   : > { %v10235_v31 = vld [vmem:[%s9517_s16 + $0x428] sm:$0xff]  ;;  %v3270_v38 = vmul.f32 %v7619_v20, %v3266_v32  ;;  %v3272_v8 = vmul.f32 %v7621_v41, %v3266_v32  ;;  %v3274_v15 = vmul.f32 %v10215_v43, %v3266_v32  ;;  %v3276_v39 = vmul.f32 %v10218_v17, %v3266_v32  ;;  %v10250_v24 = vld [vmem:[%s9520_s21 + $0x438] sm:$0xff] }
 0x1fc   : > { %v7643_v18 = vld [vmem:[%s9520_s21 + $0x408] sm:$0xff]  ;;  %v3299_v50 = vmul.f32 %v7627_v22, %v3295_v47  ;;  %v3301_v37 = vmul.f32 %v7629_v58, %v3295_v47  ;;  %v3303_v34 = vmul.f32 %v10223_v3, %v3295_v47  ;;  %v3305_v49 = vmul.f32 %v10226_v21, %v3295_v47  ;;  %v10260_v32 = vld [vmem:[%s9517_s16 + $0x58] sm:$0xff] }
 0x1fd   : > { %v10247_v40 = vld [vmem:[%s9520_s21 + $0x428] sm:$0xff]  ;;  %v3278_v29 = vadd.f32 %v3270_v38, %v3231_v57  ;;  %v3280_v30 = vadd.f32 %v3272_v8, %v3233_v11  ;;  %v3282_v12 = vadd.f32 %v3274_v15, %v3235_v54  ;;  %v3284_v61 = vadd.f32 %v3276_v39, %v3237_v46  ;;  %v8523_v57 = vld [vmem:[#allocation13 + $0x11] ss:$8 sm:$0x3] }
 0x1fe   : > { %v3346_v20 = vmul.f32 %v7635_v28, %v3342_v6  ;;  %v3348_v41 = vmul.f32 %v7637_v45, %v3342_v6  ;;  %v3350_v48 = vmul.f32 %v10235_v31, %v3342_v6  ;;  %v3352_v63 = vmul.f32 %v10238_v55, %v3342_v6  ;;  %v10257_v51 = vld [vmem:[%s9517_s16 + $0x48] sm:$0xff]  ;;  %v10266_v28 = vld [vmem:[%s9520_s21 + $0x58] sm:$0xff] }
 0x1ff   : > { %v3307_v52 = vadd.f32 %v3299_v50, %v3278_v29  ;;  %v3309_v23 = vadd.f32 %v3301_v37, %v3280_v30  ;;  %v3311_v22 = vadd.f32 %v3303_v34, %v3282_v12  ;;  %v3313_v7 = vadd.f32 %v3305_v49, %v3284_v61  ;;  %v10263_v59 = vld [vmem:[%s9520_s21 + $0x48] sm:$0xff]  ;;  %v8525_v46 = vld [vmem:[#allocation13 + $0x12] ss:$8 sm:$0x3] }
 0x200   : > { %v3375_v14 = vmul.f32 %v7643_v18, %v3371_v35  ;;  %v3377_v16 = vmul.f32 %v7645_v19, %v3371_v35  ;;  %v3379_v44 = vmul.f32 %v10247_v40, %v3371_v35  ;;  %v3381_v58 = vmul.f32 %v10250_v24, %v3371_v35  ;;  %v8524_v35 = vld [vmem:[#allocation14 + $0x11] ss:$8 sm:$0x3]  ;;  %v8526_v38 = vld [vmem:[#allocation14 + $0x12] ss:$8 sm:$0x3] }
 0x201   : > { %v3354_v1 = vadd.f32 %v3346_v20, %v3307_v52  ;;  %v3356_v47 = vadd.f32 %v3348_v41, %v3309_v23  ;;  %v3358_v25 = vadd.f32 %v3350_v48, %v3311_v22  ;;  %v3360_v6 = vadd.f32 %v3352_v63, %v3313_v7  ;;  %v10273_v37 = vld [vmem:[%s9517_s16 + $0xc8] sm:$0xff]  ;;  %v10276_v34 = vld [vmem:[%s9517_s16 + $0xd8] sm:$0xff] }
 0x202   : > { %v3418_v11 = vrot.slane %v8523_v57, %v13424_v5  ;;  %v3447_v54 = vrot.slane %v8524_v35, %v13424_v5  ;;  %v3494_v45 = vrot.slane %v8525_v46, %v13424_v5  ;;  %v3523_v8 = vrot.slane %v8526_v38, %v13424_v5  ;;  %v8527_v49 = vld [vmem:[%s9517_s16 + $0x28] sm:$0xff]  ;;  %v8528_v29 = vld [vmem:[%s9517_s16 + $0x38] sm:$0xff] }
 0x203   : > { %v3383_v15 = vadd.f32 %v3375_v14, %v3354_v1  ;;  %v3385_v39 = vadd.f32 %v3377_v16, %v3356_v47  ;;  %v3387_v18 = vadd.f32 %v3379_v44, %v3358_v25  ;;  %v3389_v50 = vadd.f32 %v3381_v58, %v3360_v6  ;;  %v8529_v20 = vld [vmem:[%s9520_s21 + $0x28] sm:$0xff]  ;;  %v8530_v48 = vld [vmem:[%s9520_s21 + $0x38] sm:$0xff] }
 0x204   : > { %v3422_v19 = vmul.f32 %v8527_v49, %v3418_v11  ;;  %v3424_v30 = vmul.f32 %v8528_v29, %v3418_v11  ;;  %v3426_v12 = vmul.f32 %v10257_v51, %v3418_v11  ;;  %v3428_v61 = vmul.f32 %v10260_v32, %v3418_v11  ;;  %v10287_v22 = vld [vmem:[%s9520_s21 + $0xc8] sm:$0xff]  ;;  %v10290_v7 = vld [vmem:[%s9520_s21 + $0xd8] sm:$0xff] }
 0x205   : > { %v3451_v41 = vmul.f32 %v8529_v20, %v3447_v54  ;;  %v3453_v63 = vmul.f32 %v8530_v48, %v3447_v54  ;;  %v3455_v52 = vmul.f32 %v10263_v59, %v3447_v54  ;;  %v3457_v23 = vmul.f32 %v10266_v28, %v3447_v54  ;;  %v8531_v1 = vld [vmem:[%s9517_s16 + $0xa8] sm:$0xff]  ;;  %v8532_v25 = vld [vmem:[%s9517_s16 + $0xb8] sm:$0xff] }
 0x206   : > { %v3430_v14 = vadd.f32 %v3422_v19, %v3383_v15  ;;  %v3432_v16 = vadd.f32 %v3424_v30, %v3385_v39  ;;  %v3434_v44 = vadd.f32 %v3426_v12, %v3387_v18  ;;  %v3436_v58 = vadd.f32 %v3428_v61, %v3389_v50  ;;  %v8533_v15 = vld [vmem:[%s9520_s21 + $0xa8] sm:$0xff]  ;;  %v8534_v18 = vld [vmem:[%s9520_s21 + $0xb8] sm:$0xff] }
 0x207   : > { %v3498_v47 = vmul.f32 %v8531_v1, %v3494_v45  ;;  %v3500_v6 = vmul.f32 %v8532_v25, %v3494_v45  ;;  %v3502_v57 = vmul.f32 %v10273_v37, %v3494_v45  ;;  %v3504_v11 = vmul.f32 %v10276_v34, %v3494_v45  ;;  %v10301_v29 = vld [vmem:[%s9517_s16 + $0x148] sm:$0xff]  ;;  %v10304_v30 = vld [vmem:[%s9517_s16 + $0x158] sm:$0xff] }
 0x208   : > { %v3459_v35 = vadd.f32 %v3451_v41, %v3430_v14  ;;  %v3461_v54 = vadd.f32 %v3453_v63, %v3432_v16  ;;  %v3463_v46 = vadd.f32 %v3455_v52, %v3434_v44  ;;  %v3465_v38 = vadd.f32 %v3457_v23, %v3436_v58  ;;  %13425 = vst [vmem:[#allocation43_spill] sm:$0xff] %v10304_v30  ;;  %v10307_v41 = vld [vmem:[%s9520_s21 + $0x148] sm:$0xff]  ;;  %v10310_v48 = vld [vmem:[%s9520_s21 + $0x158] sm:$0xff] }
 0x209   : > { %v3527_v39 = vmul.f32 %v8533_v15, %v3523_v8  ;;  %v3529_v50 = vmul.f32 %v8534_v18, %v3523_v8  ;;  %v3531_v49 = vmul.f32 %v10287_v22, %v3523_v8  ;;  %v3533_v19 = vmul.f32 %v10290_v7, %v3523_v8  ;;  %13426 = vst [vmem:[#allocation45_spill] sm:$0xff] %v10307_v41  ;;  %v8535_v63 = vld [vmem:[#allocation13 + $0x13] ss:$8 sm:$0x3] }
 0x20a   : > { %v3506_v12 = vadd.f32 %v3498_v47, %v3459_v35  ;;  %v3508_v45 = vadd.f32 %v3500_v6, %v3461_v54  ;;  %v3510_v61 = vadd.f32 %v3502_v57, %v3463_v46  ;;  %v3512_v20 = vadd.f32 %v3504_v11, %v3465_v38  ;;  %13427 = vst [vmem:[#allocation48_spill] sm:$0xff] %v10310_v48  ;;  %v8536_v8 = vld [vmem:[#allocation14 + $0x13] ss:$8 sm:$0x3]  ;;  %v10317_v57 = vld [vmem:[%s9517_s16 + $0x1c8] sm:$0xff] }
 0x20b   : > { %v3570_v52 = vrot.slane %v8535_v63, %v13424_v5  ;;  %v3599_v23 = vrot.slane %v8536_v8, %v13424_v5  ;;  %v8537_v14 = vld [vmem:[#allocation13 + $0x14] ss:$8 sm:$0x3]  ;;  %v8539_v35 = vld [vmem:[%s9517_s16 + $0x128] sm:$0xff] }
 0x20c   : > { %v3646_v16 = vrot.slane %v8537_v14, %v13424_v5  ;;  %v8538_v44 = vld [vmem:[#allocation14 + $0x14] ss:$8 sm:$0x3]  ;;  %v3535_v1 = vadd.f32 %v3527_v39, %v3506_v12  ;;  %v3537_v47 = vadd.f32 %v3529_v50, %v3508_v45  ;;  %v3539_v25 = vadd.f32 %v3531_v49, %v3510_v61  ;;  %v8541_v39 = vld [vmem:[%s9520_s21 + $0x128] sm:$0xff] }
 0x20d   : > { %v3675_v58 = vrot.slane %v8538_v44, %v13424_v5  ;;  %v3541_v6 = vadd.f32 %v3533_v19, %v3512_v20  ;;  %v10320_v11 = vld [vmem:[%s9517_s16 + $0x1d8] sm:$0xff]  ;;  %v3574_v54 = vmul.f32 %v8539_v35, %v3570_v52  ;;  %v3578_v15 = vmul.f32 %v10301_v29, %v3570_v52  ;;  %v10331_v61 = vld [vmem:[%s9520_s21 + $0x1c8] sm:$0xff] }
 0x20e   : > { %v8540_v46 = vld [vmem:[%s9517_s16 + $0x138] sm:$0xff]  ;;  %v3580_v18 = vmul.f32 %v10304_v30, %v3570_v52  ;;  %v3603_v50 = vmul.f32 %v8541_v39, %v3599_v23  ;;  %v3607_v19 = vmul.f32 %v10307_v41, %v3599_v23  ;;  %v3609_v45 = vmul.f32 %v10310_v48, %v3599_v23  ;;  %v8543_v35 = vld [vmem:[%s9517_s16 + $0x1a8] sm:$0xff] }
 0x20f   : > { %v3576_v38 = vmul.f32 %v8540_v46, %v3570_v52  ;;  %v8542_v49 = vld [vmem:[%s9520_s21 + $0x138] sm:$0xff]  ;;  %v3582_v63 = vadd.f32 %v3574_v54, %v3535_v1  ;;  %v3586_v14 = vadd.f32 %v3578_v15, %v3539_v25  ;;  %v3650_v52 = vmul.f32 %v8543_v35, %v3646_v16  ;;  %v10345_v54 = vld [vmem:[%s9517_s16 + $0x248] sm:$0xff] }
 0x210   : > { %v3605_v12 = vmul.f32 %v8542_v49, %v3599_v23  ;;  %v10334_v20 = vld [vmem:[%s9520_s21 + $0x1d8] sm:$0xff]  ;;  %v3588_v44 = vadd.f32 %v3580_v18, %v3541_v6  ;;  %v3654_v49 = vmul.f32 %v10317_v57, %v3646_v16  ;;  %v3656_v2 = vmul.f32 %v10320_v11, %v3646_v16  ;;  %v10361_v35 = vld [vmem:[%s9517_s16 + $0x2c8] sm:$0xff] }
 0x211   : > { %v3584_v8 = vadd.f32 %v3576_v38, %v3537_v47  ;;  %v8544_v46 = vld [vmem:[%s9517_s16 + $0x1b8] sm:$0xff]  ;;  %v3611_v23 = vadd.f32 %v3603_v50, %v3582_v63  ;;  %v3615_v41 = vadd.f32 %v3607_v19, %v3586_v14  ;;  %v3679_v1 = vmul.f32 %v10122_v56, %v3675_v58 }
 0x212   : > { %v3652_v39 = vmul.f32 %v8544_v46, %v3646_v16  ;;  %v3617_v30 = vadd.f32 %v3609_v45, %v3588_v44  ;;  %v3681_v47 = vmul.f32 %v10125_v26, %v3675_v58  ;;  %v3683_v25 = vmul.f32 %v10331_v61, %v3675_v58  ;;  %v10348_v38 = vld [vmem:[%s9517_s16 + $0x258] sm:$0xff] }
 0x213   : > { %v3613_v48 = vadd.f32 %v3605_v12, %v3584_v8  ;;  %v3685_v6 = vmul.f32 %v10334_v20, %v3675_v58  ;;  %v3658_v15 = vadd.f32 %v3650_v52, %v3611_v23  ;;  %v3662_v16 = vadd.f32 %v3654_v49, %v3615_v41  ;;  %v10351_v12 = vld [vmem:[%s9520_s21 + $0x248] sm:$0xff]  ;;  %v10354_v19 = vld [vmem:[%s9520_s21 + $0x258] sm:$0xff] }
 0x214   : > { %v3664_v50 = vadd.f32 %v3656_v2, %v3617_v30  ;;  %v8545_v56 = vld [vmem:[#allocation13 + $0x15] ss:$8 sm:$0x3]  ;;  %v8547_v63 = vld [vmem:[#allocation13 + $0x16] ss:$8 sm:$0x3] }
 0x215   : > { %v3660_v18 = vadd.f32 %v3652_v39, %v3613_v48  ;;  %v3722_v26 = vrot.slane %v8545_v56, %v13424_v5  ;;  %v8546_v45 = vld [vmem:[#allocation14 + $0x15] ss:$8 sm:$0x3]  ;;  %v3798_v8 = vrot.slane %v8547_v63, %v13424_v5  ;;  %v8548_v14 = vld [vmem:[#allocation14 + $0x16] ss:$8 sm:$0x3]  ;;  %v3687_v2 = vadd.f32 %v3679_v1, %v3658_v15 }
 0x216   : > { %v3751_v58 = vrot.slane %v8546_v45, %v13424_v5  ;;  %v3827_v41 = vrot.slane %v8548_v14, %v13424_v5  ;;  %v3691_v48 = vadd.f32 %v3683_v25, %v3662_v16  ;;  %v3693_v44 = vadd.f32 %v3685_v6, %v3664_v50  ;;  %v10364_v52 = vld [vmem:[%s9517_s16 + $0x2d8] sm:$0xff]  ;;  %v10375_v25 = vld [vmem:[%s9520_s21 + $0x2c8] sm:$0xff] }
 0x217   : > { %v3689_v30 = vadd.f32 %v3681_v47, %v3660_v18  ;;  %v3726_v46 = vmul.f32 %v10136_v4, %v3722_v26  ;;  %v3728_v39 = vmul.f32 %v10139_v0, %v3722_v26  ;;  %v3730_v49 = vmul.f32 %v10345_v54, %v3722_v26  ;;  %v10378_v6 = vld [vmem:[%s9520_s21 + $0x2d8] sm:$0xff] }
 0x218   : > { %v3732_v23 = vmul.f32 %v10348_v38, %v3722_v26  ;;  %v3755_v56 = vmul.f32 %v10150_v53, %v3751_v58  ;;  %v3757_v45 = vmul.f32 %v10153_v36, %v3751_v58  ;;  %v3759_v1 = vmul.f32 %v10351_v12, %v3751_v58 }
 0x219   : > { %v3761_v47 = vmul.f32 %v10354_v19, %v3751_v58  ;;  %v3734_v15 = vadd.f32 %v3726_v46, %v3687_v2  ;;  %v3736_v4 = vadd.f32 %v3728_v39, %v3689_v30  ;;  %v3738_v0 = vadd.f32 %v3730_v49, %v3691_v48 }
 0x21a   : > { %v3740_v18 = vadd.f32 %v3732_v23, %v3693_v44  ;;  %v3802_v16 = vmul.f32 %v10171_v60, %v3798_v8  ;;  %v3804_v53 = vmul.f32 %v10174_v42, %v3798_v8  ;;  %v3806_v36 = vmul.f32 %v10361_v35, %v3798_v8  ;;  %v10389_v44 = vld [vmem:[%s9517_s16 + $0x348] sm:$0xff]  ;;  %v10392_v42 = vld [vmem:[%s9517_s16 + $0x358] sm:$0xff] }
 0x21b   : > { %v3808_v50 = vmul.f32 %v10364_v52, %v3798_v8  ;;  %v3763_v26 = vadd.f32 %v3755_v56, %v3734_v15  ;;  %v3765_v58 = vadd.f32 %v3757_v45, %v3736_v4  ;;  %v3767_v63 = vadd.f32 %v3759_v1, %v3738_v0  ;;  %v10395_v23 = vld [vmem:[%s9520_s21 + $0x348] sm:$0xff]  ;;  %v10398_v56 = vld [vmem:[%s9520_s21 + $0x358] sm:$0xff] }
 0x21c   : > { %v3769_v14 = vadd.f32 %v3761_v47, %v3740_v18  ;;  %v3831_v2 = vmul.f32 %v10183_v62, %v3827_v41  ;;  %v3833_v30 = vmul.f32 %v10186_v10, %v3827_v41  ;;  %v3835_v48 = vmul.f32 %v10375_v25, %v3827_v41  ;;  %v8549_v62 = vld [vmem:[#allocation13 + $0x17] ss:$8 sm:$0x3]  ;;  %v8551_v1 = vld [vmem:[#allocation13 + $0x20] ss:$8 sm:$0x3] }
 0x21d   : > { %v3837_v60 = vmul.f32 %v10378_v6, %v3827_v41  ;;  %v3810_v46 = vadd.f32 %v3802_v16, %v3763_v26  ;;  %v3812_v39 = vadd.f32 %v3804_v53, %v3765_v58  ;;  %v3814_v8 = vadd.f32 %v3806_v36, %v3767_v63  ;;  %v8550_v45 = vld [vmem:[#allocation14 + $0x17] ss:$8 sm:$0x3]  ;;  %v8552_v15 = vld [vmem:[#allocation14 + $0x20] ss:$8 sm:$0x3] }
 0x21e   : > { %v3816_v49 = vadd.f32 %v3808_v50, %v3769_v14  ;;  %v3874_v10 = vrot.slane %v8549_v62, %v13424_v5  ;;  %v3903_v41 = vrot.slane %v8550_v45, %v13424_v5  ;;  %v3950_v47 = vrot.slane %v8551_v1, %v13424_v5  ;;  %v10405_v36 = vld [vmem:[%s9517_s16 + $0x3c8] sm:$0xff]  ;;  %v10408_v50 = vld [vmem:[%s9517_s16 + $0x3d8] sm:$0xff] }
 0x21f   : > { %v3979_v4 = vrot.slane %v8552_v15, %v13424_v5  ;;  %v3839_v0 = vadd.f32 %v3831_v2, %v3810_v46  ;;  %v3841_v18 = vadd.f32 %v3833_v30, %v3812_v39  ;;  %v3843_v16 = vadd.f32 %v3835_v48, %v3814_v8  ;;  %v10419_v48 = vld [vmem:[%s9520_s21 + $0x3c8] sm:$0xff] }
 0x220   : > { %v3845_v53 = vadd.f32 %v3837_v60, %v3816_v49  ;;  %v3878_v26 = vmul.f32 %v10193_v27, %v3874_v10  ;;  %v3880_v58 = vmul.f32 %v10196_v9, %v3874_v10  ;;  %v3882_v63 = vmul.f32 %v10389_v44, %v3874_v10  ;;  %v10422_v60 = vld [vmem:[%s9520_s21 + $0x3d8] sm:$0xff] }
 0x221   : > { %v3884_v14 = vmul.f32 %v10392_v42, %v3874_v10  ;;  %v3907_v62 = vmul.f32 %v10203_v13, %v3903_v41  ;;  %v3909_v45 = vmul.f32 %v10206_v33, %v3903_v41  ;;  %v3911_v2 = vmul.f32 %v10395_v23, %v3903_v41 }
 0x222   : > { %v3913_v30 = vmul.f32 %v10398_v56, %v3903_v41  ;;  %v3886_v46 = vadd.f32 %v3878_v26, %v3839_v0  ;;  %v3888_v27 = vadd.f32 %v3880_v58, %v3841_v18  ;;  %v3890_v9 = vadd.f32 %v3882_v63, %v3843_v16 }
 0x223   : > { %v3892_v39 = vadd.f32 %v3884_v14, %v3845_v53  ;;  %v3954_v8 = vmul.f32 %v10215_v43, %v3950_v47  ;;  %v3956_v13 = vmul.f32 %v10218_v17, %v3950_v47  ;;  %v3958_v33 = vmul.f32 %v10405_v36, %v3950_v47  ;;  %v10433_v53 = vld [vmem:[%s9517_s16 + $0x448] sm:$0xff]  ;;  %v10436_v17 = vld [vmem:[%s9517_s16 + $0x458] sm:$0xff] }
 0x224   : > { %v3960_v49 = vmul.f32 %v10408_v50, %v3950_v47  ;;  %v3915_v10 = vadd.f32 %v3907_v62, %v3886_v46  ;;  %v3917_v41 = vadd.f32 %v3909_v45, %v3888_v27  ;;  %v3919_v1 = vadd.f32 %v3911_v2, %v3890_v9  ;;  %v10439_v14 = vld [vmem:[%s9520_s21 + $0x448] sm:$0xff]  ;;  %v10442_v62 = vld [vmem:[%s9520_s21 + $0x458] sm:$0xff] }
 0x225   : > { %v3921_v15 = vadd.f32 %v3913_v30, %v3892_v39  ;;  %v3983_v0 = vmul.f32 %v10223_v3, %v3979_v4  ;;  %v3985_v18 = vmul.f32 %v10226_v21, %v3979_v4  ;;  %v3987_v16 = vmul.f32 %v10419_v48, %v3979_v4  ;;  %13428 = vst [vmem:[#allocation53_spill] sm:$0xff] %v10442_v62  ;;  %v8553_v3 = vld [vmem:[#allocation13 + $0x21] ss:$8 sm:$0x3] }
 0x226   : > { %v3989_v43 = vmul.f32 %v10422_v60, %v3979_v4  ;;  %v3962_v26 = vadd.f32 %v3954_v8, %v3915_v10  ;;  %v3964_v58 = vadd.f32 %v3956_v13, %v3917_v41  ;;  %v3966_v47 = vadd.f32 %v3958_v33, %v3919_v1  ;;  %v8554_v45 = vld [vmem:[#allocation14 + $0x21] ss:$8 sm:$0x3]  ;;  %v8555_v2 = vld [vmem:[#allocation13 + $0x22] ss:$8 sm:$0x3] }
 0x227   : > { %v3968_v63 = vadd.f32 %v3960_v49, %v3921_v15  ;;  %v4026_v21 = vrot.slane %v8553_v3, %v13424_v5  ;;  %v4055_v4 = vrot.slane %v8554_v45, %v13424_v5  ;;  %v4102_v30 = vrot.slane %v8555_v2, %v13424_v5  ;;  %v8556_v46 = vld [vmem:[#allocation14 + $0x22] ss:$8 sm:$0x3]  ;;  %v7801_v49 = vld [vmem:[%s9517_s16 + $0x78] sm:$0xff] }
 0x228   : > { %v4131_v27 = vrot.slane %v8556_v46, %v13424_v5  ;;  %v3991_v9 = vadd.f32 %v3983_v0, %v3962_v26  ;;  %v3993_v39 = vadd.f32 %v3985_v18, %v3964_v58  ;;  %v3995_v8 = vadd.f32 %v3987_v16, %v3966_v47  ;;  %v7799_v33 = vld [vmem:[%s9517_s16 + $0x68] sm:$0xff]  ;;  %v7809_v16 = vld [vmem:[%s9520_s21 + $0x78] sm:$0xff] }
 0x229   : > { %v3997_v13 = vadd.f32 %v3989_v43, %v3968_v63  ;;  %v4030_v10 = vmul.f32 %v10235_v31, %v4026_v21  ;;  %v4032_v41 = vmul.f32 %v10238_v55, %v4026_v21  ;;  %v4034_v1 = vmul.f32 %v10433_v53, %v4026_v21  ;;  %v7807_v18 = vld [vmem:[%s9520_s21 + $0x68] sm:$0xff] }
 0x22a   : > { %v4036_v15 = vmul.f32 %v10436_v17, %v4026_v21  ;;  %v4059_v3 = vmul.f32 %v10247_v40, %v4055_v4  ;;  %v4061_v45 = vmul.f32 %v10250_v24, %v4055_v4  ;;  %v4063_v2 = vmul.f32 %v10439_v14, %v4055_v4 }
 0x22b   : > { %v4065_v0 = vmul.f32 %v10442_v62, %v4055_v4  ;;  %v4038_v43 = vadd.f32 %v4030_v10, %v3991_v9  ;;  %v4040_v26 = vadd.f32 %v4032_v41, %v3993_v39  ;;  %v4042_v31 = vadd.f32 %v4034_v1, %v3995_v8  ;;  %v7815_v8 = vld [vmem:[%s9517_s16 + $0xe8] sm:$0xff] }
 0x22c   : > { %v4044_v55 = vadd.f32 %v4036_v15, %v3997_v13  ;;  %v4106_v58 = vmul.f32 %v10257_v51, %v4102_v30  ;;  %v4108_v47 = vmul.f32 %v10260_v32, %v4102_v30  ;;  %v4110_v63 = vmul.f32 %v7799_v33, %v4102_v30  ;;  %v7817_v13 = vld [vmem:[%s9517_s16 + $0xf8] sm:$0xff] }
 0x22d   : > { %v4112_v40 = vmul.f32 %v7801_v49, %v4102_v30  ;;  %v4067_v24 = vadd.f32 %v4059_v3, %v4038_v43  ;;  %v4069_v21 = vadd.f32 %v4061_v45, %v4040_v26  ;;  %v4071_v46 = vadd.f32 %v4063_v2, %v4042_v31  ;;  %v7823_v30 = vld [vmem:[%s9520_s21 + $0xe8] sm:$0xff]  ;;  %v7825_v33 = vld [vmem:[%s9520_s21 + $0xf8] sm:$0xff] }
 0x22e   : > { %v4073_v4 = vadd.f32 %v4065_v0, %v4044_v55  ;;  %v4135_v62 = vmul.f32 %v10263_v59, %v4131_v27  ;;  %v4137_v9 = vmul.f32 %v10266_v28, %v4131_v27  ;;  %v4139_v39 = vmul.f32 %v7807_v18, %v4131_v27  ;;  %v8557_v49 = vld [vmem:[#allocation13 + $0x23] ss:$8 sm:$0x3]  ;;  %v8559_v45 = vld [vmem:[#allocation13 + $0x24] ss:$8 sm:$0x3] }
 0x22f   : > { %v4141_v10 = vmul.f32 %v7809_v16, %v4131_v27  ;;  %v4114_v41 = vadd.f32 %v4106_v58, %v4067_v24  ;;  %v4116_v51 = vadd.f32 %v4108_v47, %v4069_v21  ;;  %v4118_v1 = vadd.f32 %v4110_v63, %v4071_v46  ;;  %v8558_v3 = vld [vmem:[#allocation14 + $0x23] ss:$8 sm:$0x3]  ;;  %v8560_v27 = vld [vmem:[#allocation14 + $0x24] ss:$8 sm:$0x3] }
 0x230   : > { %v4120_v32 = vadd.f32 %v4112_v40, %v4073_v4  ;;  %v4178_v15 = vrot.slane %v8557_v49, %v13424_v5  ;;  %v4207_v59 = vrot.slane %v8558_v3, %v13424_v5  ;;  %v4254_v28 = vrot.slane %v8559_v45, %v13424_v5  ;;  %v7831_v26 = vld [vmem:[%s9517_s16 + $0x168] sm:$0xff]  ;;  %v7833_v31 = vld [vmem:[%s9517_s16 + $0x178] sm:$0xff] }
 0x231   : > { %v4283_v2 = vrot.slane %v8560_v27, %v13424_v5  ;;  %v4143_v0 = vadd.f32 %v4135_v62, %v4114_v41  ;;  %v4145_v18 = vadd.f32 %v4137_v9, %v4116_v51  ;;  %v4147_v16 = vadd.f32 %v4139_v39, %v4118_v1  ;;  %v7839_v4 = vld [vmem:[%s9520_s21 + $0x168] sm:$0xff]  ;;  %v7841_v49 = vld [vmem:[%s9520_s21 + $0x178] sm:$0xff]  ;;  %v13429_v41 = vld [vmem:[#allocation43_spill] sm:$0xff] }
 0x232   : > { %v4149_v43 = vadd.f32 %v4141_v10, %v4120_v32  ;;  %v4182_v55 = vmul.f32 %v10273_v37, %v4178_v15  ;;  %v4184_v58 = vmul.f32 %v10276_v34, %v4178_v15  ;;  %v4186_v47 = vmul.f32 %v7815_v8, %v4178_v15  ;;  %v13430_v32 = vld [vmem:[#allocation45_spill] sm:$0xff]  ;;  %v7847_v45 = vld [vmem:[%s9517_s16 + $0x1e8] sm:$0xff]  ;;  %v7849_v27 = vld [vmem:[%s9517_s16 + $0x1f8] sm:$0xff] }
 0x233   : > { %v4188_v63 = vmul.f32 %v7817_v13, %v4178_v15  ;;  %v4211_v40 = vmul.f32 %v10287_v22, %v4207_v59  ;;  %v4213_v24 = vmul.f32 %v10290_v7, %v4207_v59  ;;  %v4215_v21 = vmul.f32 %v7823_v30, %v4207_v59 }
 0x234   : > { %v4217_v46 = vmul.f32 %v7825_v33, %v4207_v59  ;;  %v4190_v62 = vadd.f32 %v4182_v55, %v4143_v0  ;;  %v4192_v9 = vadd.f32 %v4184_v58, %v4145_v18  ;;  %v4194_v39 = vadd.f32 %v4186_v47, %v4147_v16  ;;  %v13431_v33 = vld [vmem:[#allocation48_spill] sm:$0xff] }
 0x235   : > { %v4196_v10 = vadd.f32 %v4188_v63, %v4149_v43  ;;  %v4258_v37 = vmul.f32 %v10301_v29, %v4254_v28  ;;  %v4260_v34 = vmul.f32 %v13429_v41, %v4254_v28  ;;  %v4262_v8 = vmul.f32 %v7831_v26, %v4254_v28  ;;  %v7857_v43 = vld [vmem:[%s9520_s21 + $0x1f8] sm:$0xff]  ;;  %v8561_v26 = vld [vmem:[#allocation13 + $0x25] ss:$8 sm:$0x3] }
 0x236   : > { %v4264_v13 = vmul.f32 %v7833_v31, %v4254_v28  ;;  %v4219_v22 = vadd.f32 %v4211_v40, %v4190_v62  ;;  %v4221_v7 = vadd.f32 %v4213_v24, %v4192_v9  ;;  %v4223_v51 = vadd.f32 %v4215_v21, %v4194_v39  ;;  %v7855_v28 = vld [vmem:[%s9520_s21 + $0x1e8] sm:$0xff]  ;;  %v7865_v62 = vld [vmem:[%s9517_s16 + $0x278] sm:$0xff] }
 0x237   : > { %v4225_v1 = vadd.f32 %v4217_v46, %v4196_v10  ;;  %v4287_v30 = vmul.f32 %v13430_v32, %v4283_v2  ;;  %v4289_v15 = vmul.f32 %v13431_v33, %v4283_v2  ;;  %v4291_v3 = vmul.f32 %v7839_v4, %v4283_v2  ;;  %v8562_v55 = vld [vmem:[#allocation14 + $0x25] ss:$8 sm:$0x3]  ;;  %v8563_v47 = vld [vmem:[#allocation13 + $0x26] ss:$8 sm:$0x3] }
 0x238   : > { %v4293_v59 = vmul.f32 %v7841_v49, %v4283_v2  ;;  %v4266_v0 = vadd.f32 %v4258_v37, %v4219_v22  ;;  %v4268_v29 = vadd.f32 %v4260_v34, %v4221_v7  ;;  %v4270_v18 = vadd.f32 %v4262_v8, %v4223_v51  ;;  %v8564_v2 = vld [vmem:[#allocation14 + $0x26] ss:$8 sm:$0x3]  ;;  %v7873_v7 = vld [vmem:[%s9520_s21 + $0x278] sm:$0xff] }
 0x239   : > { %v4272_v16 = vadd.f32 %v4264_v13, %v4225_v1  ;;  %v4330_v31 = vrot.slane %v8561_v26, %v13424_v5  ;;  %v4359_v58 = vrot.slane %v8562_v55, %v13424_v5  ;;  %v4406_v63 = vrot.slane %v8563_v47, %v13424_v5  ;;  %v7863_v49 = vld [vmem:[%s9517_s16 + $0x268] sm:$0xff] }
 0x23a   : > { %v4435_v40 = vrot.slane %v8564_v2, %v13424_v5  ;;  %v4295_v24 = vadd.f32 %v4287_v30, %v4266_v0  ;;  %v4297_v21 = vadd.f32 %v4289_v15, %v4268_v29  ;;  %v4299_v46 = vadd.f32 %v4291_v3, %v4270_v18  ;;  %v7871_v22 = vld [vmem:[%s9520_s21 + $0x268] sm:$0xff]  ;;  %v8568_v2 = vld [vmem:[#allocation14 + $0x30] ss:$8 sm:$0x3] }
 0x23b   : > { %v4301_v4 = vadd.f32 %v4293_v59, %v4272_v16  ;;  %v4334_v9 = vmul.f32 %v10317_v57, %v4330_v31  ;;  %v4336_v39 = vmul.f32 %v10320_v11, %v4330_v31  ;;  %v4338_v10 = vmul.f32 %v7847_v45, %v4330_v31  ;;  %v7879_v18 = vld [vmem:[%s9517_s16 + $0x2e8] sm:$0xff]  ;;  %v7881_v16 = vld [vmem:[%s9517_s16 + $0x2f8] sm:$0xff] }
 0x23c   : > { %v4340_v37 = vmul.f32 %v7849_v27, %v4330_v31  ;;  %v4363_v41 = vmul.f32 %v10331_v61, %v4359_v58  ;;  %v4365_v34 = vmul.f32 %v10334_v20, %v4359_v58  ;;  %v4367_v8 = vmul.f32 %v7855_v28, %v4359_v58  ;;  %v7887_v26 = vld [vmem:[%s9520_s21 + $0x2e8] sm:$0xff]  ;;  %v7889_v31 = vld [vmem:[%s9520_s21 + $0x2f8] sm:$0xff] }
 0x23d   : > { %v4369_v13 = vmul.f32 %v7857_v43, %v4359_v58  ;;  %v4342_v51 = vadd.f32 %v4334_v9, %v4295_v24  ;;  %v4344_v1 = vadd.f32 %v4336_v39, %v4297_v21  ;;  %v4346_v32 = vadd.f32 %v4338_v10, %v4299_v46  ;;  %v8565_v55 = vld [vmem:[#allocation13 + $0x27] ss:$8 sm:$0x3] }
 0x23e   : > { %v4348_v30 = vadd.f32 %v4340_v37, %v4301_v4  ;;  %v4410_v57 = vmul.f32 %v10345_v54, %v4406_v63  ;;  %v4412_v11 = vmul.f32 %v10348_v38, %v4406_v63  ;;  %v4414_v33 = vmul.f32 %v7863_v49, %v4406_v63  ;;  %v8566_v47 = vld [vmem:[#allocation14 + $0x27] ss:$8 sm:$0x3] }
 0x23f   : > { %v4416_v15 = vmul.f32 %v7865_v62, %v4406_v63  ;;  %v4371_v61 = vadd.f32 %v4363_v41, %v4342_v51  ;;  %v4373_v20 = vadd.f32 %v4365_v34, %v4344_v1  ;;  %v4375_v3 = vadd.f32 %v4367_v8, %v4346_v32  ;;  %v8567_v63 = vld [vmem:[#allocation13 + $0x30] ss:$8 sm:$0x3]  ;;  %v7895_v49 = vld [vmem:[%s9517_s16 + $0x368] sm:$0xff] }
 0x240   : > { %v4377_v59 = vadd.f32 %v4369_v13, %v4348_v30  ;;  %v4439_v45 = vmul.f32 %v10351_v12, %v4435_v40  ;;  %v4441_v27 = vmul.f32 %v10354_v19, %v4435_v40  ;;  %v4443_v0 = vmul.f32 %v7871_v22, %v4435_v40  ;;  %v7897_v62 = vld [vmem:[%s9517_s16 + $0x378] sm:$0xff]  ;;  %v7903_v22 = vld [vmem:[%s9520_s21 + $0x368] sm:$0xff] }
 0x241   : > { %v4445_v29 = vmul.f32 %v7873_v7, %v4435_v40  ;;  %v4418_v28 = vadd.f32 %v4410_v57, %v4371_v61  ;;  %v4420_v54 = vadd.f32 %v4412_v11, %v4373_v20  ;;  %v4422_v43 = vadd.f32 %v4414_v33, %v4375_v3  ;;  %v7905_v7 = vld [vmem:[%s9520_s21 + $0x378] sm:$0xff] }
 0x242   : > { %v4424_v38 = vadd.f32 %v4416_v15, %v4377_v59  ;;  %v4482_v58 = vrot.slane %v8565_v55, %v13424_v5  ;;  %v4511_v12 = vrot.slane %v8566_v47, %v13424_v5  ;;  %v4558_v19 = vrot.slane %v8567_v63, %v13424_v5  ;;  %v7927_v63 = vld [vmem:[%s9517_s16 + $0x468] sm:$0xff] }
 0x243   : > { %v4587_v40 = vrot.slane %v8568_v2, %v13424_v5  ;;  %v4447_v24 = vadd.f32 %v4439_v45, %v4418_v28  ;;  %v4449_v21 = vadd.f32 %v4441_v27, %v4420_v54  ;;  %v4451_v46 = vadd.f32 %v4443_v0, %v4422_v43  ;;  %v7911_v45 = vld [vmem:[%s9517_s16 + $0x3e8] sm:$0xff]  ;;  %v7913_v27 = vld [vmem:[%s9517_s16 + $0x3f8] sm:$0xff] }
 0x244   : > { %v4453_v4 = vadd.f32 %v4445_v29, %v4424_v38  ;;  %v4486_v9 = vmul.f32 %v10361_v35, %v4482_v58  ;;  %v4488_v39 = vmul.f32 %v10364_v52, %v4482_v58  ;;  %v4490_v10 = vmul.f32 %v7879_v18, %v4482_v58  ;;  %v7919_v18 = vld [vmem:[%s9520_s21 + $0x3e8] sm:$0xff]  ;;  %v8569_v28 = vld [vmem:[#allocation13 + $0x31] ss:$8 sm:$0x3] }
 0x245   : > { %v4492_v37 = vmul.f32 %v7881_v16, %v4482_v58  ;;  %v4515_v41 = vmul.f32 %v10375_v25, %v4511_v12  ;;  %v4517_v34 = vmul.f32 %v10378_v6, %v4511_v12  ;;  %v4519_v8 = vmul.f32 %v7887_v26, %v4511_v12  ;;  %v7921_v16 = vld [vmem:[%s9520_s21 + $0x3f8] sm:$0xff] }
 0x246   : > { %v4521_v13 = vmul.f32 %v7889_v31, %v4511_v12  ;;  %v4494_v51 = vadd.f32 %v4486_v9, %v4447_v24  ;;  %v4496_v1 = vadd.f32 %v4488_v39, %v4449_v21  ;;  %v4498_v32 = vadd.f32 %v4490_v10, %v4451_v46  ;;  %v8570_v43 = vld [vmem:[#allocation14 + $0x31] ss:$8 sm:$0x3]  ;;  %v8571_v38 = vld [vmem:[#allocation13 + $0x32] ss:$8 sm:$0x3] }
 0x247   : > { %v4500_v30 = vadd.f32 %v4492_v37, %v4453_v4  ;;  %v4562_v35 = vmul.f32 %v10389_v44, %v4558_v19  ;;  %v4564_v52 = vmul.f32 %v10392_v42, %v4558_v19  ;;  %v4566_v57 = vmul.f32 %v7895_v49, %v4558_v19  ;;  %v8572_v26 = vld [vmem:[#allocation14 + $0x32] ss:$8 sm:$0x3]  ;;  %v7935_v9 = vld [vmem:[%s9520_s21 + $0x468] sm:$0xff] }
 0x248   : > { %v4568_v11 = vmul.f32 %v7897_v62, %v4558_v19  ;;  %v4523_v25 = vadd.f32 %v4515_v41, %v4494_v51  ;;  %v4525_v6 = vadd.f32 %v4517_v34, %v4496_v1  ;;  %v4527_v33 = vadd.f32 %v4519_v8, %v4498_v32  ;;  %v7929_v19 = vld [vmem:[%s9517_s16 + $0x478] sm:$0xff]  ;;  %v4766_v51 = vld [vmem:[%s9517_s16] sm:$0xff] }
 0x249   : > { %v4529_v15 = vadd.f32 %v4521_v13, %v4500_v30  ;;  %v4591_v61 = vmul.f32 %v10395_v23, %v4587_v40  ;;  %v4593_v20 = vmul.f32 %v10398_v56, %v4587_v40  ;;  %v4595_v3 = vmul.f32 %v7903_v22, %v4587_v40  ;;  %v7937_v39 = vld [vmem:[%s9520_s21 + $0x478] sm:$0xff]  ;;  %v4782_v1 = vld [vmem:[#allocation16] ss:$8 sm:$0x3]  ;;  %v13432_v30 = vld [vmem:[#allocation53_spill] sm:$0xff] }
 0x24a   : > { %v4597_v59 = vmul.f32 %v7905_v7, %v4587_v40  ;;  %v4570_v0 = vadd.f32 %v4562_v35, %v4523_v25  ;;  %v4572_v44 = vadd.f32 %v4564_v52, %v4525_v6  ;;  %v4574_v29 = vadd.f32 %v4566_v57, %v4527_v33  ;;  %v4810_v32 = vld [vmem:[#allocation17] ss:$8 sm:$0x3]  ;;  %v4769_v25 = vld [vmem:[%s9517_s16 + $0x18] sm:$0xff] }
 0x24b   : > { %v4576_v42 = vadd.f32 %v4568_v11, %v4529_v15  ;;  %v4634_v54 = vrot.slane %v8569_v28, %v13424_v5  ;;  %v4663_v23 = vrot.slane %v8570_v43, %v13424_v5  ;;  %v4710_v56 = vrot.slane %v8571_v38, %v13424_v5  ;;  %v4767_v57 = vld [vmem:[%s9517_s16 + $0x8] sm:$0xff]  ;;  %v4768_v11 = vld [vmem:[%s9517_s16 + $0x10] sm:$0xff]  ;;  %v4777_v38 = vld [vmem:[%s9520_s21 + $0x18] sm:$0xff] }
 0x24c   : > { %v4739_v31 = vrot.slane %v8572_v26, %v13424_v5  ;;  %v4599_v55 = vadd.f32 %v4591_v61, %v4570_v0  ;;  %v4601_v58 = vadd.f32 %v4593_v20, %v4572_v44  ;;  %v4603_v47 = vadd.f32 %v4595_v3, %v4574_v29  ;;  %v10549_v20 = vld [vmem:[%s9517_s16 + $0x20] sm:$0xff]  ;;  %v10552_v3 = vld [vmem:[%s9517_s16 + $0x28] sm:$0xff] }
 0x24d   : > { %v4605_v12 = vadd.f32 %v4597_v59, %v4576_v42  ;;  %v4638_v2 = vmul.f32 %v10405_v36, %v4634_v54  ;;  %v4640_v40 = vmul.f32 %v10408_v50, %v4634_v54  ;;  %v4642_v24 = vmul.f32 %v7911_v45, %v4634_v54  ;;  %v10558_v59 = vld [vmem:[%s9517_s16 + $0x38] sm:$0xff]  ;;  %v4774_v45 = vld [vmem:[%s9520_s21] sm:$0xff]  ;;  %v10572_v26 = vld [vmem:[%s9520_s21 + $0x28] sm:$0xff] }
 0x24e   : > { %v4644_v21 = vmul.f32 %v7913_v27, %v4634_v54  ;;  %v4667_v46 = vmul.f32 %v10419_v48, %v4663_v23  ;;  %v4669_v4 = vmul.f32 %v10422_v60, %v4663_v23  ;;  %v4671_v49 = vmul.f32 %v7919_v18, %v4663_v23  ;;  %v4775_v27 = vld [vmem:[%s9520_s21 + $0x8] sm:$0xff]  ;;  %v13433_v0 = vld [vmem:[#allocation39_spill] sm:$0xff] }
 0x24f   : > { %v4673_v62 = vmul.f32 %v7921_v16, %v4663_v23  ;;  %v4646_v10 = vadd.f32 %v4638_v2, %v4599_v55  ;;  %v4648_v37 = vadd.f32 %v4640_v40, %v4601_v58  ;;  %v4650_v41 = vadd.f32 %v4642_v24, %v4603_v47  ;;  %v4776_v23 = vld [vmem:[%s9520_s21 + $0x10] sm:$0xff]  ;;  %v10578_v55 = vld [vmem:[%s9520_s21 + $0x38] sm:$0xff] }
 0x250   : > { %v4652_v34 = vadd.f32 %v4644_v21, %v4605_v12  ;;  %v4714_v36 = vmul.f32 %v10433_v53, %v4710_v56  ;;  %v4716_v50 = vmul.f32 %v10436_v17, %v4710_v56  ;;  %v4718_v8 = vmul.f32 %v7927_v63, %v4710_v56 }
 0x251   : > { %v4720_v48 = vmul.f32 %v7929_v19, %v4710_v56  ;;  %v4675_v13 = vadd.f32 %v4667_v46, %v4646_v10  ;;  %v4677_v60 = vadd.f32 %v4669_v4, %v4648_v37  ;;  %v4679_v22 = vadd.f32 %v4671_v49, %v4650_v41  ;;  %v10569_v56 = vld [vmem:[%s9520_s21 + $0x20] sm:$0xff] }
 0x252   : > { %v4681_v7 = vadd.f32 %v4673_v62, %v4652_v34  ;;  %v4743_v53 = vmul.f32 %v10439_v14, %v4739_v31  ;;  %v4745_v17 = vmul.f32 %v13432_v30, %v4739_v31  ;;  %v4747_v35 = vmul.f32 %v7935_v9, %v4739_v31  ;;  %v10555_v14 = vld [vmem:[%s9517_s16 + $0x30] sm:$0xff]  ;;  %v4855_v62 = vld [vmem:[#allocation16 + $0x1] ss:$8 sm:$0x3]  ;;  %v7941_v30 = vld [vmem:[%s9517_s16 + $0x98] sm:$0xff] }
 0x253   : > { %v4749_v52 = vmul.f32 %v7937_v39, %v4739_v31  ;;  %v4722_v6 = vadd.f32 %v4714_v36, %v4675_v13  ;;  %v4724_v33 = vadd.f32 %v4716_v50, %v4677_v60  ;;  %v4726_v15 = vadd.f32 %v4718_v8, %v4679_v22  ;;  %v10575_v31 = vld [vmem:[%s9520_s21 + $0x30] sm:$0xff]  ;;  %v7938_v41 = vld [vmem:[%s9517_s16 + $0x80] sm:$0xff]  ;;  %v7939_v34 = vld [vmem:[%s9517_s16 + $0x88] sm:$0xff] }
 0x254   : > { %v4728_v61 = vadd.f32 %v4720_v48, %v4681_v7  ;;  %v4787_v44 = vrot.slane %v4782_v1, %v13433_v0  ;;  %v4791_v29 = vrot.slane %v4782_v1, %v13424_v5  ;;  %v4815_v42 = vrot.slane %v4810_v32, %v13433_v0  ;;  %v4884_v36 = vld [vmem:[#allocation17 + $0x1] ss:$8 sm:$0x3]  ;;  %v4929_v60 = vld [vmem:[#allocation16 + $0x2] ss:$8 sm:$0x3] }
 0x255   : > { %v4819_v18 = vrot.slane %v4810_v32, %v13424_v5  ;;  %v4751_v16 = vadd.f32 %v4743_v53, %v4722_v6  ;;  %v4753_v28 = vadd.f32 %v4745_v17, %v4724_v33  ;;  %v4755_v54 = vadd.f32 %v4747_v35, %v4726_v15  ;;  %v4958_v22 = vld [vmem:[#allocation17 + $0x2] ss:$8 sm:$0x3]  ;;  %v7940_v53 = vld [vmem:[%s9517_s16 + $0x90] sm:$0xff] }
 0x256   : > { %v4757_v43 = vadd.f32 %v4749_v52, %v4728_v61  ;;  %v4794_v58 = vmul.f32 %v4787_v44, %v4766_v51  ;;  %v4795_v47 = vmul.f32 %v4791_v29, %v4767_v57  ;;  %v4796_v12 = vmul.f32 %v4787_v44, %v4768_v11  ;;  %v10597_v17 = vld [vmem:[%s9517_s16 + $0xa0] sm:$0xff]  ;;  %v10600_v35 = vld [vmem:[%s9517_s16 + $0xa8] sm:$0xff]  ;;  %v10603_v52 = vld [vmem:[%s9517_s16 + $0xb0] sm:$0xff] }
 0x257   : > { %v4797_v63 = vmul.f32 %v4791_v29, %v4769_v25  ;;  %4759 = vst [vmem:[%s10156_s6 + $0x8] sm:$0xff] %v4751_v16  ;;  %4761 = vst [vmem:[%s10156_s6 + $0x18] sm:$0xff] %v4753_v28  ;;  %v4798_v19 = vmul.f32 %v4787_v44, %v10549_v20  ;;  %v4799_v2 = vmul.f32 %v4791_v29, %v10552_v3  ;;  %v10606_v57 = vld [vmem:[%s9517_s16 + $0xb8] sm:$0xff] }
 0x258   : > { %4763 = vst [vmem:[%s10156_s6 + $0x28] sm:$0xff] %v4755_v54  ;;  %4765 = vst [vmem:[%s10156_s6 + $0x38] sm:$0xff] %v4757_v43  ;;  %v4800_v40 = vmul.f32 %v4787_v44, %v10555_v14  ;;  %v4801_v24 = vmul.f32 %v4791_v29, %v10558_v59  ;;  %v4822_v21 = vmul.f32 %v4815_v42, %v4774_v45  ;;  %v7946_v44 = vld [vmem:[%s9520_s21 + $0x80] sm:$0xff]  ;;  %v7947_v29 = vld [vmem:[%s9520_s21 + $0x88] sm:$0xff] }
 0x259   : > { %v4823_v46 = vmul.f32 %v4819_v18, %v4775_v27  ;;  %v4824_v4 = vmul.f32 %v4815_v42, %v4776_v23  ;;  %v4825_v49 = vmul.f32 %v4819_v18, %v4777_v38  ;;  %v4826_v9 = vmul.f32 %v4815_v42, %v10569_v56  ;;  %v7948_v54 = vld [vmem:[%s9520_s21 + $0x90] sm:$0xff]  ;;  %v7949_v43 = vld [vmem:[%s9520_s21 + $0x98] sm:$0xff]  ;;  %v10629_v23 = vld [vmem:[%s9520_s21 + $0xa0] sm:$0xff] }
 0x25a   : > { %v4827_v39 = vmul.f32 %v4819_v18, %v10572_v26  ;;  %v4828_v10 = vmul.f32 %v4815_v42, %v10575_v31  ;;  %v4829_v37 = vmul.f32 %v4819_v18, %v10578_v55  ;;  %v4830_v50 = vadd.f32 %v4822_v21, %v4794_v58 }
 0x25b   : > { %v4831_v8 = vadd.f32 %v4823_v46, %v4795_v47  ;;  %v4832_v48 = vadd.f32 %v4824_v4, %v4796_v12  ;;  %v4833_v13 = vadd.f32 %v4825_v49, %v4797_v63  ;;  %v4834_v7 = vadd.f32 %v4826_v9, %v4798_v19  ;;  %v10636_v63 = vld [vmem:[%s9520_s21 + $0xa8] sm:$0xff]  ;;  %v10639_v19 = vld [vmem:[%s9520_s21 + $0xb0] sm:$0xff] }
 0x25c   : > { %v4835_v51 = vadd.f32 %v4827_v39, %v4799_v2  ;;  %v4836_v1 = vadd.f32 %v4828_v10, %v4800_v40  ;;  %v4837_v32 = vadd.f32 %v4829_v37, %v4801_v24  ;;  %v4860_v11 = vrot.slane %v4855_v62, %v13433_v0  ;;  %v10642_v2 = vld [vmem:[%s9520_s21 + $0xb8] sm:$0xff] }
 0x25d   : > { %v4864_v25 = vrot.slane %v4855_v62, %v13424_v5  ;;  %v4889_v6 = vrot.slane %v4884_v36, %v13433_v0  ;;  %v4893_v33 = vrot.slane %v4884_v36, %v13424_v5  ;;  %v10613_v15 = vrot.slane %v4929_v60, %v13433_v0  ;;  %v7955_v36 = vld [vmem:[%s9517_s16 + $0x108] sm:$0xff] }
 0x25e   : > { %v10616_v61 = vrot.slane %v4929_v60, %v13424_v5  ;;  %v10619_v45 = vrot.slane %v4958_v22, %v13433_v0  ;;  %v10622_v27 = vrot.slane %v4958_v22, %v13424_v5  ;;  %v4867_v42 = vmul.f32 %v7938_v41, %v4860_v11  ;;  %v7956_v60 = vld [vmem:[%s9517_s16 + $0x110] sm:$0xff]  ;;  %v7957_v22 = vld [vmem:[%s9517_s16 + $0x118] sm:$0xff] }
 0x25f   : > { %v4868_v18 = vmul.f32 %v7939_v34, %v4864_v25  ;;  %v4869_v16 = vmul.f32 %v7940_v53, %v4860_v11  ;;  %v4870_v28 = vmul.f32 %v7941_v30, %v4864_v25  ;;  %v4871_v38 = vmul.f32 %v10597_v17, %v4860_v11  ;;  %v7954_v34 = vld [vmem:[%s9517_s16 + $0x100] sm:$0xff]  ;;  %v10656_v30 = vld [vmem:[%s9517_s16 + $0x128] sm:$0xff] }
 0x260   : > { %v4872_v58 = vmul.f32 %v10600_v35, %v4864_v25  ;;  %v4873_v47 = vmul.f32 %v10603_v52, %v4860_v11  ;;  %v4874_v12 = vmul.f32 %v10606_v57, %v4864_v25  ;;  %v4875_v40 = vadd.f32 %v4867_v42, %v4830_v50  ;;  %v10659_v11 = vld [vmem:[%s9517_s16 + $0x130] sm:$0xff]  ;;  %v10662_v25 = vld [vmem:[%s9517_s16 + $0x138] sm:$0xff]  ;;  %v7962_v42 = vld [vmem:[%s9520_s21 + $0x100] sm:$0xff] }
 0x261   : > { %v4876_v24 = vadd.f32 %v4868_v18, %v4831_v8  ;;  %v4877_v21 = vadd.f32 %v4869_v16, %v4832_v48  ;;  %v4878_v46 = vadd.f32 %v4870_v28, %v4833_v13  ;;  %v4879_v4 = vadd.f32 %v4871_v38, %v4834_v7  ;;  %v10653_v7 = vld [vmem:[%s9517_s16 + $0x120] sm:$0xff]  ;;  %13434 = vst [vmem:[#allocation54_spill] sm:$0xff] %v10659_v11  ;;  %v7963_v18 = vld [vmem:[%s9520_s21 + $0x108] sm:$0xff]  ;;  %v7964_v38 = vld [vmem:[%s9520_s21 + $0x110] sm:$0xff] }
 0x262   : > { %v4880_v49 = vadd.f32 %v4872_v58, %v4835_v51  ;;  %v4881_v62 = vadd.f32 %v4873_v47, %v4836_v1  ;;  %v4882_v9 = vadd.f32 %v4874_v12, %v4837_v32  ;;  %v4896_v39 = vmul.f32 %v7946_v44, %v4889_v6  ;;  %13435 = vst [vmem:[#allocation41_spill] sm:$0xff] %v10662_v25  ;;  %v7965_v58 = vld [vmem:[%s9520_s21 + $0x118] sm:$0xff]  ;;  %v10673_v47 = vld [vmem:[%s9520_s21 + $0x120] sm:$0xff] }
 0x263   : > { %v4897_v10 = vmul.f32 %v7947_v29, %v4893_v33  ;;  %v4898_v37 = vmul.f32 %v7948_v54, %v4889_v6  ;;  %v4899_v41 = vmul.f32 %v7949_v43, %v4893_v33  ;;  %v4900_v50 = vmul.f32 %v10629_v23, %v4889_v6  ;;  %13436 = vst [vmem:[#allocation42_spill] sm:$0xff] %v10673_v47 }
 0x264   : > { %v4901_v8 = vmul.f32 %v10636_v63, %v4893_v33  ;;  %v4902_v48 = vmul.f32 %v10639_v19, %v4889_v6  ;;  %v4903_v13 = vmul.f32 %v10642_v2, %v4893_v33  ;;  %v4904_v51 = vadd.f32 %v4896_v39, %v4875_v40 }
 0x265   : > { %v4905_v1 = vadd.f32 %v4897_v10, %v4876_v24  ;;  %v4906_v32 = vadd.f32 %v4898_v37, %v4877_v21  ;;  %v4907_v53 = vadd.f32 %v4899_v41, %v4878_v46  ;;  %v4908_v6 = vadd.f32 %v4900_v50, %v4879_v4  ;;  %v10684_v46 = vld [vmem:[%s9520_s21 + $0x128] sm:$0xff]  ;;  %v10687_v4 = vld [vmem:[%s9520_s21 + $0x130] sm:$0xff] }
 0x266   : > { %v4909_v33 = vadd.f32 %v4901_v8, %v4880_v49  ;;  %v4910_v44 = vadd.f32 %v4902_v48, %v4881_v62  ;;  %v4911_v29 = vadd.f32 %v4903_v13, %v4882_v9  ;;  %v4941_v16 = vmul.f32 %v7954_v34, %v10613_v15  ;;  %13437 = vst [vmem:[#allocation44_spill] sm:$0xff] %v10684_v46  ;;  %v10690_v49 = vld [vmem:[%s9520_s21 + $0x138] sm:$0xff]  ;;  %v5003_v48 = vld [vmem:[#allocation16 + $0x3] ss:$8 sm:$0x3] }
 0x267   : > { %v4942_v28 = vmul.f32 %v7955_v36, %v10616_v61  ;;  %v4943_v54 = vmul.f32 %v7956_v60, %v10613_v15  ;;  %v4944_v43 = vmul.f32 %v7957_v22, %v10616_v61  ;;  %v4945_v12 = vmul.f32 %v10653_v7, %v10613_v15  ;;  %13438 = vst [vmem:[#allocation49_spill] sm:$0xff] %v10687_v4 }
 0x268   : > { %v4946_v40 = vmul.f32 %v10656_v30, %v10616_v61  ;;  %v4947_v24 = vmul.f32 %v10659_v11, %v10613_v15  ;;  %v4948_v21 = vmul.f32 %v10662_v25, %v10616_v61  ;;  %13439 = vst [vmem:[#allocation46_spill] sm:$0xff] %v10690_v49  ;;  %v4949_v62 = vadd.f32 %v4941_v16, %v4904_v51  ;;  %v7986_v25 = vld [vmem:[%s9517_s16 + $0x200] sm:$0xff]  ;;  %v7987_v11 = vld [vmem:[%s9517_s16 + $0x208] sm:$0xff] }
 0x269   : > { %v4950_v9 = vadd.f32 %v4942_v28, %v4905_v1  ;;  %v4951_v39 = vadd.f32 %v4943_v54, %v4906_v32  ;;  %v4952_v10 = vadd.f32 %v4944_v43, %v4907_v53  ;;  %v4953_v37 = vadd.f32 %v4945_v12, %v4908_v6  ;;  %v7970_v1 = vld [vmem:[%s9517_s16 + $0x180] sm:$0xff]  ;;  %v7971_v32 = vld [vmem:[%s9517_s16 + $0x188] sm:$0xff]  ;;  %v7973_v43 = vld [vmem:[%s9517_s16 + $0x198] sm:$0xff] }
 0x26a   : > { %v4954_v41 = vadd.f32 %v4946_v40, %v4909_v33  ;;  %v4955_v34 = vadd.f32 %v4947_v24, %v4910_v44  ;;  %v4956_v36 = vadd.f32 %v4948_v21, %v4911_v29  ;;  %v4970_v15 = vmul.f32 %v7962_v42, %v10619_v45  ;;  %v5032_v53 = vld [vmem:[#allocation17 + $0x3] ss:$8 sm:$0x3]  ;;  %v5077_v42 = vld [vmem:[#allocation16 + $0x4] ss:$8 sm:$0x3] }
 0x26b   : > { %v4971_v61 = vmul.f32 %v7963_v18, %v10622_v27  ;;  %v4972_v50 = vmul.f32 %v7964_v38, %v10619_v45  ;;  %v4973_v8 = vmul.f32 %v7965_v58, %v10622_v27  ;;  %v4974_v13 = vmul.f32 %v10673_v47, %v10619_v45  ;;  %v5106_v18 = vld [vmem:[#allocation17 + $0x4] ss:$8 sm:$0x3]  ;;  %v10715_v12 = vld [vmem:[%s9517_s16 + $0x1b0] sm:$0xff]  ;;  %v10718_v40 = vld [vmem:[%s9517_s16 + $0x1b8] sm:$0xff] }
 0x26c   : > { %v4975_v60 = vmul.f32 %v10684_v46, %v10622_v27  ;;  %v4976_v22 = vmul.f32 %v10687_v4, %v10619_v45  ;;  %v4977_v51 = vmul.f32 %v10690_v49, %v10622_v27  ;;  %v4978_v6 = vadd.f32 %v4970_v15, %v4949_v62  ;;  %v7972_v27 = vld [vmem:[%s9517_s16 + $0x190] sm:$0xff]  ;;  %v10709_v38 = vld [vmem:[%s9517_s16 + $0x1a0] sm:$0xff]  ;;  %v10712_v58 = vld [vmem:[%s9517_s16 + $0x1a8] sm:$0xff]  ;;  %13442 = vst [vmem:[#allocation51_spill] sm:$0xff] %v10715_v12 }
 0x26d   : > { %v4979_v33 = vadd.f32 %v4971_v61, %v4950_v9  ;;  %v4980_v44 = vadd.f32 %v4972_v50, %v4951_v39  ;;  %v4981_v29 = vadd.f32 %v4973_v8, %v4952_v10  ;;  %v4982_v16 = vadd.f32 %v4974_v13, %v4953_v37  ;;  %13440 = vst [vmem:[#allocation50_spill] sm:$0xff] %v10709_v38  ;;  %v7981_v13 = vld [vmem:[%s9520_s21 + $0x198] sm:$0xff] }
 0x26e   : > { %v4983_v28 = vadd.f32 %v4975_v60, %v4954_v41  ;;  %v4984_v45 = vadd.f32 %v4976_v22, %v4955_v34  ;;  %v4985_v54 = vadd.f32 %v4977_v51, %v4956_v36  ;;  %13441 = vst [vmem:[#allocation47_spill] sm:$0xff] %v10712_v58  ;;  %13443 = vst [vmem:[#allocation52_spill] sm:$0xff] %v10718_v40  ;;  %v7978_v34 = vld [vmem:[%s9520_s21 + $0x180] sm:$0xff]  ;;  %v7979_v36 = vld [vmem:[%s9520_s21 + $0x188] sm:$0xff] }
 0x26f   : > { %v5008_v24 = vrot.slane %v5003_v48, %v13433_v0  ;;  %v5012_v21 = vrot.slane %v5003_v48, %v13424_v5  ;;  %v5037_v62 = vrot.slane %v5032_v53, %v13433_v0  ;;  %v5041_v9 = vrot.slane %v5032_v53, %v13424_v5  ;;  %v7980_v48 = vld [vmem:[%s9520_s21 + $0x190] sm:$0xff]  ;;  %v10741_v60 = vld [vmem:[%s9520_s21 + $0x1a0] sm:$0xff] }
 0x270   : > { %v10725_v39 = vrot.slane %v5077_v42, %v13433_v0  ;;  %v10728_v10 = vrot.slane %v5077_v42, %v13424_v5  ;;  %v10731_v37 = vrot.slane %v5106_v18, %v13433_v0  ;;  %v10734_v41 = vrot.slane %v5106_v18, %v13424_v5  ;;  %13444 = vst [vmem:[#allocation40_spill] sm:$0xff] %v10741_v60  ;;  %v10748_v18 = vld [vmem:[%s9520_s21 + $0x1a8] sm:$0xff] }
 0x271   : > { %v5015_v15 = vmul.f32 %v7970_v1, %v5008_v24  ;;  %v5016_v61 = vmul.f32 %v7971_v32, %v5012_v21  ;;  %v5017_v50 = vmul.f32 %v7972_v27, %v5008_v24  ;;  %v5018_v8 = vmul.f32 %v7973_v43, %v5012_v21  ;;  %13445 = vst [vmem:[#allocation43_spill] sm:$0xff] %v10748_v18  ;;  %v10751_v1 = vld [vmem:[%s9520_s21 + $0x1b0] sm:$0xff]  ;;  %v10754_v32 = vld [vmem:[%s9520_s21 + $0x1b8] sm:$0xff] }
 0x272   : > { %v5019_v22 = vmul.f32 %v10709_v38, %v5008_v24  ;;  %v5020_v51 = vmul.f32 %v10712_v58, %v5012_v21  ;;  %v5021_v53 = vmul.f32 %v10715_v12, %v5008_v24  ;;  %v5022_v42 = vmul.f32 %v10718_v40, %v5012_v21  ;;  %13446 = vst [vmem:[#allocation45_spill] sm:$0xff] %v10751_v1 }
 0x273   : > { %13447 = vst [vmem:[#allocation48_spill] sm:$0xff] %v10754_v32  ;;  %v5023_v27 = vadd.f32 %v5015_v15, %v4978_v6  ;;  %v5024_v43 = vadd.f32 %v5016_v61, %v4979_v33  ;;  %v5025_v49 = vadd.f32 %v5017_v50, %v4980_v44  ;;  %v5026_v4 = vadd.f32 %v5018_v8, %v4981_v29  ;;  %v10768_v61 = vld [vmem:[%s9517_s16 + $0x228] sm:$0xff]  ;;  %v10771_v50 = vld [vmem:[%s9517_s16 + $0x230] sm:$0xff] }
 0x274   : > { %v5027_v38 = vadd.f32 %v5019_v22, %v4982_v16  ;;  %v5028_v58 = vadd.f32 %v5020_v51, %v4983_v28  ;;  %v5029_v24 = vadd.f32 %v5021_v53, %v4984_v45  ;;  %v5030_v12 = vadd.f32 %v5022_v42, %v4985_v54  ;;  %v7988_v16 = vld [vmem:[%s9517_s16 + $0x210] sm:$0xff]  ;;  %v7989_v28 = vld [vmem:[%s9517_s16 + $0x218] sm:$0xff]  ;;  %v10765_v45 = vld [vmem:[%s9517_s16 + $0x220] sm:$0xff]  ;;  %13449 = vst [vmem:[#allocation39_spill] sm:$0xff] %v10768_v61 }
 0x275   : > { %v5044_v21 = vmul.f32 %v7978_v34, %v5037_v62  ;;  %v5045_v40 = vmul.f32 %v7979_v36, %v5041_v9  ;;  %v5046_v46 = vmul.f32 %v7980_v48, %v5037_v62  ;;  %v5047_v47 = vmul.f32 %v7981_v13, %v5041_v9  ;;  %13448 = vst [vmem:[#allocation53_spill] sm:$0xff] %v10765_v45  ;;  %v7994_v22 = vld [vmem:[%s9520_s21 + $0x200] sm:$0xff]  ;;  %v7996_v51 = vld [vmem:[%s9520_s21 + $0x210] sm:$0xff]  ;;  %v7997_v53 = vld [vmem:[%s9520_s21 + $0x218] sm:$0xff] }
 0x276   : > { %v5048_v6 = vmul.f32 %v10741_v60, %v5037_v62  ;;  %v5049_v33 = vmul.f32 %v10748_v18, %v5041_v9  ;;  %v5050_v44 = vmul.f32 %v10751_v1, %v5037_v62  ;;  %v5051_v29 = vmul.f32 %v10754_v32, %v5041_v9  ;;  %13450 = vst [vmem:[#allocation55_spill] sm:$0xff] %v10771_v50  ;;  %v10774_v62 = vld [vmem:[%s9517_s16 + $0x238] sm:$0xff]  ;;  %v10785_v42 = vld [vmem:[%s9520_s21 + $0x220] sm:$0xff]  ;;  %v8019_v60 = vld [vmem:[%s9517_s16 + $0x308] sm:$0xff] }
 0x277   : > { %v5052_v54 = vadd.f32 %v5044_v21, %v5023_v27  ;;  %v5053_v34 = vadd.f32 %v5045_v40, %v5024_v43  ;;  %v5054_v36 = vadd.f32 %v5046_v46, %v5025_v49  ;;  %v5055_v15 = vadd.f32 %v5047_v47, %v5026_v4  ;;  %13451 = vst [vmem:[#allocation56_spill] sm:$0xff] %v10774_v62  ;;  %v7995_v40 = vld [vmem:[%s9520_s21 + $0x208] sm:$0xff]  ;;  %v10799_v27 = vld [vmem:[%s9520_s21 + $0x230] sm:$0xff]  ;;  %v10802_v43 = vld [vmem:[%s9520_s21 + $0x238] sm:$0xff] }
 0x278   : > { %v5056_v8 = vadd.f32 %v5048_v6, %v5027_v38  ;;  %v5057_v9 = vadd.f32 %v5049_v33, %v5028_v58  ;;  %v5058_v48 = vadd.f32 %v5050_v44, %v5029_v24  ;;  %v5059_v13 = vadd.f32 %v5051_v29, %v5030_v12  ;;  %13452 = vst [vmem:[#allocation57_spill] sm:$0xff] %v10785_v42  ;;  %v8018_v18 = vld [vmem:[%s9517_s16 + $0x300] sm:$0xff] }
 0x279   : > { %v5089_v46 = vmul.f32 %v7986_v25, %v10725_v39  ;;  %v5090_v47 = vmul.f32 %v7987_v11, %v10728_v10  ;;  %v5091_v4 = vmul.f32 %v7988_v16, %v10725_v39  ;;  %v5092_v49 = vmul.f32 %v7989_v28, %v10728_v10  ;;  %v10796_v25 = vld [vmem:[%s9520_s21 + $0x228] sm:$0xff]  ;;  %13454 = vst [vmem:[#allocation59_spill] sm:$0xff] %v10799_v27 }
 0x27a   : > { %v5093_v38 = vmul.f32 %v10765_v45, %v10725_v39  ;;  %v5094_v58 = vmul.f32 %v10768_v61, %v10728_v10  ;;  %v5095_v12 = vmul.f32 %v10771_v50, %v10725_v39  ;;  %v5096_v11 = vmul.f32 %v10774_v62, %v10728_v10  ;;  %13453 = vst [vmem:[#allocation58_spill] sm:$0xff] %v10796_v25  ;;  %v5151_v61 = vld [vmem:[#allocation16 + $0x5] ss:$8 sm:$0x3] }
 0x27b   : > { %13455 = vst [vmem:[#allocation60_spill] sm:$0xff] %v10802_v43  ;;  %v5097_v24 = vadd.f32 %v5089_v46, %v5052_v54  ;;  %v5098_v21 = vadd.f32 %v5090_v47, %v5053_v34  ;;  %v5099_v6 = vadd.f32 %v5091_v4, %v5054_v36  ;;  %v5100_v33 = vadd.f32 %v5092_v49, %v5055_v15  ;;  %v5225_v47 = vld [vmem:[#allocation16 + $0x6] ss:$8 sm:$0x3] }
 0x27c   : > { %v5101_v44 = vadd.f32 %v5093_v38, %v5056_v8  ;;  %v5102_v29 = vadd.f32 %v5094_v58, %v5057_v9  ;;  %v5103_v16 = vadd.f32 %v5095_v12, %v5058_v48  ;;  %v5104_v28 = vadd.f32 %v5096_v11, %v5059_v13  ;;  %v8002_v8 = vld [vmem:[%s9517_s16 + $0x280] sm:$0xff]  ;;  %v8003_v9 = vld [vmem:[%s9517_s16 + $0x288] sm:$0xff]  ;;  %v8005_v38 = vld [vmem:[%s9517_s16 + $0x298] sm:$0xff] }
 0x27d   : > { %v5118_v39 = vmul.f32 %v7994_v22, %v10731_v37  ;;  %v5119_v10 = vmul.f32 %v7995_v40, %v10734_v41  ;;  %v5120_v62 = vmul.f32 %v7996_v51, %v10731_v37  ;;  %v5121_v50 = vmul.f32 %v7997_v53, %v10734_v41  ;;  %v5180_v48 = vld [vmem:[#allocation17 + $0x5] ss:$8 sm:$0x3]  ;;  %v5254_v4 = vld [vmem:[#allocation17 + $0x6] ss:$8 sm:$0x3] }
 0x27e   : > { %v5122_v54 = vmul.f32 %v10785_v42, %v10731_v37  ;;  %v5123_v34 = vmul.f32 %v10796_v25, %v10734_v41  ;;  %v5124_v36 = vmul.f32 %v10799_v27, %v10731_v37  ;;  %v5125_v15 = vmul.f32 %v10802_v43, %v10734_v41  ;;  %v8004_v41 = vld [vmem:[%s9517_s16 + $0x290] sm:$0xff]  ;;  %v10821_v58 = vld [vmem:[%s9517_s16 + $0x2a0] sm:$0xff]  ;;  %v10824_v12 = vld [vmem:[%s9517_s16 + $0x2a8] sm:$0xff] }
 0x27f   : > { %v5126_v13 = vadd.f32 %v5118_v39, %v5097_v24  ;;  %v5127_v22 = vadd.f32 %v5119_v10, %v5098_v21  ;;  %v5128_v40 = vadd.f32 %v5120_v62, %v5099_v6  ;;  %v5129_v46 = vadd.f32 %v5121_v50, %v5100_v33  ;;  %13456 = vst [vmem:[#allocation61_spill] sm:$0xff] %v10821_v58  ;;  %v10827_v11 = vld [vmem:[%s9517_s16 + $0x2b0] sm:$0xff]  ;;  %v10830_v24 = vld [vmem:[%s9517_s16 + $0x2b8] sm:$0xff]  ;;  %v10860_v25 = vld [vmem:[%s9520_s21 + $0x2a8] sm:$0xff] }
 0x280   : > { %v5130_v49 = vadd.f32 %v5122_v54, %v5101_v44  ;;  %v5131_v51 = vadd.f32 %v5123_v34, %v5102_v29  ;;  %v5132_v37 = vadd.f32 %v5124_v36, %v5103_v16  ;;  %v5133_v53 = vadd.f32 %v5125_v15, %v5104_v28  ;;  %13457 = vst [vmem:[#allocation62_spill] sm:$0xff] %v10824_v12  ;;  %v8011_v28 = vld [vmem:[%s9520_s21 + $0x288] sm:$0xff]  ;;  %v8012_v36 = vld [vmem:[%s9520_s21 + $0x290] sm:$0xff]  ;;  %v8013_v15 = vld [vmem:[%s9520_s21 + $0x298] sm:$0xff] }
 0x281   : > { %13458 = vst [vmem:[#allocation63_spill] sm:$0xff] %v10827_v11  ;;  %13459 = vst [vmem:[#allocation64_spill] sm:$0xff] %v10830_v24  ;;  %v5156_v50 = vrot.slane %v5151_v61, %v13433_v0  ;;  %v5160_v62 = vrot.slane %v5151_v61, %v13424_v5  ;;  %v5185_v21 = vrot.slane %v5180_v48, %v13433_v0  ;;  %v8010_v61 = vld [vmem:[%s9520_s21 + $0x280] sm:$0xff] }
 0x282   : > { %v5189_v6 = vrot.slane %v5180_v48, %v13424_v5  ;;  %v10837_v33 = vrot.slane %v5225_v47, %v13433_v0  ;;  %v10840_v44 = vrot.slane %v5225_v47, %v13424_v5  ;;  %v10843_v29 = vrot.slane %v5254_v4, %v13433_v0  ;;  %v10853_v48 = vld [vmem:[%s9520_s21 + $0x2a0] sm:$0xff]  ;;  %13461 = vst [vmem:[#allocation66_spill] sm:$0xff] %v10860_v25 }
 0x283   : > { %v10846_v16 = vrot.slane %v5254_v4, %v13424_v5  ;;  %v5163_v39 = vmul.f32 %v8002_v8, %v5156_v50  ;;  %v5164_v10 = vmul.f32 %v8003_v9, %v5160_v62  ;;  %v5165_v54 = vmul.f32 %v8004_v41, %v5156_v50  ;;  %13460 = vst [vmem:[#allocation65_spill] sm:$0xff] %v10853_v48  ;;  %v10863_v8 = vld [vmem:[%s9520_s21 + $0x2b0] sm:$0xff]  ;;  %v10866_v9 = vld [vmem:[%s9520_s21 + $0x2b8] sm:$0xff] }
 0x284   : > { %v5166_v34 = vmul.f32 %v8005_v38, %v5160_v62  ;;  %v5167_v47 = vmul.f32 %v10821_v58, %v5156_v50  ;;  %v5168_v43 = vmul.f32 %v10824_v12, %v5160_v62  ;;  %v5169_v27 = vmul.f32 %v10827_v11, %v5156_v50  ;;  %13462 = vst [vmem:[#allocation67_spill] sm:$0xff] %v10863_v8 }
 0x285   : > { %v5170_v4 = vmul.f32 %v10830_v24, %v5160_v62  ;;  %13463 = vst [vmem:[#allocation68_spill] sm:$0xff] %v10866_v9  ;;  %v5171_v41 = vadd.f32 %v5163_v39, %v5126_v13  ;;  %v5172_v38 = vadd.f32 %v5164_v10, %v5127_v22  ;;  %v5173_v42 = vadd.f32 %v5165_v54, %v5128_v40  ;;  %v10883_v39 = vld [vmem:[%s9517_s16 + $0x330] sm:$0xff] }
 0x286   : > { %v5174_v45 = vadd.f32 %v5166_v34, %v5129_v46  ;;  %v5175_v58 = vadd.f32 %v5167_v47, %v5130_v49  ;;  %v5176_v12 = vadd.f32 %v5168_v43, %v5131_v51  ;;  %v5177_v50 = vadd.f32 %v5169_v27, %v5132_v37  ;;  %v8020_v27 = vld [vmem:[%s9517_s16 + $0x310] sm:$0xff]  ;;  %v8021_v46 = vld [vmem:[%s9517_s16 + $0x318] sm:$0xff]  ;;  %v10877_v49 = vld [vmem:[%s9517_s16 + $0x320] sm:$0xff]  ;;  %13466 = vst [vmem:[#allocation71_spill] sm:$0xff] %v10883_v39 }
 0x287   : > { %v5178_v11 = vadd.f32 %v5170_v4, %v5133_v53  ;;  %v5192_v62 = vmul.f32 %v8010_v61, %v5185_v21  ;;  %v5193_v24 = vmul.f32 %v8011_v28, %v5189_v6  ;;  %v5194_v32 = vmul.f32 %v8012_v36, %v5185_v21  ;;  %13464 = vst [vmem:[#allocation69_spill] sm:$0xff] %v10877_v49  ;;  %v10880_v28 = vld [vmem:[%s9517_s16 + $0x328] sm:$0xff]  ;;  %v8026_v36 = vld [vmem:[%s9520_s21 + $0x300] sm:$0xff]  ;;  %v8029_v47 = vld [vmem:[%s9520_s21 + $0x318] sm:$0xff] }
 0x288   : > { %v5195_v1 = vmul.f32 %v8013_v15, %v5189_v6  ;;  %v5196_v13 = vmul.f32 %v10853_v48, %v5185_v21  ;;  %v5197_v22 = vmul.f32 %v10860_v25, %v5189_v6  ;;  %v5198_v40 = vmul.f32 %v10863_v8, %v5185_v21  ;;  %13465 = vst [vmem:[#allocation70_spill] sm:$0xff] %v10880_v28  ;;  %v10886_v21 = vld [vmem:[%s9517_s16 + $0x338] sm:$0xff]  ;;  %v8028_v15 = vld [vmem:[%s9520_s21 + $0x310] sm:$0xff]  ;;  %v10897_v4 = vld [vmem:[%s9520_s21 + $0x320] sm:$0xff] }
 0x289   : > { %v5199_v43 = vmul.f32 %v10866_v9, %v5189_v6  ;;  %v5200_v51 = vadd.f32 %v5192_v62, %v5171_v41  ;;  %v5201_v37 = vadd.f32 %v5193_v24, %v5172_v38  ;;  %v5202_v53 = vadd.f32 %v5194_v32, %v5173_v42  ;;  %13467 = vst [vmem:[#allocation72_spill] sm:$0xff] %v10886_v21  ;;  %v8027_v24 = vld [vmem:[%s9520_s21 + $0x308] sm:$0xff]  ;;  %v10911_v41 = vld [vmem:[%s9520_s21 + $0x330] sm:$0xff]  ;;  %v10914_v38 = vld [vmem:[%s9520_s21 + $0x338] sm:$0xff] }
 0x28a   : > { %v5203_v61 = vadd.f32 %v5195_v1, %v5174_v45  ;;  %v5204_v10 = vadd.f32 %v5196_v13, %v5175_v58  ;;  %v5205_v6 = vadd.f32 %v5197_v22, %v5176_v12  ;;  %v5206_v54 = vadd.f32 %v5198_v40, %v5177_v50  ;;  %13468 = vst [vmem:[#allocation73_spill] sm:$0xff] %v10897_v4  ;;  %v8050_v25 = vld [vmem:[%s9517_s16 + $0x400] sm:$0xff]  ;;  %v8051_v48 = vld [vmem:[%s9517_s16 + $0x408] sm:$0xff] }
 0x28b   : > { %v5207_v34 = vadd.f32 %v5199_v43, %v5178_v11  ;;  %v5237_v32 = vmul.f32 %v8018_v18, %v10837_v33  ;;  %v5238_v1 = vmul.f32 %v8019_v60, %v10840_v44  ;;  %v5239_v45 = vmul.f32 %v8020_v27, %v10837_v33  ;;  %v10908_v18 = vld [vmem:[%s9520_s21 + $0x328] sm:$0xff]  ;;  %13470 = vst [vmem:[#allocation75_spill] sm:$0xff] %v10911_v41 }
 0x28c   : > { %v5240_v42 = vmul.f32 %v8021_v46, %v10840_v44  ;;  %v5241_v58 = vmul.f32 %v10877_v49, %v10837_v33  ;;  %v5242_v12 = vmul.f32 %v10880_v28, %v10840_v44  ;;  %v5243_v11 = vmul.f32 %v10883_v39, %v10837_v33  ;;  %13469 = vst [vmem:[#allocation74_spill] sm:$0xff] %v10908_v18  ;;  %v5299_v28 = vld [vmem:[#allocation16 + $0x7] ss:$8 sm:$0x3] }
 0x28d   : > { %v5244_v60 = vmul.f32 %v10886_v21, %v10840_v44  ;;  %13471 = vst [vmem:[#allocation76_spill] sm:$0xff] %v10914_v38  ;;  %v5245_v50 = vadd.f32 %v5237_v32, %v5200_v51  ;;  %v5246_v62 = vadd.f32 %v5238_v1, %v5201_v37  ;;  %v5247_v13 = vadd.f32 %v5239_v45, %v5202_v53  ;;  %v5373_v1 = vld [vmem:[#allocation16 + $0x10] ss:$8 sm:$0x3] }
 0x28e   : > { %v5248_v22 = vadd.f32 %v5240_v42, %v5203_v61  ;;  %v5249_v40 = vadd.f32 %v5241_v58, %v5204_v10  ;;  %v5250_v43 = vadd.f32 %v5242_v12, %v5205_v6  ;;  %v5251_v27 = vadd.f32 %v5243_v11, %v5206_v54  ;;  %v8034_v10 = vld [vmem:[%s9517_s16 + $0x380] sm:$0xff]  ;;  %v8035_v6 = vld [vmem:[%s9517_s16 + $0x388] sm:$0xff]  ;;  %v5402_v45 = vld [vmem:[#allocation17 + $0x10] ss:$8 sm:$0x3] }
 0x28f   : > { %v5252_v46 = vadd.f32 %v5244_v60, %v5207_v34  ;;  %v5266_v33 = vmul.f32 %v8026_v36, %v10843_v29  ;;  %v5267_v44 = vmul.f32 %v8027_v24, %v10846_v16  ;;  %v5268_v21 = vmul.f32 %v8028_v15, %v10843_v29  ;;  %v5328_v54 = vld [vmem:[#allocation17 + $0x7] ss:$8 sm:$0x3]  ;;  %v8037_v58 = vld [vmem:[%s9517_s16 + $0x398] sm:$0xff]  ;;  %v10939_v60 = vld [vmem:[%s9517_s16 + $0x3b0] sm:$0xff] }
 0x290   : > { %v5269_v39 = vmul.f32 %v8029_v47, %v10846_v16  ;;  %v5270_v51 = vmul.f32 %v10897_v4, %v10843_v29  ;;  %v5271_v37 = vmul.f32 %v10908_v18, %v10846_v16  ;;  %v5272_v53 = vmul.f32 %v10911_v41, %v10843_v29  ;;  %v10933_v12 = vld [vmem:[%s9517_s16 + $0x3a0] sm:$0xff]  ;;  %v10936_v11 = vld [vmem:[%s9517_s16 + $0x3a8] sm:$0xff]  ;;  %13474 = vst [vmem:[#allocation79_spill] sm:$0xff] %v10939_v60 }
 0x291   : > { %v5273_v61 = vmul.f32 %v10914_v38, %v10846_v16  ;;  %v5274_v34 = vadd.f32 %v5266_v33, %v5245_v50  ;;  %v5275_v36 = vadd.f32 %v5267_v44, %v5246_v62  ;;  %v5276_v24 = vadd.f32 %v5268_v21, %v5247_v13  ;;  %v8036_v16 = vld [vmem:[%s9517_s16 + $0x390] sm:$0xff]  ;;  %13472 = vst [vmem:[#allocation77_spill] sm:$0xff] %v10933_v12  ;;  %v10942_v50 = vld [vmem:[%s9517_s16 + $0x3b8] sm:$0xff]  ;;  %v10972_v18 = vld [vmem:[%s9520_s21 + $0x3a8] sm:$0xff] }
 0x292   : > { %v5277_v32 = vadd.f32 %v5269_v39, %v5248_v22  ;;  %v5278_v42 = vadd.f32 %v5270_v51, %v5249_v40  ;;  %v5279_v15 = vadd.f32 %v5271_v37, %v5250_v43  ;;  %v5280_v29 = vadd.f32 %v5272_v53, %v5251_v27  ;;  %13473 = vst [vmem:[#allocation78_spill] sm:$0xff] %v10936_v11  ;;  %v8044_v53 = vld [vmem:[%s9520_s21 + $0x390] sm:$0xff] }
 0x293   : > { %v5281_v47 = vadd.f32 %v5273_v61, %v5252_v46  ;;  %13475 = vst [vmem:[#allocation80_spill] sm:$0xff] %v10942_v50  ;;  %v5304_v39 = vrot.slane %v5299_v28, %v13433_v0  ;;  %v5308_v21 = vrot.slane %v5299_v28, %v13424_v5  ;;  %v5333_v62 = vrot.slane %v5328_v54, %v13433_v0  ;;  %v8042_v28 = vld [vmem:[%s9520_s21 + $0x380] sm:$0xff]  ;;  %v8043_v46 = vld [vmem:[%s9520_s21 + $0x388] sm:$0xff]  ;;  %v8045_v61 = vld [vmem:[%s9520_s21 + $0x398] sm:$0xff] }
 0x294   : > { %v5337_v13 = vrot.slane %v5328_v54, %v13424_v5  ;;  %v10949_v22 = vrot.slane %v5373_v1, %v13433_v0  ;;  %v10952_v40 = vrot.slane %v5373_v1, %v13424_v5  ;;  %v10955_v43 = vrot.slane %v5402_v45, %v13433_v0  ;;  %v10965_v54 = vld [vmem:[%s9520_s21 + $0x3a0] sm:$0xff] }
 0x295   : > { %v10958_v27 = vrot.slane %v5402_v45, %v13424_v5  ;;  %v5311_v33 = vmul.f32 %v8034_v10, %v5304_v39  ;;  %v5312_v44 = vmul.f32 %v8035_v6, %v5308_v21  ;;  %v5313_v51 = vmul.f32 %v8036_v16, %v5304_v39  ;;  %v10975_v10 = vld [vmem:[%s9520_s21 + $0x3b0] sm:$0xff]  ;;  %v10978_v6 = vld [vmem:[%s9520_s21 + $0x3b8] sm:$0xff] }
 0x296   : > { %v5314_v37 = vmul.f32 %v8037_v58, %v5308_v21  ;;  %v5315_v1 = vmul.f32 %v10933_v12, %v5304_v39  ;;  %v5316_v38 = vmul.f32 %v10936_v11, %v5308_v21  ;;  %v5317_v41 = vmul.f32 %v10939_v60, %v5304_v39 }
 0x297   : > { %v5318_v45 = vmul.f32 %v10942_v50, %v5308_v21  ;;  %v5319_v16 = vadd.f32 %v5311_v33, %v5274_v34  ;;  %v5320_v58 = vadd.f32 %v5312_v44, %v5275_v36  ;;  %v5321_v4 = vadd.f32 %v5313_v51, %v5276_v24  ;;  %v10995_v33 = vld [vmem:[%s9517_s16 + $0x430] sm:$0xff] }
 0x298   : > { %v5322_v49 = vadd.f32 %v5314_v37, %v5277_v32  ;;  %v5323_v12 = vadd.f32 %v5315_v1, %v5278_v42  ;;  %v5324_v11 = vadd.f32 %v5316_v38, %v5279_v15  ;;  %v5325_v39 = vadd.f32 %v5317_v41, %v5280_v29  ;;  %v8052_v41 = vld [vmem:[%s9517_s16 + $0x410] sm:$0xff]  ;;  %v8053_v32 = vld [vmem:[%s9517_s16 + $0x418] sm:$0xff]  ;;  %v10989_v42 = vld [vmem:[%s9517_s16 + $0x420] sm:$0xff]  ;;  %13477 = vst [vmem:[#allocation82_spill] sm:$0xff] %v10995_v33 }
 0x299   : > { %v5326_v60 = vadd.f32 %v5318_v45, %v5281_v47  ;;  %v5340_v21 = vmul.f32 %v8042_v28, %v5333_v62  ;;  %v5341_v50 = vmul.f32 %v8043_v46, %v5337_v13  ;;  %v5342_v9 = vmul.f32 %v8044_v53, %v5333_v62  ;;  %v10992_v46 = vld [vmem:[%s9517_s16 + $0x428] sm:$0xff]  ;;  %v8058_v53 = vld [vmem:[%s9520_s21 + $0x400] sm:$0xff]  ;;  %v8061_v1 = vld [vmem:[%s9520_s21 + $0x418] sm:$0xff] }
 0x29a   : > { %v5343_v8 = vmul.f32 %v8045_v61, %v5337_v13  ;;  %v5344_v34 = vmul.f32 %v10965_v54, %v5333_v62  ;;  %v5345_v36 = vmul.f32 %v10972_v18, %v5337_v13  ;;  %v5346_v24 = vmul.f32 %v10975_v10, %v5333_v62  ;;  %13476 = vst [vmem:[#allocation81_spill] sm:$0xff] %v10992_v46  ;;  %v10998_v62 = vld [vmem:[%s9517_s16 + $0x438] sm:$0xff]  ;;  %v8060_v61 = vld [vmem:[%s9520_s21 + $0x410] sm:$0xff]  ;;  %v11009_v45 = vld [vmem:[%s9520_s21 + $0x420] sm:$0xff] }
 0x29b   : > { %v5347_v38 = vmul.f32 %v10978_v6, %v5337_v13  ;;  %v5348_v15 = vadd.f32 %v5340_v21, %v5319_v16  ;;  %v5349_v29 = vadd.f32 %v5341_v50, %v5320_v58  ;;  %v5350_v47 = vadd.f32 %v5342_v9, %v5321_v4  ;;  %13478 = vst [vmem:[#allocation83_spill] sm:$0xff] %v10998_v62  ;;  %v8059_v50 = vld [vmem:[%s9520_s21 + $0x408] sm:$0xff]  ;;  %v11023_v16 = vld [vmem:[%s9520_s21 + $0x430] sm:$0xff]  ;;  %v11026_v58 = vld [vmem:[%s9520_s21 + $0x438] sm:$0xff] }
 0x29c   : > { %v5351_v28 = vadd.f32 %v5343_v8, %v5322_v49  ;;  %v5352_v44 = vadd.f32 %v5344_v34, %v5323_v12  ;;  %v5353_v13 = vadd.f32 %v5345_v36, %v5324_v11  ;;  %v5354_v51 = vadd.f32 %v5346_v24, %v5325_v39 }
 0x29d   : > { %v5355_v37 = vadd.f32 %v5347_v38, %v5326_v60  ;;  %v5385_v9 = vmul.f32 %v8050_v25, %v10949_v22  ;;  %v5386_v8 = vmul.f32 %v8051_v48, %v10952_v40  ;;  %v5387_v49 = vmul.f32 %v8052_v41, %v10949_v22  ;;  %v11020_v48 = vld [vmem:[%s9520_s21 + $0x428] sm:$0xff] }
 0x29e   : > { %v5388_v4 = vmul.f32 %v8053_v32, %v10952_v40  ;;  %v5389_v12 = vmul.f32 %v10989_v42, %v10949_v22  ;;  %v5390_v11 = vmul.f32 %v10992_v46, %v10952_v40  ;;  %v5391_v60 = vmul.f32 %v10995_v33, %v10949_v22 }
 0x29f   : > { %v5392_v25 = vmul.f32 %v10998_v62, %v10952_v40  ;;  %v5393_v39 = vadd.f32 %v5385_v9, %v5348_v15  ;;  %v5394_v21 = vadd.f32 %v5386_v8, %v5349_v29  ;;  %v5395_v34 = vadd.f32 %v5387_v49, %v5350_v47  ;;  %v5550_v9 = vld [vmem:[#allocation17 + $0x12] ss:$8 sm:$0x3] }
 0x2a0   : > { %v5396_v36 = vadd.f32 %v5388_v4, %v5351_v28  ;;  %v5397_v24 = vadd.f32 %v5389_v12, %v5352_v44  ;;  %v5398_v38 = vadd.f32 %v5390_v11, %v5353_v13  ;;  %v5399_v41 = vadd.f32 %v5391_v60, %v5354_v51  ;;  %v5447_v28 = vld [vmem:[#allocation16 + $0x11] ss:$8 sm:$0x3] }
 0x2a1   : > { %v5400_v32 = vadd.f32 %v5392_v25, %v5355_v37  ;;  %v5414_v46 = vmul.f32 %v8058_v53, %v10955_v43  ;;  %v5415_v22 = vmul.f32 %v8059_v50, %v10958_v27  ;;  %v5416_v40 = vmul.f32 %v8060_v61, %v10955_v43  ;;  %v5476_v44 = vld [vmem:[#allocation17 + $0x11] ss:$8 sm:$0x3]  ;;  %v5521_v50 = vld [vmem:[#allocation16 + $0x12] ss:$8 sm:$0x3] }
 0x2a2   : > { %v5417_v62 = vmul.f32 %v8061_v1, %v10958_v27  ;;  %v5418_v33 = vmul.f32 %v11009_v45, %v10955_v43  ;;  %v5419_v15 = vmul.f32 %v11020_v48, %v10958_v27  ;;  %v5420_v29 = vmul.f32 %v11023_v16, %v10955_v43  ;;  %v11041_v1 = vld [vmem:[%s9517_s16 + $0x40] sm:$0xff]  ;;  %v11044_v43 = vld [vmem:[%s9517_s16 + $0x48] sm:$0xff]  ;;  %v11047_v12 = vld [vmem:[%s9517_s16 + $0x50] sm:$0xff] }
 0x2a3   : > { %v5421_v47 = vmul.f32 %v11026_v58, %v10958_v27  ;;  %v5422_v13 = vadd.f32 %v5414_v46, %v5393_v39  ;;  %v5423_v51 = vadd.f32 %v5415_v22, %v5394_v21  ;;  %v5424_v37 = vadd.f32 %v5416_v40, %v5395_v34  ;;  %13479 = vst [vmem:[#allocation84_spill] sm:$0xff] %v11044_v43  ;;  %v11050_v27 = vld [vmem:[%s9517_s16 + $0x58] sm:$0xff] }
 0x2a4   : > { %v5425_v53 = vadd.f32 %v5417_v62, %v5396_v36  ;;  %v5426_v8 = vadd.f32 %v5418_v33, %v5397_v24  ;;  %v5427_v49 = vadd.f32 %v5419_v15, %v5398_v38  ;;  %v5428_v4 = vadd.f32 %v5420_v29, %v5399_v41  ;;  %13480 = vst [vmem:[#allocation85_spill] sm:$0xff] %v11047_v12  ;;  %v11069_v41 = vld [vmem:[%s9520_s21 + $0x40] sm:$0xff]  ;;  %v11076_v29 = vld [vmem:[%s9520_s21 + $0x48] sm:$0xff] }
 0x2a5   : > { %v5429_v61 = vadd.f32 %v5421_v47, %v5400_v32  ;;  %13481 = vst [vmem:[#allocation86_spill] sm:$0xff] %v11050_v27  ;;  %v5452_v46 = vrot.slane %v5447_v28, %v13433_v0  ;;  %v5456_v11 = vrot.slane %v5447_v28, %v13424_v5  ;;  %v5481_v62 = vrot.slane %v5476_v44, %v13433_v0  ;;  %v11079_v47 = vld [vmem:[%s9520_s21 + $0x50] sm:$0xff] }
 0x2a6   : > { %v5485_v33 = vrot.slane %v5476_v44, %v13424_v5  ;;  %v5526_v60 = vrot.slane %v5521_v50, %v13433_v0  ;;  %v5530_v25 = vrot.slane %v5521_v50, %v13424_v5  ;;  %v11059_v39 = vrot.slane %v5550_v9, %v13433_v0 }
 0x2a7   : > { %v11062_v21 = vrot.slane %v5550_v9, %v13424_v5  ;;  %v5459_v34 = vmul.f32 %v5452_v46, %v10549_v20  ;;  %v5460_v36 = vmul.f32 %v5456_v11, %v10552_v3  ;;  %v5461_v24 = vmul.f32 %v5452_v46, %v10555_v14  ;;  %v11082_v20 = vld [vmem:[%s9520_s21 + $0x58] sm:$0xff] }
 0x2a8   : > { %v5462_v38 = vmul.f32 %v5456_v11, %v10558_v59  ;;  %v5463_v32 = vmul.f32 %v11041_v1, %v5452_v46  ;;  %v5464_v22 = vmul.f32 %v11044_v43, %v5456_v11  ;;  %v5465_v40 = vmul.f32 %v11047_v12, %v5452_v46 }
 0x2a9   : > { %v5466_v15 = vmul.f32 %v11050_v27, %v5456_v11  ;;  %v5467_v3 = vadd.f32 %v5459_v34, %v5422_v13  ;;  %v5468_v14 = vadd.f32 %v5460_v36, %v5423_v51  ;;  %v5469_v59 = vadd.f32 %v5461_v24, %v5424_v37 }
 0x2aa   : > { %v5470_v28 = vadd.f32 %v5462_v38, %v5425_v53  ;;  %v5471_v44 = vadd.f32 %v5463_v32, %v5426_v8  ;;  %v5472_v50 = vadd.f32 %v5464_v22, %v5427_v49  ;;  %v5473_v9 = vadd.f32 %v5465_v40, %v5428_v4  ;;  %v11093_v8 = vld [vmem:[%s9517_s16 + $0xc0] sm:$0xff] }
 0x2ab   : > { %v5474_v43 = vadd.f32 %v5466_v15, %v5429_v61  ;;  %v5488_v46 = vmul.f32 %v5481_v62, %v10569_v56  ;;  %v5489_v11 = vmul.f32 %v5485_v33, %v10572_v26  ;;  %v5490_v27 = vmul.f32 %v5481_v62, %v10575_v31  ;;  %v11096_v26 = vld [vmem:[%s9517_s16 + $0xc8] sm:$0xff]  ;;  %v11099_v31 = vld [vmem:[%s9517_s16 + $0xd0] sm:$0xff]  ;;  %v11109_v32 = vld [vmem:[%s9520_s21 + $0xc0] sm:$0xff] }
 0x2ac   : > { %v5491_v12 = vmul.f32 %v5485_v33, %v10578_v55  ;;  %v5492_v13 = vmul.f32 %v11069_v41, %v5481_v62  ;;  %v5493_v51 = vmul.f32 %v11076_v29, %v5485_v33  ;;  %v5494_v37 = vmul.f32 %v11079_v47, %v5481_v62  ;;  %v11102_v55 = vld [vmem:[%s9517_s16 + $0xd8] sm:$0xff] }
 0x2ad   : > { %v5495_v53 = vmul.f32 %v11082_v20, %v5485_v33  ;;  %v5496_v49 = vadd.f32 %v5488_v46, %v5467_v3  ;;  %v5497_v4 = vadd.f32 %v5489_v11, %v5468_v14  ;;  %v5498_v56 = vadd.f32 %v5490_v27, %v5469_v59  ;;  %v11116_v14 = vld [vmem:[%s9520_s21 + $0xc8] sm:$0xff] }
 0x2ae   : > { %v5499_v61 = vadd.f32 %v5491_v12, %v5470_v28  ;;  %v5500_v34 = vadd.f32 %v5492_v13, %v5471_v44  ;;  %v5501_v62 = vadd.f32 %v5493_v51, %v5472_v50  ;;  %v5502_v36 = vadd.f32 %v5494_v37, %v5473_v9  ;;  %v5624_v37 = vld [vmem:[#allocation17 + $0x13] ss:$8 sm:$0x3] }
 0x2af   : > { %v5503_v33 = vadd.f32 %v5495_v53, %v5474_v43  ;;  %v5533_v24 = vmul.f32 %v10597_v17, %v5526_v60  ;;  %v5534_v38 = vmul.f32 %v10600_v35, %v5530_v25  ;;  %v5535_v27 = vmul.f32 %v10603_v52, %v5526_v60  ;;  %v11119_v43 = vld [vmem:[%s9520_s21 + $0xd0] sm:$0xff]  ;;  %v11122_v17 = vld [vmem:[%s9520_s21 + $0xd8] sm:$0xff] }
 0x2b0   : > { %v5536_v12 = vmul.f32 %v10606_v57, %v5530_v25  ;;  %v5537_v22 = vmul.f32 %v11093_v8, %v5526_v60  ;;  %v5538_v40 = vmul.f32 %v11096_v26, %v5530_v25  ;;  %v5539_v15 = vmul.f32 %v11099_v31, %v5526_v60  ;;  %13482 = vst [vmem:[#allocation87_spill] sm:$0xff] %v11119_v43 }
 0x2b1   : > { %v5540_v3 = vmul.f32 %v11102_v55, %v5530_v25  ;;  %13483 = vst [vmem:[#allocation88_spill] sm:$0xff] %v11122_v17  ;;  %v5541_v35 = vadd.f32 %v5533_v24, %v5496_v49  ;;  %v5542_v52 = vadd.f32 %v5534_v38, %v5497_v4  ;;  %v5543_v59 = vadd.f32 %v5535_v27, %v5498_v56  ;;  %v5669_v56 = vld [vmem:[#allocation16 + $0x14] ss:$8 sm:$0x3]  ;;  %v11141_v24 = vld [vmem:[%s9517_s16 + $0x140] sm:$0xff] }
 0x2b2   : > { %v5544_v57 = vadd.f32 %v5536_v12, %v5499_v61  ;;  %v5545_v28 = vadd.f32 %v5537_v22, %v5500_v34  ;;  %v5546_v44 = vadd.f32 %v5538_v40, %v5501_v62  ;;  %v5547_v50 = vadd.f32 %v5539_v15, %v5502_v36  ;;  %v5698_v61 = vld [vmem:[#allocation17 + $0x14] ss:$8 sm:$0x3]  ;;  %13484 = vst [vmem:[#allocation89_spill] sm:$0xff] %v11141_v24 }
 0x2b3   : > { %v5548_v9 = vadd.f32 %v5540_v3, %v5503_v33  ;;  %v5562_v46 = vmul.f32 %v10629_v23, %v11059_v39  ;;  %v5563_v60 = vmul.f32 %v10636_v63, %v11062_v21  ;;  %v5564_v25 = vmul.f32 %v10639_v19, %v11059_v39  ;;  %v5595_v19 = vld [vmem:[#allocation16 + $0x13] ss:$8 sm:$0x3] }
 0x2b4   : > { %v5565_v11 = vmul.f32 %v10642_v2, %v11062_v21  ;;  %v5566_v13 = vmul.f32 %v11109_v32, %v11059_v39  ;;  %v5567_v51 = vmul.f32 %v11116_v14, %v11062_v21  ;;  %v5568_v23 = vmul.f32 %v11119_v43, %v11059_v39  ;;  %v11144_v39 = vld [vmem:[%s9517_s16 + $0x148] sm:$0xff]  ;;  %v11147_v38 = vld [vmem:[%s9517_s16 + $0x150] sm:$0xff] }
 0x2b5   : > { %v5569_v63 = vmul.f32 %v11122_v17, %v11062_v21  ;;  %v5570_v53 = vadd.f32 %v5562_v46, %v5541_v35  ;;  %v5571_v2 = vadd.f32 %v5563_v60, %v5542_v52  ;;  %v5572_v49 = vadd.f32 %v5564_v25, %v5543_v59  ;;  %13485 = vst [vmem:[#allocation90_spill] sm:$0xff] %v11144_v39  ;;  %v11150_v21 = vld [vmem:[%s9517_s16 + $0x158] sm:$0xff]  ;;  %v11169_v46 = vld [vmem:[%s9520_s21 + $0x140] sm:$0xff] }
 0x2b6   : > { %v5573_v4 = vadd.f32 %v5565_v11, %v5544_v57  ;;  %v5574_v34 = vadd.f32 %v5566_v13, %v5545_v28  ;;  %v5575_v62 = vadd.f32 %v5567_v51, %v5546_v44  ;;  %v5576_v36 = vadd.f32 %v5568_v23, %v5547_v50  ;;  %13486 = vst [vmem:[#allocation91_spill] sm:$0xff] %v11147_v38  ;;  %v13488_v28 = vld [vmem:[#allocation54_spill] sm:$0xff]  ;;  %v13489_v50 = vld [vmem:[#allocation41_spill] sm:$0xff]  ;;  %v11176_v51 = vld [vmem:[%s9520_s21 + $0x148] sm:$0xff] }
 0x2b7   : > { %v5577_v33 = vadd.f32 %v5569_v63, %v5548_v9  ;;  %13487 = vst [vmem:[#allocation92_spill] sm:$0xff] %v11150_v21  ;;  %v5600_v27 = vrot.slane %v5595_v19, %v13433_v0  ;;  %v5604_v12 = vrot.slane %v5595_v19, %v13424_v5  ;;  %v5629_v22 = vrot.slane %v5624_v37, %v13433_v0  ;;  %v11179_v23 = vld [vmem:[%s9520_s21 + $0x150] sm:$0xff]  ;;  %v13497_v17 = vld [vmem:[#allocation46_spill] sm:$0xff] }
 0x2b8   : > { %v5633_v40 = vrot.slane %v5624_v37, %v13424_v5  ;;  %v5674_v15 = vrot.slane %v5669_v56, %v13433_v0  ;;  %v5678_v3 = vrot.slane %v5669_v56, %v13424_v5  ;;  %v11159_v35 = vrot.slane %v5698_v61, %v13433_v0  ;;  %13490 = vst [vmem:[#allocation54_spill] sm:$0xff] %v11169_v46 }
 0x2b9   : > { %v11162_v52 = vrot.slane %v5698_v61, %v13424_v5  ;;  %v5607_v59 = vmul.f32 %v10653_v7, %v5600_v27  ;;  %v5608_v57 = vmul.f32 %v10656_v30, %v5604_v12  ;;  %v5609_v44 = vmul.f32 %v13488_v28, %v5600_v27  ;;  %13491 = vst [vmem:[#allocation41_spill] sm:$0xff] %v11176_v51  ;;  %v11182_v7 = vld [vmem:[%s9520_s21 + $0x158] sm:$0xff] }
 0x2ba   : > { %v5610_v9 = vmul.f32 %v13489_v50, %v5604_v12  ;;  %v5611_v60 = vmul.f32 %v11141_v24, %v5600_v27  ;;  %v5612_v25 = vmul.f32 %v11144_v39, %v5604_v12  ;;  %v5613_v11 = vmul.f32 %v11147_v38, %v5600_v27  ;;  %13492 = vst [vmem:[#allocation93_spill] sm:$0xff] %v11179_v23  ;;  %v13494_v27 = vld [vmem:[#allocation42_spill] sm:$0xff]  ;;  %v13496_v39 = vld [vmem:[#allocation49_spill] sm:$0xff] }
 0x2bb   : > { %v5614_v13 = vmul.f32 %v11150_v21, %v5604_v12  ;;  %13493 = vst [vmem:[#allocation94_spill] sm:$0xff] %v11182_v7  ;;  %v5615_v30 = vadd.f32 %v5607_v59, %v5570_v53  ;;  %v5616_v63 = vadd.f32 %v5608_v57, %v5571_v2  ;;  %v5617_v19 = vadd.f32 %v5609_v44, %v5572_v49  ;;  %v13495_v21 = vld [vmem:[#allocation44_spill] sm:$0xff] }
 0x2bc   : > { %v5618_v37 = vadd.f32 %v5610_v9, %v5573_v4  ;;  %v5619_v56 = vadd.f32 %v5611_v60, %v5574_v34  ;;  %v5620_v61 = vadd.f32 %v5612_v25, %v5575_v62  ;;  %v5621_v28 = vadd.f32 %v5613_v11, %v5576_v36  ;;  %v11193_v34 = vld [vmem:[%s9517_s16 + $0x1c0] sm:$0xff]  ;;  %v13502_v9 = vld [vmem:[#allocation50_spill] sm:$0xff] }
 0x2bd   : > { %v5622_v50 = vadd.f32 %v5614_v13, %v5577_v33  ;;  %v5636_v12 = vmul.f32 %v13494_v27, %v5629_v22  ;;  %v5637_v38 = vmul.f32 %v13495_v21, %v5633_v40  ;;  %v5638_v24 = vmul.f32 %v13496_v39, %v5629_v22  ;;  %13498 = vst [vmem:[#allocation42_spill] sm:$0xff] %v11193_v34  ;;  %v11196_v21 = vld [vmem:[%s9517_s16 + $0x1c8] sm:$0xff]  ;;  %v11199_v39 = vld [vmem:[%s9517_s16 + $0x1d0] sm:$0xff]  ;;  %v13503_v25 = vld [vmem:[#allocation47_spill] sm:$0xff] }
 0x2be   : > { %v5639_v43 = vmul.f32 %v13497_v17, %v5633_v40  ;;  %v5640_v53 = vmul.f32 %v11169_v46, %v5629_v22  ;;  %v5641_v2 = vmul.f32 %v11176_v51, %v5633_v40  ;;  %v5642_v49 = vmul.f32 %v11179_v23, %v5629_v22  ;;  %13499 = vst [vmem:[#allocation44_spill] sm:$0xff] %v11196_v21  ;;  %v11202_v17 = vld [vmem:[%s9517_s16 + $0x1d8] sm:$0xff] }
 0x2bf   : > { %v5643_v4 = vmul.f32 %v11182_v7, %v5633_v40  ;;  %v5644_v62 = vadd.f32 %v5636_v12, %v5615_v30  ;;  %v5645_v36 = vadd.f32 %v5637_v38, %v5616_v63  ;;  %v5646_v33 = vadd.f32 %v5638_v24, %v5617_v19  ;;  %13500 = vst [vmem:[#allocation49_spill] sm:$0xff] %v11199_v39  ;;  %v13504_v38 = vld [vmem:[#allocation51_spill] sm:$0xff] }
 0x2c0   : > { %v5647_v59 = vadd.f32 %v5639_v43, %v5618_v37  ;;  %13501 = vst [vmem:[#allocation46_spill] sm:$0xff] %v11202_v17  ;;  %v5648_v57 = vadd.f32 %v5640_v53, %v5619_v56  ;;  %v5649_v22 = vadd.f32 %v5641_v2, %v5620_v61  ;;  %v5650_v44 = vadd.f32 %v5642_v49, %v5621_v28  ;;  %v13505_v43 = vld [vmem:[#allocation52_spill] sm:$0xff]  ;;  %v11209_v30 = vld [vmem:[%s9520_s21 + $0x1c0] sm:$0xff]  ;;  %v11219_v28 = vld [vmem:[%s9520_s21 + $0x1d0] sm:$0xff] }
 0x2c1   : > { %v5651_v40 = vadd.f32 %v5643_v4, %v5622_v50  ;;  %v5681_v60 = vmul.f32 %v13502_v9, %v5674_v15  ;;  %v5682_v11 = vmul.f32 %v13503_v25, %v5678_v3  ;;  %v5683_v24 = vmul.f32 %v13504_v38, %v5674_v15  ;;  %13506 = vst [vmem:[#allocation50_spill] sm:$0xff] %v11209_v30  ;;  %v11216_v61 = vld [vmem:[%s9520_s21 + $0x1c8] sm:$0xff]  ;;  %v11222_v50 = vld [vmem:[%s9520_s21 + $0x1d8] sm:$0xff] }
 0x2c2   : > { %v5684_v13 = vmul.f32 %v13505_v43, %v5678_v3  ;;  %v5685_v63 = vmul.f32 %v11193_v34, %v5674_v15  ;;  %v5686_v19 = vmul.f32 %v11196_v21, %v5678_v3  ;;  %v5687_v37 = vmul.f32 %v11199_v39, %v5674_v15  ;;  %13507 = vst [vmem:[#allocation47_spill] sm:$0xff] %v11216_v61  ;;  %v13510_v38 = vld [vmem:[#allocation40_spill] sm:$0xff]  ;;  %v13511_v15 = vld [vmem:[#allocation43_spill] sm:$0xff] }
 0x2c3   : > { %v5688_v56 = vmul.f32 %v11202_v17, %v5678_v3  ;;  %13508 = vst [vmem:[#allocation51_spill] sm:$0xff] %v11219_v28  ;;  %13509 = vst [vmem:[#allocation52_spill] sm:$0xff] %v11222_v50  ;;  %v5689_v27 = vadd.f32 %v5681_v60, %v5644_v62  ;;  %v5690_v12 = vadd.f32 %v5682_v11, %v5645_v36  ;;  %v13512_v17 = vld [vmem:[#allocation45_spill] sm:$0xff]  ;;  %v13513_v21 = vld [vmem:[#allocation48_spill] sm:$0xff] }
 0x2c4   : > { %v5691_v53 = vadd.f32 %v5683_v24, %v5646_v33  ;;  %v5692_v2 = vadd.f32 %v5684_v13, %v5647_v59  ;;  %v5693_v49 = vadd.f32 %v5685_v63, %v5648_v57  ;;  %v5694_v4 = vadd.f32 %v5686_v19, %v5649_v22  ;;  %v5743_v36 = vld [vmem:[#allocation16 + $0x15] ss:$8 sm:$0x3]  ;;  %v5846_v24 = vld [vmem:[#allocation17 + $0x16] ss:$8 sm:$0x3] }
 0x2c5   : > { %v5695_v9 = vadd.f32 %v5687_v37, %v5650_v44  ;;  %v5696_v25 = vadd.f32 %v5688_v56, %v5651_v40  ;;  %v5710_v43 = vmul.f32 %v13510_v38, %v11159_v35  ;;  %v5711_v3 = vmul.f32 %v13511_v15, %v11162_v52  ;;  %v5817_v44 = vld [vmem:[#allocation16 + $0x16] ss:$8 sm:$0x3]  ;;  %v11260_v19 = vld [vmem:[%s9517_s16 + $0x240] sm:$0xff]  ;;  %v11263_v37 = vld [vmem:[%s9517_s16 + $0x248] sm:$0xff] }
 0x2c6   : > { %v5712_v39 = vmul.f32 %v13512_v17, %v11159_v35  ;;  %v5713_v62 = vmul.f32 %v13513_v21, %v11162_v52  ;;  %v5714_v33 = vmul.f32 %v11209_v30, %v11159_v35  ;;  %v5715_v59 = vmul.f32 %v11216_v61, %v11162_v52  ;;  %v5772_v17 = vld [vmem:[#allocation17 + $0x15] ss:$8 sm:$0x3]  ;;  %13514 = vst [vmem:[#allocation40_spill] sm:$0xff] %v11260_v19  ;;  %v13521_v15 = vld [vmem:[#allocation39_spill] sm:$0xff] }
 0x2c7   : > { %v5716_v57 = vmul.f32 %v11219_v28, %v11159_v35  ;;  %v5717_v22 = vmul.f32 %v11222_v50, %v11162_v52  ;;  %v11240_v21 = vadd.f32 %v5710_v43, %v5689_v27  ;;  %v11242_v40 = vadd.f32 %v5711_v3, %v5690_v12  ;;  %13515 = vst [vmem:[#allocation43_spill] sm:$0xff] %v11263_v37  ;;  %v11269_v56 = vld [vmem:[%s9517_s16 + $0x258] sm:$0xff]  ;;  %v13520_v38 = vld [vmem:[#allocation53_spill] sm:$0xff] }
 0x2c8   : > { %v11244_v60 = vadd.f32 %v5712_v39, %v5691_v53  ;;  %v11246_v11 = vadd.f32 %v5713_v62, %v5692_v2  ;;  %v11251_v35 = vadd.f32 %v5714_v33, %v5693_v49  ;;  %v11253_v13 = vadd.f32 %v5715_v59, %v5694_v4  ;;  %v11266_v39 = vld [vmem:[%s9517_s16 + $0x250] sm:$0xff]  ;;  %13517 = vst [vmem:[#allocation48_spill] sm:$0xff] %v11269_v56  ;;  %v13522_v62 = vld [vmem:[#allocation55_spill] sm:$0xff]  ;;  %v13523_v33 = vld [vmem:[#allocation56_spill] sm:$0xff] }
 0x2c9   : > { %v11255_v52 = vadd.f32 %v5716_v57, %v5695_v9  ;;  %v11257_v63 = vadd.f32 %v5717_v22, %v5696_v25  ;;  %13516 = vst [vmem:[#allocation45_spill] sm:$0xff] %v11266_v39  ;;  %v5748_v27 = vrot.slane %v5743_v36, %v13433_v0  ;;  %v5752_v12 = vrot.slane %v5743_v36, %v13424_v5 }
 0x2ca   : > { %v11274_v53 = vrot.slane %v5772_v17, %v13433_v0  ;;  %v11277_v2 = vrot.slane %v5772_v17, %v13424_v5  ;;  %v11287_v49 = vrot.slane %v5817_v44, %v13433_v0  ;;  %v11290_v4 = vrot.slane %v5817_v44, %v13424_v5 }
 0x2cb   : > { %v11293_v9 = vrot.slane %v5846_v24, %v13433_v0  ;;  %v11296_v25 = vrot.slane %v5846_v24, %v13424_v5  ;;  %v5755_v43 = vmul.f32 %v13520_v38, %v5748_v27  ;;  %v5756_v3 = vmul.f32 %v13521_v15, %v5752_v12 }
 0x2cc   : > { %v5757_v36 = vmul.f32 %v13522_v62, %v5748_v27  ;;  %v5758_v59 = vmul.f32 %v13523_v33, %v5752_v12 }
 0x2cd   : > { %8874 = shalt.err (!%p8871_p2)
}
 0x2ce   : > { %s8875_s10 = scalar_lea.hbm %s11283_s4, 1024  ;;  %s8879_s6 = scalar_lea.hbm %s13519_s26, 2048 }
 0x2cf   : > { %p8876_p0 = scmp.ne.s32.totalorder %s11283_s4, %s8875_s10  ;;  %p8880_p10 = scmp.lt.u32.totalorder %s11283_s4, %s13519_s26 }
 0x2d0   : > { %p8881_p12 = scmp.lt.u32.totalorder %s8879_s6, %s8875_s10  ;;  %p8883_p7 = scmp.lt.u32.totalorder %s8875_s10, %s11283_s4 }
 0x2d1   : > { %p8877_p1 = pnand %p8876_p0, %p13524_p5 }
 0x2d2   : > { %p8882_p13 = por %p8881_p12, %p8880_p10 }
 0x2d3   : > { %p8878_p4 = pneg %p8877_p1 }
 0x2d4   : > { %p8884_p11 = por %p8883_p7, %p8882_p13 }
 0x2d6   : > { %p8885_p6 = pnand %p8884_p11, %p8878_p4 }
 0x2d8   : > { %8888 = shalt.err (!%p8885_p6)
}
 0x2d9   : > { %s9026_s1 = smov 256   ;;  %s9027_s7 = smov 16   ;;  %v11332_v57 = vld [vmem:[%s9520_s21 + $0x240] sm:$0xff]  ;;  %v5759_v22 = vmul.f32 %v11260_v19, %v5748_v27  ;;  %v5760_v17 = vmul.f32 %v11263_v37, %v5752_v12  ;;  %v5761_v44 = vmul.f32 %v11266_v39, %v5748_v27  ;;  %v5762_v24 = vmul.f32 %v11269_v56, %v5752_v12  ;;  %v11339_v38 = vld [vmem:[%s9520_s21 + $0x248] sm:$0xff]  ;;  %v11342_v15 = vld [vmem:[%s9520_s21 + $0x250] sm:$0xff] }
 0x2da   : > { %8410 = dma.vmem_to_hbm [thread:$0]  (%p13524_p5), %s11298_s30, 1024, %s11283_s4, %s6776_s19, %s9026_s1, %s9026_s1, %s9027_s7   ;;  %13525 = vst [vmem:[#allocation53_spill] sm:$0xff] %v11332_v57  ;;  %13526 = vst [vmem:[#allocation39_spill] sm:$0xff] %v11339_v38  ;;  %v5763_v33 = vadd.f32 %v5755_v43, %v11240_v21  ;;  %v5764_v50 = vadd.f32 %v5756_v3, %v11242_v40  ;;  %v5765_v28 = vadd.f32 %v5757_v36, %v11244_v60  ;;  %v13529_v39 = vld [vmem:[#allocation57_spill] sm:$0xff]  ;;  %v13530_v40 = vld [vmem:[#allocation58_spill] sm:$0xff] }
 0x2db   : > { %13527 = vst [vmem:[#allocation55_spill] sm:$0xff] %v11342_v15  ;;  %v11345_v62 = vld [vmem:[%s9520_s21 + $0x258] sm:$0xff]  ;;  %v5766_v19 = vadd.f32 %v5758_v59, %v11246_v11  ;;  %v5767_v37 = vadd.f32 %v5759_v22, %v11251_v35  ;;  %v5768_v27 = vadd.f32 %v5760_v17, %v11253_v13  ;;  %v5769_v12 = vadd.f32 %v5761_v44, %v11255_v52  ;;  %v13531_v60 = vld [vmem:[#allocation59_spill] sm:$0xff]  ;;  %v13532_v35 = vld [vmem:[#allocation60_spill] sm:$0xff]  ;;  %s13705_s30 = sld [smem:[#allocation102_spill]]  ;;  %s9028_s20 = smov [#allocation22]  }
 0x2dc   : > { %13528 = vst [vmem:[#allocation56_spill] sm:$0xff] %v11345_v62  ;;  %v5770_v56 = vadd.f32 %v5762_v24, %v11257_v63  ;;  %v5784_v21 = vmul.f32 %v13529_v39, %v11274_v53  ;;  %v5785_v43 = vmul.f32 %v13530_v40, %v11277_v2  ;;  %v5786_v11 = vmul.f32 %v13531_v60, %v11274_v53  ;;  %v11372_v36 = vld [vmem:[%s9517_s16 + $0x2c0] sm:$0xff]  ;;  %v11375_v24 = vld [vmem:[%s9517_s16 + $0x2c8] sm:$0xff]  ;;  %v11378_v40 = vld [vmem:[%s9517_s16 + $0x2d0] sm:$0xff]  ;;  %s8893_s18 = sshll.u32 %s9028_s20, 4  ;;  %s8894_s18 = int_to_ptr.vmem [resolvable:$false] %s8893_s18 }
 0x2dd   : > { %v5787_v3 = vmul.f32 %v13532_v35, %v11277_v2  ;;  %v5788_v13 = vmul.f32 %v11332_v57, %v11274_v53  ;;  %v5789_v52 = vmul.f32 %v11339_v38, %v11277_v2  ;;  %v5790_v63 = vmul.f32 %v11342_v15, %v11274_v53  ;;  %13533 = vst [vmem:[#allocation57_spill] sm:$0xff] %v11372_v36  ;;  %v11381_v60 = vld [vmem:[%s9517_s16 + $0x2d8] sm:$0xff]  ;;  %v13545_v57 = vld [vmem:[#allocation65_spill] sm:$0xff]  ;;  %v13548_v30 = vld [vmem:[#allocation68_spill] sm:$0xff]  ;;  %s8895_s6 = scalar_lea.vmem %s8894_s18, 2048 }
 0x2de   : > { %v5791_v39 = vmul.f32 %v11345_v62, %v11277_v2  ;;  %v5792_v59 = vadd.f32 %v5784_v21, %v5763_v33  ;;  %v5793_v22 = vadd.f32 %v5785_v43, %v5764_v50  ;;  %v5794_v17 = vadd.f32 %v5786_v11, %v5765_v28  ;;  %13534 = vst [vmem:[#allocation58_spill] sm:$0xff] %v11375_v24  ;;  %v13537_v62 = vld [vmem:[#allocation61_spill] sm:$0xff]  ;;  %v13538_v50 = vld [vmem:[#allocation62_spill] sm:$0xff]  ;;  %v13540_v21 = vld [vmem:[#allocation64_spill] sm:$0xff] }
 0x2df   : > { %v5795_v44 = vadd.f32 %v5787_v3, %v5766_v19  ;;  %13535 = vst [vmem:[#allocation59_spill] sm:$0xff] %v11378_v40  ;;  %13536 = vst [vmem:[#allocation60_spill] sm:$0xff] %v11381_v60  ;;  %v5796_v53 = vadd.f32 %v5788_v13, %v5767_v37  ;;  %v5797_v35 = vadd.f32 %v5789_v52, %v5768_v27  ;;  %v13539_v19 = vld [vmem:[#allocation63_spill] sm:$0xff]  ;;  %v11406_v3 = vld [vmem:[%s9520_s21 + $0x2d0] sm:$0xff] }
 0x2e0   : > { %v5798_v15 = vadd.f32 %v5790_v63, %v5769_v12  ;;  %v5799_v2 = vadd.f32 %v5791_v39, %v5770_v56  ;;  %v5829_v38 = vmul.f32 %v13537_v62, %v11287_v49  ;;  %v5830_v28 = vmul.f32 %v13538_v50, %v11290_v4  ;;  %v11392_v11 = vld [vmem:[%s9520_s21 + $0x2c0] sm:$0xff]  ;;  %v11403_v12 = vld [vmem:[%s9520_s21 + $0x2c8] sm:$0xff]  ;;  %13543 = vst [vmem:[#allocation63_spill] sm:$0xff] %v11406_v3  ;;  %v11409_v13 = vld [vmem:[%s9520_s21 + $0x2d8] sm:$0xff] }
 0x2e1   : > { %v5831_v33 = vmul.f32 %v13539_v19, %v11287_v49  ;;  %v5832_v43 = vmul.f32 %v13540_v21, %v11290_v4  ;;  %13541 = vst [vmem:[#allocation61_spill] sm:$0xff] %v11392_v11  ;;  %v5833_v37 = vmul.f32 %v11372_v36, %v11287_v49  ;;  %v5834_v56 = vmul.f32 %v11375_v24, %v11290_v4  ;;  %v13559_v7 = vld [vmem:[#allocation75_spill] sm:$0xff]  ;;  %v13560_v51 = vld [vmem:[#allocation76_spill] sm:$0xff]  ;;  %s12514_s17 = scalar_lea.hbm %s13705_s30, %s11249_s27 }
 0x2e2   : > { %v5835_v62 = vmul.f32 %v11378_v40, %v11287_v49  ;;  %v5836_v27 = vmul.f32 %v11381_v60, %v11290_v4  ;;  %13542 = vst [vmem:[#allocation62_spill] sm:$0xff] %v11403_v12  ;;  %13544 = vst [vmem:[#allocation64_spill] sm:$0xff] %v11409_v13  ;;  %v5837_v52 = vadd.f32 %v5829_v38, %v5792_v59  ;;  %v13546_v40 = vld [vmem:[#allocation66_spill] sm:$0xff]  ;;  %v13547_v60 = vld [vmem:[#allocation67_spill] sm:$0xff] }
 0x2e3   : > { %v5838_v63 = vadd.f32 %v5830_v28, %v5793_v22  ;;  %v5839_v39 = vadd.f32 %v5831_v33, %v5794_v17  ;;  %v5840_v50 = vadd.f32 %v5832_v43, %v5795_v44  ;;  %v5841_v19 = vadd.f32 %v5833_v37, %v5796_v53  ;;  %v5891_v22 = vld [vmem:[#allocation16 + $0x17] ss:$8 sm:$0x3]  ;;  %v5965_v53 = vld [vmem:[#allocation16 + $0x20] ss:$8 sm:$0x3] }
 0x2e4   : > { %v5842_v21 = vadd.f32 %v5834_v56, %v5797_v35  ;;  %v5843_v36 = vadd.f32 %v5835_v62, %v5798_v15  ;;  %v5844_v24 = vadd.f32 %v5836_v27, %v5799_v2  ;;  %v5858_v49 = vmul.f32 %v13545_v57, %v11293_v9  ;;  %v5920_v17 = vld [vmem:[#allocation17 + $0x17] ss:$8 sm:$0x3]  ;;  %v5994_v35 = vld [vmem:[#allocation17 + $0x20] ss:$8 sm:$0x3] }
 0x2e5   : > { %v5859_v4 = vmul.f32 %v13546_v40, %v11296_v25  ;;  %v5860_v61 = vmul.f32 %v13547_v60, %v11293_v9  ;;  %v5861_v34 = vmul.f32 %v13548_v30, %v11296_v25  ;;  %v5862_v38 = vmul.f32 %v11392_v11, %v11293_v9  ;;  %v11428_v37 = vld [vmem:[%s9517_s16 + $0x340] sm:$0xff]  ;;  %v11434_v56 = vld [vmem:[%s9517_s16 + $0x350] sm:$0xff] }
 0x2e6   : > { %v5863_v15 = vmul.f32 %v11403_v12, %v11296_v25  ;;  %v5864_v57 = vmul.f32 %v11406_v3, %v11293_v9  ;;  %v5865_v59 = vmul.f32 %v11409_v13, %v11296_v25  ;;  %v5866_v44 = vadd.f32 %v5858_v49, %v5837_v52  ;;  %13549 = vst [vmem:[#allocation65_spill] sm:$0xff] %v11428_v37  ;;  %v11431_v9 = vld [vmem:[%s9517_s16 + $0x348] sm:$0xff]  ;;  %v11437_v25 = vld [vmem:[%s9517_s16 + $0x358] sm:$0xff]  ;;  %v13555_v49 = vld [vmem:[#allocation71_spill] sm:$0xff] }
 0x2e7   : > { %v5867_v30 = vadd.f32 %v5859_v4, %v5838_v63  ;;  %v5868_v40 = vadd.f32 %v5860_v61, %v5839_v39  ;;  %v5869_v60 = vadd.f32 %v5861_v34, %v5840_v50  ;;  %v5870_v2 = vadd.f32 %v5862_v38, %v5841_v19  ;;  %13550 = vst [vmem:[#allocation66_spill] sm:$0xff] %v11431_v9  ;;  %v13553_v39 = vld [vmem:[#allocation69_spill] sm:$0xff]  ;;  %v13554_v19 = vld [vmem:[#allocation70_spill] sm:$0xff]  ;;  %v13556_v38 = vld [vmem:[#allocation72_spill] sm:$0xff] }
 0x2e8   : > { %v5871_v28 = vadd.f32 %v5863_v15, %v5842_v21  ;;  %v5872_v33 = vadd.f32 %v5864_v57, %v5843_v36  ;;  %v5873_v43 = vadd.f32 %v5865_v59, %v5844_v24  ;;  %13551 = vst [vmem:[#allocation67_spill] sm:$0xff] %v11434_v56  ;;  %13552 = vst [vmem:[#allocation68_spill] sm:$0xff] %v11437_v25  ;;  %v11456_v57 = vld [vmem:[%s9520_s21 + $0x340] sm:$0xff]  ;;  %v11466_v13 = vld [vmem:[%s9520_s21 + $0x350] sm:$0xff] }
 0x2e9   : > { %v5896_v62 = vrot.slane %v5891_v22, %v13433_v0  ;;  %v5900_v61 = vrot.slane %v5891_v22, %v13424_v5  ;;  %v5925_v34 = vrot.slane %v5920_v17, %v13433_v0  ;;  %v5929_v36 = vrot.slane %v5920_v17, %v13424_v5 }
 0x2ea   : > { %v5970_v24 = vrot.slane %v5965_v53, %v13433_v0  ;;  %v5974_v27 = vrot.slane %v5965_v53, %v13424_v5  ;;  %v11446_v52 = vrot.slane %v5994_v35, %v13433_v0  ;;  %v11449_v63 = vrot.slane %v5994_v35, %v13424_v5  ;;  %v11463_v35 = vld [vmem:[%s9520_s21 + $0x348] sm:$0xff] }
 0x2eb   : > { %v5903_v50 = vmul.f32 %v13553_v39, %v5896_v62  ;;  %v5904_v21 = vmul.f32 %v13554_v19, %v5900_v61  ;;  %v5905_v4 = vmul.f32 %v13555_v49, %v5896_v62  ;;  %v5906_v15 = vmul.f32 %v13556_v38, %v5900_v61  ;;  %v11469_v39 = vld [vmem:[%s9520_s21 + $0x358] sm:$0xff] }
 0x2ec   : > { %v5907_v59 = vmul.f32 %v11428_v37, %v5896_v62  ;;  %v5908_v22 = vmul.f32 %v11431_v9, %v5900_v61  ;;  %v5909_v17 = vmul.f32 %v11434_v56, %v5896_v62  ;;  %v5910_v53 = vmul.f32 %v11437_v25, %v5900_v61  ;;  %v13557_v62 = vld [vmem:[#allocation73_spill] sm:$0xff]  ;;  %v13558_v25 = vld [vmem:[#allocation74_spill] sm:$0xff] }
 0x2ed   : > { %v5911_v19 = vadd.f32 %v5903_v50, %v5866_v44  ;;  %v5912_v49 = vadd.f32 %v5904_v21, %v5867_v30  ;;  %v5913_v38 = vadd.f32 %v5905_v4, %v5868_v40  ;;  %v5914_v3 = vadd.f32 %v5906_v15, %v5869_v60  ;;  %v13561_v15 = vld [vmem:[#allocation77_spill] sm:$0xff] }
 0x2ee   : > { %v5915_v12 = vadd.f32 %v5907_v59, %v5870_v2  ;;  %v5916_v11 = vadd.f32 %v5908_v22, %v5871_v28  ;;  %v5917_v37 = vadd.f32 %v5909_v17, %v5872_v33  ;;  %v5918_v9 = vadd.f32 %v5910_v53, %v5873_v43  ;;  %v11480_v2 = vld [vmem:[%s9517_s16 + $0x3c0] sm:$0xff]  ;;  %v13562_v22 = vld [vmem:[#allocation78_spill] sm:$0xff] }
 0x2ef   : > { %v5932_v61 = vmul.f32 %v13557_v62, %v5925_v34  ;;  %v5933_v56 = vmul.f32 %v13558_v25, %v5929_v36  ;;  %v5934_v23 = vmul.f32 %v13559_v7, %v5925_v34  ;;  %v5935_v46 = vmul.f32 %v13560_v51, %v5929_v36  ;;  %v11483_v25 = vld [vmem:[%s9517_s16 + $0x3c8] sm:$0xff]  ;;  %v11486_v7 = vld [vmem:[%s9517_s16 + $0x3d0] sm:$0xff]  ;;  %v11489_v51 = vld [vmem:[%s9517_s16 + $0x3d8] sm:$0xff] }
 0x2f0   : > { %v5936_v44 = vmul.f32 %v11456_v57, %v5925_v34  ;;  %v5937_v30 = vmul.f32 %v11463_v35, %v5929_v36  ;;  %v5938_v40 = vmul.f32 %v11466_v13, %v5925_v34  ;;  %v5939_v60 = vmul.f32 %v11469_v39, %v5929_v36  ;;  %v11496_v53 = vld [vmem:[%s9520_s21 + $0x3c0] sm:$0xff] }
 0x2f1   : > { %v5940_v28 = vadd.f32 %v5932_v61, %v5911_v19  ;;  %v5941_v33 = vadd.f32 %v5933_v56, %v5912_v49  ;;  %v5942_v43 = vadd.f32 %v5934_v23, %v5913_v38  ;;  %v5943_v50 = vadd.f32 %v5935_v46, %v5914_v3  ;;  %v13563_v56 = vld [vmem:[#allocation79_spill] sm:$0xff]  ;;  %v13564_v46 = vld [vmem:[#allocation80_spill] sm:$0xff] }
 0x2f2   : > { %v5944_v21 = vadd.f32 %v5936_v44, %v5915_v12  ;;  %v5945_v34 = vadd.f32 %v5937_v30, %v5916_v11  ;;  %v5946_v4 = vadd.f32 %v5938_v40, %v5917_v37  ;;  %v5947_v36 = vadd.f32 %v5939_v60, %v5918_v9  ;;  %v11503_v12 = vld [vmem:[%s9520_s21 + $0x3c8] sm:$0xff]  ;;  %v11506_v37 = vld [vmem:[%s9520_s21 + $0x3d0] sm:$0xff]  ;;  %v11509_v9 = vld [vmem:[%s9520_s21 + $0x3d8] sm:$0xff] }
 0x2f3   : > { %v5977_v59 = vmul.f32 %v13561_v15, %v5970_v24  ;;  %v5978_v17 = vmul.f32 %v13562_v22, %v5974_v27  ;;  %v5979_v23 = vmul.f32 %v13563_v56, %v5970_v24  ;;  %v5980_v3 = vmul.f32 %v13564_v46, %v5974_v27  ;;  %13565 = vst [vmem:[#allocation69_spill] sm:$0xff] %v11503_v12 }
 0x2f4   : > { %v5981_v19 = vmul.f32 %v11480_v2, %v5970_v24  ;;  %v5982_v49 = vmul.f32 %v11483_v25, %v5974_v27  ;;  %v5983_v38 = vmul.f32 %v11486_v7, %v5970_v24  ;;  %v5984_v11 = vmul.f32 %v11489_v51, %v5974_v27  ;;  %13566 = vst [vmem:[#allocation70_spill] sm:$0xff] %v11506_v37 }
 0x2f5   : > { %13567 = vst [vmem:[#allocation71_spill] sm:$0xff] %v11509_v9  ;;  %v5985_v62 = vadd.f32 %v5977_v59, %v5940_v28  ;;  %v5986_v61 = vadd.f32 %v5978_v17, %v5941_v33  ;;  %v5987_v44 = vadd.f32 %v5979_v23, %v5942_v43  ;;  %v5988_v30 = vadd.f32 %v5980_v3, %v5943_v50  ;;  %v6068_v43 = vld [vmem:[#allocation17 + $0x21] ss:$8 sm:$0x3] }
 0x2f6   : > { %v5989_v40 = vadd.f32 %v5981_v19, %v5944_v21  ;;  %v5990_v60 = vadd.f32 %v5982_v49, %v5945_v34  ;;  %v5991_v15 = vadd.f32 %v5983_v38, %v5946_v4  ;;  %v5992_v22 = vadd.f32 %v5984_v11, %v5947_v36  ;;  %v6113_v4 = vld [vmem:[#allocation16 + $0x22] ss:$8 sm:$0x3]  ;;  %v11534_v49 = vld [vmem:[%s9517_s16 + $0x450] sm:$0xff] }
 0x2f7   : > { %v6006_v56 = vmul.f32 %v10965_v54, %v11446_v52  ;;  %v6007_v24 = vmul.f32 %v10972_v18, %v11449_v63  ;;  %v6008_v27 = vmul.f32 %v10975_v10, %v11446_v52  ;;  %v6009_v46 = vmul.f32 %v10978_v6, %v11449_v63  ;;  %v6039_v10 = vld [vmem:[#allocation16 + $0x21] ss:$8 sm:$0x3]  ;;  %v6142_v36 = vld [vmem:[#allocation17 + $0x22] ss:$8 sm:$0x3] }
 0x2f8   : > { %v6010_v28 = vmul.f32 %v11496_v53, %v11446_v52  ;;  %v6011_v33 = vmul.f32 %v11503_v12, %v11449_v63  ;;  %v6012_v54 = vmul.f32 %v11506_v37, %v11446_v52  ;;  %v6013_v18 = vmul.f32 %v11509_v9, %v11449_v63  ;;  %v11528_v19 = vld [vmem:[%s9517_s16 + $0x440] sm:$0xff]  ;;  %v11531_v52 = vld [vmem:[%s9517_s16 + $0x448] sm:$0xff]  ;;  %13570 = vst [vmem:[#allocation74_spill] sm:$0xff] %v11534_v49  ;;  %v11537_v63 = vld [vmem:[%s9517_s16 + $0x458] sm:$0xff] }
 0x2f9   : > { %v6014_v50 = vadd.f32 %v6006_v56, %v5985_v62  ;;  %v6015_v6 = vadd.f32 %v6007_v24, %v5986_v61  ;;  %v6016_v21 = vadd.f32 %v6008_v27, %v5987_v44  ;;  %v6017_v34 = vadd.f32 %v6009_v46, %v5988_v30  ;;  %13568 = vst [vmem:[#allocation72_spill] sm:$0xff] %v11528_v19  ;;  %v13573_v24 = vld [vmem:[#allocation82_spill] sm:$0xff]  ;;  %v13574_v46 = vld [vmem:[#allocation83_spill] sm:$0xff] }
 0x2fa   : > { %v6018_v59 = vadd.f32 %v6010_v28, %v5989_v40  ;;  %v6019_v17 = vadd.f32 %v6011_v33, %v5990_v60  ;;  %v6020_v23 = vadd.f32 %v6012_v54, %v5991_v15  ;;  %v6021_v3 = vadd.f32 %v6013_v18, %v5992_v22  ;;  %13569 = vst [vmem:[#allocation73_spill] sm:$0xff] %v11531_v52  ;;  %v13572_v22 = vld [vmem:[#allocation81_spill] sm:$0xff]  ;;  %v11556_v33 = vld [vmem:[%s9520_s21 + $0x440] sm:$0xff] }
 0x2fb   : > { %13571 = vst [vmem:[#allocation75_spill] sm:$0xff] %v11537_v63  ;;  %v6044_v38 = vrot.slane %v6039_v10, %v13433_v0  ;;  %v6048_v11 = vrot.slane %v6039_v10, %v13424_v5  ;;  %v6073_v62 = vrot.slane %v6068_v43, %v13433_v0  ;;  %v6077_v61 = vrot.slane %v6068_v43, %v13424_v5 }
 0x2fc   : > { %v6118_v44 = vrot.slane %v6113_v4, %v13433_v0  ;;  %v6122_v30 = vrot.slane %v6113_v4, %v13424_v5  ;;  %v11546_v40 = vrot.slane %v6142_v36, %v13433_v0  ;;  %v11549_v60 = vrot.slane %v6142_v36, %v13424_v5  ;;  %v11563_v4 = vld [vmem:[%s9520_s21 + $0x448] sm:$0xff]  ;;  %v11566_v36 = vld [vmem:[%s9520_s21 + $0x450] sm:$0xff] }
 0x2fd   : > { %v6051_v15 = vmul.f32 %v10989_v42, %v6044_v38  ;;  %v6052_v56 = vmul.f32 %v13572_v22, %v6048_v11  ;;  %v6053_v27 = vmul.f32 %v13573_v24, %v6044_v38  ;;  %v6054_v28 = vmul.f32 %v13574_v46, %v6048_v11  ;;  %v11569_v42 = vld [vmem:[%s9520_s21 + $0x458] sm:$0xff] }
 0x2fe   : > { %v6055_v54 = vmul.f32 %v11528_v19, %v6044_v38  ;;  %v6056_v18 = vmul.f32 %v11531_v52, %v6048_v11  ;;  %v6057_v10 = vmul.f32 %v11534_v49, %v6044_v38  ;;  %v6058_v43 = vmul.f32 %v11537_v63, %v6048_v11  ;;  %13575 = vst [vmem:[#allocation76_spill] sm:$0xff] %v11569_v42 }
 0x2ff   : > { %v6059_v22 = vadd.f32 %v6051_v15, %v6014_v50  ;;  %v6060_v24 = vadd.f32 %v6052_v56, %v6015_v6  ;;  %v6061_v46 = vadd.f32 %v6053_v27, %v6016_v21  ;;  %v6062_v9 = vadd.f32 %v6054_v28, %v6017_v34  ;;  %v8215_v15 = vld [vmem:[%s9517_s16 + $0x68] sm:$0xff] }
 0x300   : > { %v6063_v37 = vadd.f32 %v6055_v54, %v6018_v59  ;;  %v6064_v12 = vadd.f32 %v6056_v18, %v6019_v17  ;;  %v6065_v19 = vadd.f32 %v6057_v10, %v6020_v23  ;;  %v6066_v52 = vadd.f32 %v6058_v43, %v6021_v3  ;;  %v8214_v59 = vld [vmem:[%s9517_s16 + $0x60] sm:$0xff]  ;;  %v13576_v54 = vld [vmem:[#allocation84_spill] sm:$0xff]  ;;  %v13577_v18 = vld [vmem:[#allocation85_spill] sm:$0xff] }
 0x301   : > { %v6080_v38 = vmul.f32 %v11009_v45, %v6073_v62  ;;  %v6081_v11 = vmul.f32 %v11020_v48, %v6077_v61  ;;  %v6082_v63 = vmul.f32 %v11023_v16, %v6073_v62  ;;  %v6083_v49 = vmul.f32 %v11026_v58, %v6077_v61  ;;  %v8216_v48 = vld [vmem:[%s9517_s16 + $0x70] sm:$0xff]  ;;  %v8217_v16 = vld [vmem:[%s9517_s16 + $0x78] sm:$0xff] }
 0x302   : > { %v6084_v50 = vmul.f32 %v11556_v33, %v6073_v62  ;;  %v6085_v6 = vmul.f32 %v11563_v4, %v6077_v61  ;;  %v6086_v21 = vmul.f32 %v11566_v36, %v6073_v62  ;;  %v6087_v34 = vmul.f32 %v11569_v42, %v6077_v61  ;;  %v13578_v43 = vld [vmem:[#allocation86_spill] sm:$0xff] }
 0x303   : > { %v6088_v17 = vadd.f32 %v6080_v38, %v6059_v22  ;;  %v6089_v23 = vadd.f32 %v6081_v11, %v6060_v24  ;;  %v6090_v3 = vadd.f32 %v6082_v63, %v6061_v46  ;;  %v6091_v45 = vadd.f32 %v6083_v49, %v6062_v9  ;;  %v8222_v63 = vld [vmem:[%s9520_s21 + $0x60] sm:$0xff]  ;;  %v8223_v38 = vld [vmem:[%s9520_s21 + $0x68] sm:$0xff]  ;;  %v8224_v11 = vld [vmem:[%s9520_s21 + $0x70] sm:$0xff] }
 0x304   : > { %v6092_v58 = vadd.f32 %v6084_v50, %v6063_v37  ;;  %v6093_v56 = vadd.f32 %v6085_v6, %v6064_v12  ;;  %v6094_v27 = vadd.f32 %v6086_v21, %v6065_v19  ;;  %v6095_v28 = vadd.f32 %v6087_v34, %v6066_v52  ;;  %v8225_v42 = vld [vmem:[%s9520_s21 + $0x78] sm:$0xff] }
 0x305   : > { %v6125_v62 = vmul.f32 %v11041_v1, %v6118_v44  ;;  %v6126_v61 = vmul.f32 %v13576_v54, %v6122_v30  ;;  %v6127_v10 = vmul.f32 %v13577_v18, %v6118_v44  ;;  %v6128_v22 = vmul.f32 %v13578_v43, %v6122_v30  ;;  %v8230_v54 = vld [vmem:[%s9517_s16 + $0xe0] sm:$0xff]  ;;  %v8233_v18 = vld [vmem:[%s9517_s16 + $0xf8] sm:$0xff] }
 0x306   : > { %v6129_v9 = vmul.f32 %v8214_v59, %v6118_v44  ;;  %v6130_v49 = vmul.f32 %v8215_v15, %v6122_v30  ;;  %v6131_v24 = vmul.f32 %v8216_v48, %v6118_v44  ;;  %v6132_v46 = vmul.f32 %v8217_v16, %v6122_v30 }
 0x307   : > { %v6133_v37 = vadd.f32 %v6125_v62, %v6088_v17  ;;  %v6134_v12 = vadd.f32 %v6126_v61, %v6089_v23  ;;  %v6135_v19 = vadd.f32 %v6127_v10, %v6090_v3  ;;  %v6136_v52 = vadd.f32 %v6128_v22, %v6091_v45  ;;  %v6187_v45 = vld [vmem:[#allocation16 + $0x23] ss:$8 sm:$0x3] }
 0x308   : > { %v6137_v50 = vadd.f32 %v6129_v9, %v6092_v58  ;;  %v6138_v1 = vadd.f32 %v6130_v49, %v6093_v56  ;;  %v6139_v6 = vadd.f32 %v6131_v24, %v6094_v27  ;;  %v6140_v21 = vadd.f32 %v6132_v46, %v6095_v28  ;;  %v6261_v58 = vld [vmem:[#allocation16 + $0x24] ss:$8 sm:$0x3] }
 0x309   : > { %v6154_v34 = vmul.f32 %v11069_v41, %v11546_v40  ;;  %v6155_v59 = vmul.f32 %v11076_v29, %v11549_v60  ;;  %v6156_v44 = vmul.f32 %v11079_v47, %v11546_v40  ;;  %v6157_v30 = vmul.f32 %v11082_v20, %v11549_v60  ;;  %v6216_v29 = vld [vmem:[#allocation17 + $0x23] ss:$8 sm:$0x3]  ;;  %v6290_v20 = vld [vmem:[#allocation17 + $0x24] ss:$8 sm:$0x3] }
 0x30a   : > { %v6158_v17 = vmul.f32 %v8222_v63, %v11546_v40  ;;  %v6159_v23 = vmul.f32 %v8223_v38, %v11549_v60  ;;  %v6160_v3 = vmul.f32 %v8224_v11, %v11546_v40  ;;  %v6161_v41 = vmul.f32 %v8225_v42, %v11549_v60  ;;  %v8231_v61 = vld [vmem:[%s9517_s16 + $0xe8] sm:$0xff]  ;;  %v8232_v40 = vld [vmem:[%s9517_s16 + $0xf0] sm:$0xff] }
 0x30b   : > { %v6162_v15 = vadd.f32 %v6154_v34, %v6133_v37  ;;  %v6163_v48 = vadd.f32 %v6155_v59, %v6134_v12  ;;  %v6164_v47 = vadd.f32 %v6156_v44, %v6135_v19  ;;  %v6165_v16 = vadd.f32 %v6157_v30, %v6136_v52  ;;  %v8238_v37 = vld [vmem:[%s9520_s21 + $0xe0] sm:$0xff] }
 0x30c   : > { %v6166_v56 = vadd.f32 %v6158_v17, %v6137_v50  ;;  %v6167_v27 = vadd.f32 %v6159_v23, %v6138_v1  ;;  %v6168_v28 = vadd.f32 %v6160_v3, %v6139_v6  ;;  %v6169_v62 = vadd.f32 %v6161_v41, %v6140_v21  ;;  %v8239_v1 = vld [vmem:[%s9520_s21 + $0xe8] sm:$0xff]  ;;  %v8240_v6 = vld [vmem:[%s9520_s21 + $0xf0] sm:$0xff]  ;;  %v8241_v21 = vld [vmem:[%s9520_s21 + $0xf8] sm:$0xff] }
 0x30d   : > { %v6192_v60 = vrot.slane %v6187_v45, %v13433_v0  ;;  %v6196_v42 = vrot.slane %v6187_v45, %v13424_v5  ;;  %v6221_v10 = vrot.slane %v6216_v29, %v13433_v0  ;;  %v6225_v43 = vrot.slane %v6216_v29, %v13424_v5  ;;  %v13579_v3 = vld [vmem:[#allocation87_spill] sm:$0xff]  ;;  %v13580_v45 = vld [vmem:[#allocation88_spill] sm:$0xff] }
 0x30e   : > { %v6266_v22 = vrot.slane %v6261_v58, %v13433_v0  ;;  %v6270_v63 = vrot.slane %v6261_v58, %v13424_v5  ;;  %v11614_v9 = vrot.slane %v6290_v20, %v13433_v0  ;;  %v11617_v49 = vrot.slane %v6290_v20, %v13424_v5 }
 0x30f   : > { %v6199_v24 = vmul.f32 %v11093_v8, %v6192_v60  ;;  %v6200_v46 = vmul.f32 %v11096_v26, %v6196_v42  ;;  %v6201_v38 = vmul.f32 %v11099_v31, %v6192_v60  ;;  %v6202_v11 = vmul.f32 %v11102_v55, %v6196_v42 }
 0x310   : > { %v6203_v12 = vmul.f32 %v8230_v54, %v6192_v60  ;;  %v6204_v19 = vmul.f32 %v8231_v61, %v6196_v42  ;;  %v6205_v52 = vmul.f32 %v8232_v40, %v6192_v60  ;;  %v6206_v50 = vmul.f32 %v8233_v18, %v6196_v42  ;;  %v8248_v54 = vld [vmem:[%s9517_s16 + $0x170] sm:$0xff] }
 0x311   : > { %v6207_v34 = vadd.f32 %v6199_v24, %v6162_v15  ;;  %v6208_v59 = vadd.f32 %v6200_v46, %v6163_v48  ;;  %v6209_v44 = vadd.f32 %v6201_v38, %v6164_v47  ;;  %v6210_v30 = vadd.f32 %v6202_v11, %v6165_v16  ;;  %v8246_v16 = vld [vmem:[%s9517_s16 + $0x160] sm:$0xff]  ;;  %v13581_v60 = vld [vmem:[#allocation89_spill] sm:$0xff]  ;;  %v13584_v38 = vld [vmem:[#allocation92_spill] sm:$0xff] }
 0x312   : > { %v6211_v8 = vadd.f32 %v6203_v12, %v6166_v56  ;;  %v6212_v17 = vadd.f32 %v6204_v19, %v6167_v27  ;;  %v6213_v26 = vadd.f32 %v6205_v52, %v6168_v28  ;;  %v6214_v31 = vadd.f32 %v6206_v50, %v6169_v62  ;;  %v8247_v62 = vld [vmem:[%s9517_s16 + $0x168] sm:$0xff]  ;;  %v13583_v24 = vld [vmem:[#allocation91_spill] sm:$0xff] }
 0x313   : > { %v6228_v55 = vmul.f32 %v11109_v32, %v6221_v10  ;;  %v6229_v23 = vmul.f32 %v11116_v14, %v6225_v43  ;;  %v6230_v41 = vmul.f32 %v13579_v3, %v6221_v10  ;;  %v6231_v29 = vmul.f32 %v13580_v45, %v6225_v43  ;;  %v8249_v32 = vld [vmem:[%s9517_s16 + $0x178] sm:$0xff]  ;;  %v13586_v3 = vld [vmem:[#allocation41_spill] sm:$0xff] }
 0x314   : > { %v6232_v15 = vmul.f32 %v8238_v37, %v6221_v10  ;;  %v6233_v58 = vmul.f32 %v8239_v1, %v6225_v43  ;;  %v6234_v48 = vmul.f32 %v8240_v6, %v6221_v10  ;;  %v6235_v47 = vmul.f32 %v8241_v21, %v6225_v43  ;;  %v13582_v10 = vld [vmem:[#allocation90_spill] sm:$0xff]  ;;  %v8254_v37 = vld [vmem:[%s9520_s21 + $0x160] sm:$0xff]  ;;  %v8255_v1 = vld [vmem:[%s9520_s21 + $0x168] sm:$0xff] }
 0x315   : > { %v6236_v20 = vadd.f32 %v6228_v55, %v6207_v34  ;;  %v6237_v56 = vadd.f32 %v6229_v23, %v6208_v59  ;;  %v6238_v27 = vadd.f32 %v6230_v41, %v6209_v44  ;;  %v6239_v28 = vadd.f32 %v6231_v29, %v6210_v30  ;;  %v8256_v6 = vld [vmem:[%s9520_s21 + $0x170] sm:$0xff]  ;;  %v8257_v21 = vld [vmem:[%s9520_s21 + $0x178] sm:$0xff] }
 0x316   : > { %v6240_v14 = vadd.f32 %v6232_v15, %v6211_v8  ;;  %v6241_v61 = vadd.f32 %v6233_v58, %v6212_v17  ;;  %v6242_v40 = vadd.f32 %v6234_v48, %v6213_v26  ;;  %v6243_v18 = vadd.f32 %v6235_v47, %v6214_v31  ;;  %v13585_v55 = vld [vmem:[#allocation54_spill] sm:$0xff] }
 0x317   : > { %v6273_v42 = vmul.f32 %v13581_v60, %v6266_v22  ;;  %v6274_v43 = vmul.f32 %v13582_v10, %v6270_v63  ;;  %v6275_v46 = vmul.f32 %v13583_v24, %v6266_v22  ;;  %v6276_v11 = vmul.f32 %v13584_v38, %v6270_v63  ;;  %v13588_v45 = vld [vmem:[#allocation94_spill] sm:$0xff]  ;;  %v8262_v60 = vld [vmem:[%s9517_s16 + $0x1e0] sm:$0xff] }
 0x318   : > { %v6277_v12 = vmul.f32 %v8246_v16, %v6266_v22  ;;  %v6278_v19 = vmul.f32 %v8247_v62, %v6270_v63  ;;  %v6279_v52 = vmul.f32 %v8248_v54, %v6266_v22  ;;  %v6280_v50 = vmul.f32 %v8249_v32, %v6270_v63  ;;  %v13587_v22 = vld [vmem:[#allocation93_spill] sm:$0xff]  ;;  %v6335_v16 = vld [vmem:[#allocation16 + $0x25] ss:$8 sm:$0x3]  ;;  %v8265_v10 = vld [vmem:[%s9517_s16 + $0x1f8] sm:$0xff] }
 0x319   : > { %v6281_v34 = vadd.f32 %v6273_v42, %v6236_v20  ;;  %v6282_v59 = vadd.f32 %v6274_v43, %v6237_v56  ;;  %v6283_v44 = vadd.f32 %v6275_v46, %v6238_v27  ;;  %v6284_v30 = vadd.f32 %v6276_v11, %v6239_v28  ;;  %v6364_v20 = vld [vmem:[#allocation17 + $0x25] ss:$8 sm:$0x3]  ;;  %v6409_v54 = vld [vmem:[#allocation16 + $0x26] ss:$8 sm:$0x3] }
 0x31a   : > { %v6285_v8 = vadd.f32 %v6277_v12, %v6240_v14  ;;  %v6286_v17 = vadd.f32 %v6278_v19, %v6241_v61  ;;  %v6287_v26 = vadd.f32 %v6279_v52, %v6242_v40  ;;  %v6288_v31 = vadd.f32 %v6280_v50, %v6243_v18  ;;  %v6438_v32 = vld [vmem:[#allocation17 + $0x26] ss:$8 sm:$0x3]  ;;  %v13589_v19 = vld [vmem:[#allocation42_spill] sm:$0xff] }
 0x31b   : > { %v6302_v23 = vmul.f32 %v13585_v55, %v11614_v9  ;;  %v6303_v41 = vmul.f32 %v13586_v3, %v11617_v49  ;;  %v6304_v63 = vmul.f32 %v13587_v22, %v11614_v9  ;;  %v6305_v29 = vmul.f32 %v13588_v45, %v11617_v49  ;;  %v8263_v42 = vld [vmem:[%s9517_s16 + $0x1e8] sm:$0xff]  ;;  %v8272_v55 = vld [vmem:[%s9520_s21 + $0x1f0] sm:$0xff] }
 0x31c   : > { %v6306_v15 = vmul.f32 %v8254_v37, %v11614_v9  ;;  %v6307_v58 = vmul.f32 %v8255_v1, %v11617_v49  ;;  %v6308_v48 = vmul.f32 %v8256_v6, %v11614_v9  ;;  %v6309_v47 = vmul.f32 %v8257_v21, %v11617_v49  ;;  %v8264_v9 = vld [vmem:[%s9517_s16 + $0x1f0] sm:$0xff]  ;;  %v13590_v50 = vld [vmem:[#allocation44_spill] sm:$0xff] }
 0x31d   : > { %v6310_v56 = vadd.f32 %v6302_v23, %v6281_v34  ;;  %v6311_v27 = vadd.f32 %v6303_v41, %v6282_v59  ;;  %v6312_v28 = vadd.f32 %v6304_v63, %v6283_v44  ;;  %v6313_v62 = vadd.f32 %v6305_v29, %v6284_v30  ;;  %v13591_v6 = vld [vmem:[#allocation49_spill] sm:$0xff]  ;;  %v13592_v34 = vld [vmem:[#allocation46_spill] sm:$0xff]  ;;  %v8270_v44 = vld [vmem:[%s9520_s21 + $0x1e0] sm:$0xff] }
 0x31e   : > { %v6314_v14 = vadd.f32 %v6306_v15, %v6285_v8  ;;  %v6315_v61 = vadd.f32 %v6307_v58, %v6286_v17  ;;  %v6316_v40 = vadd.f32 %v6308_v48, %v6287_v26  ;;  %v6317_v18 = vadd.f32 %v6309_v47, %v6288_v31  ;;  %v8271_v31 = vld [vmem:[%s9520_s21 + $0x1e8] sm:$0xff]  ;;  %v8273_v23 = vld [vmem:[%s9520_s21 + $0x1f8] sm:$0xff] }
 0x31f   : > { %v6340_v49 = vrot.slane %v6335_v16, %v13433_v0  ;;  %v6344_v43 = vrot.slane %v6335_v16, %v13424_v5  ;;  %v6369_v24 = vrot.slane %v6364_v20, %v13433_v0  ;;  %v6373_v46 = vrot.slane %v6364_v20, %v13424_v5  ;;  %v13593_v48 = vld [vmem:[#allocation50_spill] sm:$0xff]  ;;  %v13594_v16 = vld [vmem:[#allocation47_spill] sm:$0xff] }
 0x320   : > { %v6414_v38 = vrot.slane %v6409_v54, %v13433_v0  ;;  %v6418_v11 = vrot.slane %v6409_v54, %v13424_v5  ;;  %v11666_v37 = vrot.slane %v6438_v32, %v13433_v0  ;;  %v11669_v12 = vrot.slane %v6438_v32, %v13424_v5  ;;  %v13595_v54 = vld [vmem:[#allocation51_spill] sm:$0xff] }
 0x321   : > { %v6347_v52 = vmul.f32 %v13589_v19, %v6340_v49  ;;  %v6348_v1 = vmul.f32 %v13590_v50, %v6344_v43  ;;  %v6349_v21 = vmul.f32 %v13591_v6, %v6340_v49  ;;  %v6350_v59 = vmul.f32 %v13592_v34, %v6344_v43  ;;  %v13597_v6 = vld [vmem:[#allocation40_spill] sm:$0xff]  ;;  %v13599_v34 = vld [vmem:[#allocation45_spill] sm:$0xff] }
 0x322   : > { %v6351_v30 = vmul.f32 %v8262_v60, %v6340_v49  ;;  %v6352_v8 = vmul.f32 %v8263_v42, %v6344_v43  ;;  %v6353_v17 = vmul.f32 %v8264_v9, %v6340_v49  ;;  %v6354_v26 = vmul.f32 %v8265_v10, %v6344_v43  ;;  %v13596_v60 = vld [vmem:[#allocation52_spill] sm:$0xff]  ;;  %v8280_v49 = vld [vmem:[%s9517_s16 + $0x270] sm:$0xff]  ;;  %v8281_v43 = vld [vmem:[%s9517_s16 + $0x278] sm:$0xff] }
 0x323   : > { %v6355_v3 = vadd.f32 %v6347_v52, %v6310_v56  ;;  %v6356_v41 = vadd.f32 %v6348_v1, %v6311_v27  ;;  %v6357_v22 = vadd.f32 %v6349_v21, %v6312_v28  ;;  %v6358_v63 = vadd.f32 %v6350_v59, %v6313_v62  ;;  %v8278_v62 = vld [vmem:[%s9517_s16 + $0x260] sm:$0xff] }
 0x324   : > { %v6359_v45 = vadd.f32 %v6351_v30, %v6314_v14  ;;  %v6360_v29 = vadd.f32 %v6352_v8, %v6315_v61  ;;  %v6361_v15 = vadd.f32 %v6353_v17, %v6316_v40  ;;  %v6362_v58 = vadd.f32 %v6354_v26, %v6317_v18  ;;  %v8279_v18 = vld [vmem:[%s9517_s16 + $0x268] sm:$0xff]  ;;  %v8286_v8 = vld [vmem:[%s9520_s21 + $0x260] sm:$0xff] }
 0x325   : > { %v6376_v47 = vmul.f32 %v13593_v48, %v6369_v24  ;;  %v6377_v20 = vmul.f32 %v13594_v16, %v6373_v46  ;;  %v6378_v32 = vmul.f32 %v13595_v54, %v6369_v24  ;;  %v6379_v42 = vmul.f32 %v13596_v60, %v6373_v46  ;;  %v13601_v16 = vld [vmem:[#allocation53_spill] sm:$0xff]  ;;  %v13602_v54 = vld [vmem:[#allocation39_spill] sm:$0xff]  ;;  %v13604_v60 = vld [vmem:[#allocation56_spill] sm:$0xff] }
 0x326   : > { %v6380_v56 = vmul.f32 %v8270_v44, %v6369_v24  ;;  %v6381_v9 = vmul.f32 %v8271_v31, %v6373_v46  ;;  %v6382_v27 = vmul.f32 %v8272_v55, %v6369_v24  ;;  %v6383_v28 = vmul.f32 %v8273_v23, %v6373_v46  ;;  %v13598_v24 = vld [vmem:[#allocation43_spill] sm:$0xff]  ;;  %v13600_v44 = vld [vmem:[#allocation48_spill] sm:$0xff] }
 0x327   : > { %v6384_v14 = vadd.f32 %v6376_v47, %v6355_v3  ;;  %v6385_v61 = vadd.f32 %v6377_v20, %v6356_v41  ;;  %v6386_v40 = vadd.f32 %v6378_v32, %v6357_v22  ;;  %v6387_v10 = vadd.f32 %v6379_v42, %v6358_v63  ;;  %v8287_v23 = vld [vmem:[%s9520_s21 + $0x268] sm:$0xff]  ;;  %v8288_v3 = vld [vmem:[%s9520_s21 + $0x270] sm:$0xff]  ;;  %v8289_v41 = vld [vmem:[%s9520_s21 + $0x278] sm:$0xff] }
 0x328   : > { %v6388_v19 = vadd.f32 %v6380_v56, %v6359_v45  ;;  %v6389_v52 = vadd.f32 %v6381_v9, %v6360_v29  ;;  %v6390_v50 = vadd.f32 %v6382_v27, %v6361_v15  ;;  %v6391_v1 = vadd.f32 %v6383_v28, %v6362_v58 }
 0x329   : > { %v6421_v21 = vmul.f32 %v13597_v6, %v6414_v38  ;;  %v6422_v46 = vmul.f32 %v13598_v24, %v6418_v11  ;;  %v6423_v59 = vmul.f32 %v13599_v34, %v6414_v38  ;;  %v6424_v30 = vmul.f32 %v13600_v44, %v6418_v11  ;;  %v8294_v6 = vld [vmem:[%s9517_s16 + $0x2e0] sm:$0xff]  ;;  %v8297_v24 = vld [vmem:[%s9517_s16 + $0x2f8] sm:$0xff] }
 0x32a   : > { %v6425_v17 = vmul.f32 %v8278_v62, %v6414_v38  ;;  %v6426_v26 = vmul.f32 %v8279_v18, %v6418_v11  ;;  %v6427_v31 = vmul.f32 %v8280_v49, %v6414_v38  ;;  %v6428_v55 = vmul.f32 %v8281_v43, %v6418_v11  ;;  %v13603_v38 = vld [vmem:[#allocation55_spill] sm:$0xff]  ;;  %v6557_v49 = vld [vmem:[#allocation16 + $0x30] ss:$8 sm:$0x3] }
 0x32b   : > { %v6429_v22 = vadd.f32 %v6421_v21, %v6384_v14  ;;  %v6430_v63 = vadd.f32 %v6422_v46, %v6385_v61  ;;  %v6431_v45 = vadd.f32 %v6423_v59, %v6386_v40  ;;  %v6432_v29 = vadd.f32 %v6424_v30, %v6387_v10  ;;  %v6483_v62 = vld [vmem:[#allocation16 + $0x27] ss:$8 sm:$0x3]  ;;  %v6586_v43 = vld [vmem:[#allocation17 + $0x30] ss:$8 sm:$0x3] }
 0x32c   : > { %v6433_v15 = vadd.f32 %v6425_v17, %v6388_v19  ;;  %v6434_v58 = vadd.f32 %v6426_v26, %v6389_v52  ;;  %v6435_v48 = vadd.f32 %v6427_v31, %v6390_v50  ;;  %v6436_v47 = vadd.f32 %v6428_v55, %v6391_v1  ;;  %v6512_v14 = vld [vmem:[#allocation17 + $0x27] ss:$8 sm:$0x3]  ;;  %v13605_v26 = vld [vmem:[#allocation57_spill] sm:$0xff]  ;;  %v13606_v55 = vld [vmem:[#allocation58_spill] sm:$0xff] }
 0x32d   : > { %v6450_v20 = vmul.f32 %v13601_v16, %v11666_v37  ;;  %v6451_v32 = vmul.f32 %v13602_v54, %v11669_v12  ;;  %v6452_v11 = vmul.f32 %v13603_v38, %v11666_v37  ;;  %v6453_v42 = vmul.f32 %v13604_v60, %v11669_v12  ;;  %v8295_v21 = vld [vmem:[%s9517_s16 + $0x2e8] sm:$0xff]  ;;  %v8304_v16 = vld [vmem:[%s9520_s21 + $0x2f0] sm:$0xff] }
 0x32e   : > { %v6454_v56 = vmul.f32 %v8286_v8, %v11666_v37  ;;  %v6455_v9 = vmul.f32 %v8287_v23, %v11669_v12  ;;  %v6456_v27 = vmul.f32 %v8288_v3, %v11666_v37  ;;  %v6457_v28 = vmul.f32 %v8289_v41, %v11669_v12  ;;  %v8296_v37 = vld [vmem:[%s9517_s16 + $0x2f0] sm:$0xff]  ;;  %v13607_v3 = vld [vmem:[#allocation59_spill] sm:$0xff] }
 0x32f   : > { %v6458_v61 = vadd.f32 %v6450_v20, %v6429_v22  ;;  %v6459_v40 = vadd.f32 %v6451_v32, %v6430_v63  ;;  %v6460_v10 = vadd.f32 %v6452_v11, %v6431_v45  ;;  %v6461_v18 = vadd.f32 %v6453_v42, %v6432_v29  ;;  %v13608_v22 = vld [vmem:[#allocation60_spill] sm:$0xff]  ;;  %v8302_v45 = vld [vmem:[%s9520_s21 + $0x2e0] sm:$0xff]  ;;  %v8305_v20 = vld [vmem:[%s9520_s21 + $0x2f8] sm:$0xff] }
 0x330   : > { %v6462_v19 = vadd.f32 %v6454_v56, %v6433_v15  ;;  %v6463_v52 = vadd.f32 %v6455_v9, %v6434_v58  ;;  %v6464_v50 = vadd.f32 %v6456_v27, %v6435_v48  ;;  %v6465_v1 = vadd.f32 %v6457_v28, %v6436_v47  ;;  %v8303_v47 = vld [vmem:[%s9520_s21 + $0x2e8] sm:$0xff]  ;;  %v13609_v27 = vld [vmem:[#allocation61_spill] sm:$0xff] }
 0x331   : > { %v6488_v12 = vrot.slane %v6483_v62, %v13433_v0  ;;  %v6492_v46 = vrot.slane %v6483_v62, %v13424_v5  ;;  %v6517_v34 = vrot.slane %v6512_v14, %v13433_v0  ;;  %v6521_v59 = vrot.slane %v6512_v14, %v13424_v5  ;;  %v13610_v62 = vld [vmem:[#allocation62_spill] sm:$0xff] }
 0x332   : > { %v6562_v44 = vrot.slane %v6557_v49, %v13433_v0  ;;  %v6566_v30 = vrot.slane %v6557_v49, %v13424_v5  ;;  %v11718_v8 = vrot.slane %v6586_v43, %v13433_v0  ;;  %v11721_v17 = vrot.slane %v6586_v43, %v13424_v5  ;;  %v13611_v49 = vld [vmem:[#allocation63_spill] sm:$0xff] }
 0x333   : > { %v6495_v31 = vmul.f32 %v13605_v26, %v6488_v12  ;;  %v6496_v23 = vmul.f32 %v13606_v55, %v6492_v46  ;;  %v6497_v41 = vmul.f32 %v13607_v3, %v6488_v12  ;;  %v6498_v63 = vmul.f32 %v13608_v22, %v6492_v46  ;;  %v13613_v3 = vld [vmem:[#allocation65_spill] sm:$0xff]  ;;  %v13615_v22 = vld [vmem:[#allocation67_spill] sm:$0xff] }
 0x334   : > { %v6499_v29 = vmul.f32 %v8294_v6, %v6488_v12  ;;  %v6500_v15 = vmul.f32 %v8295_v21, %v6492_v46  ;;  %v6501_v58 = vmul.f32 %v8296_v37, %v6488_v12  ;;  %v6502_v48 = vmul.f32 %v8297_v24, %v6492_v46  ;;  %v13612_v6 = vld [vmem:[#allocation64_spill] sm:$0xff]  ;;  %v8312_v12 = vld [vmem:[%s9517_s16 + $0x370] sm:$0xff]  ;;  %v8313_v46 = vld [vmem:[%s9517_s16 + $0x378] sm:$0xff] }
 0x335   : > { %v6503_v54 = vadd.f32 %v6495_v31, %v6458_v61  ;;  %v6504_v32 = vadd.f32 %v6496_v23, %v6459_v40  ;;  %v6505_v38 = vadd.f32 %v6497_v41, %v6460_v10  ;;  %v6506_v11 = vadd.f32 %v6498_v63, %v6461_v18  ;;  %v8310_v18 = vld [vmem:[%s9517_s16 + $0x360] sm:$0xff] }
 0x336   : > { %v6507_v60 = vadd.f32 %v6499_v29, %v6462_v19  ;;  %v6508_v42 = vadd.f32 %v6500_v15, %v6463_v52  ;;  %v6509_v56 = vadd.f32 %v6501_v58, %v6464_v50  ;;  %v6510_v9 = vadd.f32 %v6502_v48, %v6465_v1  ;;  %v8311_v1 = vld [vmem:[%s9517_s16 + $0x368] sm:$0xff]  ;;  %v8318_v15 = vld [vmem:[%s9520_s21 + $0x360] sm:$0xff] }
 0x337   : > { %v6524_v28 = vmul.f32 %v13609_v27, %v6517_v34  ;;  %v6525_v14 = vmul.f32 %v13610_v62, %v6521_v59  ;;  %v6526_v43 = vmul.f32 %v13611_v49, %v6517_v34  ;;  %v6527_v21 = vmul.f32 %v13612_v6, %v6521_v59 }
 0x338   : > { %v6528_v61 = vmul.f32 %v8302_v45, %v6517_v34  ;;  %v6529_v37 = vmul.f32 %v8303_v47, %v6521_v59  ;;  %v6530_v40 = vmul.f32 %v8304_v16, %v6517_v34  ;;  %v6531_v10 = vmul.f32 %v8305_v20, %v6521_v59  ;;  %v13614_v34 = vld [vmem:[#allocation66_spill] sm:$0xff]  ;;  %v13616_v45 = vld [vmem:[#allocation68_spill] sm:$0xff] }
 0x339   : > { %v6532_v19 = vadd.f32 %v6524_v28, %v6503_v54  ;;  %v6533_v52 = vadd.f32 %v6525_v14, %v6504_v32  ;;  %v6534_v50 = vadd.f32 %v6526_v43, %v6505_v38  ;;  %v6535_v24 = vadd.f32 %v6527_v21, %v6506_v11  ;;  %v8319_v20 = vld [vmem:[%s9520_s21 + $0x368] sm:$0xff]  ;;  %v8320_v54 = vld [vmem:[%s9520_s21 + $0x370] sm:$0xff]  ;;  %v8321_v32 = vld [vmem:[%s9520_s21 + $0x378] sm:$0xff] }
 0x33a   : > { %v6536_v26 = vadd.f32 %v6528_v61, %v6507_v60  ;;  %v6537_v31 = vadd.f32 %v6529_v37, %v6508_v42  ;;  %v6538_v55 = vadd.f32 %v6530_v40, %v6509_v56  ;;  %v6539_v23 = vadd.f32 %v6531_v10, %v6510_v9  ;;  %v6631_v21 = vld [vmem:[#allocation16 + $0x31] ss:$8 sm:$0x3]  ;;  %v6705_v10 = vld [vmem:[#allocation16 + $0x32] ss:$8 sm:$0x3] }
 0x33b   : > { %v6569_v41 = vmul.f32 %v13613_v3, %v6562_v44  ;;  %v6570_v59 = vmul.f32 %v13614_v34, %v6566_v30  ;;  %v6571_v63 = vmul.f32 %v13615_v22, %v6562_v44  ;;  %v6572_v29 = vmul.f32 %v13616_v45, %v6566_v30  ;;  %v8334_v45 = vld [vmem:[%s9520_s21 + $0x3e0] sm:$0xff] }
 0x33c   : > { %v6573_v58 = vmul.f32 %v8310_v18, %v6562_v44  ;;  %v6574_v48 = vmul.f32 %v8311_v1, %v6566_v30  ;;  %v6575_v47 = vmul.f32 %v8312_v12, %v6562_v44  ;;  %v6576_v16 = vmul.f32 %v8313_v46, %v6566_v30  ;;  %v8327_v1 = vld [vmem:[%s9517_s16 + $0x3e8] sm:$0xff]  ;;  %v8329_v12 = vld [vmem:[%s9517_s16 + $0x3f8] sm:$0xff] }
 0x33d   : > { %v6577_v38 = vadd.f32 %v6569_v41, %v6532_v19  ;;  %v6578_v11 = vadd.f32 %v6570_v59, %v6533_v52  ;;  %v6579_v60 = vadd.f32 %v6571_v63, %v6534_v50  ;;  %v6580_v42 = vadd.f32 %v6572_v29, %v6535_v24  ;;  %v8326_v24 = vld [vmem:[%s9517_s16 + $0x3e0] sm:$0xff] }
 0x33e   : > { %v6581_v56 = vadd.f32 %v6573_v58, %v6536_v26  ;;  %v6582_v9 = vadd.f32 %v6574_v48, %v6537_v31  ;;  %v6583_v27 = vadd.f32 %v6575_v47, %v6538_v55  ;;  %v6584_v28 = vadd.f32 %v6576_v16, %v6539_v23  ;;  %v8335_v47 = vld [vmem:[%s9520_s21 + $0x3e8] sm:$0xff]  ;;  %v8336_v16 = vld [vmem:[%s9520_s21 + $0x3f0] sm:$0xff] }
 0x33f   : > { %v6598_v62 = vmul.f32 %v11456_v57, %v11718_v8  ;;  %v6599_v14 = vmul.f32 %v11463_v35, %v11721_v17  ;;  %v6600_v44 = vmul.f32 %v11466_v13, %v11718_v8  ;;  %v6601_v30 = vmul.f32 %v11469_v39, %v11721_v17  ;;  %v6660_v35 = vld [vmem:[#allocation17 + $0x31] ss:$8 sm:$0x3]  ;;  %v6734_v39 = vld [vmem:[#allocation17 + $0x32] ss:$8 sm:$0x3] }
 0x340   : > { %v6602_v49 = vmul.f32 %v8318_v15, %v11718_v8  ;;  %v6603_v43 = vmul.f32 %v8319_v20, %v11721_v17  ;;  %v6604_v6 = vmul.f32 %v8320_v54, %v11718_v8  ;;  %v6605_v57 = vmul.f32 %v8321_v32, %v11721_v17  ;;  %v8328_v8 = vld [vmem:[%s9517_s16 + $0x3f0] sm:$0xff]  ;;  %v8337_v20 = vld [vmem:[%s9520_s21 + $0x3f8] sm:$0xff] }
 0x341   : > { %v6606_v61 = vadd.f32 %v6598_v62, %v6577_v38  ;;  %v6607_v37 = vadd.f32 %v6599_v14, %v6578_v11  ;;  %v6608_v13 = vadd.f32 %v6600_v44, %v6579_v60  ;;  %v6609_v40 = vadd.f32 %v6601_v30, %v6580_v42  ;;  %v13617_v42 = vld [vmem:[#allocation69_spill] sm:$0xff] }
 0x342   : > { %v6610_v18 = vadd.f32 %v6602_v49, %v6581_v56  ;;  %v6611_v19 = vadd.f32 %v6603_v43, %v6582_v9  ;;  %v6612_v52 = vadd.f32 %v6604_v6, %v6583_v27  ;;  %v6613_v50 = vadd.f32 %v6605_v57, %v6584_v28  ;;  %v13618_v9 = vld [vmem:[#allocation70_spill] sm:$0xff]  ;;  %v13619_v28 = vld [vmem:[#allocation71_spill] sm:$0xff] }
 0x343   : > { %v6636_v17 = vrot.slane %v6631_v21, %v13433_v0  ;;  %v6640_v46 = vrot.slane %v6631_v21, %v13424_v5  ;;  %v6665_v26 = vrot.slane %v6660_v35, %v13433_v0  ;;  %v6669_v31 = vrot.slane %v6660_v35, %v13424_v5  ;;  %v8342_v43 = vld [vmem:[%s9517_s16 + $0x460] sm:$0xff] }
 0x344   : > { %v6710_v55 = vrot.slane %v6705_v10, %v13433_v0  ;;  %v6714_v23 = vrot.slane %v6705_v10, %v13424_v5  ;;  %v11770_v3 = vrot.slane %v6734_v39, %v13433_v0  ;;  %v11773_v41 = vrot.slane %v6734_v39, %v13424_v5 }
 0x345   : > { %v6643_v34 = vmul.f32 %v11480_v2, %v6636_v17  ;;  %v6644_v59 = vmul.f32 %v11483_v25, %v6640_v46  ;;  %v6645_v22 = vmul.f32 %v11486_v7, %v6636_v17  ;;  %v6646_v63 = vmul.f32 %v11489_v51, %v6640_v46 }
 0x346   : > { %v6647_v29 = vmul.f32 %v8326_v24, %v6636_v17  ;;  %v6648_v15 = vmul.f32 %v8327_v1, %v6640_v46  ;;  %v6649_v58 = vmul.f32 %v8328_v8, %v6636_v17  ;;  %v6650_v48 = vmul.f32 %v8329_v12, %v6640_v46  ;;  %v13622_v24 = vld [vmem:[#allocation74_spill] sm:$0xff]  ;;  %v13623_v8 = vld [vmem:[#allocation75_spill] sm:$0xff] }
 0x347   : > { %v6651_v54 = vadd.f32 %v6643_v34, %v6606_v61  ;;  %v6652_v32 = vadd.f32 %v6644_v59, %v6607_v37  ;;  %v6653_v38 = vadd.f32 %v6645_v22, %v6608_v13  ;;  %v6654_v11 = vadd.f32 %v6646_v63, %v6609_v40  ;;  %v8343_v61 = vld [vmem:[%s9517_s16 + $0x468] sm:$0xff]  ;;  %v8344_v37 = vld [vmem:[%s9517_s16 + $0x470] sm:$0xff]  ;;  %v8350_v17 = vld [vmem:[%s9520_s21 + $0x460] sm:$0xff] }
 0x348   : > { %v6655_v2 = vadd.f32 %v6647_v29, %v6610_v18  ;;  %v6656_v60 = vadd.f32 %v6648_v15, %v6611_v19  ;;  %v6657_v25 = vadd.f32 %v6649_v58, %v6612_v52  ;;  %v6658_v7 = vadd.f32 %v6650_v48, %v6613_v50  ;;  %v13620_v18 = vld [vmem:[#allocation72_spill] sm:$0xff]  ;;  %v13621_v52 = vld [vmem:[#allocation73_spill] sm:$0xff]  ;;  %v8353_v63 = vld [vmem:[%s9520_s21 + $0x478] sm:$0xff] }
 0x349   : > { %v6672_v51 = vmul.f32 %v11496_v53, %v6665_v26  ;;  %v6673_v56 = vmul.f32 %v13617_v42, %v6669_v31  ;;  %v6674_v27 = vmul.f32 %v13618_v9, %v6665_v26  ;;  %v6675_v62 = vmul.f32 %v13619_v28, %v6669_v31  ;;  %v8345_v53 = vld [vmem:[%s9517_s16 + $0x478] sm:$0xff]  ;;  %v8351_v59 = vld [vmem:[%s9520_s21 + $0x468] sm:$0xff]  ;;  %v8352_v22 = vld [vmem:[%s9520_s21 + $0x470] sm:$0xff]  ;;  %s11834_s16 = scalar_lea.vmem [#allocation22], %s10115_s15 }
 0x34a   : > { %v6676_v14 = vmul.f32 %v8334_v45, %v6665_v26  ;;  %v6677_v44 = vmul.f32 %v8335_v47, %v6669_v31  ;;  %v6678_v30 = vmul.f32 %v8336_v16, %v6665_v26  ;;  %v6679_v49 = vmul.f32 %v8337_v20, %v6669_v31  ;;  %v698_v42 = vld [vmem:[#allocation11] ss:$8 sm:$0x3]  ;;  %s6826_s11 = sshll.u32 %s11834_s16, 4  ;;  %s12533_s11 = int_to_ptr.vmem [resolvable:$true] %s6826_s11 }
 0x34b   : > { %v6680_v6 = vadd.f32 %v6672_v51, %v6651_v54  ;;  %v6681_v57 = vadd.f32 %v6673_v56, %v6652_v32  ;;  %v6682_v21 = vadd.f32 %v6674_v27, %v6653_v38  ;;  %v6683_v35 = vadd.f32 %v6675_v62, %v6654_v11  ;;  %v13624_v32 = vld [vmem:[#allocation76_spill] sm:$0xff]  ;;  %s8889_s10 = scalar_lea.vmem %s12533_s11, 1024  ;;  %p8896_p2 = scmp.lt.s32.totalorder %s12533_s11, %s8894_s18 }
 0x34c   : > { %v6684_v13 = vadd.f32 %v6676_v14, %v6655_v2  ;;  %v6685_v40 = vadd.f32 %v6677_v44, %v6656_v60  ;;  %v6686_v10 = vadd.f32 %v6678_v30, %v6657_v25  ;;  %v6687_v39 = vadd.f32 %v6679_v49, %v6658_v7  ;;  %v670_v11 = vld [vmem:[#allocation10] ss:$8 sm:$0x3]  ;;  %v745_v62 = vld [vmem:[#allocation10 + $0x1] ss:$8 sm:$0x3]  ;;  %p8890_p3 = scmp.ne.s32.totalorder %s12533_s11, %s8889_s10  ;;  %p8897_p0 = scmp.lt.s32.totalorder %s8895_s6, %s8889_s10 }
 0x34d   : > { %v6717_v19 = vmul.f32 %v13620_v18, %v6710_v55  ;;  %v6718_v50 = vmul.f32 %v13621_v52, %v6714_v23  ;;  %v6719_v1 = vmul.f32 %v13622_v24, %v6710_v55  ;;  %v6720_v12 = vmul.f32 %v13623_v8, %v6714_v23  ;;  %v655_v51 = vld [vmem:[%s9501_s12 + $0x8] sm:$0xff]  ;;  %v11816_v49 = vld [vmem:[%s9501_s12 + $0x20] sm:$0xff]  ;;  %v11864_v8 = vld [vmem:[%s9511_s29 + $0x38] sm:$0xff] }
 0x34e   : > { %v6721_v46 = vmul.f32 %v8342_v43, %v6710_v55  ;;  %v6722_v26 = vmul.f32 %v8343_v61, %v6714_v23  ;;  %v6723_v31 = vmul.f32 %v8344_v37, %v6710_v55  ;;  %v6724_v34 = vmul.f32 %v8345_v53, %v6714_v23  ;;  %v11819_v43 = vld [vmem:[%s9501_s12 + $0x28] sm:$0xff]  ;;  %p8891_p9 = pnand %p8890_p3, %p13524_p5  ;;  %p8898_p1 = por %p8897_p0, %p8896_p2 }
 0x34f   : > { %v6725_v45 = vadd.f32 %v6717_v19, %v6680_v6  ;;  %v6726_v29 = vadd.f32 %v6718_v50, %v6681_v57  ;;  %v6727_v15 = vadd.f32 %v6719_v1, %v6682_v21  ;;  %v6728_v58 = vadd.f32 %v6720_v12, %v6683_v35  ;;  %v11822_v6 = vld [vmem:[%s9501_s12 + $0x30] sm:$0xff]  ;;  %v11825_v57 = vld [vmem:[%s9501_s12 + $0x38] sm:$0xff]  ;;  %v662_v21 = vld [vmem:[%s9511_s29] sm:$0xff] }
 0x350   : > { %v6729_v48 = vadd.f32 %v6721_v46, %v6684_v13  ;;  %v6730_v47 = vadd.f32 %v6722_v26, %v6685_v40  ;;  %v6731_v16 = vadd.f32 %v6723_v31, %v6686_v10  ;;  %v6732_v20 = vadd.f32 %v6724_v34, %v6687_v39  ;;  %v663_v35 = vld [vmem:[%s9511_s29 + $0x8] sm:$0xff]  ;;  %v664_v40 = vld [vmem:[%s9511_s29 + $0x10] sm:$0xff]  ;;  %v665_v10 = vld [vmem:[%s9511_s29 + $0x18] sm:$0xff]  ;;  %p8892_p8 = pneg %p8891_p9 }
 0x351   : > { %v6746_v54 = vmul.f32 %v11556_v33, %v11770_v3  ;;  %v6747_v55 = vmul.f32 %v11563_v4, %v11773_v41  ;;  %v6748_v23 = vmul.f32 %v11566_v36, %v11770_v3  ;;  %v6749_v38 = vmul.f32 %v13624_v32, %v11773_v41  ;;  %v654_v33 = vld [vmem:[%s9501_s12] sm:$0xff]  ;;  %v656_v4 = vld [vmem:[%s9501_s12 + $0x10] sm:$0xff]  ;;  %v657_v36 = vld [vmem:[%s9501_s12 + $0x18] sm:$0xff] }
 0x352   : > { %v6750_v2 = vmul.f32 %v8350_v17, %v11770_v3  ;;  %v6751_v60 = vmul.f32 %v8351_v59, %v11773_v41  ;;  %v6752_v25 = vmul.f32 %v8352_v22, %v11770_v3  ;;  %v6753_v7 = vmul.f32 %v8353_v63, %v11773_v41  ;;  %v774_v3 = vld [vmem:[#allocation11 + $0x1] ss:$8 sm:$0x3]  ;;  %v11861_v1 = vld [vmem:[%s9511_s29 + $0x30] sm:$0xff]  ;;  %p8899_p4 = pnand %p8898_p1, %p8892_p8 }
 0x353   : > { %v6754_v56 = vadd.f32 %v6746_v54, %v6725_v45  ;;  %v6755_v9 = vadd.f32 %v6747_v55, %v6726_v29  ;;  %v6756_v27 = vadd.f32 %v6748_v23, %v6727_v15  ;;  %v6757_v28 = vadd.f32 %v6749_v38, %v6728_v58  ;;  %v11843_v39 = vld [vmem:[%s9511_s29 + $0x20] sm:$0xff]  ;;  %v11858_v24 = vld [vmem:[%s9511_s29 + $0x28] sm:$0xff]  ;;  %v7108_v55 = vld [vmem:[%s9501_s12 + $0x90] sm:$0xff] }
 0x354   : > { %v6758_v14 = vadd.f32 %v6750_v2, %v6729_v48  ;;  %v6759_v41 = vadd.f32 %v6751_v60, %v6730_v47  ;;  %v6760_v44 = vadd.f32 %v6752_v25, %v6731_v16  ;;  %v6761_v30 = vadd.f32 %v6753_v7, %v6732_v20  ;;  %v7106_v58 = vld [vmem:[%s9501_s12 + $0x80] sm:$0xff]  ;;  %v7107_v48 = vld [vmem:[%s9501_s12 + $0x88] sm:$0xff]  ;;  %v7109_v23 = vld [vmem:[%s9501_s12 + $0x98] sm:$0xff] }
 0x355   : > { %v675_v61 = vrot.slane %v670_v11, %v13433_v0  ;;  %v679_v37 = vrot.slane %v670_v11, %v13424_v5  ;;  %v703_v53 = vrot.slane %v698_v42, %v13433_v0  ;;  %v707_v13 = vrot.slane %v698_v42, %v13424_v5  ;;  %6762 = vst [vmem:[%s11834_s16] sm:$0xff] %v6754_v56  ;;  %v11879_v32 = vld [vmem:[%s9501_s12 + $0xa0] sm:$0xff]  ;;  %v11882_v25 = vld [vmem:[%s9501_s12 + $0xa8] sm:$0xff]  ;;  %v11885_v7 = vld [vmem:[%s9501_s12 + $0xb0] sm:$0xff] }
 0x356   : > { %6763 = vst [vmem:[%s11834_s16 + $0x8] sm:$0xff] %v6755_v9  ;;  %6764 = vst [vmem:[%s11834_s16 + $0x10] sm:$0xff] %v6756_v27  ;;  %v750_v18 = vrot.slane %v745_v62, %v13433_v0  ;;  %v754_v19 = vrot.slane %v745_v62, %v13424_v5  ;;  %v11848_v52 = vrot.slane %v774_v3, %v13433_v0  ;;  %v7114_v56 = vld [vmem:[%s9511_s29 + $0x80] sm:$0xff]  ;;  %v7115_v9 = vld [vmem:[%s9511_s29 + $0x88] sm:$0xff] }
 0x357   : > { %6765 = vst [vmem:[%s11834_s16 + $0x18] sm:$0xff] %v6757_v28  ;;  %v11851_v50 = vrot.slane %v774_v3, %v13424_v5  ;;  %6766 = vst [vmem:[%s11834_s16 + $0x20] sm:$0xff] %v6758_v14  ;;  %v682_v12 = vmul.f32 %v675_v61, %v654_v33  ;;  %v683_v17 = vmul.f32 %v679_v37, %v655_v51  ;;  %v11888_v33 = vld [vmem:[%s9501_s12 + $0xb8] sm:$0xff]  ;;  %v7116_v14 = vld [vmem:[%s9511_s29 + $0x90] sm:$0xff] }
 0x358   : > { %6767 = vst [vmem:[%s11834_s16 + $0x28] sm:$0xff] %v6759_v41  ;;  %6768 = vst [vmem:[%s11834_s16 + $0x30] sm:$0xff] %v6760_v44  ;;  %v684_v46 = vmul.f32 %v675_v61, %v656_v4  ;;  %v685_v26 = vmul.f32 %v679_v37, %v657_v36  ;;  %v686_v31 = vmul.f32 %v675_v61, %v11816_v49  ;;  %v7117_v41 = vld [vmem:[%s9511_s29 + $0x98] sm:$0xff]  ;;  %v11895_v44 = vld [vmem:[%s9511_s29 + $0xa0] sm:$0xff] }
 0x359   : > { %6769 = vst [vmem:[%s11834_s16 + $0x38] sm:$0xff] %v6761_v30  ;;  %v687_v34 = vmul.f32 %v679_v37, %v11819_v43  ;;  %v688_v59 = vmul.f32 %v675_v61, %v11822_v6  ;;  %v689_v22 = vmul.f32 %v679_v37, %v11825_v57  ;;  %v710_v63 = vmul.f32 %v703_v53, %v662_v21  ;;  %v11902_v37 = vld [vmem:[%s9511_s29 + $0xa8] sm:$0xff] }
 0x35a   : > { %v711_v45 = vmul.f32 %v707_v13, %v663_v35  ;;  %v712_v29 = vmul.f32 %v703_v53, %v664_v40  ;;  %v713_v15 = vmul.f32 %v707_v13, %v665_v10  ;;  %v714_v47 = vmul.f32 %v703_v53, %v11843_v39 }
 0x35b   : > { %v715_v16 = vmul.f32 %v707_v13, %v11858_v24  ;;  %v716_v20 = vmul.f32 %v703_v53, %v11861_v1  ;;  %v717_v54 = vmul.f32 %v707_v13, %v11864_v8  ;;  %v718_v38 = vadd.f32 %v710_v63, %v682_v12  ;;  %v11905_v53 = vld [vmem:[%s9511_s29 + $0xb0] sm:$0xff]  ;;  %v11908_v13 = vld [vmem:[%s9511_s29 + $0xb8] sm:$0xff]  ;;  %v821_v63 = vld [vmem:[#allocation10 + $0x2] ss:$8 sm:$0x3] }
 0x35c   : > { %v719_v11 = vadd.f32 %v711_v45, %v683_v17  ;;  %v720_v2 = vadd.f32 %v712_v29, %v684_v46  ;;  %v721_v60 = vadd.f32 %v713_v15, %v685_v26  ;;  %v722_v51 = vadd.f32 %v714_v47, %v686_v31  ;;  %v7123_v47 = vld [vmem:[%s9501_s12 + $0x108] sm:$0xff] }
 0x35d   : > { %v723_v4 = vadd.f32 %v715_v16, %v687_v34  ;;  %v724_v36 = vadd.f32 %v716_v20, %v688_v59  ;;  %v725_v42 = vadd.f32 %v717_v54, %v689_v22  ;;  %v757_v27 = vmul.f32 %v7106_v58, %v750_v18  ;;  %v850_v16 = vld [vmem:[#allocation11 + $0x2] ss:$8 sm:$0x3] }
 0x35e   : > { %v758_v28 = vmul.f32 %v7107_v48, %v754_v19  ;;  %v759_v62 = vmul.f32 %v7108_v55, %v750_v18  ;;  %v760_v3 = vmul.f32 %v7109_v23, %v754_v19  ;;  %v761_v30 = vmul.f32 %v11879_v32, %v750_v18  ;;  %v7122_v48 = vld [vmem:[%s9501_s12 + $0x100] sm:$0xff] }
 0x35f   : > { %v762_v21 = vmul.f32 %v11882_v25, %v754_v19  ;;  %v763_v35 = vmul.f32 %v11885_v7, %v750_v18  ;;  %v764_v61 = vmul.f32 %v11888_v33, %v754_v19  ;;  %v765_v40 = vadd.f32 %v757_v27, %v718_v38  ;;  %v897_v38 = vld [vmem:[#allocation10 + $0x3] ss:$8 sm:$0x3] }
 0x360   : > { %v766_v10 = vadd.f32 %v758_v28, %v719_v11  ;;  %v767_v12 = vadd.f32 %v759_v62, %v720_v2  ;;  %v768_v17 = vadd.f32 %v760_v3, %v721_v60  ;;  %v769_v46 = vadd.f32 %v761_v30, %v722_v51  ;;  %v926_v11 = vld [vmem:[#allocation11 + $0x3] ss:$8 sm:$0x3] }
 0x361   : > { %v770_v26 = vadd.f32 %v762_v21, %v723_v4  ;;  %v771_v31 = vadd.f32 %v763_v35, %v724_v36  ;;  %v772_v34 = vadd.f32 %v764_v61, %v725_v42  ;;  %v786_v18 = vmul.f32 %v7114_v56, %v11848_v52  ;;  %v7125_v4 = vld [vmem:[%s9501_s12 + $0x118] sm:$0xff]  ;;  %v11927_v36 = vld [vmem:[%s9501_s12 + $0x120] sm:$0xff]  ;;  %v11930_v42 = vld [vmem:[%s9501_s12 + $0x128] sm:$0xff] }
 0x362   : > { %v787_v19 = vmul.f32 %v7115_v9, %v11851_v50  ;;  %v788_v59 = vmul.f32 %v7116_v14, %v11848_v52  ;;  %v789_v22 = vmul.f32 %v7117_v41, %v11851_v50  ;;  %v790_v45 = vmul.f32 %v11895_v44, %v11848_v52  ;;  %v11933_v56 = vld [vmem:[%s9501_s12 + $0x130] sm:$0xff]  ;;  %v11936_v9 = vld [vmem:[%s9501_s12 + $0x138] sm:$0xff]  ;;  %v7130_v35 = vld [vmem:[%s9511_s29 + $0x100] sm:$0xff] }
 0x363   : > { %v791_v29 = vmul.f32 %v11902_v37, %v11851_v50  ;;  %v792_v15 = vmul.f32 %v11905_v53, %v11848_v52  ;;  %v793_v58 = vmul.f32 %v11908_v13, %v11851_v50  ;;  %v794_v20 = vadd.f32 %v786_v18, %v765_v40  ;;  %v7124_v50 = vld [vmem:[%s9501_s12 + $0x110] sm:$0xff]  ;;  %13625 = vst [vmem:[#allocation77_spill] sm:$0xff] %v11933_v56  ;;  %v7131_v61 = vld [vmem:[%s9511_s29 + $0x108] sm:$0xff] }
 0x364   : > { %v795_v54 = vadd.f32 %v787_v19, %v766_v10  ;;  %v796_v55 = vadd.f32 %v788_v59, %v767_v12  ;;  %v797_v23 = vadd.f32 %v789_v22, %v768_v17  ;;  %v798_v2 = vadd.f32 %v790_v45, %v769_v46  ;;  %13626 = vst [vmem:[#allocation78_spill] sm:$0xff] %v11936_v9  ;;  %v7132_v46 = vld [vmem:[%s9511_s29 + $0x110] sm:$0xff]  ;;  %v11966_v22 = vld [vmem:[%s9511_s29 + $0x128] sm:$0xff]  ;;  %v11972_v45 = vld [vmem:[%s9511_s29 + $0x138] sm:$0xff] }
 0x365   : > { %v799_v60 = vadd.f32 %v791_v29, %v770_v26  ;;  %v800_v52 = vadd.f32 %v792_v15, %v771_v31  ;;  %v801_v51 = vadd.f32 %v793_v58, %v772_v34  ;;  %v826_v27 = vrot.slane %v821_v63, %v13433_v0  ;;  %v7133_v26 = vld [vmem:[%s9511_s29 + $0x118] sm:$0xff]  ;;  %v11959_v31 = vld [vmem:[%s9511_s29 + $0x120] sm:$0xff]  ;;  %13628 = vst [vmem:[#allocation80_spill] sm:$0xff] %v11966_v22 }
 0x366   : > { %v830_v28 = vrot.slane %v821_v63, %v13424_v5  ;;  %v855_v62 = vrot.slane %v850_v16, %v13433_v0  ;;  %v859_v3 = vrot.slane %v850_v16, %v13424_v5  ;;  %v11943_v14 = vrot.slane %v897_v38, %v13433_v0  ;;  %13627 = vst [vmem:[#allocation79_spill] sm:$0xff] %v11959_v31  ;;  %v11969_v63 = vld [vmem:[%s9511_s29 + $0x130] sm:$0xff] }
 0x367   : > { %v11946_v41 = vrot.slane %v897_v38, %v13424_v5  ;;  %v11949_v30 = vrot.slane %v926_v11, %v13433_v0  ;;  %v11952_v21 = vrot.slane %v926_v11, %v13424_v5  ;;  %v833_v40 = vmul.f32 %v7122_v48, %v826_v27  ;;  %13629 = vst [vmem:[#allocation81_spill] sm:$0xff] %v11969_v63 }
 0x368   : > { %v834_v10 = vmul.f32 %v7123_v47, %v830_v28  ;;  %v835_v12 = vmul.f32 %v7124_v50, %v826_v27  ;;  %v836_v17 = vmul.f32 %v7125_v4, %v830_v28  ;;  %v837_v34 = vmul.f32 %v11927_v36, %v826_v27  ;;  %13630 = vst [vmem:[#allocation82_spill] sm:$0xff] %v11972_v45 }
 0x369   : > { %v838_v18 = vmul.f32 %v11930_v42, %v830_v28  ;;  %v839_v19 = vmul.f32 %v11933_v56, %v826_v27  ;;  %v840_v59 = vmul.f32 %v11936_v9, %v830_v28  ;;  %v841_v29 = vadd.f32 %v833_v40, %v794_v20  ;;  %v7138_v9 = vld [vmem:[%s9501_s12 + $0x180] sm:$0xff]  ;;  %v7139_v56 = vld [vmem:[%s9501_s12 + $0x188] sm:$0xff] }
 0x36a   : > { %v842_v15 = vadd.f32 %v834_v10, %v795_v54  ;;  %v843_v58 = vadd.f32 %v835_v12, %v796_v55  ;;  %v844_v48 = vadd.f32 %v836_v17, %v797_v23  ;;  %v845_v47 = vadd.f32 %v837_v34, %v798_v2  ;;  %v7140_v2 = vld [vmem:[%s9501_s12 + $0x190] sm:$0xff]  ;;  %v11986_v10 = vld [vmem:[%s9501_s12 + $0x1a8] sm:$0xff]  ;;  %v7146_v34 = vld [vmem:[%s9511_s29 + $0x180] sm:$0xff] }
 0x36b   : > { %v846_v16 = vadd.f32 %v838_v18, %v799_v60  ;;  %v847_v38 = vadd.f32 %v839_v19, %v800_v52  ;;  %v848_v11 = vadd.f32 %v840_v59, %v801_v51  ;;  %v862_v50 = vmul.f32 %v7130_v35, %v855_v62  ;;  %v7141_v60 = vld [vmem:[%s9501_s12 + $0x198] sm:$0xff]  ;;  %v11983_v52 = vld [vmem:[%s9501_s12 + $0x1a0] sm:$0xff]  ;;  %13632 = vst [vmem:[#allocation84_spill] sm:$0xff] %v11986_v10  ;;  %v11989_v12 = vld [vmem:[%s9501_s12 + $0x1b0] sm:$0xff] }
 0x36c   : > { %v863_v4 = vmul.f32 %v7131_v61, %v859_v3  ;;  %v864_v27 = vmul.f32 %v7132_v46, %v855_v62  ;;  %v865_v28 = vmul.f32 %v7133_v26, %v859_v3  ;;  %v866_v20 = vmul.f32 %v11959_v31, %v855_v62  ;;  %13631 = vst [vmem:[#allocation83_spill] sm:$0xff] %v11983_v52  ;;  %v7147_v18 = vld [vmem:[%s9511_s29 + $0x188] sm:$0xff] }
 0x36d   : > { %v867_v54 = vmul.f32 %v11966_v22, %v859_v3  ;;  %v868_v55 = vmul.f32 %v11969_v63, %v855_v62  ;;  %v869_v23 = vmul.f32 %v11972_v45, %v859_v3  ;;  %v870_v51 = vadd.f32 %v862_v50, %v841_v29  ;;  %13633 = vst [vmem:[#allocation85_spill] sm:$0xff] %v11989_v12  ;;  %v11992_v62 = vld [vmem:[%s9501_s12 + $0x1b8] sm:$0xff]  ;;  %v12003_v50 = vld [vmem:[%s9511_s29 + $0x1a0] sm:$0xff]  ;;  %v7171_v31 = vld [vmem:[%s9501_s12 + $0x288] sm:$0xff] }
 0x36e   : > { %v871_v35 = vadd.f32 %v863_v4, %v842_v15  ;;  %v872_v61 = vadd.f32 %v864_v27, %v843_v58  ;;  %v873_v40 = vadd.f32 %v865_v28, %v844_v48  ;;  %13634 = vst [vmem:[#allocation86_spill] sm:$0xff] %v11992_v62  ;;  %v874_v17 = vadd.f32 %v866_v20, %v845_v47  ;;  %v7148_v58 = vld [vmem:[%s9511_s29 + $0x190] sm:$0xff]  ;;  %v7149_v48 = vld [vmem:[%s9511_s29 + $0x198] sm:$0xff]  ;;  %v7170_v22 = vld [vmem:[%s9501_s12 + $0x280] sm:$0xff] }
 0x36f   : > { %v875_v3 = vadd.f32 %v867_v54, %v846_v16  ;;  %v876_v46 = vadd.f32 %v868_v55, %v847_v38  ;;  %v877_v26 = vadd.f32 %v869_v23, %v848_v11  ;;  %v909_v19 = vmul.f32 %v7138_v9, %v11943_v14  ;;  %13635 = vst [vmem:[#allocation87_spill] sm:$0xff] %v12003_v50  ;;  %v12014_v9 = vld [vmem:[%s9511_s29 + $0x1a8] sm:$0xff]  ;;  %v12017_v11 = vld [vmem:[%s9511_s29 + $0x1b0] sm:$0xff]  ;;  %v12020_v4 = vld [vmem:[%s9511_s29 + $0x1b8] sm:$0xff] }
 0x370   : > { %v910_v59 = vmul.f32 %v7139_v56, %v11946_v41  ;;  %v911_v29 = vmul.f32 %v7140_v2, %v11943_v14  ;;  %v912_v15 = vmul.f32 %v7141_v60, %v11946_v41  ;;  %v913_v47 = vmul.f32 %v11983_v52, %v11943_v14  ;;  %13636 = vst [vmem:[#allocation88_spill] sm:$0xff] %v12014_v9 }
 0x371   : > { %v914_v16 = vmul.f32 %v11986_v10, %v11946_v41  ;;  %v915_v38 = vmul.f32 %v11989_v12, %v11943_v14  ;;  %v916_v56 = vmul.f32 %v11992_v62, %v11946_v41  ;;  %13637 = vst [vmem:[#allocation89_spill] sm:$0xff] %v12017_v11  ;;  %13638 = vst [vmem:[#allocation90_spill] sm:$0xff] %v12020_v4  ;;  %v973_v10 = vld [vmem:[#allocation10 + $0x4] ss:$8 sm:$0x3] }
 0x372   : > { %v917_v27 = vadd.f32 %v909_v19, %v870_v51  ;;  %v918_v28 = vadd.f32 %v910_v59, %v871_v35  ;;  %v919_v20 = vadd.f32 %v911_v29, %v872_v61  ;;  %v920_v54 = vadd.f32 %v912_v15, %v873_v40  ;;  %v1049_v59 = vld [vmem:[#allocation10 + $0x5] ss:$8 sm:$0x3] }
 0x373   : > { %v921_v55 = vadd.f32 %v913_v47, %v874_v17  ;;  %v922_v23 = vadd.f32 %v914_v16, %v875_v3  ;;  %v923_v2 = vadd.f32 %v915_v38, %v876_v46  ;;  %v924_v60 = vadd.f32 %v916_v56, %v877_v26  ;;  %v7154_v17 = vld [vmem:[%s9501_s12 + $0x200] sm:$0xff]  ;;  %v7155_v3 = vld [vmem:[%s9501_s12 + $0x208] sm:$0xff]  ;;  %v7157_v47 = vld [vmem:[%s9501_s12 + $0x218] sm:$0xff] }
 0x374   : > { %v938_v14 = vmul.f32 %v7146_v34, %v11949_v30  ;;  %v939_v41 = vmul.f32 %v7147_v18, %v11952_v21  ;;  %v940_v62 = vmul.f32 %v7148_v58, %v11949_v30  ;;  %v941_v12 = vmul.f32 %v7149_v48, %v11952_v21  ;;  %v1002_v46 = vld [vmem:[#allocation11 + $0x4] ss:$8 sm:$0x3]  ;;  %v1078_v29 = vld [vmem:[#allocation11 + $0x5] ss:$8 sm:$0x3] }
 0x375   : > { %v942_v51 = vmul.f32 %v12003_v50, %v11949_v30  ;;  %v943_v35 = vmul.f32 %v12014_v9, %v11952_v21  ;;  %v944_v61 = vmul.f32 %v12017_v11, %v11949_v30  ;;  %v945_v40 = vmul.f32 %v12020_v4, %v11952_v21  ;;  %v7156_v21 = vld [vmem:[%s9501_s12 + $0x210] sm:$0xff]  ;;  %v12039_v16 = vld [vmem:[%s9501_s12 + $0x220] sm:$0xff]  ;;  %v12042_v38 = vld [vmem:[%s9501_s12 + $0x228] sm:$0xff] }
 0x376   : > { %v946_v26 = vadd.f32 %v938_v14, %v917_v27  ;;  %v947_v34 = vadd.f32 %v939_v41, %v918_v28  ;;  %v948_v18 = vadd.f32 %v940_v62, %v919_v20  ;;  %v949_v19 = vadd.f32 %v941_v12, %v920_v54  ;;  %13639 = vst [vmem:[#allocation91_spill] sm:$0xff] %v12039_v16  ;;  %v12045_v56 = vld [vmem:[%s9501_s12 + $0x230] sm:$0xff]  ;;  %v12048_v27 = vld [vmem:[%s9501_s12 + $0x238] sm:$0xff]  ;;  %v12078_v9 = vld [vmem:[%s9511_s29 + $0x228] sm:$0xff] }
 0x377   : > { %v950_v15 = vadd.f32 %v942_v51, %v921_v55  ;;  %v951_v58 = vadd.f32 %v943_v35, %v922_v23  ;;  %v952_v30 = vadd.f32 %v944_v61, %v923_v2  ;;  %v953_v48 = vadd.f32 %v945_v40, %v924_v60  ;;  %13640 = vst [vmem:[#allocation92_spill] sm:$0xff] %v12042_v38  ;;  %v7163_v60 = vld [vmem:[%s9511_s29 + $0x208] sm:$0xff]  ;;  %v7164_v61 = vld [vmem:[%s9511_s29 + $0x210] sm:$0xff]  ;;  %v7165_v40 = vld [vmem:[%s9511_s29 + $0x218] sm:$0xff] }
 0x378   : > { %13641 = vst [vmem:[#allocation54_spill] sm:$0xff] %v12045_v56  ;;  %13642 = vst [vmem:[#allocation41_spill] sm:$0xff] %v12048_v27  ;;  %v978_v12 = vrot.slane %v973_v10, %v13433_v0  ;;  %v982_v62 = vrot.slane %v973_v10, %v13424_v5  ;;  %v1007_v28 = vrot.slane %v1002_v46, %v13433_v0  ;;  %v7162_v10 = vld [vmem:[%s9511_s29 + $0x200] sm:$0xff] }
 0x379   : > { %v1011_v20 = vrot.slane %v1002_v46, %v13424_v5  ;;  %v12055_v54 = vrot.slane %v1049_v59, %v13433_v0  ;;  %v12058_v55 = vrot.slane %v1049_v59, %v13424_v5  ;;  %v12061_v23 = vrot.slane %v1078_v29, %v13433_v0  ;;  %v12071_v46 = vld [vmem:[%s9511_s29 + $0x220] sm:$0xff]  ;;  %13644 = vst [vmem:[#allocation94_spill] sm:$0xff] %v12078_v9 }
 0x37a   : > { %v12064_v2 = vrot.slane %v1078_v29, %v13424_v5  ;;  %v985_v14 = vmul.f32 %v7154_v17, %v978_v12  ;;  %v986_v41 = vmul.f32 %v7155_v3, %v982_v62  ;;  %v987_v51 = vmul.f32 %v7156_v21, %v978_v12  ;;  %13643 = vst [vmem:[#allocation93_spill] sm:$0xff] %v12071_v46  ;;  %v12081_v17 = vld [vmem:[%s9511_s29 + $0x230] sm:$0xff]  ;;  %v12084_v3 = vld [vmem:[%s9511_s29 + $0x238] sm:$0xff] }
 0x37b   : > { %v988_v35 = vmul.f32 %v7157_v47, %v982_v62  ;;  %v989_v59 = vmul.f32 %v12039_v16, %v978_v12  ;;  %v990_v4 = vmul.f32 %v12042_v38, %v982_v62  ;;  %v991_v11 = vmul.f32 %v12045_v56, %v978_v12  ;;  %13645 = vst [vmem:[#allocation42_spill] sm:$0xff] %v12081_v17 }
 0x37c   : > { %v992_v29 = vmul.f32 %v12048_v27, %v982_v62  ;;  %13646 = vst [vmem:[#allocation44_spill] sm:$0xff] %v12084_v3  ;;  %v993_v21 = vadd.f32 %v985_v14, %v946_v26  ;;  %v994_v47 = vadd.f32 %v986_v41, %v947_v34  ;;  %v995_v50 = vadd.f32 %v987_v51, %v948_v18  ;;  %v12101_v14 = vld [vmem:[%s9501_s12 + $0x2b0] sm:$0xff] }
 0x37d   : > { %v996_v52 = vadd.f32 %v988_v35, %v949_v19  ;;  %v997_v16 = vadd.f32 %v989_v59, %v950_v15  ;;  %v998_v38 = vadd.f32 %v990_v4, %v951_v58  ;;  %v999_v12 = vadd.f32 %v991_v11, %v952_v30  ;;  %v7172_v11 = vld [vmem:[%s9501_s12 + $0x290] sm:$0xff]  ;;  %v7173_v19 = vld [vmem:[%s9501_s12 + $0x298] sm:$0xff]  ;;  %v12095_v15 = vld [vmem:[%s9501_s12 + $0x2a0] sm:$0xff]  ;;  %13649 = vst [vmem:[#allocation50_spill] sm:$0xff] %v12101_v14 }
 0x37e   : > { %v1000_v56 = vadd.f32 %v992_v29, %v953_v48  ;;  %v1014_v62 = vmul.f32 %v7162_v10, %v1007_v28  ;;  %v1015_v27 = vmul.f32 %v7163_v60, %v1011_v20  ;;  %v1016_v45 = vmul.f32 %v7164_v61, %v1007_v28  ;;  %13647 = vst [vmem:[#allocation49_spill] sm:$0xff] %v12095_v15  ;;  %v12098_v60 = vld [vmem:[%s9501_s12 + $0x2a8] sm:$0xff]  ;;  %v7178_v61 = vld [vmem:[%s9511_s29 + $0x280] sm:$0xff]  ;;  %v7181_v59 = vld [vmem:[%s9511_s29 + $0x298] sm:$0xff] }
 0x37f   : > { %v1017_v63 = vmul.f32 %v7165_v40, %v1011_v20  ;;  %v1018_v26 = vmul.f32 %v12071_v46, %v1007_v28  ;;  %v1019_v34 = vmul.f32 %v12078_v9, %v1011_v20  ;;  %v1020_v18 = vmul.f32 %v12081_v17, %v1007_v28  ;;  %13648 = vst [vmem:[#allocation46_spill] sm:$0xff] %v12098_v60  ;;  %v12104_v28 = vld [vmem:[%s9501_s12 + $0x2b8] sm:$0xff]  ;;  %v7180_v40 = vld [vmem:[%s9511_s29 + $0x290] sm:$0xff]  ;;  %v12115_v29 = vld [vmem:[%s9511_s29 + $0x2a0] sm:$0xff] }
 0x380   : > { %v1021_v4 = vmul.f32 %v12084_v3, %v1011_v20  ;;  %v1022_v58 = vadd.f32 %v1014_v62, %v993_v21  ;;  %v1023_v30 = vadd.f32 %v1015_v27, %v994_v47  ;;  %v1024_v48 = vadd.f32 %v1016_v45, %v995_v50  ;;  %13650 = vst [vmem:[#allocation47_spill] sm:$0xff] %v12104_v28  ;;  %v7179_v27 = vld [vmem:[%s9511_s29 + $0x288] sm:$0xff]  ;;  %v12129_v21 = vld [vmem:[%s9511_s29 + $0x2b0] sm:$0xff]  ;;  %v12132_v47 = vld [vmem:[%s9511_s29 + $0x2b8] sm:$0xff] }
 0x381   : > { %v1025_v10 = vadd.f32 %v1017_v63, %v996_v52  ;;  %v1026_v41 = vadd.f32 %v1018_v26, %v997_v16  ;;  %v1027_v20 = vadd.f32 %v1019_v34, %v998_v38  ;;  %v1028_v51 = vadd.f32 %v1020_v18, %v999_v12  ;;  %13651 = vst [vmem:[#allocation51_spill] sm:$0xff] %v12115_v29  ;;  %v7202_v9 = vld [vmem:[%s9501_s12 + $0x380] sm:$0xff]  ;;  %v7203_v46 = vld [vmem:[%s9501_s12 + $0x388] sm:$0xff] }
 0x382   : > { %v1029_v35 = vadd.f32 %v1021_v4, %v1000_v56  ;;  %v1061_v45 = vmul.f32 %v7170_v22, %v12055_v54  ;;  %v1062_v63 = vmul.f32 %v7171_v31, %v12058_v55  ;;  %v1063_v52 = vmul.f32 %v7172_v11, %v12055_v54  ;;  %v12126_v22 = vld [vmem:[%s9511_s29 + $0x2a8] sm:$0xff]  ;;  %13653 = vst [vmem:[#allocation40_spill] sm:$0xff] %v12129_v21 }
 0x383   : > { %v1064_v50 = vmul.f32 %v7173_v19, %v12058_v55  ;;  %v1065_v16 = vmul.f32 %v12095_v15, %v12055_v54  ;;  %v1066_v38 = vmul.f32 %v12098_v60, %v12058_v55  ;;  %v1067_v56 = vmul.f32 %v12101_v14, %v12055_v54  ;;  %13652 = vst [vmem:[#allocation52_spill] sm:$0xff] %v12126_v22  ;;  %v1125_v60 = vld [vmem:[#allocation10 + $0x6] ss:$8 sm:$0x3] }
 0x384   : > { %v1068_v31 = vmul.f32 %v12104_v28, %v12058_v55  ;;  %13654 = vst [vmem:[#allocation43_spill] sm:$0xff] %v12132_v47  ;;  %v1069_v12 = vadd.f32 %v1061_v45, %v1022_v58  ;;  %v1070_v62 = vadd.f32 %v1062_v63, %v1023_v30  ;;  %v1071_v26 = vadd.f32 %v1063_v52, %v1024_v48  ;;  %v1201_v63 = vld [vmem:[#allocation10 + $0x7] ss:$8 sm:$0x3] }
 0x385   : > { %v1072_v34 = vadd.f32 %v1064_v50, %v1025_v10  ;;  %v1073_v18 = vadd.f32 %v1065_v16, %v1026_v41  ;;  %v1074_v4 = vadd.f32 %v1066_v38, %v1027_v20  ;;  %v1075_v11 = vadd.f32 %v1067_v56, %v1028_v51  ;;  %v7186_v41 = vld [vmem:[%s9501_s12 + $0x300] sm:$0xff]  ;;  %v7187_v20 = vld [vmem:[%s9501_s12 + $0x308] sm:$0xff]  ;;  %v7189_v16 = vld [vmem:[%s9501_s12 + $0x318] sm:$0xff] }
 0x386   : > { %v1076_v19 = vadd.f32 %v1068_v31, %v1029_v35  ;;  %v1090_v54 = vmul.f32 %v7178_v61, %v12061_v23  ;;  %v1091_v55 = vmul.f32 %v7179_v27, %v12064_v2  ;;  %v1092_v28 = vmul.f32 %v7180_v40, %v12061_v23  ;;  %v1154_v51 = vld [vmem:[#allocation11 + $0x6] ss:$8 sm:$0x3]  ;;  %v1230_v52 = vld [vmem:[#allocation11 + $0x7] ss:$8 sm:$0x3] }
 0x387   : > { %v1093_v14 = vmul.f32 %v7181_v59, %v12064_v2  ;;  %v1094_v58 = vmul.f32 %v12115_v29, %v12061_v23  ;;  %v1095_v30 = vmul.f32 %v12126_v22, %v12064_v2  ;;  %v1096_v48 = vmul.f32 %v12129_v21, %v12061_v23  ;;  %v12151_v38 = vld [vmem:[%s9501_s12 + $0x320] sm:$0xff]  ;;  %v12154_v56 = vld [vmem:[%s9501_s12 + $0x328] sm:$0xff]  ;;  %v12157_v31 = vld [vmem:[%s9501_s12 + $0x330] sm:$0xff] }
 0x388   : > { %v1097_v10 = vmul.f32 %v12132_v47, %v12064_v2  ;;  %v1098_v35 = vadd.f32 %v1090_v54, %v1069_v12  ;;  %v1099_v61 = vadd.f32 %v1091_v55, %v1070_v62  ;;  %v1100_v27 = vadd.f32 %v1092_v28, %v1071_v26  ;;  %v7188_v2 = vld [vmem:[%s9501_s12 + $0x310] sm:$0xff]  ;;  %13655 = vst [vmem:[#allocation45_spill] sm:$0xff] %v12151_v38  ;;  %v12160_v12 = vld [vmem:[%s9501_s12 + $0x338] sm:$0xff]  ;;  %v12190_v22 = vld [vmem:[%s9511_s29 + $0x328] sm:$0xff] }
 0x389   : > { %v1101_v45 = vadd.f32 %v1093_v14, %v1072_v34  ;;  %v1102_v50 = vadd.f32 %v1094_v58, %v1073_v18  ;;  %v1103_v40 = vadd.f32 %v1095_v30, %v1074_v4  ;;  %v1104_v23 = vadd.f32 %v1096_v48, %v1075_v11  ;;  %13656 = vst [vmem:[#allocation48_spill] sm:$0xff] %v12154_v56  ;;  %v7196_v48 = vld [vmem:[%s9511_s29 + $0x310] sm:$0xff] }
 0x38a   : > { %v1105_v59 = vadd.f32 %v1097_v10, %v1076_v19  ;;  %13657 = vst [vmem:[#allocation53_spill] sm:$0xff] %v12157_v31  ;;  %13658 = vst [vmem:[#allocation39_spill] sm:$0xff] %v12160_v12  ;;  %v1130_v14 = vrot.slane %v1125_v60, %v13433_v0  ;;  %v1134_v28 = vrot.slane %v1125_v60, %v13424_v5  ;;  %v7194_v60 = vld [vmem:[%s9511_s29 + $0x300] sm:$0xff]  ;;  %v7195_v19 = vld [vmem:[%s9511_s29 + $0x308] sm:$0xff] }
 0x38b   : > { %v1159_v62 = vrot.slane %v1154_v51, %v13433_v0  ;;  %v1163_v26 = vrot.slane %v1154_v51, %v13424_v5  ;;  %v12167_v34 = vrot.slane %v1201_v63, %v13433_v0  ;;  %v12170_v18 = vrot.slane %v1201_v63, %v13424_v5  ;;  %v7197_v10 = vld [vmem:[%s9511_s29 + $0x318] sm:$0xff]  ;;  %v12183_v51 = vld [vmem:[%s9511_s29 + $0x320] sm:$0xff]  ;;  %13660 = vst [vmem:[#allocation56_spill] sm:$0xff] %v12190_v22 }
 0x38c   : > { %v12173_v4 = vrot.slane %v1230_v52, %v13433_v0  ;;  %v12176_v11 = vrot.slane %v1230_v52, %v13424_v5  ;;  %v1137_v54 = vmul.f32 %v7186_v41, %v1130_v14  ;;  %v1138_v55 = vmul.f32 %v7187_v20, %v1134_v28  ;;  %13659 = vst [vmem:[#allocation55_spill] sm:$0xff] %v12183_v51  ;;  %v12193_v41 = vld [vmem:[%s9511_s29 + $0x330] sm:$0xff]  ;;  %v12196_v20 = vld [vmem:[%s9511_s29 + $0x338] sm:$0xff] }
 0x38d   : > { %v1139_v58 = vmul.f32 %v7188_v2, %v1130_v14  ;;  %v1140_v30 = vmul.f32 %v7189_v16, %v1134_v28  ;;  %v1141_v63 = vmul.f32 %v12151_v38, %v1130_v14  ;;  %v1142_v47 = vmul.f32 %v12154_v56, %v1134_v28  ;;  %13661 = vst [vmem:[#allocation57_spill] sm:$0xff] %v12193_v41 }
 0x38e   : > { %v1143_v21 = vmul.f32 %v12157_v31, %v1130_v14  ;;  %v1144_v52 = vmul.f32 %v12160_v12, %v1134_v28  ;;  %13662 = vst [vmem:[#allocation58_spill] sm:$0xff] %v12196_v20  ;;  %v1145_v2 = vadd.f32 %v1137_v54, %v1098_v35  ;;  %v1146_v16 = vadd.f32 %v1138_v55, %v1099_v61  ;;  %v12213_v54 = vld [vmem:[%s9501_s12 + $0x3b0] sm:$0xff] }
 0x38f   : > { %v1147_v29 = vadd.f32 %v1139_v58, %v1100_v27  ;;  %v1148_v15 = vadd.f32 %v1140_v30, %v1101_v45  ;;  %v1149_v38 = vadd.f32 %v1141_v63, %v1102_v50  ;;  %v1150_v56 = vadd.f32 %v1142_v47, %v1103_v40  ;;  %v7205_v45 = vld [vmem:[%s9501_s12 + $0x398] sm:$0xff]  ;;  %v12207_v50 = vld [vmem:[%s9501_s12 + $0x3a0] sm:$0xff]  ;;  %13665 = vst [vmem:[#allocation61_spill] sm:$0xff] %v12213_v54 }
 0x390   : > { %v1151_v14 = vadd.f32 %v1143_v21, %v1104_v23  ;;  %v1152_v31 = vadd.f32 %v1144_v52, %v1105_v59  ;;  %v1166_v28 = vmul.f32 %v7194_v60, %v1159_v62  ;;  %v1167_v12 = vmul.f32 %v7195_v19, %v1163_v26  ;;  %v7204_v21 = vld [vmem:[%s9501_s12 + $0x390] sm:$0xff]  ;;  %13663 = vst [vmem:[#allocation59_spill] sm:$0xff] %v12207_v50  ;;  %v12210_v19 = vld [vmem:[%s9501_s12 + $0x3a8] sm:$0xff]  ;;  %v7213_v63 = vld [vmem:[%s9511_s29 + $0x398] sm:$0xff] }
 0x391   : > { %v1168_v3 = vmul.f32 %v7196_v48, %v1159_v62  ;;  %v1169_v17 = vmul.f32 %v7197_v10, %v1163_v26  ;;  %v1170_v35 = vmul.f32 %v12183_v51, %v1159_v62  ;;  %v1171_v61 = vmul.f32 %v12190_v22, %v1163_v26  ;;  %13664 = vst [vmem:[#allocation60_spill] sm:$0xff] %v12210_v19  ;;  %v7210_v48 = vld [vmem:[%s9511_s29 + $0x380] sm:$0xff]  ;;  %v7212_v10 = vld [vmem:[%s9511_s29 + $0x390] sm:$0xff] }
 0x392   : > { %v1172_v27 = vmul.f32 %v12193_v41, %v1159_v62  ;;  %v1173_v47 = vmul.f32 %v12196_v20, %v1163_v26  ;;  %v1174_v40 = vadd.f32 %v1166_v28, %v1145_v2  ;;  %v1175_v23 = vadd.f32 %v1167_v12, %v1146_v16  ;;  %v12216_v62 = vld [vmem:[%s9501_s12 + $0x3b8] sm:$0xff]  ;;  %v7211_v12 = vld [vmem:[%s9511_s29 + $0x388] sm:$0xff]  ;;  %v12227_v52 = vld [vmem:[%s9511_s29 + $0x3a0] sm:$0xff] }
 0x393   : > { %v1176_v59 = vadd.f32 %v1168_v3, %v1147_v29  ;;  %v1177_v60 = vadd.f32 %v1169_v17, %v1148_v15  ;;  %13666 = vst [vmem:[#allocation62_spill] sm:$0xff] %v12216_v62  ;;  %v1178_v55 = vadd.f32 %v1170_v35, %v1149_v38  ;;  %v1179_v26 = vadd.f32 %v1171_v61, %v1150_v56  ;;  %v12241_v2 = vld [vmem:[%s9511_s29 + $0x3b0] sm:$0xff]  ;;  %v12244_v16 = vld [vmem:[%s9511_s29 + $0x3b8] sm:$0xff] }
 0x394   : > { %v1180_v58 = vadd.f32 %v1172_v27, %v1151_v14  ;;  %v1181_v30 = vadd.f32 %v1173_v47, %v1152_v31  ;;  %v1213_v3 = vmul.f32 %v7202_v9, %v12167_v34  ;;  %v1214_v17 = vmul.f32 %v7203_v46, %v12170_v18  ;;  %13667 = vst [vmem:[#allocation63_spill] sm:$0xff] %v12227_v52  ;;  %v12238_v46 = vld [vmem:[%s9511_s29 + $0x3a8] sm:$0xff] }
 0x395   : > { %v1215_v15 = vmul.f32 %v7204_v21, %v12167_v34  ;;  %v1216_v29 = vmul.f32 %v7205_v45, %v12170_v18  ;;  %v1217_v38 = vmul.f32 %v12207_v50, %v12167_v34  ;;  %v1218_v56 = vmul.f32 %v12210_v19, %v12170_v18  ;;  %13668 = vst [vmem:[#allocation64_spill] sm:$0xff] %v12238_v46  ;;  %v1277_v19 = vld [vmem:[#allocation10 + $0x10] ss:$8 sm:$0x3] }
 0x396   : > { %v1219_v31 = vmul.f32 %v12213_v54, %v12167_v34  ;;  %v1220_v9 = vmul.f32 %v12216_v62, %v12170_v18  ;;  %13669 = vst [vmem:[#allocation65_spill] sm:$0xff] %v12241_v2  ;;  %13670 = vst [vmem:[#allocation66_spill] sm:$0xff] %v12244_v16  ;;  %v1221_v14 = vadd.f32 %v1213_v3, %v1174_v40 }
 0x397   : > { %v1222_v28 = vadd.f32 %v1214_v17, %v1175_v23  ;;  %v1223_v35 = vadd.f32 %v1215_v15, %v1176_v59  ;;  %v1224_v61 = vadd.f32 %v1216_v29, %v1177_v60  ;;  %v1225_v27 = vadd.f32 %v1217_v38, %v1178_v55  ;;  %v7218_v55 = vld [vmem:[%s9501_s12 + $0x400] sm:$0xff]  ;;  %v1353_v17 = vld [vmem:[#allocation10 + $0x11] ss:$8 sm:$0x3] }
 0x398   : > { %v1226_v47 = vadd.f32 %v1218_v56, %v1179_v26  ;;  %v1227_v21 = vadd.f32 %v1219_v31, %v1180_v58  ;;  %v1228_v45 = vadd.f32 %v1220_v9, %v1181_v30  ;;  %v1242_v34 = vmul.f32 %v7210_v48, %v12173_v4  ;;  %v7219_v26 = vld [vmem:[%s9501_s12 + $0x408] sm:$0xff]  ;;  %v1306_v58 = vld [vmem:[#allocation11 + $0x10] ss:$8 sm:$0x3]  ;;  %v12263_v56 = vld [vmem:[%s9501_s12 + $0x420] sm:$0xff] }
 0x399   : > { %v1243_v18 = vmul.f32 %v7211_v12, %v12176_v11  ;;  %v1244_v62 = vmul.f32 %v7212_v10, %v12173_v4  ;;  %v1245_v54 = vmul.f32 %v7213_v63, %v12176_v11  ;;  %v1246_v40 = vmul.f32 %v12227_v52, %v12173_v4  ;;  %v1382_v15 = vld [vmem:[#allocation11 + $0x11] ss:$8 sm:$0x3]  ;;  %13671 = vst [vmem:[#allocation67_spill] sm:$0xff] %v12263_v56  ;;  %v12266_v31 = vld [vmem:[%s9501_s12 + $0x428] sm:$0xff] }
 0x39a   : > { %v1247_v23 = vmul.f32 %v12238_v46, %v12176_v11  ;;  %v1248_v59 = vmul.f32 %v12241_v2, %v12173_v4  ;;  %v1249_v60 = vmul.f32 %v12244_v16, %v12176_v11  ;;  %v1250_v30 = vadd.f32 %v1242_v34, %v1221_v14  ;;  %v7220_v11 = vld [vmem:[%s9501_s12 + $0x410] sm:$0xff]  ;;  %v7221_v38 = vld [vmem:[%s9501_s12 + $0x418] sm:$0xff]  ;;  %13672 = vst [vmem:[#allocation68_spill] sm:$0xff] %v12266_v31  ;;  %v7227_v34 = vld [vmem:[%s9511_s29 + $0x408] sm:$0xff] }
 0x39b   : > { %v1251_v48 = vadd.f32 %v1243_v18, %v1222_v28  ;;  %v1252_v12 = vadd.f32 %v1244_v62, %v1223_v35  ;;  %v1253_v3 = vadd.f32 %v1245_v54, %v1224_v61  ;;  %v1254_v29 = vadd.f32 %v1246_v40, %v1225_v27  ;;  %v12269_v9 = vld [vmem:[%s9501_s12 + $0x430] sm:$0xff]  ;;  %v12272_v14 = vld [vmem:[%s9501_s12 + $0x438] sm:$0xff]  ;;  %v12298_v46 = vld [vmem:[%s9511_s29 + $0x428] sm:$0xff] }
 0x39c   : > { %v1255_v10 = vadd.f32 %v1247_v23, %v1226_v47  ;;  %v1256_v4 = vadd.f32 %v1248_v59, %v1227_v21  ;;  %v1257_v63 = vadd.f32 %v1249_v60, %v1228_v45  ;;  %13673 = vst [vmem:[#allocation69_spill] sm:$0xff] %v12269_v9  ;;  %13674 = vst [vmem:[#allocation70_spill] sm:$0xff] %v12272_v14  ;;  %v7226_v45 = vld [vmem:[%s9511_s29 + $0x400] sm:$0xff]  ;;  %v7228_v59 = vld [vmem:[%s9511_s29 + $0x410] sm:$0xff] }
 0x39d   : > { %v1282_v54 = vrot.slane %v1277_v19, %v13433_v0  ;;  %v1286_v62 = vrot.slane %v1277_v19, %v13424_v5  ;;  %v1311_v28 = vrot.slane %v1306_v58, %v13433_v0  ;;  %v1315_v35 = vrot.slane %v1306_v58, %v13424_v5  ;;  %v7229_v60 = vld [vmem:[%s9511_s29 + $0x418] sm:$0xff]  ;;  %v12291_v58 = vld [vmem:[%s9511_s29 + $0x420] sm:$0xff]  ;;  %v12301_v52 = vld [vmem:[%s9511_s29 + $0x430] sm:$0xff] }
 0x39e   : > { %v1358_v61 = vrot.slane %v1353_v17, %v13433_v0  ;;  %v1362_v27 = vrot.slane %v1353_v17, %v13424_v5  ;;  %v12281_v47 = vrot.slane %v1382_v15, %v13433_v0  ;;  %v12284_v21 = vrot.slane %v1382_v15, %v13424_v5 }
 0x39f   : > { %v1289_v19 = vmul.f32 %v7218_v55, %v1282_v54  ;;  %v1290_v18 = vmul.f32 %v7219_v26, %v1286_v62  ;;  %v1291_v40 = vmul.f32 %v7220_v11, %v1282_v54  ;;  %v1292_v23 = vmul.f32 %v7221_v38, %v1286_v62  ;;  %v12304_v55 = vld [vmem:[%s9511_s29 + $0x438] sm:$0xff] }
 0x3a0   : > { %v1293_v17 = vmul.f32 %v12263_v56, %v1282_v54  ;;  %v1294_v16 = vmul.f32 %v12266_v31, %v1286_v62  ;;  %v1295_v2 = vmul.f32 %v12269_v9, %v1282_v54  ;;  %v1296_v15 = vmul.f32 %v12272_v14, %v1286_v62 }
 0x3a1   : > { %v1297_v26 = vadd.f32 %v1289_v19, %v1250_v30  ;;  %v1298_v11 = vadd.f32 %v1290_v18, %v1251_v48  ;;  %v1299_v38 = vadd.f32 %v1291_v40, %v1252_v12  ;;  %v1300_v50 = vadd.f32 %v1292_v23, %v1253_v3  ;;  %v12311_v12 = vld [vmem:[%s9501_s12 + $0x40] sm:$0xff] }
 0x3a2   : > { %v1301_v20 = vadd.f32 %v1293_v17, %v1254_v29  ;;  %v1302_v41 = vadd.f32 %v1294_v16, %v1255_v10  ;;  %v1303_v56 = vadd.f32 %v1295_v2, %v1256_v4  ;;  %v1304_v31 = vadd.f32 %v1296_v15, %v1257_v63  ;;  %v12314_v10 = vld [vmem:[%s9501_s12 + $0x48] sm:$0xff]  ;;  %v12317_v4 = vld [vmem:[%s9501_s12 + $0x50] sm:$0xff]  ;;  %v12320_v63 = vld [vmem:[%s9501_s12 + $0x58] sm:$0xff] }
 0x3a3   : > { %v1318_v54 = vmul.f32 %v7226_v45, %v1311_v28  ;;  %v1319_v62 = vmul.f32 %v7227_v34, %v1315_v35  ;;  %v1320_v14 = vmul.f32 %v7228_v59, %v1311_v28  ;;  %v1321_v9 = vmul.f32 %v7229_v60, %v1315_v35 }
 0x3a4   : > { %v1322_v22 = vmul.f32 %v12291_v58, %v1311_v28  ;;  %v1323_v51 = vmul.f32 %v12298_v46, %v1315_v35  ;;  %v1324_v30 = vmul.f32 %v12301_v52, %v1311_v28  ;;  %v1325_v48 = vmul.f32 %v12304_v55, %v1315_v35 }
 0x3a5   : > { %v1326_v16 = vadd.f32 %v1318_v54, %v1297_v26  ;;  %v1327_v2 = vadd.f32 %v1319_v62, %v1298_v11  ;;  %v1328_v3 = vadd.f32 %v1320_v14, %v1299_v38  ;;  %v1329_v29 = vadd.f32 %v1321_v9, %v1300_v50  ;;  %v12327_v9 = vld [vmem:[%s9511_s29 + $0x40] sm:$0xff]  ;;  %v1458_v54 = vld [vmem:[#allocation11 + $0x12] ss:$8 sm:$0x3] }
 0x3a6   : > { %v1330_v45 = vadd.f32 %v1322_v22, %v1301_v20  ;;  %v1331_v28 = vadd.f32 %v1323_v51, %v1302_v41  ;;  %v1332_v34 = vadd.f32 %v1324_v30, %v1303_v56  ;;  %v1333_v35 = vadd.f32 %v1325_v48, %v1304_v31  ;;  %v12334_v51 = vld [vmem:[%s9511_s29 + $0x48] sm:$0xff]  ;;  %v12337_v41 = vld [vmem:[%s9511_s29 + $0x50] sm:$0xff] }
 0x3a7   : > { %v1365_v19 = vmul.f32 %v1358_v61, %v11816_v49  ;;  %v1366_v18 = vmul.f32 %v1362_v27, %v11819_v43  ;;  %v1367_v14 = vmul.f32 %v1358_v61, %v11822_v6  ;;  %v1368_v50 = vmul.f32 %v1362_v27, %v11825_v57  ;;  %v12340_v49 = vld [vmem:[%s9511_s29 + $0x58] sm:$0xff] }
 0x3a8   : > { %v1369_v40 = vmul.f32 %v12311_v12, %v1358_v61  ;;  %v1370_v23 = vmul.f32 %v12314_v10, %v1362_v27  ;;  %v1371_v59 = vmul.f32 %v12317_v4, %v1358_v61  ;;  %v1372_v22 = vmul.f32 %v12320_v63, %v1362_v27 }
 0x3a9   : > { %v1373_v43 = vadd.f32 %v1365_v19, %v1326_v16  ;;  %v1374_v6 = vadd.f32 %v1366_v18, %v1327_v2  ;;  %v1375_v20 = vadd.f32 %v1367_v14, %v1328_v3  ;;  %v1376_v57 = vadd.f32 %v1368_v50, %v1329_v29  ;;  %v1505_v16 = vld [vmem:[#allocation10 + $0x13] ss:$8 sm:$0x3] }
 0x3aa   : > { %v1377_v56 = vadd.f32 %v1369_v40, %v1330_v45  ;;  %v1378_v31 = vadd.f32 %v1370_v23, %v1331_v28  ;;  %v1379_v60 = vadd.f32 %v1371_v59, %v1332_v34  ;;  %v1380_v17 = vadd.f32 %v1372_v22, %v1333_v35  ;;  %v1534_v2 = vld [vmem:[#allocation11 + $0x13] ss:$8 sm:$0x3]  ;;  %v12359_v34 = vld [vmem:[%s9501_s12 + $0xc0] sm:$0xff] }
 0x3ab   : > { %v1394_v15 = vmul.f32 %v12281_v47, %v11843_v39  ;;  %v1395_v61 = vmul.f32 %v12284_v21, %v11858_v24  ;;  %v1396_v27 = vmul.f32 %v12281_v47, %v11861_v1  ;;  %v1397_v26 = vmul.f32 %v12284_v21, %v11864_v8  ;;  %v1429_v1 = vld [vmem:[#allocation10 + $0x12] ss:$8 sm:$0x3] }
 0x3ac   : > { %v1398_v11 = vmul.f32 %v12327_v9, %v12281_v47  ;;  %v1399_v38 = vmul.f32 %v12334_v51, %v12284_v21  ;;  %v1400_v39 = vmul.f32 %v12337_v41, %v12281_v47  ;;  %v1401_v24 = vmul.f32 %v12340_v49, %v12284_v21  ;;  %v12362_v47 = vld [vmem:[%s9501_s12 + $0xc8] sm:$0xff]  ;;  %v12365_v35 = vld [vmem:[%s9501_s12 + $0xd0] sm:$0xff]  ;;  %v12368_v21 = vld [vmem:[%s9501_s12 + $0xd8] sm:$0xff] }
 0x3ad   : > { %v1402_v62 = vadd.f32 %v1394_v15, %v1373_v43  ;;  %v1403_v8 = vadd.f32 %v1395_v61, %v1374_v6  ;;  %v1404_v30 = vadd.f32 %v1396_v27, %v1375_v20  ;;  %v1405_v48 = vadd.f32 %v1397_v26, %v1376_v57  ;;  %v12394_v61 = vld [vmem:[%s9511_s29 + $0xc8] sm:$0xff]  ;;  %v12397_v27 = vld [vmem:[%s9511_s29 + $0xd0] sm:$0xff] }
 0x3ae   : > { %v1406_v3 = vadd.f32 %v1398_v11, %v1377_v56  ;;  %v1407_v29 = vadd.f32 %v1399_v38, %v1378_v31  ;;  %v1408_v45 = vadd.f32 %v1400_v39, %v1379_v60  ;;  %v1409_v28 = vadd.f32 %v1401_v24, %v1380_v17  ;;  %v12387_v56 = vld [vmem:[%s9511_s29 + $0xc0] sm:$0xff] }
 0x3af   : > { %v1434_v19 = vrot.slane %v1429_v1, %v13433_v0  ;;  %v1438_v18 = vrot.slane %v1429_v1, %v13424_v5  ;;  %v1463_v14 = vrot.slane %v1458_v54, %v13433_v0  ;;  %v1467_v50 = vrot.slane %v1458_v54, %v13424_v5 }
 0x3b0   : > { %v1510_v40 = vrot.slane %v1505_v16, %v13433_v0  ;;  %v1514_v23 = vrot.slane %v1505_v16, %v13424_v5  ;;  %v12377_v59 = vrot.slane %v1534_v2, %v13433_v0  ;;  %v12380_v22 = vrot.slane %v1534_v2, %v13424_v5 }
 0x3b1   : > { %v1441_v43 = vmul.f32 %v11879_v32, %v1434_v19  ;;  %v1442_v6 = vmul.f32 %v11882_v25, %v1438_v18  ;;  %v1443_v20 = vmul.f32 %v11885_v7, %v1434_v19  ;;  %v1444_v57 = vmul.f32 %v11888_v33, %v1438_v18  ;;  %v12400_v32 = vld [vmem:[%s9511_s29 + $0xd8] sm:$0xff] }
 0x3b2   : > { %v1445_v31 = vmul.f32 %v12359_v34, %v1434_v19  ;;  %v1446_v60 = vmul.f32 %v12362_v47, %v1438_v18  ;;  %v1447_v17 = vmul.f32 %v12365_v35, %v1434_v19  ;;  %v1448_v15 = vmul.f32 %v12368_v21, %v1438_v18 }
 0x3b3   : > { %v1449_v25 = vadd.f32 %v1441_v43, %v1402_v62  ;;  %v1450_v7 = vadd.f32 %v1442_v6, %v1403_v8  ;;  %v1451_v33 = vadd.f32 %v1443_v20, %v1404_v30  ;;  %v1452_v26 = vadd.f32 %v1444_v57, %v1405_v48  ;;  %v13679_v20 = vld [vmem:[#allocation77_spill] sm:$0xff] }
 0x3b4   : > { %v1453_v11 = vadd.f32 %v1445_v31, %v1406_v3  ;;  %v1454_v38 = vadd.f32 %v1446_v60, %v1407_v29  ;;  %v1455_v39 = vadd.f32 %v1447_v17, %v1408_v45  ;;  %v1456_v24 = vadd.f32 %v1448_v15, %v1409_v28  ;;  %v12411_v3 = vld [vmem:[%s9501_s12 + $0x140] sm:$0xff]  ;;  %v13680_v31 = vld [vmem:[#allocation78_spill] sm:$0xff] }
 0x3b5   : > { %v1470_v1 = vmul.f32 %v11895_v44, %v1463_v14  ;;  %v1471_v54 = vmul.f32 %v11902_v37, %v1467_v50  ;;  %v1472_v16 = vmul.f32 %v11905_v53, %v1463_v14  ;;  %v1473_v2 = vmul.f32 %v11908_v13, %v1467_v50  ;;  %13675 = vst [vmem:[#allocation71_spill] sm:$0xff] %v12411_v3  ;;  %v12414_v37 = vld [vmem:[%s9501_s12 + $0x148] sm:$0xff]  ;;  %v12417_v53 = vld [vmem:[%s9501_s12 + $0x150] sm:$0xff]  ;;  %v12420_v13 = vld [vmem:[%s9501_s12 + $0x158] sm:$0xff] }
 0x3b6   : > { %v1474_v62 = vmul.f32 %v12387_v56, %v1463_v14  ;;  %v1475_v8 = vmul.f32 %v12394_v61, %v1467_v50  ;;  %v1476_v30 = vmul.f32 %v12397_v27, %v1463_v14  ;;  %v1477_v48 = vmul.f32 %v12400_v32, %v1467_v50  ;;  %13676 = vst [vmem:[#allocation72_spill] sm:$0xff] %v12414_v37  ;;  %v12427_v17 = vld [vmem:[%s9511_s29 + $0x140] sm:$0xff] }
 0x3b7   : > { %v1478_v29 = vadd.f32 %v1470_v1, %v1449_v25  ;;  %v1479_v45 = vadd.f32 %v1471_v54, %v1450_v7  ;;  %v1480_v44 = vadd.f32 %v1472_v16, %v1451_v33  ;;  %v1481_v28 = vadd.f32 %v1473_v2, %v1452_v26  ;;  %13677 = vst [vmem:[#allocation73_spill] sm:$0xff] %v12417_v53  ;;  %v12434_v26 = vld [vmem:[%s9511_s29 + $0x148] sm:$0xff] }
 0x3b8   : > { %13678 = vst [vmem:[#allocation74_spill] sm:$0xff] %v12420_v13  ;;  %v1482_v19 = vadd.f32 %v1474_v62, %v1453_v11  ;;  %v1483_v18 = vadd.f32 %v1475_v8, %v1454_v38  ;;  %v1484_v14 = vadd.f32 %v1476_v30, %v1455_v39  ;;  %v1485_v50 = vadd.f32 %v1477_v48, %v1456_v24  ;;  %v12437_v11 = vld [vmem:[%s9511_s29 + $0x150] sm:$0xff]  ;;  %v13685_v62 = vld [vmem:[#allocation79_spill] sm:$0xff] }
 0x3b9   : > { %v1517_v43 = vmul.f32 %v11927_v36, %v1510_v40  ;;  %v1518_v6 = vmul.f32 %v11930_v42, %v1514_v23  ;;  %v1519_v57 = vmul.f32 %v13679_v20, %v1510_v40  ;;  %v1520_v60 = vmul.f32 %v13680_v31, %v1514_v23  ;;  %13681 = vst [vmem:[#allocation75_spill] sm:$0xff] %v12427_v17  ;;  %v12440_v36 = vld [vmem:[%s9511_s29 + $0x158] sm:$0xff]  ;;  %v13687_v30 = vld [vmem:[#allocation81_spill] sm:$0xff] }
 0x3ba   : > { %v1521_v15 = vmul.f32 %v12411_v3, %v1510_v40  ;;  %v1522_v25 = vmul.f32 %v12414_v37, %v1514_v23  ;;  %v1523_v7 = vmul.f32 %v12417_v53, %v1510_v40  ;;  %v1524_v33 = vmul.f32 %v12420_v13, %v1514_v23  ;;  %13682 = vst [vmem:[#allocation76_spill] sm:$0xff] %v12434_v26  ;;  %v13686_v40 = vld [vmem:[#allocation80_spill] sm:$0xff]  ;;  %v13688_v20 = vld [vmem:[#allocation82_spill] sm:$0xff]  ;;  %v13703_v13 = vld [vmem:[#allocation89_spill] sm:$0xff] }
 0x3bb   : > { %13683 = vst [vmem:[#allocation77_spill] sm:$0xff] %v12437_v11  ;;  %13684 = vst [vmem:[#allocation78_spill] sm:$0xff] %v12440_v36  ;;  %v1525_v42 = vadd.f32 %v1517_v43, %v1478_v29  ;;  %v1526_v38 = vadd.f32 %v1518_v6, %v1479_v45  ;;  %v1527_v39 = vadd.f32 %v1519_v57, %v1480_v44  ;;  %v1657_v57 = vld [vmem:[#allocation10 + $0x15] ss:$8 sm:$0x3] }
 0x3bc   : > { %v1528_v24 = vadd.f32 %v1520_v60, %v1481_v28  ;;  %v1529_v1 = vadd.f32 %v1521_v15, %v1482_v19  ;;  %v1530_v54 = vadd.f32 %v1522_v25, %v1483_v18  ;;  %v1531_v16 = vadd.f32 %v1523_v7, %v1484_v14  ;;  %v1581_v19 = vld [vmem:[#allocation10 + $0x14] ss:$8 sm:$0x3]  ;;  %v1686_v60 = vld [vmem:[#allocation11 + $0x15] ss:$8 sm:$0x3] }
 0x3bd   : > { %v1532_v2 = vadd.f32 %v1524_v33, %v1485_v50  ;;  %v1546_v8 = vmul.f32 %v13685_v62, %v12377_v59  ;;  %v1547_v23 = vmul.f32 %v13686_v40, %v12380_v22  ;;  %v1548_v48 = vmul.f32 %v13687_v30, %v12377_v59  ;;  %v1610_v18 = vld [vmem:[#allocation11 + $0x14] ss:$8 sm:$0x3]  ;;  %v12459_v62 = vld [vmem:[%s9501_s12 + $0x1c0] sm:$0xff]  ;;  %v13694_v30 = vld [vmem:[#allocation84_spill] sm:$0xff] }
 0x3be   : > { %v1549_v31 = vmul.f32 %v13688_v20, %v12380_v22  ;;  %v1550_v29 = vmul.f32 %v12427_v17, %v12377_v59  ;;  %v1551_v45 = vmul.f32 %v12434_v26, %v12380_v22  ;;  %v1552_v44 = vmul.f32 %v12437_v11, %v12377_v59  ;;  %13689 = vst [vmem:[#allocation79_spill] sm:$0xff] %v12459_v62  ;;  %v12462_v59 = vld [vmem:[%s9501_s12 + $0x1c8] sm:$0xff]  ;;  %v12465_v40 = vld [vmem:[%s9501_s12 + $0x1d0] sm:$0xff]  ;;  %v13704_v37 = vld [vmem:[#allocation90_spill] sm:$0xff] }
 0x3bf   : > { %v1553_v28 = vmul.f32 %v12440_v36, %v12380_v22  ;;  %v1554_v14 = vadd.f32 %v1546_v8, %v1525_v42  ;;  %v1555_v50 = vadd.f32 %v1547_v23, %v1526_v38  ;;  %v1556_v43 = vadd.f32 %v1548_v48, %v1527_v39  ;;  %13690 = vst [vmem:[#allocation80_spill] sm:$0xff] %v12462_v59  ;;  %v12468_v22 = vld [vmem:[%s9501_s12 + $0x1d8] sm:$0xff]  ;;  %v13693_v8 = vld [vmem:[#allocation83_spill] sm:$0xff]  ;;  %v13695_v20 = vld [vmem:[#allocation85_spill] sm:$0xff] }
 0x3c0   : > { %v1557_v6 = vadd.f32 %v1549_v31, %v1528_v24  ;;  %v1558_v15 = vadd.f32 %v1550_v29, %v1529_v1  ;;  %v1559_v25 = vadd.f32 %v1551_v45, %v1530_v54  ;;  %v1560_v7 = vadd.f32 %v1552_v44, %v1531_v16  ;;  %13691 = vst [vmem:[#allocation81_spill] sm:$0xff] %v12465_v40  ;;  %v13696_v29 = vld [vmem:[#allocation86_spill] sm:$0xff]  ;;  %v12491_v44 = vld [vmem:[%s9511_s29 + $0x1c0] sm:$0xff] }
 0x3c1   : > { %v1561_v33 = vadd.f32 %v1553_v28, %v1532_v2  ;;  %13692 = vst [vmem:[#allocation82_spill] sm:$0xff] %v12468_v22  ;;  %v1586_v42 = vrot.slane %v1581_v19, %v13433_v0  ;;  %v1590_v38 = vrot.slane %v1581_v19, %v13424_v5  ;;  %v1615_v39 = vrot.slane %v1610_v18, %v13433_v0 }
 0x3c2   : > { %v1619_v24 = vrot.slane %v1610_v18, %v13424_v5  ;;  %v12475_v1 = vrot.slane %v1657_v57, %v13433_v0  ;;  %v12478_v54 = vrot.slane %v1657_v57, %v13424_v5  ;;  %v12481_v16 = vrot.slane %v1686_v60, %v13433_v0  ;;  %13697 = vst [vmem:[#allocation83_spill] sm:$0xff] %v12491_v44 }
 0x3c3   : > { %v12484_v2 = vrot.slane %v1686_v60, %v13424_v5  ;;  %v1593_v23 = vmul.f32 %v13693_v8, %v1586_v42  ;;  %v1594_v48 = vmul.f32 %v13694_v30, %v1590_v38  ;;  %v1595_v31 = vmul.f32 %v13695_v20, %v1586_v42  ;;  %v12498_v60 = vld [vmem:[%s9511_s29 + $0x1c8] sm:$0xff]  ;;  %v12501_v8 = vld [vmem:[%s9511_s29 + $0x1d0] sm:$0xff]  ;;  %v12504_v30 = vld [vmem:[%s9511_s29 + $0x1d8] sm:$0xff] }
 0x3c4   : > { %v1596_v45 = vmul.f32 %v13696_v29, %v1590_v38  ;;  %v1597_v28 = vmul.f32 %v12459_v62, %v1586_v42  ;;  %v1598_v19 = vmul.f32 %v12462_v59, %v1590_v38  ;;  %v1599_v18 = vmul.f32 %v12465_v40, %v1586_v42  ;;  %13698 = vst [vmem:[#allocation84_spill] sm:$0xff] %v12498_v60  ;;  %v13701_v42 = vld [vmem:[#allocation87_spill] sm:$0xff] }
 0x3c5   : > { %v1600_v57 = vmul.f32 %v12468_v22, %v1590_v38  ;;  %13699 = vst [vmem:[#allocation85_spill] sm:$0xff] %v12501_v8  ;;  %13700 = vst [vmem:[#allocation86_spill] sm:$0xff] %v12504_v30  ;;  %v1601_v20 = vadd.f32 %v1593_v23, %v1554_v14  ;;  %v1602_v36 = vadd.f32 %v1594_v48, %v1555_v50  ;;  %v13702_v22 = vld [vmem:[#allocation88_spill] sm:$0xff]  ;;  %v12527_v23 = vld [vmem:[%s9501_s12 + $0x250] sm:$0xff] }
 0x3c6   : > { %v1603_v29 = vadd.f32 %v1595_v31, %v1556_v43  ;;  %v1604_v11 = vadd.f32 %v1596_v45, %v1557_v6  ;;  %v1605_v26 = vadd.f32 %v1597_v28, %v1558_v15  ;;  %v1606_v62 = vadd.f32 %v1598_v19, %v1559_v25  ;;  %v12521_v25 = vld [vmem:[%s9501_s12 + $0x240] sm:$0xff]  ;;  %13708 = vst [vmem:[#allocation89_spill] sm:$0xff] %v12527_v23  ;;  %v12530_v48 = vld [vmem:[%s9501_s12 + $0x258] sm:$0xff] }
 0x3c7   : > { %v1607_v17 = vadd.f32 %v1599_v18, %v1560_v7  ;;  %v1608_v59 = vadd.f32 %v1600_v57, %v1561_v33  ;;  %v1622_v38 = vmul.f32 %v13701_v42, %v1615_v39  ;;  %v1623_v40 = vmul.f32 %v13702_v22, %v1619_v24  ;;  %13706 = vst [vmem:[#allocation87_spill] sm:$0xff] %v12521_v25  ;;  %v13713_v18 = vld [vmem:[#allocation41_spill] sm:$0xff] }
 0x3c8   : > { %v1624_v53 = vmul.f32 %v13703_v13, %v1615_v39  ;;  %v1625_v14 = vmul.f32 %v13704_v37, %v1619_v24  ;;  %v1626_v50 = vmul.f32 %v12491_v44, %v1615_v39  ;;  %v1627_v43 = vmul.f32 %v12498_v60, %v1619_v24  ;;  %v12524_v37 = vld [vmem:[%s9501_s12 + $0x248] sm:$0xff]  ;;  %13709 = vst [vmem:[#allocation90_spill] sm:$0xff] %v12530_v48 }
 0x3c9   : > { %v1628_v6 = vmul.f32 %v12501_v8, %v1615_v39  ;;  %v1629_v15 = vmul.f32 %v12504_v30, %v1619_v24  ;;  %v1630_v7 = vadd.f32 %v1622_v38, %v1601_v20  ;;  %v1631_v33 = vadd.f32 %v1623_v40, %v1602_v36  ;;  %13707 = vst [vmem:[#allocation88_spill] sm:$0xff] %v12524_v37  ;;  %v13710_v24 = vld [vmem:[#allocation91_spill] sm:$0xff]  ;;  %v13712_v40 = vld [vmem:[#allocation54_spill] sm:$0xff] }
 0x3ca   : > { %v1632_v13 = vadd.f32 %v1624_v53, %v1603_v29  ;;  %v1633_v22 = vadd.f32 %v1625_v14, %v1604_v11  ;;  %v1634_v31 = vadd.f32 %v1626_v50, %v1605_v26  ;;  %v1635_v45 = vadd.f32 %v1627_v43, %v1606_v62  ;;  %v13711_v11 = vld [vmem:[#allocation92_spill] sm:$0xff] }
 0x3cb   : > { %v1636_v28 = vadd.f32 %v1628_v6, %v1607_v17  ;;  %v1637_v39 = vadd.f32 %v1629_v15, %v1608_v59  ;;  %v1669_v53 = vmul.f32 %v13710_v24, %v12475_v1  ;;  %v1670_v36 = vmul.f32 %v13711_v11, %v12478_v54 }
 0x3cc   : > { %v1671_v19 = vmul.f32 %v13712_v40, %v12475_v1  ;;  %v1672_v26 = vmul.f32 %v13713_v18, %v12478_v54 }
 0x3cd   : > { %8902 = shalt.err (!%p8899_p4)
}
 0x3ce   : > { %s8903_s13 = scalar_lea.hbm %s12514_s17, 1024  ;;  %s8907_s21 = scalar_lea.hbm %s13705_s30, 2048 }
 0x3cf   : > { %p8904_p10 = scmp.ne.s32.totalorder %s12514_s17, %s8903_s13  ;;  %p8908_p7 = scmp.lt.u32.totalorder %s12514_s17, %s13705_s30 }
 0x3d0   : > { %p8909_p11 = scmp.lt.u32.totalorder %s8907_s21, %s8903_s13  ;;  %p8911_p3 = scmp.lt.u32.totalorder %s8903_s13, %s12514_s17 }
 0x3d1   : > { %p8905_p12 = pnand %p8904_p10, %p13524_p5 }
 0x3d2   : > { %p8910_p6 = por %p8909_p11, %p8908_p7 }
 0x3d3   : > { %p8906_p13 = pneg %p8905_p12 }
 0x3d4   : > { %p8912_p9 = por %p8911_p3, %p8910_p6 }
 0x3d6   : > { %p8913_p8 = pnand %p8912_p9, %p8906_p13 }
 0x3d8   : > { %8916 = shalt.err (!%p8913_p8)
}
 0x3d9   : > { %8411 = dma.vmem_to_hbm [thread:$0]  (%p13524_p5), %s12533_s11, 1024, %s12514_s17, %s6776_s19, %s9026_s1, %s9026_s1, %s9027_s7   ;;  %v1673_v62 = vmul.f32 %v12521_v25, %v12475_v1  ;;  %v1674_v59 = vmul.f32 %v12524_v37, %v12478_v54  ;;  %v1675_v57 = vmul.f32 %v12527_v23, %v12475_v1  ;;  %v1676_v20 = vmul.f32 %v12530_v48, %v12478_v54  ;;  %v13718_v18 = vld [vmem:[#allocation93_spill] sm:$0xff]  ;;  %v13719_v23 = vld [vmem:[#allocation94_spill] sm:$0xff]  ;;  %v13721_v25 = vld [vmem:[#allocation44_spill] sm:$0xff] }
 0x3da   : > { %v12570_v17 = vld [vmem:[%s9511_s29 + $0x240] sm:$0xff]  ;;  %v12581_v29 = vld [vmem:[%s9511_s29 + $0x248] sm:$0xff]  ;;  %v12584_v42 = vld [vmem:[%s9511_s29 + $0x250] sm:$0xff]  ;;  %v1677_v14 = vadd.f32 %v1669_v53, %v1630_v7  ;;  %v1678_v50 = vadd.f32 %v1670_v36, %v1631_v33  ;;  %v1679_v43 = vadd.f32 %v1671_v19, %v1632_v13  ;;  %v1680_v6 = vadd.f32 %v1672_v26, %v1633_v22  ;;  %s13820_s17 = sld [smem:[#allocation100_spill]]  ;;  %s9029_s10 = smov [#allocation19]  }
 0x3db   : > { %13714 = vst [vmem:[#allocation91_spill] sm:$0xff] %v12570_v17  ;;  %13715 = vst [vmem:[#allocation92_spill] sm:$0xff] %v12581_v29  ;;  %v12587_v38 = vld [vmem:[%s9511_s29 + $0x258] sm:$0xff]  ;;  %v1681_v15 = vadd.f32 %v1673_v62, %v1634_v31  ;;  %v1682_v24 = vadd.f32 %v1674_v59, %v1635_v45  ;;  %v1683_v11 = vadd.f32 %v1675_v57, %v1636_v28  ;;  %v12606_v59 = vld [vmem:[%s9501_s12 + $0x2c0] sm:$0xff]  ;;  %s8921_s18 = sshll.u32 %s9029_s10, 4  ;;  %s8922_s18 = int_to_ptr.vmem [resolvable:$false] %s8921_s18 }
 0x3dc   : > { %13716 = vst [vmem:[#allocation54_spill] sm:$0xff] %v12584_v42  ;;  %13717 = vst [vmem:[#allocation41_spill] sm:$0xff] %v12587_v38  ;;  %v1684_v40 = vadd.f32 %v1676_v20, %v1637_v39  ;;  %v1698_v1 = vmul.f32 %v13718_v18, %v12481_v16  ;;  %v1699_v54 = vmul.f32 %v13719_v23, %v12484_v2  ;;  %v13720_v48 = vld [vmem:[#allocation42_spill] sm:$0xff]  ;;  %v12612_v57 = vld [vmem:[%s9501_s12 + $0x2d0] sm:$0xff]  ;;  %s8923_s6 = scalar_lea.vmem %s8922_s18, 2048 }
 0x3dd   : > { %v1700_v37 = vmul.f32 %v13720_v48, %v12481_v16  ;;  %v1701_v30 = vmul.f32 %v13721_v25, %v12484_v2  ;;  %v1702_v7 = vmul.f32 %v12570_v17, %v12481_v16  ;;  %v1703_v33 = vmul.f32 %v12581_v29, %v12484_v2  ;;  %v1733_v23 = vld [vmem:[#allocation10 + $0x16] ss:$8 sm:$0x3]  ;;  %v1809_v39 = vld [vmem:[#allocation10 + $0x17] ss:$8 sm:$0x3] }
 0x3de   : > { %v1704_v13 = vmul.f32 %v12584_v42, %v12481_v16  ;;  %v1705_v22 = vmul.f32 %v12587_v38, %v12484_v2  ;;  %v1762_v48 = vld [vmem:[#allocation11 + $0x16] ss:$8 sm:$0x3]  ;;  %v1706_v31 = vadd.f32 %v1698_v1, %v1677_v14  ;;  %v1707_v25 = vadd.f32 %v1699_v54, %v1678_v50  ;;  %v1838_v53 = vld [vmem:[#allocation11 + $0x17] ss:$8 sm:$0x3] }
 0x3df   : > { %v1708_v45 = vadd.f32 %v1700_v37, %v1679_v43  ;;  %v1709_v28 = vadd.f32 %v1701_v30, %v1680_v6  ;;  %v1710_v36 = vadd.f32 %v1702_v7, %v1681_v15  ;;  %v1711_v19 = vadd.f32 %v1703_v33, %v1682_v24  ;;  %13722 = vst [vmem:[#allocation93_spill] sm:$0xff] %v12606_v59  ;;  %v12609_v16 = vld [vmem:[%s9501_s12 + $0x2c8] sm:$0xff]  ;;  %v12615_v2 = vld [vmem:[%s9501_s12 + $0x2d8] sm:$0xff]  ;;  %v13726_v24 = vld [vmem:[#allocation49_spill] sm:$0xff] }
 0x3e0   : > { %v1712_v26 = vadd.f32 %v1704_v13, %v1683_v11  ;;  %v1713_v62 = vadd.f32 %v1705_v22, %v1684_v40  ;;  %13723 = vst [vmem:[#allocation94_spill] sm:$0xff] %v12609_v16  ;;  %13724 = vst [vmem:[#allocation42_spill] sm:$0xff] %v12612_v57  ;;  %v1738_v20 = vrot.slane %v1733_v23, %v13433_v0  ;;  %v13727_v40 = vld [vmem:[#allocation46_spill] sm:$0xff]  ;;  %v13729_v7 = vld [vmem:[#allocation47_spill] sm:$0xff]  ;;  %s13038_s11 = scalar_lea.hbm %s13820_s17, %s11249_s27 }
 0x3e1   : > { %13725 = vst [vmem:[#allocation44_spill] sm:$0xff] %v12615_v2  ;;  %v1742_v37 = vrot.slane %v1733_v23, %v13424_v5  ;;  %v1767_v30 = vrot.slane %v1762_v48, %v13433_v0  ;;  %v1771_v14 = vrot.slane %v1762_v48, %v13424_v5  ;;  %v1814_v50 = vrot.slane %v1809_v39, %v13433_v0  ;;  %v13728_v1 = vld [vmem:[#allocation50_spill] sm:$0xff]  ;;  %v12634_v13 = vld [vmem:[%s9511_s29 + $0x2c0] sm:$0xff]  ;;  %v12644_v38 = vld [vmem:[%s9511_s29 + $0x2d0] sm:$0xff] }
 0x3e2   : > { %v1818_v43 = vrot.slane %v1809_v39, %v13424_v5  ;;  %v12624_v6 = vrot.slane %v1838_v53, %v13433_v0  ;;  %v12627_v15 = vrot.slane %v1838_v53, %v13424_v5  ;;  %v1745_v11 = vmul.f32 %v13726_v24, %v1738_v20  ;;  %13730 = vst [vmem:[#allocation49_spill] sm:$0xff] %v12634_v13  ;;  %v12641_v53 = vld [vmem:[%s9511_s29 + $0x2c8] sm:$0xff]  ;;  %v12647_v24 = vld [vmem:[%s9511_s29 + $0x2d8] sm:$0xff]  ;;  %v13737_v44 = vld [vmem:[#allocation43_spill] sm:$0xff] }
 0x3e3   : > { %v1746_v18 = vmul.f32 %v13727_v40, %v1742_v37  ;;  %v1747_v54 = vmul.f32 %v13728_v1, %v1738_v20  ;;  %v1748_v33 = vmul.f32 %v13729_v7, %v1742_v37  ;;  %v1749_v22 = vmul.f32 %v12606_v59, %v1738_v20  ;;  %13731 = vst [vmem:[#allocation46_spill] sm:$0xff] %v12641_v53  ;;  %v13736_v8 = vld [vmem:[#allocation40_spill] sm:$0xff] }
 0x3e4   : > { %v1750_v23 = vmul.f32 %v12609_v16, %v1742_v37  ;;  %v1751_v48 = vmul.f32 %v12612_v57, %v1738_v20  ;;  %v1752_v39 = vmul.f32 %v12615_v2, %v1742_v37  ;;  %13732 = vst [vmem:[#allocation50_spill] sm:$0xff] %v12644_v38  ;;  %13733 = vst [vmem:[#allocation47_spill] sm:$0xff] %v12647_v24  ;;  %v13734_v20 = vld [vmem:[#allocation51_spill] sm:$0xff]  ;;  %v13735_v2 = vld [vmem:[#allocation52_spill] sm:$0xff] }
 0x3e5   : > { %v1753_v40 = vadd.f32 %v1745_v11, %v1706_v31  ;;  %v1754_v1 = vadd.f32 %v1746_v18, %v1707_v25  ;;  %v1755_v7 = vadd.f32 %v1747_v54, %v1708_v45  ;;  %v1756_v42 = vadd.f32 %v1748_v33, %v1709_v28  ;;  %v13742_v33 = vld [vmem:[#allocation45_spill] sm:$0xff] }
 0x3e6   : > { %v1757_v29 = vadd.f32 %v1749_v22, %v1710_v36  ;;  %v1758_v17 = vadd.f32 %v1750_v23, %v1711_v19  ;;  %v1759_v59 = vadd.f32 %v1751_v48, %v1712_v26  ;;  %v1760_v16 = vadd.f32 %v1752_v39, %v1713_v62  ;;  %v12658_v36 = vld [vmem:[%s9501_s12 + $0x340] sm:$0xff]  ;;  %v13743_v23 = vld [vmem:[#allocation48_spill] sm:$0xff] }
 0x3e7   : > { %v1774_v37 = vmul.f32 %v13734_v20, %v1767_v30  ;;  %v1775_v57 = vmul.f32 %v13735_v2, %v1771_v14  ;;  %v1776_v60 = vmul.f32 %v13736_v8, %v1767_v30  ;;  %v1777_v3 = vmul.f32 %v13737_v44, %v1771_v14  ;;  %13738 = vst [vmem:[#allocation51_spill] sm:$0xff] %v12658_v36  ;;  %v12661_v2 = vld [vmem:[%s9501_s12 + $0x348] sm:$0xff]  ;;  %v12664_v8 = vld [vmem:[%s9501_s12 + $0x350] sm:$0xff]  ;;  %v12667_v44 = vld [vmem:[%s9501_s12 + $0x358] sm:$0xff] }
 0x3e8   : > { %v1778_v31 = vmul.f32 %v12634_v13, %v1767_v30  ;;  %v1779_v25 = vmul.f32 %v12641_v53, %v1771_v14  ;;  %v1780_v45 = vmul.f32 %v12644_v38, %v1767_v30  ;;  %v1781_v28 = vmul.f32 %v12647_v24, %v1771_v14  ;;  %13739 = vst [vmem:[#allocation52_spill] sm:$0xff] %v12661_v2  ;;  %v12674_v39 = vld [vmem:[%s9511_s29 + $0x340] sm:$0xff]  ;;  %v13764_v24 = vld [vmem:[#allocation65_spill] sm:$0xff]  ;;  %v13765_v53 = vld [vmem:[#allocation66_spill] sm:$0xff] }
 0x3e9   : > { %v1782_v19 = vadd.f32 %v1774_v37, %v1753_v40  ;;  %v1783_v26 = vadd.f32 %v1775_v57, %v1754_v1  ;;  %v1784_v62 = vadd.f32 %v1776_v60, %v1755_v7  ;;  %v1785_v11 = vadd.f32 %v1777_v3, %v1756_v42  ;;  %13740 = vst [vmem:[#allocation40_spill] sm:$0xff] %v12664_v8  ;;  %v13744_v57 = vld [vmem:[#allocation53_spill] sm:$0xff]  ;;  %v13745_v3 = vld [vmem:[#allocation39_spill] sm:$0xff] }
 0x3ea   : > { %13741 = vst [vmem:[#allocation43_spill] sm:$0xff] %v12667_v44  ;;  %v1786_v18 = vadd.f32 %v1778_v31, %v1757_v29  ;;  %v1787_v30 = vadd.f32 %v1779_v25, %v1758_v17  ;;  %v1788_v54 = vadd.f32 %v1780_v45, %v1759_v59  ;;  %v1789_v14 = vadd.f32 %v1781_v28, %v1760_v16  ;;  %v12681_v29 = vld [vmem:[%s9511_s29 + $0x348] sm:$0xff]  ;;  %v12684_v59 = vld [vmem:[%s9511_s29 + $0x350] sm:$0xff]  ;;  %v12687_v16 = vld [vmem:[%s9511_s29 + $0x358] sm:$0xff] }
 0x3eb   : > { %v1821_v22 = vmul.f32 %v13742_v33, %v1814_v50  ;;  %v1822_v48 = vmul.f32 %v13743_v23, %v1818_v43  ;;  %v1823_v60 = vmul.f32 %v13744_v57, %v1814_v50  ;;  %v1824_v42 = vmul.f32 %v13745_v3, %v1818_v43  ;;  %13746 = vst [vmem:[#allocation45_spill] sm:$0xff] %v12674_v39  ;;  %v13750_v57 = vld [vmem:[#allocation55_spill] sm:$0xff] }
 0x3ec   : > { %v1825_v40 = vmul.f32 %v12658_v36, %v1814_v50  ;;  %v1826_v1 = vmul.f32 %v12661_v2, %v1818_v43  ;;  %v1827_v7 = vmul.f32 %v12664_v8, %v1814_v50  ;;  %v1828_v17 = vmul.f32 %v12667_v44, %v1818_v43  ;;  %13747 = vst [vmem:[#allocation48_spill] sm:$0xff] %v12681_v29  ;;  %v13751_v50 = vld [vmem:[#allocation56_spill] sm:$0xff]  ;;  %v13752_v44 = vld [vmem:[#allocation57_spill] sm:$0xff]  ;;  %v13753_v2 = vld [vmem:[#allocation58_spill] sm:$0xff] }
 0x3ed   : > { %13748 = vst [vmem:[#allocation53_spill] sm:$0xff] %v12684_v59  ;;  %13749 = vst [vmem:[#allocation39_spill] sm:$0xff] %v12687_v16  ;;  %v1829_v20 = vadd.f32 %v1821_v22, %v1782_v19  ;;  %v1830_v37 = vadd.f32 %v1822_v48, %v1783_v26  ;;  %v1831_v31 = vadd.f32 %v1823_v60, %v1784_v62  ;;  %v1961_v22 = vld [vmem:[#allocation10 + $0x21] ss:$8 sm:$0x3] }
 0x3ee   : > { %v1832_v25 = vadd.f32 %v1824_v42, %v1785_v11  ;;  %v1833_v45 = vadd.f32 %v1825_v40, %v1786_v18  ;;  %v1834_v28 = vadd.f32 %v1826_v1, %v1787_v30  ;;  %v1835_v33 = vadd.f32 %v1827_v7, %v1788_v54  ;;  %v1914_v18 = vld [vmem:[#allocation11 + $0x20] ss:$8 sm:$0x3]  ;;  %v1990_v48 = vld [vmem:[#allocation11 + $0x21] ss:$8 sm:$0x3] }
 0x3ef   : > { %v1836_v23 = vadd.f32 %v1828_v17, %v1789_v14  ;;  %v1850_v3 = vmul.f32 %v13750_v57, %v12624_v6  ;;  %v1851_v43 = vmul.f32 %v13751_v50, %v12627_v15  ;;  %v1852_v8 = vmul.f32 %v13752_v44, %v12624_v6  ;;  %v1885_v44 = vld [vmem:[#allocation10 + $0x20] ss:$8 sm:$0x3]  ;;  %v12712_v17 = vld [vmem:[%s9501_s12 + $0x3d0] sm:$0xff] }
 0x3f0   : > { %v1853_v36 = vmul.f32 %v13753_v2, %v12627_v15  ;;  %v1854_v19 = vmul.f32 %v12674_v39, %v12624_v6  ;;  %v1855_v26 = vmul.f32 %v12681_v29, %v12627_v15  ;;  %v1856_v62 = vmul.f32 %v12684_v59, %v12624_v6  ;;  %v12706_v7 = vld [vmem:[%s9501_s12 + $0x3c0] sm:$0xff]  ;;  %v12709_v6 = vld [vmem:[%s9501_s12 + $0x3c8] sm:$0xff]  ;;  %13756 = vst [vmem:[#allocation57_spill] sm:$0xff] %v12712_v17  ;;  %v13760_v50 = vld [vmem:[#allocation61_spill] sm:$0xff] }
 0x3f1   : > { %v1857_v11 = vmul.f32 %v12687_v16, %v12627_v15  ;;  %v1858_v30 = vadd.f32 %v1850_v3, %v1829_v20  ;;  %v1859_v2 = vadd.f32 %v1851_v43, %v1830_v37  ;;  %v1860_v54 = vadd.f32 %v1852_v8, %v1831_v31  ;;  %13754 = vst [vmem:[#allocation55_spill] sm:$0xff] %v12706_v7  ;;  %v12715_v15 = vld [vmem:[%s9501_s12 + $0x3d8] sm:$0xff]  ;;  %v13759_v57 = vld [vmem:[#allocation60_spill] sm:$0xff]  ;;  %v12744_v16 = vld [vmem:[%s9511_s29 + $0x3d0] sm:$0xff] }
 0x3f2   : > { %v1861_v14 = vadd.f32 %v1853_v36, %v1832_v25  ;;  %v1862_v60 = vadd.f32 %v1854_v19, %v1833_v45  ;;  %v1863_v42 = vadd.f32 %v1855_v26, %v1834_v28  ;;  %v1864_v40 = vadd.f32 %v1856_v62, %v1835_v33  ;;  %13755 = vst [vmem:[#allocation56_spill] sm:$0xff] %v12709_v6  ;;  %v13758_v33 = vld [vmem:[#allocation59_spill] sm:$0xff]  ;;  %v13761_v19 = vld [vmem:[#allocation62_spill] sm:$0xff] }
 0x3f3   : > { %v1865_v1 = vadd.f32 %v1857_v11, %v1836_v23  ;;  %13757 = vst [vmem:[#allocation58_spill] sm:$0xff] %v12715_v15  ;;  %v1890_v20 = vrot.slane %v1885_v44, %v13433_v0  ;;  %v1894_v8 = vrot.slane %v1885_v44, %v13424_v5  ;;  %v1919_v36 = vrot.slane %v1914_v18, %v13433_v0  ;;  %v12734_v62 = vld [vmem:[%s9511_s29 + $0x3c0] sm:$0xff] }
 0x3f4   : > { %v1923_v37 = vrot.slane %v1914_v18, %v13424_v5  ;;  %v1966_v31 = vrot.slane %v1961_v22, %v13433_v0  ;;  %v1970_v25 = vrot.slane %v1961_v22, %v13424_v5  ;;  %v12724_v45 = vrot.slane %v1990_v48, %v13433_v0 }
 0x3f5   : > { %v12727_v28 = vrot.slane %v1990_v48, %v13424_v5  ;;  %v1897_v23 = vmul.f32 %v13758_v33, %v1890_v20  ;;  %v1898_v3 = vmul.f32 %v13759_v57, %v1894_v8  ;;  %v1899_v43 = vmul.f32 %v13760_v50, %v1890_v20  ;;  %v12741_v48 = vld [vmem:[%s9511_s29 + $0x3c8] sm:$0xff]  ;;  %v12747_v33 = vld [vmem:[%s9511_s29 + $0x3d8] sm:$0xff] }
 0x3f6   : > { %v1900_v26 = vmul.f32 %v13761_v19, %v1894_v8  ;;  %v1901_v11 = vmul.f32 %v12706_v7, %v1890_v20  ;;  %v1902_v44 = vmul.f32 %v12709_v6, %v1894_v8  ;;  %v1903_v18 = vmul.f32 %v12712_v17, %v1890_v20  ;;  %v13762_v20 = vld [vmem:[#allocation63_spill] sm:$0xff] }
 0x3f7   : > { %v1904_v22 = vmul.f32 %v12715_v15, %v1894_v8  ;;  %v1905_v57 = vadd.f32 %v1897_v23, %v1858_v30  ;;  %v1906_v50 = vadd.f32 %v1898_v3, %v1859_v2  ;;  %v1907_v19 = vadd.f32 %v1899_v43, %v1860_v54  ;;  %v13763_v15 = vld [vmem:[#allocation64_spill] sm:$0xff] }
 0x3f8   : > { %v1908_v59 = vadd.f32 %v1900_v26, %v1861_v14  ;;  %v1909_v29 = vadd.f32 %v1901_v11, %v1862_v60  ;;  %v1910_v39 = vadd.f32 %v1902_v44, %v1863_v42  ;;  %v1911_v7 = vadd.f32 %v1903_v18, %v1864_v40  ;;  %v12758_v60 = vld [vmem:[%s9501_s12 + $0x440] sm:$0xff]  ;;  %v13767_v44 = vld [vmem:[#allocation68_spill] sm:$0xff] }
 0x3f9   : > { %v1912_v6 = vadd.f32 %v1904_v22, %v1865_v1  ;;  %v1926_v8 = vmul.f32 %v13762_v20, %v1919_v36  ;;  %v1927_v17 = vmul.f32 %v13763_v15, %v1923_v37  ;;  %v1928_v38 = vmul.f32 %v13764_v24, %v1919_v36  ;;  %v12761_v15 = vld [vmem:[%s9501_s12 + $0x448] sm:$0xff]  ;;  %v12764_v24 = vld [vmem:[%s9501_s12 + $0x450] sm:$0xff]  ;;  %v13766_v26 = vld [vmem:[#allocation67_spill] sm:$0xff] }
 0x3fa   : > { %v1929_v13 = vmul.f32 %v13765_v53, %v1923_v37  ;;  %v1930_v30 = vmul.f32 %v12734_v62, %v1919_v36  ;;  %v1931_v2 = vmul.f32 %v12741_v48, %v1923_v37  ;;  %v1932_v54 = vmul.f32 %v12744_v16, %v1919_v36  ;;  %v12767_v53 = vld [vmem:[%s9501_s12 + $0x458] sm:$0xff]  ;;  %v12774_v22 = vld [vmem:[%s9511_s29 + $0x440] sm:$0xff] }
 0x3fb   : > { %v1933_v14 = vmul.f32 %v12747_v33, %v1923_v37  ;;  %v1934_v42 = vadd.f32 %v1926_v8, %v1905_v57  ;;  %v1935_v40 = vadd.f32 %v1927_v17, %v1906_v50  ;;  %v1936_v1 = vadd.f32 %v1928_v38, %v1907_v19  ;;  %v13768_v17 = vld [vmem:[#allocation69_spill] sm:$0xff] }
 0x3fc   : > { %v1937_v23 = vadd.f32 %v1929_v13, %v1908_v59  ;;  %v1938_v3 = vadd.f32 %v1930_v30, %v1909_v29  ;;  %v1939_v36 = vadd.f32 %v1931_v2, %v1910_v39  ;;  %v1940_v43 = vadd.f32 %v1932_v54, %v1911_v7  ;;  %v13769_v13 = vld [vmem:[#allocation70_spill] sm:$0xff]  ;;  %v12781_v29 = vld [vmem:[%s9511_s29 + $0x448] sm:$0xff]  ;;  %v12784_v7 = vld [vmem:[%s9511_s29 + $0x450] sm:$0xff] }
 0x3fd   : > { %v1941_v37 = vadd.f32 %v1933_v14, %v1912_v6  ;;  %v1973_v11 = vmul.f32 %v13766_v26, %v1966_v31  ;;  %v1974_v18 = vmul.f32 %v13767_v44, %v1970_v25  ;;  %v1975_v38 = vmul.f32 %v13768_v17, %v1966_v31  ;;  %13770 = vst [vmem:[#allocation59_spill] sm:$0xff] %v12781_v29  ;;  %v12787_v6 = vld [vmem:[%s9511_s29 + $0x458] sm:$0xff] }
 0x3fe   : > { %v1976_v59 = vmul.f32 %v13769_v13, %v1970_v25  ;;  %v1977_v57 = vmul.f32 %v12758_v60, %v1966_v31  ;;  %v1978_v50 = vmul.f32 %v12761_v15, %v1970_v25  ;;  %v1979_v19 = vmul.f32 %v12764_v24, %v1966_v31  ;;  %13771 = vst [vmem:[#allocation60_spill] sm:$0xff] %v12784_v7 }
 0x3ff   : > { %v1980_v39 = vmul.f32 %v12767_v53, %v1970_v25  ;;  %13772 = vst [vmem:[#allocation61_spill] sm:$0xff] %v12787_v6  ;;  %v1981_v20 = vadd.f32 %v1973_v11, %v1934_v42  ;;  %v1982_v8 = vadd.f32 %v1974_v18, %v1935_v40  ;;  %v1983_v30 = vadd.f32 %v1975_v38, %v1936_v1  ;;  %v2066_v1 = vld [vmem:[#allocation11 + $0x22] ss:$8 sm:$0x3] }
 0x400   : > { %v1984_v2 = vadd.f32 %v1976_v59, %v1937_v23  ;;  %v1985_v54 = vadd.f32 %v1977_v57, %v1938_v3  ;;  %v1986_v14 = vadd.f32 %v1978_v50, %v1939_v36  ;;  %v1987_v26 = vadd.f32 %v1979_v19, %v1940_v43  ;;  %v2113_v43 = vld [vmem:[#allocation10 + $0x23] ss:$8 sm:$0x3]  ;;  %v7384_v50 = vld [vmem:[%s9501_s12 + $0x70] sm:$0xff]  ;;  %v7385_v19 = vld [vmem:[%s9501_s12 + $0x78] sm:$0xff] }
 0x401   : > { %v1988_v44 = vadd.f32 %v1980_v39, %v1941_v37  ;;  %v2002_v17 = vmul.f32 %v12291_v58, %v12724_v45  ;;  %v2003_v31 = vmul.f32 %v12298_v46, %v12727_v28  ;;  %v2004_v25 = vmul.f32 %v12301_v52, %v12724_v45  ;;  %v2037_v52 = vld [vmem:[#allocation10 + $0x22] ss:$8 sm:$0x3]  ;;  %v2142_v37 = vld [vmem:[#allocation11 + $0x23] ss:$8 sm:$0x3] }
 0x402   : > { %v2005_v13 = vmul.f32 %v12304_v55, %v12727_v28  ;;  %v2006_v42 = vmul.f32 %v12774_v22, %v12724_v45  ;;  %v2007_v40 = vmul.f32 %v12781_v29, %v12727_v28  ;;  %v2008_v58 = vmul.f32 %v12784_v7, %v12724_v45  ;;  %v7382_v57 = vld [vmem:[%s9501_s12 + $0x60] sm:$0xff]  ;;  %v7383_v45 = vld [vmem:[%s9501_s12 + $0x68] sm:$0xff] }
 0x403   : > { %v2009_v46 = vmul.f32 %v12787_v6, %v12727_v28  ;;  %v2010_v23 = vadd.f32 %v2002_v17, %v1981_v20  ;;  %v2011_v55 = vadd.f32 %v2003_v31, %v1982_v8  ;;  %v2012_v3 = vadd.f32 %v2004_v25, %v1983_v30  ;;  %v7390_v25 = vld [vmem:[%s9511_s29 + $0x60] sm:$0xff] }
 0x404   : > { %v2013_v36 = vadd.f32 %v2005_v13, %v1984_v2  ;;  %v2014_v11 = vadd.f32 %v2006_v42, %v1985_v54  ;;  %v2015_v18 = vadd.f32 %v2007_v40, %v1986_v14  ;;  %v2016_v38 = vadd.f32 %v2008_v58, %v1987_v26 }
 0x405   : > { %v2017_v59 = vadd.f32 %v2009_v46, %v1988_v44  ;;  %v2042_v28 = vrot.slane %v2037_v52, %v13433_v0  ;;  %v2046_v39 = vrot.slane %v2037_v52, %v13424_v5  ;;  %v2071_v20 = vrot.slane %v2066_v1, %v13433_v0  ;;  %v7391_v46 = vld [vmem:[%s9511_s29 + $0x68] sm:$0xff]  ;;  %v7392_v52 = vld [vmem:[%s9511_s29 + $0x70] sm:$0xff] }
 0x406   : > { %v2075_v8 = vrot.slane %v2066_v1, %v13424_v5  ;;  %v2118_v30 = vrot.slane %v2113_v43, %v13433_v0  ;;  %v2122_v2 = vrot.slane %v2113_v43, %v13424_v5  ;;  %v12816_v54 = vrot.slane %v2142_v37, %v13433_v0  ;;  %v7393_v1 = vld [vmem:[%s9511_s29 + $0x78] sm:$0xff] }
 0x407   : > { %v12819_v14 = vrot.slane %v2142_v37, %v13424_v5  ;;  %v2049_v26 = vmul.f32 %v12311_v12, %v2042_v28  ;;  %v2050_v44 = vmul.f32 %v12314_v10, %v2046_v39  ;;  %v2051_v17 = vmul.f32 %v12317_v4, %v2042_v28 }
 0x408   : > { %v2052_v31 = vmul.f32 %v12320_v63, %v2046_v39  ;;  %v2053_v13 = vmul.f32 %v7382_v57, %v2042_v28  ;;  %v2054_v42 = vmul.f32 %v7383_v45, %v2046_v39  ;;  %v2055_v40 = vmul.f32 %v7384_v50, %v2042_v28 }
 0x409   : > { %v2056_v58 = vmul.f32 %v7385_v19, %v2046_v39  ;;  %v2057_v43 = vadd.f32 %v2049_v26, %v2010_v23  ;;  %v2058_v37 = vadd.f32 %v2050_v44, %v2011_v55  ;;  %v2059_v6 = vadd.f32 %v2051_v17, %v2012_v3  ;;  %v7400_v39 = vld [vmem:[%s9501_s12 + $0xf0] sm:$0xff] }
 0x40a   : > { %v2060_v7 = vadd.f32 %v2052_v31, %v2013_v36  ;;  %v2061_v12 = vadd.f32 %v2053_v13, %v2014_v11  ;;  %v2062_v29 = vadd.f32 %v2054_v42, %v2015_v18  ;;  %v2063_v10 = vadd.f32 %v2055_v40, %v2016_v38  ;;  %v7398_v36 = vld [vmem:[%s9501_s12 + $0xe0] sm:$0xff]  ;;  %v7407_v42 = vld [vmem:[%s9511_s29 + $0xe8] sm:$0xff]  ;;  %v7408_v40 = vld [vmem:[%s9511_s29 + $0xf0] sm:$0xff] }
 0x40b   : > { %v2064_v4 = vadd.f32 %v2056_v58, %v2017_v59  ;;  %v2078_v63 = vmul.f32 %v12327_v9, %v2071_v20  ;;  %v2079_v57 = vmul.f32 %v12334_v51, %v2075_v8  ;;  %v2080_v45 = vmul.f32 %v12337_v41, %v2071_v20  ;;  %v7399_v59 = vld [vmem:[%s9501_s12 + $0xe8] sm:$0xff]  ;;  %v7401_v9 = vld [vmem:[%s9501_s12 + $0xf8] sm:$0xff] }
 0x40c   : > { %v2081_v50 = vmul.f32 %v12340_v49, %v2075_v8  ;;  %v2082_v23 = vmul.f32 %v7390_v25, %v2071_v20  ;;  %v2083_v19 = vmul.f32 %v7391_v46, %v2075_v8  ;;  %v2084_v55 = vmul.f32 %v7392_v52, %v2071_v20  ;;  %v7409_v58 = vld [vmem:[%s9511_s29 + $0xf8] sm:$0xff] }
 0x40d   : > { %v2085_v3 = vmul.f32 %v7393_v1, %v2075_v8  ;;  %v2086_v11 = vadd.f32 %v2078_v63, %v2057_v43  ;;  %v2087_v18 = vadd.f32 %v2079_v57, %v2058_v37  ;;  %v2088_v38 = vadd.f32 %v2080_v45, %v2059_v6  ;;  %v7406_v6 = vld [vmem:[%s9511_s29 + $0xe0] sm:$0xff] }
 0x40e   : > { %v2089_v28 = vadd.f32 %v2081_v50, %v2060_v7  ;;  %v2090_v51 = vadd.f32 %v2082_v23, %v2061_v12  ;;  %v2091_v41 = vadd.f32 %v2083_v19, %v2062_v29  ;;  %v2092_v26 = vadd.f32 %v2084_v55, %v2063_v10  ;;  %v2189_v63 = vld [vmem:[#allocation10 + $0x24] ss:$8 sm:$0x3]  ;;  %v2265_v23 = vld [vmem:[#allocation10 + $0x25] ss:$8 sm:$0x3] }
 0x40f   : > { %v2093_v49 = vadd.f32 %v2085_v3, %v2064_v4  ;;  %v2125_v44 = vmul.f32 %v12359_v34, %v2118_v30  ;;  %v2126_v20 = vmul.f32 %v12362_v47, %v2122_v2  ;;  %v2127_v8 = vmul.f32 %v12365_v35, %v2118_v30 }
 0x410   : > { %v2128_v17 = vmul.f32 %v12368_v21, %v2122_v2  ;;  %v2129_v7 = vmul.f32 %v7398_v36, %v2118_v30  ;;  %v2130_v31 = vmul.f32 %v7399_v59, %v2122_v2  ;;  %v2131_v25 = vmul.f32 %v7400_v39, %v2118_v30 }
 0x411   : > { %v2132_v13 = vmul.f32 %v7401_v9, %v2122_v2  ;;  %v2133_v46 = vadd.f32 %v2125_v44, %v2086_v11  ;;  %v2134_v29 = vadd.f32 %v2126_v20, %v2087_v18  ;;  %v2135_v52 = vadd.f32 %v2127_v8, %v2088_v38  ;;  %v7414_v11 = vld [vmem:[%s9501_s12 + $0x160] sm:$0xff]  ;;  %v7415_v18 = vld [vmem:[%s9501_s12 + $0x168] sm:$0xff]  ;;  %v7417_v38 = vld [vmem:[%s9501_s12 + $0x178] sm:$0xff] }
 0x412   : > { %v2136_v1 = vadd.f32 %v2128_v17, %v2089_v28  ;;  %v2137_v43 = vadd.f32 %v2129_v7, %v2090_v51  ;;  %v2138_v34 = vadd.f32 %v2130_v31, %v2091_v41  ;;  %v2139_v37 = vadd.f32 %v2131_v25, %v2092_v26  ;;  %v13774_v20 = vld [vmem:[#allocation72_spill] sm:$0xff]  ;;  %v13775_v17 = vld [vmem:[#allocation73_spill] sm:$0xff]  ;;  %v13776_v7 = vld [vmem:[#allocation74_spill] sm:$0xff] }
 0x413   : > { %v2140_v47 = vadd.f32 %v2132_v13, %v2093_v49  ;;  %v2154_v35 = vmul.f32 %v12387_v56, %v12816_v54  ;;  %v2155_v21 = vmul.f32 %v12394_v61, %v12819_v14  ;;  %v2156_v30 = vmul.f32 %v12397_v27, %v12816_v54  ;;  %v2218_v61 = vld [vmem:[#allocation11 + $0x24] ss:$8 sm:$0x3] }
 0x414   : > { %v2157_v2 = vmul.f32 %v12400_v32, %v12819_v14  ;;  %v2158_v12 = vmul.f32 %v7406_v6, %v12816_v54  ;;  %v2159_v10 = vmul.f32 %v7407_v42, %v12819_v14  ;;  %v2160_v4 = vmul.f32 %v7408_v40, %v12816_v54  ;;  %v2294_v32 = vld [vmem:[#allocation11 + $0x25] ss:$8 sm:$0x3]  ;;  %v7416_v54 = vld [vmem:[%s9501_s12 + $0x170] sm:$0xff] }
 0x415   : > { %v2161_v56 = vmul.f32 %v7409_v58, %v12819_v14  ;;  %v2162_v57 = vadd.f32 %v2154_v35, %v2133_v46  ;;  %v2163_v45 = vadd.f32 %v2155_v21, %v2134_v29  ;;  %v2164_v27 = vadd.f32 %v2156_v30, %v2135_v52  ;;  %v13773_v49 = vld [vmem:[#allocation71_spill] sm:$0xff]  ;;  %v7423_v46 = vld [vmem:[%s9511_s29 + $0x168] sm:$0xff]  ;;  %v7424_v29 = vld [vmem:[%s9511_s29 + $0x170] sm:$0xff] }
 0x416   : > { %v2165_v50 = vadd.f32 %v2157_v2, %v2136_v1  ;;  %v2166_v19 = vadd.f32 %v2158_v12, %v2137_v43  ;;  %v2167_v55 = vadd.f32 %v2159_v10, %v2138_v34  ;;  %v2168_v3 = vadd.f32 %v2160_v4, %v2139_v37  ;;  %v7422_v25 = vld [vmem:[%s9511_s29 + $0x160] sm:$0xff]  ;;  %v7425_v52 = vld [vmem:[%s9511_s29 + $0x178] sm:$0xff]  ;;  %v13778_v10 = vld [vmem:[#allocation76_spill] sm:$0xff] }
 0x417   : > { %v2169_v36 = vadd.f32 %v2161_v56, %v2140_v47  ;;  %v2194_v14 = vrot.slane %v2189_v63, %v13433_v0  ;;  %v2198_v28 = vrot.slane %v2189_v63, %v13424_v5  ;;  %v2223_v59 = vrot.slane %v2218_v61, %v13433_v0  ;;  %v13777_v2 = vld [vmem:[#allocation75_spill] sm:$0xff]  ;;  %v13779_v56 = vld [vmem:[#allocation77_spill] sm:$0xff] }
 0x418   : > { %v2227_v39 = vrot.slane %v2218_v61, %v13424_v5  ;;  %v2270_v9 = vrot.slane %v2265_v23, %v13433_v0  ;;  %v2274_v51 = vrot.slane %v2265_v23, %v13424_v5  ;;  %v12868_v41 = vrot.slane %v2294_v32, %v13433_v0  ;;  %v13780_v61 = vld [vmem:[#allocation78_spill] sm:$0xff] }
 0x419   : > { %v12871_v26 = vrot.slane %v2294_v32, %v13424_v5  ;;  %v2201_v44 = vmul.f32 %v13773_v49, %v2194_v14  ;;  %v2202_v8 = vmul.f32 %v13774_v20, %v2198_v28  ;;  %v2203_v6 = vmul.f32 %v13775_v17, %v2194_v14 }
 0x41a   : > { %v2204_v31 = vmul.f32 %v13776_v7, %v2198_v28  ;;  %v2205_v13 = vmul.f32 %v7414_v11, %v2194_v14  ;;  %v2206_v42 = vmul.f32 %v7415_v18, %v2198_v28  ;;  %v2207_v40 = vmul.f32 %v7416_v54, %v2194_v14  ;;  %v7432_v18 = vld [vmem:[%s9501_s12 + $0x1f0] sm:$0xff]  ;;  %v7433_v54 = vld [vmem:[%s9501_s12 + $0x1f8] sm:$0xff] }
 0x41b   : > { %v2208_v58 = vmul.f32 %v7417_v38, %v2198_v28  ;;  %v2209_v1 = vadd.f32 %v2201_v44, %v2162_v57  ;;  %v2210_v43 = vadd.f32 %v2202_v8, %v2163_v45  ;;  %v2211_v34 = vadd.f32 %v2203_v6, %v2164_v27  ;;  %v13781_v44 = vld [vmem:[#allocation79_spill] sm:$0xff]  ;;  %v13783_v8 = vld [vmem:[#allocation81_spill] sm:$0xff]  ;;  %v13784_v6 = vld [vmem:[#allocation82_spill] sm:$0xff] }
 0x41c   : > { %v2212_v37 = vadd.f32 %v2204_v31, %v2165_v50  ;;  %v2213_v47 = vadd.f32 %v2205_v13, %v2166_v19  ;;  %v2214_v35 = vadd.f32 %v2206_v42, %v2167_v55  ;;  %v2215_v21 = vadd.f32 %v2207_v40, %v2168_v3  ;;  %v7430_v50 = vld [vmem:[%s9501_s12 + $0x1e0] sm:$0xff] }
 0x41d   : > { %v2216_v30 = vadd.f32 %v2208_v58, %v2169_v36  ;;  %v2230_v12 = vmul.f32 %v13777_v2, %v2223_v59  ;;  %v2231_v4 = vmul.f32 %v13778_v10, %v2227_v39  ;;  %v2232_v63 = vmul.f32 %v13779_v56, %v2223_v59  ;;  %v7431_v36 = vld [vmem:[%s9501_s12 + $0x1e8] sm:$0xff]  ;;  %v7438_v31 = vld [vmem:[%s9511_s29 + $0x1e0] sm:$0xff] }
 0x41e   : > { %v2233_v23 = vmul.f32 %v13780_v61, %v2227_v39  ;;  %v2234_v57 = vmul.f32 %v7422_v25, %v2223_v59  ;;  %v2235_v32 = vmul.f32 %v7423_v46, %v2227_v39  ;;  %v2236_v45 = vmul.f32 %v7424_v29, %v2223_v59  ;;  %v13782_v59 = vld [vmem:[#allocation80_spill] sm:$0xff]  ;;  %v7440_v46 = vld [vmem:[%s9511_s29 + $0x1f0] sm:$0xff]  ;;  %v7441_v29 = vld [vmem:[%s9511_s29 + $0x1f8] sm:$0xff] }
 0x41f   : > { %v2237_v27 = vmul.f32 %v7425_v52, %v2227_v39  ;;  %v2238_v19 = vadd.f32 %v2230_v12, %v2209_v1  ;;  %v2239_v55 = vadd.f32 %v2231_v4, %v2210_v43  ;;  %v2240_v3 = vadd.f32 %v2232_v63, %v2211_v34  ;;  %v7439_v58 = vld [vmem:[%s9511_s29 + $0x1e8] sm:$0xff]  ;;  %v13788_v4 = vld [vmem:[#allocation86_spill] sm:$0xff] }
 0x420   : > { %v2241_v11 = vadd.f32 %v2233_v23, %v2212_v37  ;;  %v2242_v38 = vadd.f32 %v2234_v57, %v2213_v47  ;;  %v2243_v14 = vadd.f32 %v2235_v32, %v2214_v35  ;;  %v2244_v28 = vadd.f32 %v2236_v45, %v2215_v21  ;;  %v13786_v12 = vld [vmem:[#allocation84_spill] sm:$0xff] }
 0x421   : > { %v2245_v49 = vadd.f32 %v2237_v27, %v2216_v30  ;;  %v2277_v20 = vmul.f32 %v13781_v44, %v2270_v9  ;;  %v2278_v39 = vmul.f32 %v13782_v59, %v2274_v51  ;;  %v2279_v17 = vmul.f32 %v13783_v8, %v2270_v9  ;;  %v13785_v30 = vld [vmem:[#allocation83_spill] sm:$0xff] }
 0x422   : > { %v2280_v7 = vmul.f32 %v13784_v6, %v2274_v51  ;;  %v2281_v25 = vmul.f32 %v7430_v50, %v2270_v9  ;;  %v2282_v13 = vmul.f32 %v7431_v36, %v2274_v51  ;;  %v2283_v42 = vmul.f32 %v7432_v18, %v2270_v9  ;;  %v13787_v9 = vld [vmem:[#allocation85_spill] sm:$0xff]  ;;  %v2341_v32 = vld [vmem:[#allocation10 + $0x26] ss:$8 sm:$0x3] }
 0x423   : > { %v2284_v40 = vmul.f32 %v7433_v54, %v2274_v51  ;;  %v2285_v52 = vadd.f32 %v2277_v20, %v2238_v19  ;;  %v2286_v1 = vadd.f32 %v2278_v39, %v2239_v55  ;;  %v2287_v43 = vadd.f32 %v2279_v17, %v2240_v3  ;;  %v2370_v45 = vld [vmem:[#allocation11 + $0x26] ss:$8 sm:$0x3]  ;;  %v2417_v3 = vld [vmem:[#allocation10 + $0x27] ss:$8 sm:$0x3] }
 0x424   : > { %v2288_v34 = vadd.f32 %v2280_v7, %v2241_v11  ;;  %v2289_v37 = vadd.f32 %v2281_v25, %v2242_v38  ;;  %v2290_v47 = vadd.f32 %v2282_v13, %v2243_v14  ;;  %v2291_v35 = vadd.f32 %v2283_v42, %v2244_v28  ;;  %v2446_v11 = vld [vmem:[#allocation11 + $0x27] ss:$8 sm:$0x3]  ;;  %v13791_v42 = vld [vmem:[#allocation89_spill] sm:$0xff] }
 0x425   : > { %v2292_v21 = vadd.f32 %v2284_v40, %v2245_v49  ;;  %v2306_v2 = vmul.f32 %v13785_v30, %v12868_v41  ;;  %v2307_v10 = vmul.f32 %v13786_v12, %v12871_v26  ;;  %v2308_v51 = vmul.f32 %v13787_v9, %v12868_v41  ;;  %v7446_v14 = vld [vmem:[%s9501_s12 + $0x260] sm:$0xff]  ;;  %v7447_v28 = vld [vmem:[%s9501_s12 + $0x268] sm:$0xff]  ;;  %v7449_v49 = vld [vmem:[%s9501_s12 + $0x278] sm:$0xff] }
 0x426   : > { %v2309_v56 = vmul.f32 %v13788_v4, %v12871_v26  ;;  %v2310_v63 = vmul.f32 %v7438_v31, %v12868_v41  ;;  %v2311_v61 = vmul.f32 %v7439_v58, %v12871_v26  ;;  %v2312_v23 = vmul.f32 %v7440_v46, %v12868_v41  ;;  %v7448_v41 = vld [vmem:[%s9501_s12 + $0x270] sm:$0xff]  ;;  %v13789_v7 = vld [vmem:[#allocation87_spill] sm:$0xff]  ;;  %v13790_v25 = vld [vmem:[#allocation88_spill] sm:$0xff] }
 0x427   : > { %v2313_v57 = vmul.f32 %v7441_v29, %v12871_v26  ;;  %v2314_v27 = vadd.f32 %v2306_v2, %v2285_v52  ;;  %v2315_v50 = vadd.f32 %v2307_v10, %v2286_v1  ;;  %v2316_v19 = vadd.f32 %v2308_v51, %v2287_v43  ;;  %v13792_v58 = vld [vmem:[#allocation90_spill] sm:$0xff]  ;;  %v7454_v29 = vld [vmem:[%s9511_s29 + $0x260] sm:$0xff] }
 0x428   : > { %v2317_v55 = vadd.f32 %v2309_v56, %v2288_v34  ;;  %v2318_v36 = vadd.f32 %v2310_v63, %v2289_v37  ;;  %v2319_v18 = vadd.f32 %v2311_v61, %v2290_v47  ;;  %v2320_v54 = vadd.f32 %v2312_v23, %v2291_v35  ;;  %v7455_v37 = vld [vmem:[%s9511_s29 + $0x268] sm:$0xff]  ;;  %v7456_v47 = vld [vmem:[%s9511_s29 + $0x270] sm:$0xff]  ;;  %v7457_v35 = vld [vmem:[%s9511_s29 + $0x278] sm:$0xff] }
 0x429   : > { %v2321_v38 = vadd.f32 %v2313_v57, %v2292_v21  ;;  %v2346_v26 = vrot.slane %v2341_v32, %v13433_v0  ;;  %v2350_v44 = vrot.slane %v2341_v32, %v13424_v5  ;;  %v2375_v20 = vrot.slane %v2370_v45, %v13433_v0  ;;  %v13793_v56 = vld [vmem:[#allocation91_spill] sm:$0xff]  ;;  %v13794_v61 = vld [vmem:[#allocation92_spill] sm:$0xff]  ;;  %v13795_v57 = vld [vmem:[#allocation54_spill] sm:$0xff] }
 0x42a   : > { %v2379_v59 = vrot.slane %v2370_v45, %v13424_v5  ;;  %v2422_v39 = vrot.slane %v2417_v3, %v13433_v0  ;;  %v2426_v8 = vrot.slane %v2417_v3, %v13424_v5  ;;  %v12920_v17 = vrot.slane %v2446_v11, %v13433_v0  ;;  %v13796_v45 = vld [vmem:[#allocation41_spill] sm:$0xff] }
 0x42b   : > { %v12923_v6 = vrot.slane %v2446_v11, %v13424_v5  ;;  %v2353_v31 = vmul.f32 %v13789_v7, %v2346_v26  ;;  %v2354_v13 = vmul.f32 %v13790_v25, %v2350_v44  ;;  %v2355_v40 = vmul.f32 %v13791_v42, %v2346_v26 }
 0x42c   : > { %v2356_v46 = vmul.f32 %v13792_v58, %v2350_v44  ;;  %v2357_v52 = vmul.f32 %v7446_v14, %v2346_v26  ;;  %v2358_v1 = vmul.f32 %v7447_v28, %v2350_v44  ;;  %v2359_v43 = vmul.f32 %v7448_v41, %v2346_v26  ;;  %v7464_v28 = vld [vmem:[%s9501_s12 + $0x2f0] sm:$0xff]  ;;  %v7465_v41 = vld [vmem:[%s9501_s12 + $0x2f8] sm:$0xff] }
 0x42d   : > { %v2360_v34 = vmul.f32 %v7449_v49, %v2350_v44  ;;  %v2361_v21 = vadd.f32 %v2353_v31, %v2314_v27  ;;  %v2362_v30 = vadd.f32 %v2354_v13, %v2315_v50  ;;  %v2363_v2 = vadd.f32 %v2355_v40, %v2316_v19  ;;  %v13797_v31 = vld [vmem:[#allocation93_spill] sm:$0xff]  ;;  %v13799_v13 = vld [vmem:[#allocation42_spill] sm:$0xff]  ;;  %v13800_v40 = vld [vmem:[#allocation44_spill] sm:$0xff] }
 0x42e   : > { %v2364_v12 = vadd.f32 %v2356_v46, %v2317_v55  ;;  %v2365_v10 = vadd.f32 %v2357_v52, %v2318_v36  ;;  %v2366_v9 = vadd.f32 %v2358_v1, %v2319_v18  ;;  %v2367_v51 = vadd.f32 %v2359_v43, %v2320_v54  ;;  %v7462_v55 = vld [vmem:[%s9501_s12 + $0x2e0] sm:$0xff] }
 0x42f   : > { %v2368_v4 = vadd.f32 %v2360_v34, %v2321_v38  ;;  %v2382_v63 = vmul.f32 %v13793_v56, %v2375_v20  ;;  %v2383_v23 = vmul.f32 %v13794_v61, %v2379_v59  ;;  %v2384_v32 = vmul.f32 %v13795_v57, %v2375_v20  ;;  %v7463_v38 = vld [vmem:[%s9501_s12 + $0x2e8] sm:$0xff]  ;;  %v7470_v46 = vld [vmem:[%s9511_s29 + $0x2e0] sm:$0xff] }
 0x430   : > { %v2385_v3 = vmul.f32 %v13796_v45, %v2379_v59  ;;  %v2386_v27 = vmul.f32 %v7454_v29, %v2375_v20  ;;  %v2387_v11 = vmul.f32 %v7455_v37, %v2379_v59  ;;  %v2388_v50 = vmul.f32 %v7456_v47, %v2375_v20  ;;  %v13798_v20 = vld [vmem:[#allocation94_spill] sm:$0xff]  ;;  %v7471_v34 = vld [vmem:[%s9511_s29 + $0x2e8] sm:$0xff]  ;;  %v7472_v37 = vld [vmem:[%s9511_s29 + $0x2f0] sm:$0xff] }
 0x431   : > { %v2389_v19 = vmul.f32 %v7457_v35, %v2379_v59  ;;  %v2390_v36 = vadd.f32 %v2382_v63, %v2361_v21  ;;  %v2391_v18 = vadd.f32 %v2383_v23, %v2362_v30  ;;  %v2392_v54 = vadd.f32 %v2384_v32, %v2363_v2  ;;  %v7473_v47 = vld [vmem:[%s9511_s29 + $0x2f8] sm:$0xff]  ;;  %v13804_v23 = vld [vmem:[#allocation47_spill] sm:$0xff] }
 0x432   : > { %v2393_v14 = vadd.f32 %v2385_v3, %v2364_v12  ;;  %v2394_v49 = vadd.f32 %v2386_v27, %v2365_v10  ;;  %v2395_v26 = vadd.f32 %v2387_v11, %v2366_v9  ;;  %v2396_v44 = vadd.f32 %v2388_v50, %v2367_v51  ;;  %v13802_v63 = vld [vmem:[#allocation46_spill] sm:$0xff] }
 0x433   : > { %v2397_v7 = vadd.f32 %v2389_v19, %v2368_v4  ;;  %v2429_v25 = vmul.f32 %v13797_v31, %v2422_v39  ;;  %v2430_v59 = vmul.f32 %v13798_v20, %v2426_v8  ;;  %v2431_v42 = vmul.f32 %v13799_v13, %v2422_v39  ;;  %v13801_v4 = vld [vmem:[#allocation49_spill] sm:$0xff] }
 0x434   : > { %v2432_v58 = vmul.f32 %v13800_v40, %v2426_v8  ;;  %v2433_v29 = vmul.f32 %v7462_v55, %v2422_v39  ;;  %v2434_v52 = vmul.f32 %v7463_v38, %v2426_v8  ;;  %v2435_v1 = vmul.f32 %v7464_v28, %v2422_v39  ;;  %v13803_v39 = vld [vmem:[#allocation50_spill] sm:$0xff] }
 0x435   : > { %v2436_v43 = vmul.f32 %v7465_v41, %v2426_v8  ;;  %v2437_v35 = vadd.f32 %v2429_v25, %v2390_v36  ;;  %v2438_v21 = vadd.f32 %v2430_v59, %v2391_v18  ;;  %v2439_v30 = vadd.f32 %v2431_v42, %v2392_v54  ;;  %v2493_v11 = vld [vmem:[#allocation10 + $0x30] ss:$8 sm:$0x3]  ;;  %v2569_v54 = vld [vmem:[#allocation10 + $0x31] ss:$8 sm:$0x3] }
 0x436   : > { %v2440_v2 = vadd.f32 %v2432_v58, %v2393_v14  ;;  %v2441_v12 = vadd.f32 %v2433_v29, %v2394_v49  ;;  %v2442_v10 = vadd.f32 %v2434_v52, %v2395_v26  ;;  %v2443_v9 = vadd.f32 %v2435_v1, %v2396_v44  ;;  %v2522_v50 = vld [vmem:[#allocation11 + $0x30] ss:$8 sm:$0x3]  ;;  %v2598_v14 = vld [vmem:[#allocation11 + $0x31] ss:$8 sm:$0x3] }
 0x437   : > { %v2444_v51 = vadd.f32 %v2436_v43, %v2397_v7  ;;  %v2458_v56 = vmul.f32 %v13801_v4, %v12920_v17  ;;  %v2459_v61 = vmul.f32 %v13802_v63, %v12923_v6  ;;  %v2460_v8 = vmul.f32 %v13803_v39, %v12920_v17  ;;  %v7478_v26 = vld [vmem:[%s9501_s12 + $0x360] sm:$0xff]  ;;  %v7479_v44 = vld [vmem:[%s9501_s12 + $0x368] sm:$0xff]  ;;  %v7481_v7 = vld [vmem:[%s9501_s12 + $0x378] sm:$0xff] }
 0x438   : > { %v2461_v57 = vmul.f32 %v13804_v23, %v12923_v6  ;;  %v2462_v32 = vmul.f32 %v7470_v46, %v12920_v17  ;;  %v2463_v45 = vmul.f32 %v7471_v34, %v12923_v6  ;;  %v2464_v3 = vmul.f32 %v7472_v37, %v12920_v17  ;;  %v7480_v17 = vld [vmem:[%s9501_s12 + $0x370] sm:$0xff]  ;;  %v13805_v58 = vld [vmem:[#allocation51_spill] sm:$0xff]  ;;  %v13806_v29 = vld [vmem:[#allocation52_spill] sm:$0xff] }
 0x439   : > { %v2465_v27 = vmul.f32 %v7473_v47, %v12923_v6  ;;  %v2466_v19 = vadd.f32 %v2458_v56, %v2437_v35  ;;  %v2467_v55 = vadd.f32 %v2459_v61, %v2438_v21  ;;  %v2468_v36 = vadd.f32 %v2460_v8, %v2439_v30  ;;  %v13807_v1 = vld [vmem:[#allocation40_spill] sm:$0xff]  ;;  %v13808_v34 = vld [vmem:[#allocation43_spill] sm:$0xff] }
 0x43a   : > { %v2469_v18 = vadd.f32 %v2461_v57, %v2440_v2  ;;  %v2470_v38 = vadd.f32 %v2462_v32, %v2441_v12  ;;  %v2471_v28 = vadd.f32 %v2463_v45, %v2442_v10  ;;  %v2472_v41 = vadd.f32 %v2464_v3, %v2443_v9  ;;  %v7486_v47 = vld [vmem:[%s9511_s29 + $0x360] sm:$0xff]  ;;  %v7487_v12 = vld [vmem:[%s9511_s29 + $0x368] sm:$0xff]  ;;  %v7488_v10 = vld [vmem:[%s9511_s29 + $0x370] sm:$0xff] }
 0x43b   : > { %v2473_v49 = vadd.f32 %v2465_v27, %v2444_v51  ;;  %v2498_v6 = vrot.slane %v2493_v11, %v13433_v0  ;;  %v2502_v31 = vrot.slane %v2493_v11, %v13424_v5  ;;  %v2527_v25 = vrot.slane %v2522_v50, %v13433_v0  ;;  %v7489_v9 = vld [vmem:[%s9511_s29 + $0x378] sm:$0xff]  ;;  %v13809_v57 = vld [vmem:[#allocation45_spill] sm:$0xff]  ;;  %v13810_v45 = vld [vmem:[#allocation48_spill] sm:$0xff] }
 0x43c   : > { %v2531_v20 = vrot.slane %v2522_v50, %v13424_v5  ;;  %v2574_v59 = vrot.slane %v2569_v54, %v13433_v0  ;;  %v2578_v13 = vrot.slane %v2569_v54, %v13424_v5  ;;  %v12972_v42 = vrot.slane %v2598_v14, %v13433_v0  ;;  %v13811_v27 = vld [vmem:[#allocation53_spill] sm:$0xff]  ;;  %v13812_v50 = vld [vmem:[#allocation39_spill] sm:$0xff] }
 0x43d   : > { %v12975_v40 = vrot.slane %v2598_v14, %v13424_v5  ;;  %v2505_v46 = vmul.f32 %v13805_v58, %v2498_v6  ;;  %v2506_v52 = vmul.f32 %v13806_v29, %v2502_v31  ;;  %v2507_v43 = vmul.f32 %v13807_v1, %v2498_v6 }
 0x43e   : > { %v2508_v37 = vmul.f32 %v13808_v34, %v2502_v31  ;;  %v2509_v35 = vmul.f32 %v7478_v26, %v2498_v6  ;;  %v2510_v21 = vmul.f32 %v7479_v44, %v2502_v31  ;;  %v2511_v30 = vmul.f32 %v7480_v17, %v2498_v6  ;;  %v7496_v44 = vld [vmem:[%s9501_s12 + $0x3f0] sm:$0xff]  ;;  %v7497_v17 = vld [vmem:[%s9501_s12 + $0x3f8] sm:$0xff] }
 0x43f   : > { %v2512_v2 = vmul.f32 %v7481_v7, %v2502_v31  ;;  %v2513_v51 = vadd.f32 %v2505_v46, %v2466_v19  ;;  %v2514_v4 = vadd.f32 %v2506_v52, %v2467_v55  ;;  %v2515_v56 = vadd.f32 %v2507_v43, %v2468_v36  ;;  %v13813_v46 = vld [vmem:[#allocation55_spill] sm:$0xff]  ;;  %v13815_v52 = vld [vmem:[#allocation57_spill] sm:$0xff]  ;;  %v13816_v43 = vld [vmem:[#allocation58_spill] sm:$0xff] }
 0x440   : > { %v2516_v63 = vadd.f32 %v2508_v37, %v2469_v18  ;;  %v2517_v61 = vadd.f32 %v2509_v35, %v2470_v38  ;;  %v2518_v39 = vadd.f32 %v2510_v21, %v2471_v28  ;;  %v2519_v8 = vadd.f32 %v2511_v30, %v2472_v41  ;;  %v7494_v18 = vld [vmem:[%s9501_s12 + $0x3e0] sm:$0xff] }
 0x441   : > { %v2520_v23 = vadd.f32 %v2512_v2, %v2473_v49  ;;  %v2534_v32 = vmul.f32 %v13809_v57, %v2527_v25  ;;  %v2535_v3 = vmul.f32 %v13810_v45, %v2531_v20  ;;  %v2536_v11 = vmul.f32 %v13811_v27, %v2527_v25  ;;  %v7495_v49 = vld [vmem:[%s9501_s12 + $0x3e8] sm:$0xff]  ;;  %v7502_v37 = vld [vmem:[%s9511_s29 + $0x3e0] sm:$0xff]  ;;  %v2645_v27 = vld [vmem:[#allocation10 + $0x32] ss:$8 sm:$0x3] }
 0x442   : > { %v2537_v54 = vmul.f32 %v13812_v50, %v2531_v20  ;;  %v2538_v19 = vmul.f32 %v7486_v47, %v2527_v25  ;;  %v2539_v14 = vmul.f32 %v7487_v12, %v2531_v20  ;;  %v2540_v55 = vmul.f32 %v7488_v10, %v2527_v25  ;;  %v13814_v25 = vld [vmem:[#allocation56_spill] sm:$0xff]  ;;  %v7504_v12 = vld [vmem:[%s9511_s29 + $0x3f0] sm:$0xff]  ;;  %v7505_v10 = vld [vmem:[%s9511_s29 + $0x3f8] sm:$0xff] }
 0x443   : > { %v2541_v36 = vmul.f32 %v7489_v9, %v2531_v20  ;;  %v2542_v38 = vadd.f32 %v2534_v32, %v2513_v51  ;;  %v2543_v28 = vadd.f32 %v2535_v3, %v2514_v4  ;;  %v2544_v41 = vadd.f32 %v2536_v11, %v2515_v56  ;;  %v7503_v2 = vld [vmem:[%s9511_s29 + $0x3e8] sm:$0xff]  ;;  %v2674_v11 = vld [vmem:[#allocation11 + $0x32] ss:$8 sm:$0x3] }
 0x444   : > { %v2545_v26 = vadd.f32 %v2537_v54, %v2516_v63  ;;  %v2546_v7 = vadd.f32 %v2538_v19, %v2517_v61  ;;  %v2547_v6 = vadd.f32 %v2539_v14, %v2518_v39  ;;  %v2548_v31 = vadd.f32 %v2540_v55, %v2519_v8 }
 0x445   : > { %v2549_v58 = vadd.f32 %v2541_v36, %v2520_v23  ;;  %v2581_v29 = vmul.f32 %v13813_v46, %v2574_v59  ;;  %v2582_v20 = vmul.f32 %v13814_v25, %v2578_v13  ;;  %v2583_v1 = vmul.f32 %v13815_v52, %v2574_v59  ;;  %v7512_v36 = vld [vmem:[%s9501_s12 + $0x470] sm:$0xff]  ;;  %v7519_v25 = vld [vmem:[%s9511_s29 + $0x468] sm:$0xff]  ;;  %v7521_v52 = vld [vmem:[%s9511_s29 + $0x478] sm:$0xff] }
 0x446   : > { %v2584_v34 = vmul.f32 %v13816_v43, %v2578_v13  ;;  %v2585_v47 = vmul.f32 %v7494_v18, %v2574_v59  ;;  %v2586_v35 = vmul.f32 %v7495_v49, %v2578_v13  ;;  %v2587_v21 = vmul.f32 %v7496_v44, %v2574_v59  ;;  %v7513_v18 = vld [vmem:[%s9501_s12 + $0x478] sm:$0xff] }
 0x447   : > { %v2588_v30 = vmul.f32 %v7497_v17, %v2578_v13  ;;  %v2589_v9 = vadd.f32 %v2581_v29, %v2542_v38  ;;  %v2590_v51 = vadd.f32 %v2582_v20, %v2543_v28  ;;  %v2591_v4 = vadd.f32 %v2583_v1, %v2544_v41  ;;  %v7520_v20 = vld [vmem:[%s9511_s29 + $0x470] sm:$0xff] }
 0x448   : > { %v2592_v56 = vadd.f32 %v2584_v34, %v2545_v26  ;;  %v2593_v63 = vadd.f32 %v2585_v47, %v2546_v7  ;;  %v2594_v61 = vadd.f32 %v2586_v35, %v2547_v6  ;;  %v2595_v39 = vadd.f32 %v2587_v21, %v2548_v31  ;;  %v7518_v6 = vld [vmem:[%s9511_s29 + $0x460] sm:$0xff]  ;;  %v13818_v35 = vld [vmem:[#allocation60_spill] sm:$0xff] }
 0x449   : > { %v2596_v8 = vadd.f32 %v2588_v30, %v2549_v58  ;;  %v2610_v23 = vmul.f32 %v12734_v62, %v12972_v42  ;;  %v2611_v57 = vmul.f32 %v12741_v48, %v12975_v40  ;;  %v2612_v59 = vmul.f32 %v12744_v16, %v12972_v42  ;;  %v7510_v16 = vld [vmem:[%s9501_s12 + $0x460] sm:$0xff]  ;;  %v13819_v30 = vld [vmem:[#allocation61_spill] sm:$0xff] }
 0x44a   : > { %v2613_v13 = vmul.f32 %v12747_v33, %v12975_v40  ;;  %v2614_v32 = vmul.f32 %v7502_v37, %v12972_v42  ;;  %v2615_v45 = vmul.f32 %v7503_v2, %v12975_v40  ;;  %v2616_v3 = vmul.f32 %v7504_v12, %v12972_v42  ;;  %v7511_v33 = vld [vmem:[%s9501_s12 + $0x468] sm:$0xff]  ;;  %v13817_v37 = vld [vmem:[#allocation59_spill] sm:$0xff]  ;;  %s639_s12 = scalar_lea.vmem [#allocation19], %s10115_s15  ;;  %s6771_s15 = scalar_lea.sflag [#allocation4], %s9497_s14 }
 0x44b   : > { %v2617_v62 = vmul.f32 %v7505_v10, %v12975_v40  ;;  %v2618_v48 = vadd.f32 %v2610_v23, %v2589_v9  ;;  %v2619_v50 = vadd.f32 %v2611_v57, %v2590_v51  ;;  %v2620_v54 = vadd.f32 %v2612_v59, %v2591_v4  ;;  %s6794_s5 = sshll.u32 %s639_s12, 4  ;;  %s13040_s5 = int_to_ptr.vmem [resolvable:$true] %s6794_s5 }
 0x44c   : > { %v2621_v19 = vadd.f32 %v2613_v13, %v2592_v56  ;;  %v2622_v14 = vadd.f32 %v2614_v32, %v2593_v63  ;;  %v2623_v55 = vadd.f32 %v2615_v45, %v2594_v61  ;;  %v2650_v38 = vrot.slane %v2645_v27, %v13433_v0  ;;  %s8917_s27 = scalar_lea.vmem %s13040_s5, 1024  ;;  %p8924_p4 = scmp.lt.s32.totalorder %s13040_s5, %s8922_s18 }
 0x44d   : > { %v2654_v42 = vrot.slane %v2645_v27, %v13424_v5  ;;  %v2624_v40 = vadd.f32 %v2616_v3, %v2595_v39  ;;  %v2625_v28 = vadd.f32 %v2617_v62, %v2596_v8  ;;  %v2679_v41 = vrot.slane %v2674_v11, %v13433_v0  ;;  %p8918_p2 = scmp.ne.s32.totalorder %s13040_s5, %s8917_s27  ;;  %p8925_p10 = scmp.lt.s32.totalorder %s8923_s6, %s8917_s27 }
 0x44e   : > { %v2683_v26 = vrot.slane %v2674_v11, %v13424_v5  ;;  %v2657_v49 = vmul.f32 %v12758_v60, %v2650_v38  ;;  %v2659_v17 = vmul.f32 %v12764_v24, %v2650_v38  ;;  %v2661_v31 = vmul.f32 %v7510_v16, %v2650_v38 }
 0x44f   : > { %v2658_v44 = vmul.f32 %v12761_v15, %v2654_v42  ;;  %v2660_v7 = vmul.f32 %v12767_v53, %v2654_v42  ;;  %v2662_v58 = vmul.f32 %v7511_v33, %v2654_v42  ;;  %v2663_v46 = vmul.f32 %v7512_v36, %v2650_v38  ;;  %p8919_p0 = pnand %p8918_p2, %p13524_p5  ;;  %p8926_p12 = por %p8925_p10, %p8924_p4 }
 0x450   : > { %v2664_v29 = vmul.f32 %v7513_v18, %v2654_v42  ;;  %v2665_v0 = vadd.f32 %v2657_v49, %v2618_v48  ;;  %v2667_v5 = vadd.f32 %v2659_v17, %v2620_v54  ;;  %v2669_v60 = vadd.f32 %v2661_v31, %v2622_v14 }
 0x451   : > { %v2666_v1 = vadd.f32 %v2658_v44, %v2619_v50  ;;  %v2668_v43 = vadd.f32 %v2660_v7, %v2621_v19  ;;  %v2670_v34 = vadd.f32 %v2662_v58, %v2623_v55  ;;  %v2671_v15 = vadd.f32 %v2663_v46, %v2624_v40  ;;  %p8920_p1 = pneg %p8919_p0 }
 0x452   : > { %v2672_v24 = vadd.f32 %v2664_v29, %v2625_v28  ;;  %v2686_v53 = vmul.f32 %v12774_v22, %v2679_v41  ;;  %v2687_v47 = vmul.f32 %v13817_v37, %v2683_v26  ;;  %v2688_v21 = vmul.f32 %v13818_v35, %v2679_v41 }
 0x453   : > { %v2689_v2 = vmul.f32 %v13819_v30, %v2683_v26  ;;  %v2690_v12 = vmul.f32 %v7518_v6, %v2679_v41  ;;  %v2691_v10 = vmul.f32 %v7519_v25, %v2683_v26  ;;  %v2692_v9 = vmul.f32 %v7520_v20, %v2679_v41  ;;  %p8927_p13 = pnand %p8926_p12, %p8920_p1 }
 0x454   : > { %v2693_v51 = vmul.f32 %v7521_v52, %v2683_v26  ;;  %v2694_v4 = vadd.f32 %v2686_v53, %v2665_v0  ;;  %v2695_v56 = vadd.f32 %v2687_v47, %v2666_v1  ;;  %v2696_v63 = vadd.f32 %v2688_v21, %v2667_v5 }
 0x455   : > { %v2697_v61 = vadd.f32 %v2689_v2, %v2668_v43  ;;  %v2698_v22 = vadd.f32 %v2690_v12, %v2669_v60  ;;  %v2699_v39 = vadd.f32 %v2691_v10, %v2670_v34  ;;  %v2700_v8 = vadd.f32 %v2692_v9, %v2671_v15 }
 0x456   : > { %v2701_v23 = vadd.f32 %v2693_v51, %v2672_v24  ;;  %2702 = vst [vmem:[%s639_s12] sm:$0xff] %v2694_v4  ;;  %2703 = vst [vmem:[%s639_s12 + $0x8] sm:$0xff] %v2695_v56 }
 0x457   : > { %2704 = vst [vmem:[%s639_s12 + $0x10] sm:$0xff] %v2696_v63  ;;  %2705 = vst [vmem:[%s639_s12 + $0x18] sm:$0xff] %v2697_v61 }
 0x458   : > { %2706 = vst [vmem:[%s639_s12 + $0x20] sm:$0xff] %v2698_v22  ;;  %2707 = vst [vmem:[%s639_s12 + $0x28] sm:$0xff] %v2699_v39 }
 0x459   : > { %2708 = vst [vmem:[%s639_s12 + $0x30] sm:$0xff] %v2700_v8  ;;  %2709 = vst [vmem:[%s639_s12 + $0x38] sm:$0xff] %v2701_v23 }
 0x45a   : > { %8930 = shalt.err (!%p8927_p13)
}
 0x45b   : > { %s8931_s13 = scalar_lea.hbm %s13038_s11, 1024  ;;  %s8935_s21 = scalar_lea.hbm %s13820_s17, 2048 }
 0x45c   : > { %p8932_p7 = scmp.ne.s32.totalorder %s13038_s11, %s8931_s13  ;;  %p8936_p3 = scmp.lt.u32.totalorder %s13038_s11, %s13820_s17 }
 0x45d   : > { %p8937_p9 = scmp.lt.u32.totalorder %s8935_s21, %s8931_s13  ;;  %p8939_p2 = scmp.lt.u32.totalorder %s8931_s13, %s13038_s11 }
 0x45e   : > { %p8933_p11 = pnand %p8932_p7, %p13524_p5 }
 0x45f   : > { %p8938_p8 = por %p8937_p9, %p8936_p3 }
 0x460   : > { %p8934_p6 = pneg %p8933_p11 }
 0x461   : > { %p8940_p0 = por %p8939_p2, %p8938_p8 }
 0x463   : > { %p8941_p1 = pnand %p8940_p0, %p8934_p6 }
 0x465   : > { %8944 = shalt.err (!%p8941_p1)
}
 0x466   : > { %8409 = dma.vmem_to_hbm [thread:$0]  (%p13524_p5), %s13040_s5, 1024, %s13038_s11, %s6771_s15, %s9026_s1, %s9026_s1, %s9027_s7  }
 0x467 PF: > { %s13821_s12 = sld [smem:[#allocation32_spill]]  ;;  %s13822_s29 = sld [smem:[#allocation38_spill]] }
 0x468   : > { %p13824_p10 = scmp.ge.s32.totalorder %s9011_s24, 2 }
 0x46d   : > { %s6841_s19 = sand.u32 1, %s13821_s12   ;;  %p13823_p4 = scmp.ne.s32.totalorder %s13822_s29, 0 }
 0x46e   : > { %s6842_s27 = scalar_lea.sflag [#allocation4], %s6841_s19 }
 0x46f   : > { %p8448_p12 = pnand %p13824_p10, %p13823_p4 }
 0x471   : > { %8990 = dma.done.wait (!%p8448_p12), %s6842_s27, 1024  }
 0x472   : > { %8992 = vsyncadd (!%p8448_p12), %s6842_s27, 4294966272  ;;  %s13825_s25 = sadd.s32 4294967294, %s9011_s24  }
 0x473   : > { %s6850_s10 = sand.u32 1, %s13825_s25  }
 0x474   : > { %s6851_s18 = scalar_lea.sflag [#allocation21], %s6850_s10 }
 0x475   : > { %8994 = dma.done.wait (!%p8448_p12), %s6851_s18, 2048  }
 0x476   : > { %8996 = vsyncadd (!%p8448_p12), %s6851_s18, 4294965248  ;;  %s13826_s24 = sld [smem:[#allocation35_spill]]  ;;  %s13827_s14 = sld [smem:[#allocation36_spill]] }
 0x477   : > { %s13828_s21 = smov %s9003_s22  ;;  %s13829_s22 = smov %s9007_s23 }
 0x47c   : > { %p38_p5 = scmp.ge.s32.totalorder %s13826_s24, 4   ;;  %s13830_s23 = smov %s13827_s14 }
 0x47e   :  { %40 = sbr.rel (!%p38_p5) target bundleno = 23 (0x17), region = 458 }
 0x485   :  { %6865 = vsyncpa [#allocation3], 1 }
 0x486   :  { %6867 = vsyncpa [#allocation3 + $0x1], 1 }
 0x487   :  { %6868 = vsyncpa [#allocation6], 1 }
 0x488   :  { %6870 = vsyncpa [#allocation6 + $0x1], 1 }
 0x489   :  { %6871 = vsyncpa [#allocation9], 1 }
 0x48a   :  { %6873 = vsyncpa [#allocation9 + $0x1], 1 }
 0x48b   :  { %6874 = vsyncpa [#allocation12], 1 }
 0x48c   :  { %6875 = vsyncpa [#allocation15], 1 }
 0x48d   :  { %6876 = vsyncpa [#allocation18], 1 }
 0x48e   :  { %6877 = vsyncpa [#allocation4], 1 }
 0x48f   :  { %6879 = vsyncpa [#allocation4 + $0x1], 1 }
 0x490   :  { %6880 = vsyncpa [#allocation21], 1 }
 0x491   :  { %6882 = vsyncpa [#allocation21 + $0x1], 1 }

</bundles_post_ra>
